<compile_context>
chip_gen: v7x
topology: tpu7x:2x2x1
jax: 0.10.0
libtpu: 0.0.40
codegen_flags: <defaults>
</compile_context>

<pallas_src>
import functools

import jax
import jax.numpy as jnp
from jax.experimental import pallas as pl
from jax.experimental.pallas import tpu as pltpu


BN_EPS = 1e-5

# Toy-scale tiles.  At real BarlowTwins sizes (2048 -> 8192 -> 8192) bump to e.g.
# (TK=512, TN=1024) on v7x (64 MiB VMEM) or (TK=1024, TN=2048) on v6e (128 MiB),
# keeping multiples of 128 for MXU/lane alignment, and raise vmem_limit_bytes.
TILE_K = 128
TILE_N = 128


def _pick_tile(dim, pref):
    """Largest tile <= pref that divides dim exactly (falls back to full dim)."""
    if dim <= pref:
        return dim
    return pref if dim % pref == 0 else dim


# ----------------------------------------------------------------------------
# Kernels
# ----------------------------------------------------------------------------

def _pool_kernel(x_ref, o_ref, *, inv_hw):
    """Spatial mean-pool one channel tile: (M, TC, HW) f32 -> (M, TC) bf16."""
    pooled = jnp.sum(x_ref[...].astype(jnp.float32), axis=-1) * inv_hw
    o_ref[...] = pooled.astype(o_ref.dtype)


def _linear_bn_relu_kernel(*refs, bn, affine, relu, view_size, num_views):
    """Fused Linear + (optional per-view BatchNorm1d, training stats) + (optional ReLU)."""
    if affine:
        x_ref, w_ref, b_ref, g_ref, beta_ref, o_ref, acc_ref = refs
    else:
        x_ref, w_ref, b_ref, o_ref, acc_ref = refs
        g_ref = beta_ref = None

    k = pl.program_id(1)

    @pl.when(k == 0)
    def _():
        acc_ref[...] = jnp.zeros_like(acc_ref)

    acc_ref[...] += jnp.dot(x_ref[...], w_ref[...],
                            preferred_element_type=jnp.float32)

    @pl.when(k == pl.num_programs(1) - 1)
    def _():
        h = acc_ref[...] + b_ref[...].astype(jnp.float32)        # (M, TN) f32
        if bn:
            parts = []
            for v in range(num_views):                           # static unroll
                lo = v * view_size                               # sublane-aligned when view_size % 8 == 0
                hv = h[lo:lo + view_size, :]
                mean = jnp.mean(hv, axis=0, keepdims=True)
                var = jnp.mean((hv - mean) ** 2, axis=0, keepdims=True)
                hv = (hv - mean) * jax.lax.rsqrt(var + BN_EPS)
                if affine:
                    hv = (hv * g_ref[...].astype(jnp.float32)
                          + beta_ref[...].astype(jnp.float32))
                parts.append(hv)
            h = jnp.concatenate(parts, axis=0)
        if relu:
            h = jnp.maximum(h, 0.0)
        # Single lane-dense full-block store.
        o_ref[...] = h.astype(o_ref.dtype)


# ----------------------------------------------------------------------------
# Layer wrappers
# ----------------------------------------------------------------------------

def spatial_mean_pool(x):
    """x: (M, C, H, W) f32 -> pooled (M, C) bf16.  Image is read from HBM once."""
    m, c, h, w = x.shape
    hw = h * w
    x3 = x.reshape(m, c, hw)                      # contiguous view, no copy
    tc = _pick_tile(c, TILE_K)
    kernel = functools.partial(_pool_kernel, inv_hw=1.0 / float(hw))
    return pl.pallas_call(
        kernel,
        out_shape=jax.ShapeDtypeStruct((m, c), jnp.bfloat16),
        grid_spec=pltpu.PrefetchScalarGridSpec(
            num_scalar_prefetch=0,
            grid=(c // tc,),
            in_specs=[pl.BlockSpec((m, tc, hw), lambda k: (0, k, 0))],
            out_specs=pl.BlockSpec((m, tc), lambda k: (0, k)),
        ),
        compiler_params=pltpu.CompilerParams(
            dimension_semantics=("parallel",)),
    )(x3)


def fused_linear(x, layer, *, bn, affine, relu, num_views, out_dtype):
    m, kdim = x.shape
    assert m % num_views == 0
    view_size = m // num_views
    nout = layer["w"].shape[1]
    tk = _pick_tile(kdim, TILE_K)
    tn = _pick_tile(nout, TILE_N)
    grid = (nout // tn, kdim // tk)

    in_arrays = [x.astype(jnp.bfloat16), layer["w"], layer["b"]]
    in_specs = [
        pl.BlockSpec((m, tk), lambda j, k: (0, k)),
        pl.BlockSpec((tk, tn), lambda j, k: (k, j)),
        pl.BlockSpec((1, tn), lambda j, k: (0, j)),
    ]
    if affine:
        in_arrays += [layer["gamma"], layer["beta"]]
        in_specs += [pl.BlockSpec((1, tn), lambda j, k: (0, j))] * 2

    kernel = functools.partial(_linear_bn_relu_kernel, bn=bn, affine=affine,
                               relu=relu, view_size=view_size, num_views=num_views)
    return pl.pallas_call(
        kernel,
        out_shape=jax.ShapeDtypeStruct((m, nout), out_dtype),
        grid_spec=pltpu.PrefetchScalarGridSpec(
            num_scalar_prefetch=0,
            grid=grid,
            in_specs=in_specs,
            out_specs=pl.BlockSpec((m, tn), lambda j, k: (0, j)),
            scratch_shapes=[pltpu.VMEM((m, tn), jnp.float32)],
        ),
        compiler_params=pltpu.CompilerParams(
            dimension_semantics=("parallel", "arbitrary")),
    )(*in_arrays)


def backbone_forward(params, x):
    """x: (M, C, H, W) -> features (M, feat_dim) bf16.  Pool once, then Linear+ReLU."""
    pooled = spatial_mean_pool(x)                                   # (M, C) bf16
    return fused_linear(pooled, params, bn=False, affine=False, relu=True,
                        num_views=1, out_dtype=jnp.bfloat16)


def projection_head_forward(params, f, *, num_views):
    # Linear -> BN(affine) -> ReLU
    h = fused_linear(f, params["l1"], bn=True, affine=True, relu=True,
                     num_views=num_views, out_dtype=jnp.bfloat16)
    # Linear -> BN(affine) -> ReLU
    h = fused_linear(h, params["l2"], bn=True, affine=True, relu=True,
                     num_views=num_views, out_dtype=jnp.bfloat16)
    # Linear -> BN(affine=False)
    z = fused_linear(h, params["l3"], bn=True, affine=False, relu=False,
                     num_views=num_views, out_dtype=jnp.float32)
    return z


def barlow_twins_forward(params, x1, x2=None, get_features=False):
    if get_features:
        return backbone_forward(params["backbone"], x1).astype(jnp.float32)
    n = x1.shape[0]
    # Both views share one weight stream (weights DMA'd from HBM once per layer).
    x = jnp.concatenate([x1, x2], axis=0)                          # (2N, C, H, W)
    f = backbone_forward(params["backbone"], x)                    # (2N, FEAT) bf16
    z = projection_head_forward(params["proj"], f, num_views=2)    # per-view BN inside
    f1 = f[:n].astype(jnp.float32)
    z1, z2 = z[:n], z[n:]
    return z1, z2, f1


# ----------------------------------------------------------------------------
# Deterministic parameter init (weights bf16, bias/gamma/beta f32)
# ----------------------------------------------------------------------------

def init_params(key, in_channels, feat_dim, hidden_dim, output_dim):
    ks = jax.random.split(key, 4)

    def lin(k, fan_in, fan_out):
        scale = 1.0 / jnp.sqrt(jnp.float32(fan_in))
        w = jax.random.uniform(k, (fan_in, fan_out), jnp.float32, -scale, scale)
        return w.astype(jnp.bfloat16), jnp.zeros((1, fan_out), jnp.float32)

    def dense_layer(k, fan_in, fan_out):
        w, b = lin(k, fan_in, fan_out)
        return {"w": w, "b": b,
                "gamma": jnp.ones((1, fan_out), jnp.float32),
                "beta": jnp.zeros((1, fan_out), jnp.float32)}

    bw, bb = lin(ks[0], in_channels, feat_dim)
    return {
        "backbone": {"w": bw, "b": bb},
        "proj": {
            "l1": dense_layer(ks[1], feat_dim, hidden_dim),
            "l2": dense_layer(ks[2], hidden_dim, hidden_dim),
            "l3": dense_layer(ks[3], hidden_dim, output_dim),
        },
    }


# ----------------------------------------------------------------------------
# Pure-JAX reference (f32) for a sanity check
# ----------------------------------------------------------------------------

def _reference_forward(params, x1, x2):
    def backbone(x):
        pooled = jnp.mean(x.reshape(x.shape[0], x.shape[1], -1), axis=-1)
        h = pooled @ params["backbone"]["w"].astype(jnp.float32) + params["backbone"]["b"]
        return jnp.maximum(h, 0.0)

    def bn(h, gamma=None, beta=None):
        mean = jnp.mean(h, axis=0, keepdims=True)
        var = jnp.mean((h - mean) ** 2, axis=0, keepdims=True)
        h = (h - mean) * jax.lax.rsqrt(var + BN_EPS)
        if gamma is not None:
            h = h * gamma + beta
        return h

    def proj(f):
        p = params["proj"]
        h = jnp.maximum(bn(f @ p["l1"]["w"].astype(jnp.float32) + p["l1"]["b"],
                           p["l1"]["gamma"], p["l1"]["beta"]), 0.0)
        h = jnp.maximum(bn(h @ p["l2"]["w"].astype(jnp.float32) + p["l2"]["b"],
                           p["l2"]["gamma"], p["l2"]["beta"]), 0.0)
        return bn(h @ p["l3"]["w"].astype(jnp.float32) + p["l3"]["b"])

    f1, f2 = backbone(x1), backbone(x2)
    return proj(f1), proj(f2), f1


# ----------------------------------------------------------------------------
# Main
# ----------------------------------------------------------------------------

if __name__ == "__main__":
    # Small shapes standing in for (2048 -> 8192 -> 8192); feature dims are
    # multiples of 128 so output stores are lane-dense and the grids are real.
    N, C, H, W = 8, 256, 8, 8
    FEAT, HIDDEN, OUT = 128, 256, 256

    key = jax.random.PRNGKey(0)
    k_param, k_x1, k_x2 = jax.random.split(key, 3)

    params = init_params(k_param, C, FEAT, HIDDEN, OUT)
    x1 = jax.random.normal(k_x1, (N, C, H, W), jnp.float32)
    x2 = jax.random.normal(k_x2, (N, C, H, W), jnp.float32)

    z1, z2, f1 = jax.jit(barlow_twins_forward)(params, x1, x2)
    jax.block_until_ready((z1, z2, f1))

    assert z1.shape == (N, OUT) and z2.shape == (N, OUT) and f1.shape == (N, FEAT)
    assert bool(jnp.all(jnp.isfinite(z1))) and bool(jnp.all(jnp.isfinite(z2)))

    # get_features path (backbone only).
    feats = jax.jit(functools.partial(barlow_twins_forward, get_features=True))(params, x1)
    jax.block_until_ready(feats)
    assert feats.shape == (N, FEAT) and bool(jnp.all(jnp.isfinite(feats)))

    # Sanity check against a pure-JAX f32 reference (bf16 tolerance).
    z1_ref, z2_ref, f1_ref = _reference_forward(params, x1, x2)

    def rel_err(a, b):
        return float(jnp.linalg.norm(a.astype(jnp.float32) - b)
                     / (jnp.linalg.norm(b) + 1e-8))

    assert rel_err(f1, f1_ref) < 0.1, rel_err(f1, f1_ref)
    assert rel_err(z1, z1_ref) < 0.1, rel_err(z1, z1_ref)
    assert rel_err(z2, z2_ref) < 0.1, rel_err(z2, z2_ref)

    print("KERNEL_OK")
</pallas_src>

<mosaic_0001>
module attributes {stable_mosaic.version = 11 : i64} {
  func.func @_pool_kernel(%arg0: i32, %arg1: memref<16x128x64xf32, #tpu.memory_space<vmem>>, %arg2: memref<16x128xbf16, #tpu.memory_space<vmem>>) attributes {dimension_semantics = [#tpu.dimension_semantics<parallel>], iteration_bounds = array<i64: 2>, scalar_prefetch = 0 : i64, scratch_operands = 0 : i64, tpu.core_type = #tpu.core_type<tc>, window_params = [{transform_indices = @transform_0, window_bounds = array<i64: 16, 128, 64>}, {transform_indices = @transform_1, window_bounds = array<i64: 16, 128>}]} {
    %c0 = arith.constant 0 : index
    %c0_0 = arith.constant 0 : index
    %c0_1 = arith.constant 0 : index
    %0 = vector.load %arg1[%c0, %c0_0, %c0_1] : memref<16x128x64xf32, #tpu.memory_space<vmem>>, vector<16x128x64xf32>
    %cst = arith.constant dense<0.000000e+00> : vector<16x128xf32>
    %1 = vector.multi_reduction <add>, %0, %cst [2] : vector<16x128x64xf32> to vector<16x128xf32>
    %cst_2 = arith.constant 1.562500e-02 : f32
    %2 = vector.broadcast %cst_2 : f32 to vector<16x128xf32>
    %3 = arith.mulf %1, %2 : vector<16x128xf32>
    %4 = arith.truncf %3 : vector<16x128xf32> to vector<16x128xbf16>
    %c0_3 = arith.constant 0 : index
    %c0_4 = arith.constant 0 : index
    %5 = vector.load %arg2[%c0_3, %c0_4] : memref<16x128xbf16, #tpu.memory_space<vmem>>, vector<16x128xbf16>
    tpu.vector_store %arg2[%c0_3, %c0_4], %4 {strides = array<i32>} : memref<16x128xbf16, #tpu.memory_space<vmem>>, vector<16x128xbf16>,
    return
  }
  func.func @transform_0(%arg0: i32) -> (i32, i32, i32) {
    %c0_i32 = arith.constant 0 : i32
    %c0_i32_0 = arith.constant 0 : i32
    %c0_i32_1 = arith.constant 0 : i32
    return %c0_i32, %arg0, %c0_i32_0 : i32, i32, i32
  }
  func.func @transform_1(%arg0: i32) -> (i32, i32) {
    %c0_i32 = arith.constant 0 : i32
    %c0_i32_0 = arith.constant 0 : i32
    return %c0_i32, %arg0 : i32, i32
  }
}

module attributes {stable_mosaic.version = 11 : i64} {
  func.func @_linear_bn_relu_kernel(%arg0: i32, %arg1: i32, %arg2: memref<16x128xbf16, #tpu.memory_space<vmem>>, %arg3: memref<128x128xbf16, #tpu.memory_space<vmem>>, %arg4: memref<1x128xf32, #tpu.memory_space<vmem>>, %arg5: memref<16x128xbf16, #tpu.memory_space<vmem>>, %arg6: memref<16x128xf32, #tpu.memory_space<vmem>>) attributes {dimension_semantics = [#tpu.dimension_semantics<parallel>, #tpu.dimension_semantics<arbitrary>], iteration_bounds = array<i64: 1, 2>, scalar_prefetch = 0 : i64, scratch_operands = 1 : i64, tpu.core_type = #tpu.core_type<tc>, window_params = [{transform_indices = @transform_0, window_bounds = array<i64: 16, 128>}, {transform_indices = @transform_1, window_bounds = array<i64: 128, 128>}, {transform_indices = @transform_2, window_bounds = array<i64: 1, 128>}, {transform_indices = @transform_3, window_bounds = array<i64: 16, 128>}]} {
    %c0_i32 = arith.constant 0 : i32
    %0 = arith.cmpi eq, %arg1, %c0_i32 : i32
    %1 = arith.extui %0 : i1 to i32
    %c0_i32_0 = arith.constant 0 : i32
    %2 = arith.cmpi ne, %1, %c0_i32_0 : i32
    scf.if %2 {
      %cst_9 = arith.constant 0.000000e+00 : f32
      %12 = vector.broadcast %cst_9 : f32 to vector<16x128xf32>
      %c0_10 = arith.constant 0 : index
      %c0_11 = arith.constant 0 : index
      %13 = vector.load %arg6[%c0_10, %c0_11] : memref<16x128xf32, #tpu.memory_space<vmem>>, vector<16x128xf32>
      tpu.vector_store %arg6[%c0_10, %c0_11], %12 {strides = array<i32>} : memref<16x128xf32, #tpu.memory_space<vmem>>, vector<16x128xf32>,
    } else {
    }
    %c0 = arith.constant 0 : index
    %c0_1 = arith.constant 0 : index
    %3 = vector.load %arg6[%c0, %c0_1] : memref<16x128xf32, #tpu.memory_space<vmem>>, vector<16x128xf32>
    %c0_2 = arith.constant 0 : index
    %c0_3 = arith.constant 0 : index
    %4 = vector.load %arg2[%c0_2, %c0_3] : memref<16x128xbf16, #tpu.memory_space<vmem>>, vector<16x128xbf16>
    %c0_4 = arith.constant 0 : index
    %c0_5 = arith.constant 0 : index
    %5 = vector.load %arg3[%c0_4, %c0_5] : memref<128x128xbf16, #tpu.memory_space<vmem>>, vector<128x128xbf16>
    %cst = arith.constant dense<0.000000e+00> : vector<16x128xf32>
    %6 = tpu.matmul %4, %5, %cst {dimension_numbers = #tpu.dot_dimension_numbers<[1], [0], [0], [1], [0, 0, 1, 1], [], []>} : vector<16x128xbf16>, vector<128x128xbf16>, vector<16x128xf32> -> vector<16x128xf32>
    %7 = arith.addf %3, %6 : vector<16x128xf32>
    %c0_6 = arith.constant 0 : index
    %c0_7 = arith.constant 0 : index
    %8 = vector.load %arg6[%c0_6, %c0_7] : memref<16x128xf32, #tpu.memory_space<vmem>>, vector<16x128xf32>
    tpu.vector_store %arg6[%c0_6, %c0_7], %7 {strides = array<i32>} : memref<16x128xf32, #tpu.memory_space<vmem>>, vector<16x128xf32>,
    %c1_i32 = arith.constant 1 : i32
    %9 = arith.cmpi eq, %arg1, %c1_i32 : i32
    %10 = arith.extui %9 : i1 to i32
    %c0_i32_8 = arith.constant 0 : i32
    %11 = arith.cmpi ne, %10, %c0_i32_8 : i32
    scf.if %11 {
      %c0_9 = arith.constant 0 : index
      %c0_10 = arith.constant 0 : index
      %12 = vector.load %arg6[%c0_9, %c0_10] : memref<16x128xf32, #tpu.memory_space<vmem>>, vector<16x128xf32>
      %c0_11 = arith.constant 0 : index
      %c0_12 = arith.constant 0 : index
      %13 = vector.load %arg4[%c0_11, %c0_12] : memref<1x128xf32, #tpu.memory_space<vmem>>, vector<1x128xf32>
      %14 = vector.broadcast %13 : vector<1x128xf32> to vector<16x128xf32>
      %15 = arith.addf %12, %14 : vector<16x128xf32>
      %cst_13 = arith.constant 0.000000e+00 : f32
      %16 = vector.broadcast %cst_13 : f32 to vector<16x128xf32>
      %17 = arith.maximumf %15, %16 : vector<16x128xf32>
      %18 = arith.truncf %17 : vector<16x128xf32> to vector<16x128xbf16>
      %c0_14 = arith.constant 0 : index
      %c0_15 = arith.constant 0 : index
      %19 = vector.load %arg5[%c0_14, %c0_15] : memref<16x128xbf16, #tpu.memory_space<vmem>>, vector<16x128xbf16>
      tpu.vector_store %arg5[%c0_14, %c0_15], %18 {strides = array<i32>} : memref<16x128xbf16, #tpu.memory_space<vmem>>, vector<16x128xbf16>,
    } else {
    }
    return
  }
  func.func @transform_0(%arg0: i32, %arg1: i32) -> (i32, i32) {
    %c0_i32 = arith.constant 0 : i32
    %c0_i32_0 = arith.constant 0 : i32
    return %c0_i32, %arg1 : i32, i32
  }
  func.func @transform_1(%arg0: i32, %arg1: i32) -> (i32, i32) {
    %c0_i32 = arith.constant 0 : i32
    return %arg1, %arg0 : i32, i32
  }
  func.func @transform_2(%arg0: i32, %arg1: i32) -> (i32, i32) {
    %c0_i32 = arith.constant 0 : i32
    %c0_i32_0 = arith.constant 0 : i32
    return %c0_i32, %arg0 : i32, i32
  }
  func.func @transform_3(%arg0: i32, %arg1: i32) -> (i32, i32) {
    %c0_i32 = arith.constant 0 : i32
    %c0_i32_0 = arith.constant 0 : i32
    return %c0_i32, %arg0 : i32, i32
  }
}

module attributes {stable_mosaic.version = 11 : i64} {
  func.func @_linear_bn_relu_kernel(%arg0: i32, %arg1: i32, %arg2: memref<16x128xbf16, #tpu.memory_space<vmem>>, %arg3: memref<128x128xbf16, #tpu.memory_space<vmem>>, %arg4: memref<1x128xf32, #tpu.memory_space<vmem>>, %arg5: memref<1x128xf32, #tpu.memory_space<vmem>>, %arg6: memref<1x128xf32, #tpu.memory_space<vmem>>, %arg7: memref<16x128xbf16, #tpu.memory_space<vmem>>, %arg8: memref<16x128xf32, #tpu.memory_space<vmem>>) attributes {dimension_semantics = [#tpu.dimension_semantics<parallel>, #tpu.dimension_semantics<arbitrary>], iteration_bounds = array<i64: 2, 1>, scalar_prefetch = 0 : i64, scratch_operands = 1 : i64, tpu.core_type = #tpu.core_type<tc>, window_params = [{transform_indices = @transform_0, window_bounds = array<i64: 16, 128>}, {transform_indices = @transform_1, window_bounds = array<i64: 128, 128>}, {transform_indices = @transform_2, window_bounds = array<i64: 1, 128>}, {transform_indices = @transform_3, window_bounds = array<i64: 1, 128>}, {transform_indices = @transform_4, window_bounds = array<i64: 1, 128>}, {transform_indices = @transform_5, window_bounds = array<i64: 16, 128>}]} {
    %c0_i32 = arith.constant 0 : i32
    %0 = arith.cmpi eq, %arg1, %c0_i32 : i32
    %1 = arith.extui %0 : i1 to i32
    %c0_i32_0 = arith.constant 0 : i32
    %2 = arith.cmpi ne, %1, %c0_i32_0 : i32
    scf.if %2 {
      %cst_10 = arith.constant 0.000000e+00 : f32
      %12 = vector.broadcast %cst_10 : f32 to vector<16x128xf32>
      %c0_11 = arith.constant 0 : index
      %c0_12 = arith.constant 0 : index
      %13 = vector.load %arg8[%c0_11, %c0_12] : memref<16x128xf32, #tpu.memory_space<vmem>>, vector<16x128xf32>
      tpu.vector_store %arg8[%c0_11, %c0_12], %12 {strides = array<i32>} : memref<16x128xf32, #tpu.memory_space<vmem>>, vector<16x128xf32>,
    } else {
    }
    %c0 = arith.constant 0 : index
    %c0_1 = arith.constant 0 : index
    %3 = vector.load %arg8[%c0, %c0_1] : memref<16x128xf32, #tpu.memory_space<vmem>>, vector<16x128xf32>
    %c0_2 = arith.constant 0 : index
    %c0_3 = arith.constant 0 : index
    %4 = vector.load %arg2[%c0_2, %c0_3] : memref<16x128xbf16, #tpu.memory_space<vmem>>, vector<16x128xbf16>
    %c0_4 = arith.constant 0 : index
    %c0_5 = arith.constant 0 : index
    %5 = vector.load %arg3[%c0_4, %c0_5] : memref<128x128xbf16, #tpu.memory_space<vmem>>, vector<128x128xbf16>
    %cst = arith.constant dense<0.000000e+00> : vector<16x128xf32>
    %6 = tpu.matmul %4, %5, %cst {dimension_numbers = #tpu.dot_dimension_numbers<[1], [0], [0], [1], [0, 0, 1, 1], [], []>} : vector<16x128xbf16>, vector<128x128xbf16>, vector<16x128xf32> -> vector<16x128xf32>
    %7 = arith.addf %3, %6 : vector<16x128xf32>
    %c0_6 = arith.constant 0 : index
    %c0_7 = arith.constant 0 : index
    %8 = vector.load %arg8[%c0_6, %c0_7] : memref<16x128xf32, #tpu.memory_space<vmem>>, vector<16x128xf32>
    tpu.vector_store %arg8[%c0_6, %c0_7], %7 {strides = array<i32>} : memref<16x128xf32, #tpu.memory_space<vmem>>, vector<16x128xf32>,
    %c0_i32_8 = arith.constant 0 : i32
    %9 = arith.cmpi eq, %arg1, %c0_i32_8 : i32
    %10 = arith.extui %9 : i1 to i32
    %c0_i32_9 = arith.constant 0 : i32
    %11 = arith.cmpi ne, %10, %c0_i32_9 : i32
    scf.if %11 {
      %c0_10 = arith.constant 0 : index
      %c0_11 = arith.constant 0 : index
      %12 = vector.load %arg8[%c0_10, %c0_11] : memref<16x128xf32, #tpu.memory_space<vmem>>, vector<16x128xf32>
      %c0_12 = arith.constant 0 : index
      %c0_13 = arith.constant 0 : index
      %13 = vector.load %arg4[%c0_12, %c0_13] : memref<1x128xf32, #tpu.memory_space<vmem>>, vector<1x128xf32>
      %14 = vector.broadcast %13 : vector<1x128xf32> to vector<16x128xf32>
      %15 = arith.addf %12, %14 : vector<16x128xf32>
      %16 = vector.extract_strided_slice %15 {offsets = [0, 0], sizes = [8, 128], strides = [1, 1]} : vector<16x128xf32> to vector<8x128xf32>
      %cst_14 = arith.constant dense<0.000000e+00> : vector<128xf32>
      %17 = vector.multi_reduction <add>, %16, %cst_14 [0] : vector<8x128xf32> to vector<128xf32>
      %18 = vector.shape_cast %17 : vector<128xf32> to vector<1x128xf32>
      %cst_15 = arith.constant 8.000000e+00 : f32
      %19 = vector.broadcast %cst_15 : f32 to vector<1x128xf32>
      %20 = arith.divf %18, %19 : vector<1x128xf32>
      %21 = vector.broadcast %20 : vector<1x128xf32> to vector<8x128xf32>
      %22 = arith.subf %16, %21 : vector<8x128xf32>
      %23 = arith.mulf %22, %22 : vector<8x128xf32>
      %cst_16 = arith.constant dense<0.000000e+00> : vector<128xf32>
      %24 = vector.multi_reduction <add>, %23, %cst_16 [0] : vector<8x128xf32> to vector<128xf32>
      %25 = vector.shape_cast %24 : vector<128xf32> to vector<1x128xf32>
      %cst_17 = arith.constant 8.000000e+00 : f32
      %26 = vector.broadcast %cst_17 : f32 to vector<1x128xf32>
      %27 = arith.divf %25, %26 : vector<1x128xf32>
      %28 = vector.broadcast %20 : vector<1x128xf32> to vector<8x128xf32>
      %29 = arith.subf %16, %28 : vector<8x128xf32>
      %cst_18 = arith.constant 9.99999974E-6 : f32
      %30 = vector.broadcast %cst_18 : f32 to vector<1x128xf32>
      %31 = arith.addf %27, %30 : vector<1x128xf32>
      %32 = math.rsqrt %31 : vector<1x128xf32>
      %33 = vector.broadcast %32 : vector<1x128xf32> to vector<8x128xf32>
      %34 = arith.mulf %29, %33 : vector<8x128xf32>
      %c0_19 = arith.constant 0 : index
      %c0_20 = arith.constant 0 : index
      %35 = vector.load %arg5[%c0_19, %c0_20] : memref<1x128xf32, #tpu.memory_space<vmem>>, vector<1x128xf32>
      %36 = vector.broadcast %35 : vector<1x128xf32> to vector<8x128xf32>
      %37 = arith.mulf %34, %36 : vector<8x128xf32>
      %c0_21 = arith.constant 0 : index
      %c0_22 = arith.constant 0 : index
      %38 = vector.load %arg6[%c0_21, %c0_22] : memref<1x128xf32, #tpu.memory_space<vmem>>, vector<1x128xf32>
      %39 = vector.broadcast %38 : vector<1x128xf32> to vector<8x128xf32>
      %40 = arith.addf %37, %39 : vector<8x128xf32>
      %41 = vector.extract_strided_slice %15 {offsets = [8, 0], sizes = [8, 128], strides = [1, 1]} : vector<16x128xf32> to vector<8x128xf32>
      %cst_23 = arith.constant dense<0.000000e+00> : vector<128xf32>
      %42 = vector.multi_reduction <add>, %41, %cst_23 [0] : vector<8x128xf32> to vector<128xf32>
      %43 = vector.shape_cast %42 : vector<128xf32> to vector<1x128xf32>
      %cst_24 = arith.constant 8.000000e+00 : f32
      %44 = vector.broadcast %cst_24 : f32 to vector<1x128xf32>
      %45 = arith.divf %43, %44 : vector<1x128xf32>
      %46 = vector.broadcast %45 : vector<1x128xf32> to vector<8x128xf32>
      %47 = arith.subf %41, %46 : vector<8x128xf32>
      %48 = arith.mulf %47, %47 : vector<8x128xf32>
      %cst_25 = arith.constant dense<0.000000e+00> : vector<128xf32>
      %49 = vector.multi_reduction <add>, %48, %cst_25 [0] : vector<8x128xf32> to vector<128xf32>
      %50 = vector.shape_cast %49 : vector<128xf32> to vector<1x128xf32>
      %cst_26 = arith.constant 8.000000e+00 : f32
      %51 = vector.broadcast %cst_26 : f32 to vector<1x128xf32>
      %52 = arith.divf %50, %51 : vector<1x128xf32>
      %53 = vector.broadcast %45 : vector<1x128xf32> to vector<8x128xf32>
      %54 = arith.subf %41, %53 : vector<8x128xf32>
      %cst_27 = arith.constant 9.99999974E-6 : f32
      %55 = vector.broadcast %cst_27 : f32 to vector<1x128xf32>
      %56 = arith.addf %52, %55 : vector<1x128xf32>
      %57 = math.rsqrt %56 : vector<1x128xf32>
      %58 = vector.broadcast %57 : vector<1x128xf32> to vector<8x128xf32>
      %59 = arith.mulf %54, %58 : vector<8x128xf32>
      %c0_28 = arith.constant 0 : index
      %c0_29 = arith.constant 0 : index
      %60 = vector.load %arg5[%c0_28, %c0_29] : memref<1x128xf32, #tpu.memory_space<vmem>>, vector<1x128xf32>
      %61 = vector.broadcast %60 : vector<1x128xf32> to vector<8x128xf32>
      %62 = arith.mulf %59, %61 : vector<8x128xf32>
      %c0_30 = arith.constant 0 : index
      %c0_31 = arith.constant 0 : index
      %63 = vector.load %arg6[%c0_30, %c0_31] : memref<1x128xf32, #tpu.memory_space<vmem>>, vector<1x128xf32>
      %64 = vector.broadcast %63 : vector<1x128xf32> to vector<8x128xf32>
      %65 = arith.addf %62, %64 : vector<8x128xf32>
      %66 = tpu.concatenate %40, %65 in 0 : vector<8x128xf32>, vector<8x128xf32> -> vector<16x128xf32>
      %cst_32 = arith.constant 0.000000e+00 : f32
      %67 = vector.broadcast %cst_32 : f32 to vector<16x128xf32>
      %68 = arith.maximumf %66, %67 : vector<16x128xf32>
      %69 = arith.truncf %68 : vector<16x128xf32> to vector<16x128xbf16>
      %c0_33 = arith.constant 0 : index
      %c0_34 = arith.constant 0 : index
      %70 = vector.load %arg7[%c0_33, %c0_34] : memref<16x128xbf16, #tpu.memory_space<vmem>>, vector<16x128xbf16>
      tpu.vector_store %arg7[%c0_33, %c0_34], %69 {strides = array<i32>} : memref<16x128xbf16, #tpu.memory_space<vmem>>, vector<16x128xbf16>,
    } else {
    }
    return
  }
  func.func @transform_0(%arg0: i32, %arg1: i32) -> (i32, i32) {
    %c0_i32 = arith.constant 0 : i32
    %c0_i32_0 = arith.constant 0 : i32
    return %c0_i32, %arg1 : i32, i32
  }
  func.func @transform_1(%arg0: i32, %arg1: i32) -> (i32, i32) {
    %c0_i32 = arith.constant 0 : i32
    return %arg1, %arg0 : i32, i32
  }
  func.func @transform_2(%arg0: i32, %arg1: i32) -> (i32, i32) {
    %c0_i32 = arith.constant 0 : i32
    %c0_i32_0 = arith.constant 0 : i32
    return %c0_i32, %arg0 : i32, i32
  }
  func.func @transform_3(%arg0: i32, %arg1: i32) -> (i32, i32) {
    %c0_i32 = arith.constant 0 : i32
    %c0_i32_0 = arith.constant 0 : i32
    return %c0_i32, %arg0 : i32, i32
  }
  func.func @transform_4(%arg0: i32, %arg1: i32) -> (i32, i32) {
    %c0_i32 = arith.constant 0 : i32
    %c0_i32_0 = arith.constant 0 : i32
    return %c0_i32, %arg0 : i32, i32
  }
  func.func @transform_5(%arg0: i32, %arg1: i32) -> (i32, i32) {
    %c0_i32 = arith.constant 0 : i32
    %c0_i32_0 = arith.constant 0 : i32
    return %c0_i32, %arg0 : i32, i32
  }
}

module attributes {stable_mosaic.version = 11 : i64} {
  func.func @_linear_bn_relu_kernel(%arg0: i32, %arg1: i32, %arg2: memref<16x128xbf16, #tpu.memory_space<vmem>>, %arg3: memref<128x128xbf16, #tpu.memory_space<vmem>>, %arg4: memref<1x128xf32, #tpu.memory_space<vmem>>, %arg5: memref<1x128xf32, #tpu.memory_space<vmem>>, %arg6: memref<1x128xf32, #tpu.memory_space<vmem>>, %arg7: memref<16x128xbf16, #tpu.memory_space<vmem>>, %arg8: memref<16x128xf32, #tpu.memory_space<vmem>>) attributes {dimension_semantics = [#tpu.dimension_semantics<parallel>, #tpu.dimension_semantics<arbitrary>], iteration_bounds = array<i64: 2, 2>, scalar_prefetch = 0 : i64, scratch_operands = 1 : i64, tpu.core_type = #tpu.core_type<tc>, window_params = [{transform_indices = @transform_0, window_bounds = array<i64: 16, 128>}, {transform_indices = @transform_1, window_bounds = array<i64: 128, 128>}, {transform_indices = @transform_2, window_bounds = array<i64: 1, 128>}, {transform_indices = @transform_3, window_bounds = array<i64: 1, 128>}, {transform_indices = @transform_4, window_bounds = array<i64: 1, 128>}, {transform_indices = @transform_5, window_bounds = array<i64: 16, 128>}]} {
    %c0_i32 = arith.constant 0 : i32
    %0 = arith.cmpi eq, %arg1, %c0_i32 : i32
    %1 = arith.extui %0 : i1 to i32
    %c0_i32_0 = arith.constant 0 : i32
    %2 = arith.cmpi ne, %1, %c0_i32_0 : i32
    scf.if %2 {
      %cst_9 = arith.constant 0.000000e+00 : f32
      %12 = vector.broadcast %cst_9 : f32 to vector<16x128xf32>
      %c0_10 = arith.constant 0 : index
      %c0_11 = arith.constant 0 : index
      %13 = vector.load %arg8[%c0_10, %c0_11] : memref<16x128xf32, #tpu.memory_space<vmem>>, vector<16x128xf32>
      tpu.vector_store %arg8[%c0_10, %c0_11], %12 {strides = array<i32>} : memref<16x128xf32, #tpu.memory_space<vmem>>, vector<16x128xf32>,
    } else {
    }
    %c0 = arith.constant 0 : index
    %c0_1 = arith.constant 0 : index
    %3 = vector.load %arg8[%c0, %c0_1] : memref<16x128xf32, #tpu.memory_space<vmem>>, vector<16x128xf32>
    %c0_2 = arith.constant 0 : index
    %c0_3 = arith.constant 0 : index
    %4 = vector.load %arg2[%c0_2, %c0_3] : memref<16x128xbf16, #tpu.memory_space<vmem>>, vector<16x128xbf16>
    %c0_4 = arith.constant 0 : index
    %c0_5 = arith.constant 0 : index
    %5 = vector.load %arg3[%c0_4, %c0_5] : memref<128x128xbf16, #tpu.memory_space<vmem>>, vector<128x128xbf16>
    %cst = arith.constant dense<0.000000e+00> : vector<16x128xf32>
    %6 = tpu.matmul %4, %5, %cst {dimension_numbers = #tpu.dot_dimension_numbers<[1], [0], [0], [1], [0, 0, 1, 1], [], []>} : vector<16x128xbf16>, vector<128x128xbf16>, vector<16x128xf32> -> vector<16x128xf32>
    %7 = arith.addf %3, %6 : vector<16x128xf32>
    %c0_6 = arith.constant 0 : index
    %c0_7 = arith.constant 0 : index
    %8 = vector.load %arg8[%c0_6, %c0_7] : memref<16x128xf32, #tpu.memory_space<vmem>>, vector<16x128xf32>
    tpu.vector_store %arg8[%c0_6, %c0_7], %7 {strides = array<i32>} : memref<16x128xf32, #tpu.memory_space<vmem>>, vector<16x128xf32>,
    %c1_i32 = arith.constant 1 : i32
    %9 = arith.cmpi eq, %arg1, %c1_i32 : i32
    %10 = arith.extui %9 : i1 to i32
    %c0_i32_8 = arith.constant 0 : i32
    %11 = arith.cmpi ne, %10, %c0_i32_8 : i32
    scf.if %11 {
      %c0_9 = arith.constant 0 : index
      %c0_10 = arith.constant 0 : index
      %12 = vector.load %arg8[%c0_9, %c0_10] : memref<16x128xf32, #tpu.memory_space<vmem>>, vector<16x128xf32>
      %c0_11 = arith.constant 0 : index
      %c0_12 = arith.constant 0 : index
      %13 = vector.load %arg4[%c0_11, %c0_12] : memref<1x128xf32, #tpu.memory_space<vmem>>, vector<1x128xf32>
      %14 = vector.broadcast %13 : vector<1x128xf32> to vector<16x128xf32>
      %15 = arith.addf %12, %14 : vector<16x128xf32>
      %16 = vector.extract_strided_slice %15 {offsets = [0, 0], sizes = [8, 128], strides = [1, 1]} : vector<16x128xf32> to vector<8x128xf32>
      %cst_13 = arith.constant dense<0.000000e+00> : vector<128xf32>
      %17 = vector.multi_reduction <add>, %16, %cst_13 [0] : vector<8x128xf32> to vector<128xf32>
      %18 = vector.shape_cast %17 : vector<128xf32> to vector<1x128xf32>
      %cst_14 = arith.constant 8.000000e+00 : f32
      %19 = vector.broadcast %cst_14 : f32 to vector<1x128xf32>
      %20 = arith.divf %18, %19 : vector<1x128xf32>
      %21 = vector.broadcast %20 : vector<1x128xf32> to vector<8x128xf32>
      %22 = arith.subf %16, %21 : vector<8x128xf32>
      %23 = arith.mulf %22, %22 : vector<8x128xf32>
      %cst_15 = arith.constant dense<0.000000e+00> : vector<128xf32>
      %24 = vector.multi_reduction <add>, %23, %cst_15 [0] : vector<8x128xf32> to vector<128xf32>
      %25 = vector.shape_cast %24 : vector<128xf32> to vector<1x128xf32>
      %cst_16 = arith.constant 8.000000e+00 : f32
      %26 = vector.broadcast %cst_16 : f32 to vector<1x128xf32>
      %27 = arith.divf %25, %26 : vector<1x128xf32>
      %28 = vector.broadcast %20 : vector<1x128xf32> to vector<8x128xf32>
      %29 = arith.subf %16, %28 : vector<8x128xf32>
      %cst_17 = arith.constant 9.99999974E-6 : f32
      %30 = vector.broadcast %cst_17 : f32 to vector<1x128xf32>
      %31 = arith.addf %27, %30 : vector<1x128xf32>
      %32 = math.rsqrt %31 : vector<1x128xf32>
      %33 = vector.broadcast %32 : vector<1x128xf32> to vector<8x128xf32>
      %34 = arith.mulf %29, %33 : vector<8x128xf32>
      %c0_18 = arith.constant 0 : index
      %c0_19 = arith.constant 0 : index
      %35 = vector.load %arg5[%c0_18, %c0_19] : memref<1x128xf32, #tpu.memory_space<vmem>>, vector<1x128xf32>
      %36 = vector.broadcast %35 : vector<1x128xf32> to vector<8x128xf32>
      %37 = arith.mulf %34, %36 : vector<8x128xf32>
      %c0_20 = arith.constant 0 : index
      %c0_21 = arith.constant 0 : index
      %38 = vector.load %arg6[%c0_20, %c0_21] : memref<1x128xf32, #tpu.memory_space<vmem>>, vector<1x128xf32>
      %39 = vector.broadcast %38 : vector<1x128xf32> to vector<8x128xf32>
      %40 = arith.addf %37, %39 : vector<8x128xf32>
      %41 = vector.extract_strided_slice %15 {offsets = [8, 0], sizes = [8, 128], strides = [1, 1]} : vector<16x128xf32> to vector<8x128xf32>
      %cst_22 = arith.constant dense<0.000000e+00> : vector<128xf32>
      %42 = vector.multi_reduction <add>, %41, %cst_22 [0] : vector<8x128xf32> to vector<128xf32>
      %43 = vector.shape_cast %42 : vector<128xf32> to vector<1x128xf32>
      %cst_23 = arith.constant 8.000000e+00 : f32
      %44 = vector.broadcast %cst_23 : f32 to vector<1x128xf32>
      %45 = arith.divf %43, %44 : vector<1x128xf32>
      %46 = vector.broadcast %45 : vector<1x128xf32> to vector<8x128xf32>
      %47 = arith.subf %41, %46 : vector<8x128xf32>
      %48 = arith.mulf %47, %47 : vector<8x128xf32>
      %cst_24 = arith.constant dense<0.000000e+00> : vector<128xf32>
      %49 = vector.multi_reduction <add>, %48, %cst_24 [0] : vector<8x128xf32> to vector<128xf32>
      %50 = vector.shape_cast %49 : vector<128xf32> to vector<1x128xf32>
      %cst_25 = arith.constant 8.000000e+00 : f32
      %51 = vector.broadcast %cst_25 : f32 to vector<1x128xf32>
      %52 = arith.divf %50, %51 : vector<1x128xf32>
      %53 = vector.broadcast %45 : vector<1x128xf32> to vector<8x128xf32>
      %54 = arith.subf %41, %53 : vector<8x128xf32>
      %cst_26 = arith.constant 9.99999974E-6 : f32
      %55 = vector.broadcast %cst_26 : f32 to vector<1x128xf32>
      %56 = arith.addf %52, %55 : vector<1x128xf32>
      %57 = math.rsqrt %56 : vector<1x128xf32>
      %58 = vector.broadcast %57 : vector<1x128xf32> to vector<8x128xf32>
      %59 = arith.mulf %54, %58 : vector<8x128xf32>
      %c0_27 = arith.constant 0 : index
      %c0_28 = arith.constant 0 : index
      %60 = vector.load %arg5[%c0_27, %c0_28] : memref<1x128xf32, #tpu.memory_space<vmem>>, vector<1x128xf32>
      %61 = vector.broadcast %60 : vector<1x128xf32> to vector<8x128xf32>
      %62 = arith.mulf %59, %61 : vector<8x128xf32>
      %c0_29 = arith.constant 0 : index
      %c0_30 = arith.constant 0 : index
      %63 = vector.load %arg6[%c0_29, %c0_30] : memref<1x128xf32, #tpu.memory_space<vmem>>, vector<1x128xf32>
      %64 = vector.broadcast %63 : vector<1x128xf32> to vector<8x128xf32>
      %65 = arith.addf %62, %64 : vector<8x128xf32>
      %66 = tpu.concatenate %40, %65 in 0 : vector<8x128xf32>, vector<8x128xf32> -> vector<16x128xf32>
      %cst_31 = arith.constant 0.000000e+00 : f32
      %67 = vector.broadcast %cst_31 : f32 to vector<16x128xf32>
      %68 = arith.maximumf %66, %67 : vector<16x128xf32>
      %69 = arith.truncf %68 : vector<16x128xf32> to vector<16x128xbf16>
      %c0_32 = arith.constant 0 : index
      %c0_33 = arith.constant 0 : index
      %70 = vector.load %arg7[%c0_32, %c0_33] : memref<16x128xbf16, #tpu.memory_space<vmem>>, vector<16x128xbf16>
      tpu.vector_store %arg7[%c0_32, %c0_33], %69 {strides = array<i32>} : memref<16x128xbf16, #tpu.memory_space<vmem>>, vector<16x128xbf16>,
    } else {
    }
    return
  }
  func.func @transform_0(%arg0: i32, %arg1: i32) -> (i32, i32) {
    %c0_i32 = arith.constant 0 : i32
    %c0_i32_0 = arith.constant 0 : i32
    return %c0_i32, %arg1 : i32, i32
  }
  func.func @transform_1(%arg0: i32, %arg1: i32) -> (i32, i32) {
    %c0_i32 = arith.constant 0 : i32
    return %arg1, %arg0 : i32, i32
  }
  func.func @transform_2(%arg0: i32, %arg1: i32) -> (i32, i32) {
    %c0_i32 = arith.constant 0 : i32
    %c0_i32_0 = arith.constant 0 : i32
    return %c0_i32, %arg0 : i32, i32
  }
  func.func @transform_3(%arg0: i32, %arg1: i32) -> (i32, i32) {
    %c0_i32 = arith.constant 0 : i32
    %c0_i32_0 = arith.constant 0 : i32
    return %c0_i32, %arg0 : i32, i32
  }
  func.func @transform_4(%arg0: i32, %arg1: i32) -> (i32, i32) {
    %c0_i32 = arith.constant 0 : i32
    %c0_i32_0 = arith.constant 0 : i32
    return %c0_i32, %arg0 : i32, i32
  }
  func.func @transform_5(%arg0: i32, %arg1: i32) -> (i32, i32) {
    %c0_i32 = arith.constant 0 : i32
    %c0_i32_0 = arith.constant 0 : i32
    return %c0_i32, %arg0 : i32, i32
  }
}

module attributes {stable_mosaic.version = 11 : i64} {
  func.func @_linear_bn_relu_kernel(%arg0: i32, %arg1: i32, %arg2: memref<16x128xbf16, #tpu.memory_space<vmem>>, %arg3: memref<128x128xbf16, #tpu.memory_space<vmem>>, %arg4: memref<1x128xf32, #tpu.memory_space<vmem>>, %arg5: memref<16x128xf32, #tpu.memory_space<vmem>>, %arg6: memref<16x128xf32, #tpu.memory_space<vmem>>) attributes {dimension_semantics = [#tpu.dimension_semantics<parallel>, #tpu.dimension_semantics<arbitrary>], iteration_bounds = array<i64: 2, 2>, scalar_prefetch = 0 : i64, scratch_operands = 1 : i64, tpu.core_type = #tpu.core_type<tc>, window_params = [{transform_indices = @transform_0, window_bounds = array<i64: 16, 128>}, {transform_indices = @transform_1, window_bounds = array<i64: 128, 128>}, {transform_indices = @transform_2, window_bounds = array<i64: 1, 128>}, {transform_indices = @transform_3, window_bounds = array<i64: 16, 128>}]} {
    %c0_i32 = arith.constant 0 : i32
    %0 = arith.cmpi eq, %arg1, %c0_i32 : i32
    %1 = arith.extui %0 : i1 to i32
    %c0_i32_0 = arith.constant 0 : i32
    %2 = arith.cmpi ne, %1, %c0_i32_0 : i32
    scf.if %2 {
      %cst_9 = arith.constant 0.000000e+00 : f32
      %12 = vector.broadcast %cst_9 : f32 to vector<16x128xf32>
      %c0_10 = arith.constant 0 : index
      %c0_11 = arith.constant 0 : index
      %13 = vector.load %arg6[%c0_10, %c0_11] : memref<16x128xf32, #tpu.memory_space<vmem>>, vector<16x128xf32>
      tpu.vector_store %arg6[%c0_10, %c0_11], %12 {strides = array<i32>} : memref<16x128xf32, #tpu.memory_space<vmem>>, vector<16x128xf32>,
    } else {
    }
    %c0 = arith.constant 0 : index
    %c0_1 = arith.constant 0 : index
    %3 = vector.load %arg6[%c0, %c0_1] : memref<16x128xf32, #tpu.memory_space<vmem>>, vector<16x128xf32>
    %c0_2 = arith.constant 0 : index
    %c0_3 = arith.constant 0 : index
    %4 = vector.load %arg2[%c0_2, %c0_3] : memref<16x128xbf16, #tpu.memory_space<vmem>>, vector<16x128xbf16>
    %c0_4 = arith.constant 0 : index
    %c0_5 = arith.constant 0 : index
    %5 = vector.load %arg3[%c0_4, %c0_5] : memref<128x128xbf16, #tpu.memory_space<vmem>>, vector<128x128xbf16>
    %cst = arith.constant dense<0.000000e+00> : vector<16x128xf32>
    %6 = tpu.matmul %4, %5, %cst {dimension_numbers = #tpu.dot_dimension_numbers<[1], [0], [0], [1], [0, 0, 1, 1], [], []>} : vector<16x128xbf16>, vector<128x128xbf16>, vector<16x128xf32> -> vector<16x128xf32>
    %7 = arith.addf %3, %6 : vector<16x128xf32>
    %c0_6 = arith.constant 0 : index
    %c0_7 = arith.constant 0 : index
    %8 = vector.load %arg6[%c0_6, %c0_7] : memref<16x128xf32, #tpu.memory_space<vmem>>, vector<16x128xf32>
    tpu.vector_store %arg6[%c0_6, %c0_7], %7 {strides = array<i32>} : memref<16x128xf32, #tpu.memory_space<vmem>>, vector<16x128xf32>,
    %c1_i32 = arith.constant 1 : i32
    %9 = arith.cmpi eq, %arg1, %c1_i32 : i32
    %10 = arith.extui %9 : i1 to i32
    %c0_i32_8 = arith.constant 0 : i32
    %11 = arith.cmpi ne, %10, %c0_i32_8 : i32
    scf.if %11 {
      %c0_9 = arith.constant 0 : index
      %c0_10 = arith.constant 0 : index
      %12 = vector.load %arg6[%c0_9, %c0_10] : memref<16x128xf32, #tpu.memory_space<vmem>>, vector<16x128xf32>
      %c0_11 = arith.constant 0 : index
      %c0_12 = arith.constant 0 : index
      %13 = vector.load %arg4[%c0_11, %c0_12] : memref<1x128xf32, #tpu.memory_space<vmem>>, vector<1x128xf32>
      %14 = vector.broadcast %13 : vector<1x128xf32> to vector<16x128xf32>
      %15 = arith.addf %12, %14 : vector<16x128xf32>
      %16 = vector.extract_strided_slice %15 {offsets = [0, 0], sizes = [8, 128], strides = [1, 1]} : vector<16x128xf32> to vector<8x128xf32>
      %cst_13 = arith.constant dense<0.000000e+00> : vector<128xf32>
      %17 = vector.multi_reduction <add>, %16, %cst_13 [0] : vector<8x128xf32> to vector<128xf32>
      %18 = vector.shape_cast %17 : vector<128xf32> to vector<1x128xf32>
      %cst_14 = arith.constant 8.000000e+00 : f32
      %19 = vector.broadcast %cst_14 : f32 to vector<1x128xf32>
      %20 = arith.divf %18, %19 : vector<1x128xf32>
      %21 = vector.broadcast %20 : vector<1x128xf32> to vector<8x128xf32>
      %22 = arith.subf %16, %21 : vector<8x128xf32>
      %23 = arith.mulf %22, %22 : vector<8x128xf32>
      %cst_15 = arith.constant dense<0.000000e+00> : vector<128xf32>
      %24 = vector.multi_reduction <add>, %23, %cst_15 [0] : vector<8x128xf32> to vector<128xf32>
      %25 = vector.shape_cast %24 : vector<128xf32> to vector<1x128xf32>
      %cst_16 = arith.constant 8.000000e+00 : f32
      %26 = vector.broadcast %cst_16 : f32 to vector<1x128xf32>
      %27 = arith.divf %25, %26 : vector<1x128xf32>
      %28 = vector.broadcast %20 : vector<1x128xf32> to vector<8x128xf32>
      %29 = arith.subf %16, %28 : vector<8x128xf32>
      %cst_17 = arith.constant 9.99999974E-6 : f32
      %30 = vector.broadcast %cst_17 : f32 to vector<1x128xf32>
      %31 = arith.addf %27, %30 : vector<1x128xf32>
      %32 = math.rsqrt %31 : vector<1x128xf32>
      %33 = vector.broadcast %32 : vector<1x128xf32> to vector<8x128xf32>
      %34 = arith.mulf %29, %33 : vector<8x128xf32>
      %35 = vector.extract_strided_slice %15 {offsets = [8, 0], sizes = [8, 128], strides = [1, 1]} : vector<16x128xf32> to vector<8x128xf32>
      %cst_18 = arith.constant dense<0.000000e+00> : vector<128xf32>
      %36 = vector.multi_reduction <add>, %35, %cst_18 [0] : vector<8x128xf32> to vector<128xf32>
      %37 = vector.shape_cast %36 : vector<128xf32> to vector<1x128xf32>
      %cst_19 = arith.constant 8.000000e+00 : f32
      %38 = vector.broadcast %cst_19 : f32 to vector<1x128xf32>
      %39 = arith.divf %37, %38 : vector<1x128xf32>
      %40 = vector.broadcast %39 : vector<1x128xf32> to vector<8x128xf32>
      %41 = arith.subf %35, %40 : vector<8x128xf32>
      %42 = arith.mulf %41, %41 : vector<8x128xf32>
      %cst_20 = arith.constant dense<0.000000e+00> : vector<128xf32>
      %43 = vector.multi_reduction <add>, %42, %cst_20 [0] : vector<8x128xf32> to vector<128xf32>
      %44 = vector.shape_cast %43 : vector<128xf32> to vector<1x128xf32>
      %cst_21 = arith.constant 8.000000e+00 : f32
      %45 = vector.broadcast %cst_21 : f32 to vector<1x128xf32>
      %46 = arith.divf %44, %45 : vector<1x128xf32>
      %47 = vector.broadcast %39 : vector<1x128xf32> to vector<8x128xf32>
      %48 = arith.subf %35, %47 : vector<8x128xf32>
      %cst_22 = arith.constant 9.99999974E-6 : f32
      %49 = vector.broadcast %cst_22 : f32 to vector<1x128xf32>
      %50 = arith.addf %46, %49 : vector<1x128xf32>
      %51 = math.rsqrt %50 : vector<1x128xf32>
      %52 = vector.broadcast %51 : vector<1x128xf32> to vector<8x128xf32>
      %53 = arith.mulf %48, %52 : vector<8x128xf32>
      %54 = tpu.concatenate %34, %53 in 0 : vector<8x128xf32>, vector<8x128xf32> -> vector<16x128xf32>
      %c0_23 = arith.constant 0 : index
      %c0_24 = arith.constant 0 : index
      %55 = vector.load %arg5[%c0_23, %c0_24] : memref<16x128xf32, #tpu.memory_space<vmem>>, vector<16x128xf32>
      tpu.vector_store %arg5[%c0_23, %c0_24], %54 {strides = array<i32>} : memref<16x128xf32, #tpu.memory_space<vmem>>, vector<16x128xf32>,
    } else {
    }
    return
  }
  func.func @transform_0(%arg0: i32, %arg1: i32) -> (i32, i32) {
    %c0_i32 = arith.constant 0 : i32
    %c0_i32_0 = arith.constant 0 : i32
    return %c0_i32, %arg1 : i32, i32
  }
  func.func @transform_1(%arg0: i32, %arg1: i32) -> (i32, i32) {
    %c0_i32 = arith.constant 0 : i32
    return %arg1, %arg0 : i32, i32
  }
  func.func @transform_2(%arg0: i32, %arg1: i32) -> (i32, i32) {
    %c0_i32 = arith.constant 0 : i32
    %c0_i32_0 = arith.constant 0 : i32
    return %c0_i32, %arg0 : i32, i32
  }
  func.func @transform_3(%arg0: i32, %arg1: i32) -> (i32, i32) {
    %c0_i32 = arith.constant 0 : i32
    %c0_i32_0 = arith.constant 0 : i32
    return %c0_i32, %arg0 : i32, i32
  }
}

</mosaic_0001>

<bundles_post_ra>
// kernel: barlow_twins_forward.6
= control target key start
LH: loop header
LB: loop body
LE: loop exit
PB: predicated region body
PF: predicated region fallthrough
CT: control target
= control target key end

     0   :  { %s696_s12 = smov 0   ;;  %s698_s13 = smov 0   ;;  %s784_s0 = inlined_call_operand.vmem [shape: bf16[16,256], index: 0, kind: input, shape index: {}]   ;;  %s785_s1 = inlined_call_operand.vmem [shape: bf16[256,128], index: 1, kind: input, shape index: {}]   ;;  %s786_s2 = inlined_call_operand.vmem [shape: f32[1,128], index: 2, kind: input, shape index: {}]   ;;  %s787_s3 = inlined_call_operand.vmem [shape: bf16[16,128], index: 3, kind: output, shape index: {}]  }
   0x1   :  { %s700_s14 = smov 0   ;;  %s702_s15 = smov 0  }
   0x2   :  { %s704_s16 = smov 0  }
   0x3 LB: > { %s22_s17 = sadd.s32 1, %s667_s15  ;;  %p39_p1 = scmp.ne.s32.totalorder %s659_s13, %s655_s12  ;;  %s671_s16 = sphi %s704_s16, %s13_s16   ;;  %s667_s15 = sphi %s702_s15, %s791_s15   ;;  %s663_s14 = sphi %s700_s14, %s790_s14   ;;  %s659_s13 = sphi %s698_s13, %s789_s13   ;;  %s655_s12 = sphi %s696_s12, %s788_s12  }
   0x4   : > { %p23_p0 = scmp.ge.s32.totalorder %s22_s17, 2  ;;  %p40_p2 = scmp.eq.s32.totalorder %s671_s16, 0 }
   0x5   : > { %s32_s19 = sadd.s32 1, %s659_s13  ;;  %p521_p5 = scmp.ge.s32.totalorder %s671_s16, 2 }
   0x6   : > { %s793_s17 = smov (%p23_p0, %s22_s17), 0  ;;  %p41_p3 = por %p40_p2, %p39_p1 }
   0x7   : > { %s29_s18 = ssub.s32 %s667_s15, %s793_s17  ;;  %151 = sbr.rel (%p521_p5) target bundleno = 21 (0x15), region = 20 }
   0x8   : > { %p30_p4 = scmp.eq.s32.totalorder %s29_s18, 0 }
   0xa   : > { %s731_s20 = scalar_select %p30_p4, %s659_s13, %s32_s19  }
   0xe   : > { %154 = sbr.rel (!%p41_p3) target bundleno = 21 (0x15), region = 24  ;;  %s156_s21 = sand.u32 (%p41_p3), 1, %s659_s13  }
   0xf   : > { %s523_s22 = sshll.u32 (%p41_p3), %s667_s15, 2  ;;  %s522_s23 = sshll.u32 (%p41_p3), %s156_s21, 3 }
  0x10   : > { %s160_s26 = scalar_lea.vmem (%p41_p3), %s784_s0, %s523_s22  ;;  %s158_s27 = scalar_lea.vmem (%p41_p3), [#allocation3], %s522_s23 }
  0x11   : > { %v176_v0 = vld [vmem:[%s160_s26] sm:$0xf] (%p41_p3)  ;;  %v178_v1 = vld [vmem:[%s160_s26 + $0x8] sm:$0xf] (%p41_p3) }
  0x12   : > { %177 = vst [vmem:[%s158_s27] sm:$0xf] (%p41_p3), %v176_v0  ;;  %179 = vst [vmem:[%s158_s27 + $0x4] sm:$0xf] (%p41_p3), %v178_v1 }
  0x15 PF: > { %p524_p6 = scmp.ge.s32.totalorder %s671_s16, 1  ;;  %p217_p7 = scmp.lt.s32.totalorder %s671_s16, 3 }
  0x17   : > { %p218_p8 = pnand %p524_p6, %p217_p7 }
  0x18   : > { %s224_s28 = sand.u32 (!%p218_p8), 1, %s655_s12   ;;  %s526_s29 = sshll.u32 (!%p218_p8), %s663_s14, 4 }
  0x19   : > { %221 = sbr.rel (%p218_p8) target bundleno = 303 (0x12f), region = 69  ;;  %s743_s30 = sshll.u32 (!%p218_p8), %s224_s28, 3 }
  0x1a   : > { %p258_p9 = scmp.lt.s32.totalorder (!%p218_p8), %s526_s29, 31  ;;  %s226_s8 = scalar_lea.vmem (!%p218_p8), [#allocation3], %s743_s30 }
  0x1b   : > { %p528_p10 = scmp.ne.s32.totalorder (!%p218_p8), %s663_s14, 0 }
  0x20   : > { %s795_s29 = smov (!%p258_p9, %s526_s29), 31  ;;  %277 = sbr.rel (%p528_p10) target bundleno = 39 (0x27), region = 77 }
  0x21   : > { %s527_s4 = sshll.u32 %s795_s29, 2  ;;  %v673_v2 = vmov (!%p528_p10), 0.0  }
  0x22   : > { %s748_s7 = scalar_lea.vmem %s785_s1, %s527_s4  ;;  %278 = vst [vmem:[#allocation2] sm:$0xff] (!%p528_p10), %v673_v2  ;;  %279 = vst [vmem:[#allocation2 + $0x8] sm:$0xff] (!%p528_p10), %v673_v2 }
  0x27 PF: > { %v624_v3 = vld [vmem:[%s748_s7] sm:$0xff]   ;;  %v674_v4 = vmov 0.0   ;;  %v625_v5 = vld [vmem:[%s748_s7 + $0x8] sm:$0xff]   ;;  %vm675_vm0 = vmmov 0   ;;  %v626_v6 = vld [vmem:[%s748_s7 + $0x10] sm:$0xff]   ;;  %p538_p11 = scmp.ne.s32.totalorder %s663_s14, 1 }
  0x28   : > { %561 = vmatprep.subr.bf16.mxu0 %v674_v4  ;;  %577 = vmatprep.mubr.msk.bf16.mxu0 %vm675_vm0, %v674_v4  ;;  %v627_v7 = vld [vmem:[%s748_s7 + $0x18] sm:$0xff]   ;;  %v628_v8 = vld [vmem:[%s748_s7 + $0x20] sm:$0xff]   ;;  %v629_v9 = vld [vmem:[%s748_s7 + $0x28] sm:$0xff]  }
  0x29   : > { %562 = vmatpush3.bf16.msra.mxu0 %v624_v3  ;;  %v630_v10 = vld [vmem:[%s748_s7 + $0x30] sm:$0xff]   ;;  %v631_v11 = vld [vmem:[%s748_s7 + $0x38] sm:$0xff]   ;;  %v280_v13 = vld [vmem:[#allocation2] sm:$0xff] }
  0x2a   : > { %563 = vmatprep.subr.bf16.mxu0 %v674_v4  ;;  %v632_v12 = vld [vmem:[%s226_s8] sm:$0xff]   ;;  %v281_v15 = vld [vmem:[#allocation2 + $0x8] sm:$0xff]  ;;  %v539_v23 = vld [vmem:[%s786_s2] ss:$0 sm:$0xff] (!%p538_p11) }
  0x2d   : > { %564 = vmatpush3.bf16.msra.mxu0 %v625_v5 }
  0x2e   : > { %565 = vmatprep.subr.bf16.mxu0 %v674_v4 }
  0x31   : > { %566 = vmatpush3.bf16.msra.mxu0 %v626_v6 }
  0x32   : > { %567 = vmatprep.subr.bf16.mxu0 %v674_v4 }
  0x35   : > { %568 = vmatpush3.bf16.msra.mxu0 %v627_v7 }
  0x36   : > { %569 = vmatprep.subr.bf16.mxu0 %v674_v4 }
  0x39   : > { %570 = vmatpush3.bf16.msra.mxu0 %v628_v8 }
  0x3a   : > { %571 = vmatprep.subr.bf16.mxu0 %v674_v4 }
  0x3d   : > { %572 = vmatpush3.bf16.msra.mxu0 %v629_v9 }
  0x3e   : > { %573 = vmatprep.subr.bf16.mxu0 %v674_v4 }
  0x41   : > { %574 = vmatpush3.bf16.msra.mxu0 %v630_v10 }
  0x42   : > { %575 = vmatprep.subr.bf16.mxu0 %v674_v4 }
  0x45   : > { %576 = vmatpush3.bf16.msra.mxu0 %v631_v11 }
  0x48   : > { %578 = vmatmul.mubr.bf16.vlgmr.msra.gmra.mrb[0].mxu0 %v632_v12 }
 0x11a   : > { %402 = sbr.rel (%p538_p11) target bundleno = 303 (0x12f), region = 81 }
 0x11b   : > { %v388_v14 = vpop.f32.mrb[0].mxu0 }
 0x11c   : > { %v395_v16 = vadd.f32 %v388_v14, %v280_v13  ;;  %v579_v17 = vpop.f32.mrb[1].mxu0 }
 0x11d   : > { %v391_v18 = vpop.f32.mrb[2].mxu0 }
 0x11e   : > { %397 = vst [vmem:[#allocation2] sm:$0xff] %v395_v16  ;;  %v396_v19 = vadd.f32 %v391_v18, %v281_v15  ;;  %v580_v20 = vpop.f32.mrb[3].mxu0 }
 0x120   : > { %398 = vst [vmem:[#allocation2 + $0x8] sm:$0xff] %v396_v19 }
 0x125   : > { %v403_v21 = vld [vmem:[#allocation2] sm:$0xff] }
 0x126   : > { %v412_v24 = vadd.f32 %v539_v23, %v403_v21 }
 0x127   : > { %v404_v22 = vld [vmem:[#allocation2 + $0x8] sm:$0xff] }
 0x128   : > { %v413_v25 = vadd.f32 %v539_v23, %v404_v22  ;;  %v414_v26 = vmax.f32 %v412_v24, 0.0 }
 0x12a   : > { %v415_v27 = vmax.f32 %v413_v25, 0.0 }
 0x12c   : > { %v550_v28 = vpack.c.bf16 %v415_v27, %v414_v26 }
 0x12e   : > { %551 = vst [vmem:[%s787_s3] sm:$0xff] %v550_v28  }
 0x12f PF: > { %s13_s16 = sadd.s32 1, %s671_s16   ;;  %s788_s12 = smov %s659_s13 }
 0x130   : > { %p10_p12 = scmp.ge.s32.totalorder %s13_s16, 4   ;;  %s789_s13 = smov %s731_s20 }
 0x131   : > { %s790_s14 = smov %s667_s15  ;;  %s791_s15 = smov %s793_s17 }
 0x132   :  { %12 = sbr.rel (!%p10_p12) target bundleno = 3 (0x3), region = 122 }

// kernel: barlow_twins_forward.7
= control target key start
LH: loop header
LB: loop body
LE: loop exit
PB: predicated region body
PF: predicated region fallthrough
CT: control target
= control target key end

     0   :  { %s958_s18 = smov 0   ;;  %s960_s19 = smov 0   ;;  %s1071_s0 = inlined_call_operand.vmem [shape: bf16[16,128], index: 0, kind: input, shape index: {}]   ;;  %s1072_s1 = inlined_call_operand.vmem [shape: bf16[128,256], index: 1, kind: input, shape index: {}]   ;;  %s1073_s2 = inlined_call_operand.vmem [shape: f32[1,256], index: 2, kind: input, shape index: {}]   ;;  %s1074_s3 = inlined_call_operand.vmem [shape: f32[1,256], index: 3, kind: input, shape index: {}]   ;;  %s1075_s4 = inlined_call_operand.vmem [shape: f32[1,256], index: 4, kind: input, shape index: {}]   ;;  %s1076_s5 = inlined_call_operand.vmem [shape: bf16[16,256], index: 5, kind: output, shape index: {}]  }
   0x1   :  { %s962_s20 = smov 0   ;;  %s964_s21 = smov 0  }
   0x2   :  { %s966_s22 = smov 0  }
   0x3 LB: > { %s27_s23 = sadd.s32 1, %s920_s21  ;;  %s767_s24 = sadd.s32 4294967295, %s924_s22   ;;  %s924_s22 = sphi %s966_s22, %s15_s22   ;;  %s920_s21 = sphi %s964_s21, %s1081_s21   ;;  %s916_s20 = sphi %s962_s20, %s1080_s20   ;;  %s912_s19 = sphi %s960_s19, %s1079_s19   ;;  %s908_s18 = sphi %s958_s18, %s1078_s18  }
   0x4   : > { %p29_p0 = scmp.ge.s32.totalorder %s27_s23, 2  ;;  %p69_p1 = scmp.ne.s32.totalorder %s912_s19, %s908_s18 }
   0x5   : > { %p70_p2 = scmp.eq.s32.totalorder %s924_s22, 0  ;;  %p177_p4 = scmp.eq.s32.totalorder %s767_s24, 1 }
   0x6   : > { %s1083_s23 = smov (%p29_p0, %s27_s23), 0  ;;  %s62_s26 = sadd.s32 1, %s912_s19 }
   0x7   : > { %p71_p3 = por %p70_p2, %p69_p1  ;;  %s58_s25 = ssub.s32 %s920_s21, %s1083_s23 }
   0x8   : > { %p60_p5 = scmp.eq.s32.totalorder %s58_s25, 0  ;;  %p993_p6 = por %p177_p4, %p69_p1 }
   0x9   : > { %p771_p7 = scmp.ge.s32.totalorder %s924_s22, 2 }
   0xa   : > { %s998_s28 = scalar_select %p60_p5, %s912_s19, %s62_s26  }
   0xb   : > { %206 = sbr.rel (%p771_p7) target bundleno = 32 (0x20), region = 20 }
  0x12   : > { %209 = sbr.rel (!%p71_p3) target bundleno = 32 (0x20), region = 24  ;;  %s211_s29 = sand.u32 (%p71_p3), 1, %s912_s19  }
  0x13   : > { %s773_s30 = sshll.u32 (%p71_p3), %s920_s21, 2  ;;  %s772_s6 = sshll.u32 (%p71_p3), %s211_s29, 6 }
  0x14   : > { %s1006_s9 = scalar_lea.vmem (%p71_p3), %s1072_s1, %s773_s30  ;;  %s213_s10 = scalar_lea.vmem (%p71_p3), [#allocation3], %s772_s6 }
  0x15   : > { %v234_v0 = vld [vmem:[%s1006_s9] sm:$0xf] (%p71_p3)  ;;  %v236_v1 = vld [vmem:[%s1006_s9 + $0x8] sm:$0xf] (%p71_p3)  ;;  %v238_v2 = vld [vmem:[%s1006_s9 + $0x10] sm:$0xf] (%p71_p3) }
  0x16   : > { %235 = vst [vmem:[%s213_s10] sm:$0xf] (%p71_p3), %v234_v0  ;;  %237 = vst [vmem:[%s213_s10 + $0x4] sm:$0xf] (%p71_p3), %v236_v1  ;;  %v240_v3 = vld [vmem:[%s1006_s9 + $0x18] sm:$0xf] (%p71_p3) }
  0x17   : > { %v242_v4 = vld [vmem:[%s1006_s9 + $0x20] sm:$0xf] (%p71_p3)  ;;  %239 = vst [vmem:[%s213_s10 + $0x8] sm:$0xf] (%p71_p3), %v238_v2  ;;  %241 = vst [vmem:[%s213_s10 + $0xc] sm:$0xf] (%p71_p3), %v240_v3 }
  0x18   : > { %243 = vst [vmem:[%s213_s10 + $0x10] sm:$0xf] (%p71_p3), %v242_v4  ;;  %v244_v5 = vld [vmem:[%s1006_s9 + $0x28] sm:$0xf] (%p71_p3)  ;;  %v246_v6 = vld [vmem:[%s1006_s9 + $0x30] sm:$0xf] (%p71_p3) }
  0x19   : > { %v248_v7 = vld [vmem:[%s1006_s9 + $0x38] sm:$0xf]  ;;  %245 = vst [vmem:[%s213_s10 + $0x14] sm:$0xf] %v244_v5  ;;  %247 = vst [vmem:[%s213_s10 + $0x18] sm:$0xf] %v246_v6 }
  0x1a   : > { %249 = vst [vmem:[%s213_s10 + $0x1c] sm:$0xf] %v248_v7  ;;  %v250_v8 = vld [vmem:[%s1006_s9 + $0x40] sm:$0xf]  ;;  %v252_v9 = vld [vmem:[%s1006_s9 + $0x48] sm:$0xf] }
  0x1b   : > { %v254_v10 = vld [vmem:[%s1006_s9 + $0x50] sm:$0xf]  ;;  %251 = vst [vmem:[%s213_s10 + $0x20] sm:$0xf] %v250_v8  ;;  %253 = vst [vmem:[%s213_s10 + $0x24] sm:$0xf] %v252_v9 }
  0x1c   : > { %255 = vst [vmem:[%s213_s10 + $0x28] sm:$0xf] %v254_v10  ;;  %v256_v11 = vld [vmem:[%s1006_s9 + $0x58] sm:$0xf]  ;;  %v258_v12 = vld [vmem:[%s1006_s9 + $0x60] sm:$0xf] }
  0x1d   : > { %v260_v13 = vld [vmem:[%s1006_s9 + $0x68] sm:$0xf]  ;;  %257 = vst [vmem:[%s213_s10 + $0x2c] sm:$0xf] %v256_v11  ;;  %259 = vst [vmem:[%s213_s10 + $0x30] sm:$0xf] %v258_v12 }
  0x1e   : > { %261 = vst [vmem:[%s213_s10 + $0x34] sm:$0xf] %v260_v13  ;;  %v262_v14 = vld [vmem:[%s1006_s9 + $0x70] sm:$0xf]  ;;  %v264_v15 = vld [vmem:[%s1006_s9 + $0x78] sm:$0xf] }
  0x1f   : > { %263 = vst [vmem:[%s213_s10 + $0x38] sm:$0xf] %v262_v14  ;;  %265 = vst [vmem:[%s213_s10 + $0x3c] sm:$0xf] %v264_v15 }
  0x20 PF: > { %p774_p8 = scmp.ge.s32.totalorder %s924_s22, 1  ;;  %p337_p9 = scmp.lt.s32.totalorder %s924_s22, 3 }
  0x22   : > { %p338_p10 = pnand %p774_p8, %p337_p9 }
  0x23   : > { %s344_s11 = sand.u32 (!%p338_p10), 1, %s908_s18   ;;  %v926_v16 = vmov (!%p338_p10), 0.0   ;;  %vm927_vm0 = vmmov (!%p338_p10), 0   ;;  %v881_v25 = vld [vmem:[%s1071_s0] sm:$0xff] (!%p338_p10)   ;;  %p388_p11 = scmp.lt.s32.totalorder (!%p338_p10), %s916_s20, 1 }
  0x24   : > { %341 = sbr.rel (%p338_p10) target bundleno = 350 (0x15e), region = 77  ;;  %811 = vmatprep.subr.bf16.mxu0 (!%p338_p10), %v926_v16  ;;  %s775_s12 = sshll.u32 (!%p338_p10), %s344_s11, 6  ;;  %827 = vmatprep.mubr.msk.bf16.mxu0 (!%p338_p10), %vm927_vm0, %v926_v16 }
  0x25   : > { %s346_s13 = scalar_lea.vmem (!%p338_p10), [#allocation3], %s775_s12  ;;  %s776_s9 = sshll.u32 (!%p338_p10), %s344_s11, 3 }
  0x26   : > { %v873_v17 = vld [vmem:[%s346_s13] sm:$0xff] (!%p338_p10)   ;;  %v874_v18 = vld [vmem:[%s346_s13 + $0x8] sm:$0xff] (!%p338_p10)   ;;  %v875_v19 = vld [vmem:[%s346_s13 + $0x10] sm:$0xff] (!%p338_p10)   ;;  %s382_s10 = scalar_lea.vmem (!%p338_p10), [#allocation4], %s776_s9 }
  0x27   : > { %812 = vmatpush3.bf16.msra.mxu0 (!%p338_p10), %v873_v17  ;;  %v876_v20 = vld [vmem:[%s346_s13 + $0x18] sm:$0xff] (!%p338_p10)   ;;  %v877_v21 = vld [vmem:[%s346_s13 + $0x20] sm:$0xff] (!%p338_p10)   ;;  %v878_v22 = vld [vmem:[%s346_s13 + $0x28] sm:$0xff] (!%p338_p10)  }
  0x28   : > { %813 = vmatprep.subr.bf16.mxu0 (!%p338_p10), %v926_v16  ;;  %v879_v23 = vld [vmem:[%s346_s13 + $0x30] sm:$0xff] (!%p338_p10)   ;;  %v880_v24 = vld [vmem:[%s346_s13 + $0x38] sm:$0xff] (!%p338_p10)  }
  0x2b   : > { %814 = vmatpush3.bf16.msra.mxu0 %v874_v18  ;;  %s1034_s16 = scalar_select %p388_p11, %s916_s20, 1 }
  0x2c   : > { %815 = vmatprep.subr.bf16.mxu0 %v926_v16  ;;  %s792_s12 = sshll.u32 (%p993_p6), %s916_s20, 2 }
  0x2d   : > { %s390_s25 = scalar_lea.vmem %s1073_s2, %s1034_s16  ;;  %s393_s30 = scalar_lea.vmem %s1074_s3, %s1034_s16 }
  0x2e   : > { %v786_v26 = vld [vmem:[%s390_s25] ss:$0 sm:$0xff]  ;;  %s396_s8 = scalar_lea.vmem %s1075_s4, %s1034_s16  ;;  %s614_s15 = scalar_lea.vmem (%p993_p6), %s1076_s5, %s792_s12 }
  0x2f   : > { %816 = vmatpush3.bf16.msra.mxu0 %v875_v19  ;;  %v787_v4 = vld [vmem:[%s393_s30] ss:$0 sm:$0xff] }
  0x30   : > { %817 = vmatprep.subr.bf16.mxu0 %v926_v16  ;;  %v788_v7 = vld [vmem:[%s396_s8] ss:$0 sm:$0xff] }
  0x33   : > { %818 = vmatpush3.bf16.msra.mxu0 %v876_v20 }
  0x34   : > { %819 = vmatprep.subr.bf16.mxu0 %v926_v16 }
  0x37   : > { %820 = vmatpush3.bf16.msra.mxu0 %v877_v21 }
  0x38   : > { %821 = vmatprep.subr.bf16.mxu0 %v926_v16 }
  0x3b   : > { %822 = vmatpush3.bf16.msra.mxu0 %v878_v22 }
  0x3c   : > { %823 = vmatprep.subr.bf16.mxu0 %v926_v16 }
  0x3f   : > { %824 = vmatpush3.bf16.msra.mxu0 %v879_v23 }
  0x40   : > { %825 = vmatprep.subr.bf16.mxu0 %v926_v16 }
  0x43   : > { %826 = vmatpush3.bf16.msra.mxu0 %v880_v24 }
  0x46   : > { %828 = vmatmul.mubr.bf16.vlgmr.msra.gmra.mrb[0].mxu0 %v881_v25 }
 0x119   : > { %v512_v27 = vpop.f32.mrb[0].mxu0 }
 0x11a   : > { %v535_v28 = vadd.f32 %v786_v26, %v512_v27  ;;  %v829_v29 = vpop.f32.mrb[1].mxu0 }
 0x11b   : > { %v515_v30 = vpop.f32.mrb[2].mxu0 }
 0x11c   : > { %v537_v31 = vrot.slane %v535_v28, 4  ;;  %v536_v32 = vadd.f32 %v786_v26, %v515_v30  ;;  %v830_v33 = vpop.f32.mrb[3].mxu0 }
 0x11e   : > { %v538_v34 = vadd.f32 %v537_v31, %v535_v28  ;;  %v573_v35 = vrot.slane %v536_v32, 4 }
 0x120   : > { %v539_v36 = vrot.slane %v538_v34, 2  ;;  %v574_v37 = vadd.f32 %v573_v35, %v536_v32 }
 0x122   : > { %v540_v38 = vadd.f32 %v539_v36, %v538_v34  ;;  %v575_v39 = vrot.slane %v574_v37, 2 }
 0x124   : > { %v541_v40 = vrot.slane %v540_v38, 1  ;;  %v576_v41 = vadd.f32 %v575_v39, %v574_v37 }
 0x126   : > { %v542_v42 = vadd.f32 %v541_v40, %v540_v38  ;;  %v577_v43 = vrot.slane %v576_v41, 1 }
 0x128   : > { %v544_v44 = vmul.f32 0.125, %v542_v42  ;;  %v578_v45 = vadd.f32 %v577_v43, %v576_v41 }
 0x12a   : > { %v545_v46 = vsub.f32 %v535_v28, %v544_v44  ;;  %v579_v47 = vmul.f32 0.125, %v578_v45 }
 0x12c   : > { %v546_v48 = vmul.f32 %v545_v46, %v545_v46  ;;  %v580_v49 = vsub.f32 %v536_v32, %v579_v47 }
 0x12e   : > { %v547_v50 = vrot.slane %v546_v48, 4  ;;  %v581_v51 = vmul.f32 %v580_v49, %v580_v49 }
 0x130   : > { %v548_v52 = vadd.f32 %v547_v50, %v546_v48  ;;  %v582_v53 = vrot.slane %v581_v51, 4 }
 0x132   : > { %v549_v54 = vrot.slane %v548_v52, 2  ;;  %v583_v55 = vadd.f32 %v582_v53, %v581_v51 }
 0x134   : > { %v550_v56 = vadd.f32 %v549_v54, %v548_v52  ;;  %v584_v57 = vrot.slane %v583_v55, 2 }
 0x136   : > { %v551_v58 = vrot.slane %v550_v56, 1  ;;  %v585_v59 = vadd.f32 %v584_v57, %v583_v55 }
 0x138   : > { %v552_v60 = vadd.f32 %v551_v58, %v550_v56  ;;  %v586_v61 = vrot.slane %v585_v59, 1 }
 0x13a   : > { %v553_v62 = vmul.f32 0.125, %v552_v60  ;;  %v587_v63 = vadd.f32 %v586_v61, %v585_v59 }
 0x13c   : > { %v554_v0 = vadd.f32 1e-05, %v553_v62  ;;  %v588_v1 = vmul.f32 0.125, %v587_v63 }
 0x13e   : > { %882 = vrsqrt.f32 %v554_v0  ;;  %v589_v2 = vadd.f32 1e-05, %v588_v1 }
 0x140   : > { %884 = vrsqrt.f32 %v589_v2 }
 0x148   : > { %v883_v3 = vpop.eup %882 }
 0x149   : > { %v556_v5 = vmul.f32 %v883_v3, %v545_v46 }
 0x14a   : > { %v885_v6 = vpop.eup %884 }
 0x14b   : > { %v564_v8 = vmul.f32 %v787_v4, %v556_v5  ;;  %v591_v9 = vmul.f32 %v885_v6, %v580_v49 }
 0x14d   : > { %v572_v10 = vadd.f32 %v788_v7, %v564_v8  ;;  %v592_v11 = vmul.f32 %v787_v4, %v591_v9 }
 0x14f   : > { %v593_v12 = vadd.f32 %v788_v7, %v592_v11  ;;  %v594_v13 = vmax.f32 %v572_v10, 0.0  ;;  %612 = sbr.rel (!%p993_p6) target bundleno = 350 (0x15e), region = 93 }
 0x151   : > { %v595_v14 = vmax.f32 %v593_v12, 0.0 }
 0x153   : > { %v800_v15 = vpack.c.bf16 %v595_v14, %v594_v13 }
 0x155   : > { %801 = vst [vmem:[%s382_s10] sm:$0xff] %v800_v15  }
 0x15c   : > { %v630_v16 = vld [vmem:[%s382_s10] sm:$0xf]  ;;  %v632_v17 = vld [vmem:[%s382_s10 + $0x4] sm:$0xf] }
 0x15d   : > { %631 = vst [vmem:[%s614_s15] sm:$0xf] %v630_v16  ;;  %633 = vst [vmem:[%s614_s15 + $0x8] sm:$0xf] %v632_v17 }
 0x15e PF: > { %s15_s22 = sadd.s32 1, %s924_s22   ;;  %s1078_s18 = smov %s912_s19 }
 0x15f   : > { %p12_p12 = scmp.ge.s32.totalorder %s15_s22, 4   ;;  %s1079_s19 = smov %s998_s28 }
 0x160   : > { %s1080_s20 = smov %s920_s21  ;;  %s1081_s21 = smov %s1083_s23 }
 0x161   :  { %14 = sbr.rel (!%p12_p12) target bundleno = 3 (0x3), region = 177 }

// kernel: barlow_twins_forward.8
= control target key start
LH: loop header
LB: loop body
LE: loop exit
PB: predicated region body
PF: predicated region fallthrough
CT: control target
= control target key end

     0   :  { %s1118_s18 = smov 0   ;;  %s1120_s19 = smov 0   ;;  %s1347_s0 = inlined_call_operand.vmem [shape: bf16[16,256], index: 0, kind: input, shape index: {}]   ;;  %s1348_s1 = inlined_call_operand.vmem [shape: bf16[256,256], index: 1, kind: input, shape index: {}]   ;;  %s1349_s2 = inlined_call_operand.vmem [shape: f32[1,256], index: 2, kind: input, shape index: {}]   ;;  %s1350_s3 = inlined_call_operand.vmem [shape: f32[1,256], index: 3, kind: input, shape index: {}]   ;;  %s1351_s4 = inlined_call_operand.vmem [shape: f32[1,256], index: 4, kind: input, shape index: {}]   ;;  %s1352_s5 = inlined_call_operand.vmem [shape: bf16[16,256], index: 5, kind: output, shape index: {}]  }
   0x1   :  { %s1122_s20 = smov 0   ;;  %s1124_s21 = smov 0  }
   0x2   :  { %s1126_s22 = smov 0   ;;  %s1128_s23 = smov 0  }
   0x3   :  { %s1130_s24 = smov 0   ;;  %s1132_s25 = smov 0  }
   0x4   :  { %s1134_s26 = smov 0   ;;  %s1136_s27 = smov 0  }
   0x5   :  { %s1138_s28 = smov 0  }
   0x6 LB: > { %1356 = sst [smem:[#allocation6_spill]] %s1063_s23  ;;  %s822_s29 = sadd.s32 4294967295, %s1083_s28   ;;  %s1083_s28 = sphi %s1138_s28, %s15_s28   ;;  %s1079_s27 = sphi %s1136_s27, %s1376_s27   ;;  %s1075_s26 = sphi %s1134_s26, %s1375_s26   ;;  %s1071_s25 = sphi %s1132_s25, %s1374_s25   ;;  %s1067_s24 = sphi %s1130_s24, %s1373_s24   ;;  %s1063_s23 = sphi %s1128_s23, %s1366_s23   ;;  %s1059_s22 = sphi %s1126_s22, %s1365_s22   ;;  %s1055_s21 = sphi %s1124_s21, %s1372_s21   ;;  %s1051_s20 = sphi %s1122_s20, %s1371_s20   ;;  %s1047_s19 = sphi %s1120_s19, %s1370_s19   ;;  %s1043_s18 = sphi %s1118_s18, %s1369_s18  }
   0x7   : > { %s24_s30 = sadd.s32 1, %s1075_s26  ;;  %s27_s6 = sadd.s32 1, %s1079_s27 }
   0x8   : > { %p25_p0 = scmp.ge.s32.totalorder %s24_s30, 2  ;;  %s34_s7 = sadd.s32 1, %s1063_s23 }
   0x9   : > { %p41_p1 = scmp.ne.s32.totalorder %s1063_s23, %s1059_s22  ;;  %p42_p2 = scmp.eq.s32.totalorder %s1083_s28, 0 }
   0xa   : > { %s1378_s30 = smov (%p25_p0, %s24_s30), 0  ;;  %s1380_s6 = smov (!%p25_p0, %s27_s6), %s1079_s27 }
   0xb   : > { %1357 = sst [smem:[#allocation7_spill]] %s1378_s30  ;;  %s31_s8 = ssub.s32 %s1075_s26, %s1378_s30 }
   0xc   : > { %p29_p3 = scmp.ge.s32.totalorder %s1380_s6, 2  ;;  %p32_p4 = scmp.eq.s32.totalorder %s31_s8, 0 }
   0xd   : > { %p1185_p5 = por %p42_p2, %p41_p1  ;;  %s62_s10 = sadd.s32 1, %s1055_s21 }
   0xe   : > { %s1382_s6 = smov (%p29_p3, %s1380_s6), 0  ;;  %p69_p6 = scmp.ne.s32.totalorder %s1055_s21, %s1051_s20 }
   0xf   : > { %1359 = sst [smem:[#allocation8_spill]] %s1382_s6  ;;  %s58_s12 = ssub.s32 %s1079_s27, %s1382_s6 }
  0x10   : > { %s1193_s11 = scalar_select %p32_p4, %s1063_s23, %s34_s7  }
  0x11   : > { %s59_s13 = sor.u32 %s58_s12, %s31_s8  ;;  %p164_p7 = scmp.eq.s32.totalorder %s58_s12, 0 }
  0x12   : > { %1360 = sst [smem:[#allocation9_spill]] %s1193_s11  ;;  %p60_p8 = scmp.eq.s32.totalorder %s59_s13, 0 }
  0x13   : > { %p1199_p9 = por %p69_p6, %p42_p2  ;;  %s166_s15 = sadd.s32 1, %s1047_s19 }
  0x14   : > { %p176_p10 = scmp.ne.s32.totalorder %s1047_s19, %s1043_s18  ;;  %p177_p11 = scmp.eq.s32.totalorder %s822_s29, 3 }
  0x15   : > { %s1207_s16 = scalar_select %p60_p8, %s1055_s21, %s62_s10  }
  0x16   : > { %s1210_s17 = scalar_select %p164_p7, %s1047_s19, %s166_s15  }
  0x17   : > { %1362 = sst [smem:[#allocation10_spill]] %s1207_s16  ;;  %p1212_p12 = por %p177_p11, %p176_p10 }
  0x18   : > { %p825_p13 = scmp.ge.s32.totalorder %s1083_s28, 4 }
  0x1a   : > { %199 = sbr.rel (%p825_p13) target bundleno = 56 (0x38), region = 16 }
  0x21   : > { %202 = sbr.rel (!%p1185_p5) target bundleno = 40 (0x28), region = 20  ;;  %s204_s7 = sand.u32 (%p1185_p5), 1, %s1063_s23  }
  0x22   : > { %s827_s8 = sshll.u32 (%p1185_p5), %s1075_s26, 2  ;;  %s826_s12 = sshll.u32 (%p1185_p5), %s204_s7, 3 }
  0x23   : > { %s208_s15 = scalar_lea.vmem (%p1185_p5), %s1347_s0, %s827_s8  ;;  %s206_s29 = scalar_lea.vmem (%p1185_p5), [#allocation3], %s826_s12 }
  0x24   : > { %v224_v0 = vld [vmem:[%s208_s15] sm:$0xf] (%p1185_p5)  ;;  %v226_v1 = vld [vmem:[%s208_s15 + $0x8] sm:$0xf] (%p1185_p5) }
  0x25   : > { %225 = vst [vmem:[%s206_s29] sm:$0xf] (%p1185_p5), %v224_v0  ;;  %227 = vst [vmem:[%s206_s29 + $0x4] sm:$0xf] (%p1185_p5), %v226_v1 }
  0x28 PF: > { %254 = sbr.rel (!%p1199_p9) target bundleno = 56 (0x38), region = 61  ;;  %s256_s9 = sand.u32 (%p1199_p9), 1, %s1055_s21  }
  0x29   : > { %s856_s6 = sshll.u32 (%p1199_p9), %s1075_s26, 5  ;;  %s828_s11 = sshll.u32 (%p1199_p9), %s256_s9, 6 }
  0x2a   : > { %s261_s7 = sadd.s32 (%p1199_p9), %s1079_s27, %s856_s6  ;;  %s258_s14 = scalar_lea.vmem (%p1199_p9), [#allocation4], %s828_s11 }
  0x2b   : > { %s831_s23 = sshll.u32 (%p1199_p9), %s261_s7, 2 }
  0x2c   : > { %s1232_s8 = scalar_lea.vmem (%p1199_p9), %s1348_s1, %s831_s23 }
  0x2d   : > { %v279_v2 = vld [vmem:[%s1232_s8] sm:$0xf] (%p1199_p9)  ;;  %v281_v3 = vld [vmem:[%s1232_s8 + $0x8] sm:$0xf] (%p1199_p9)  ;;  %v283_v4 = vld [vmem:[%s1232_s8 + $0x10] sm:$0xf] (%p1199_p9) }
  0x2e   : > { %280 = vst [vmem:[%s258_s14] sm:$0xf] (%p1199_p9), %v279_v2  ;;  %282 = vst [vmem:[%s258_s14 + $0x4] sm:$0xf] (%p1199_p9), %v281_v3  ;;  %v285_v5 = vld [vmem:[%s1232_s8 + $0x18] sm:$0xf] (%p1199_p9) }
  0x2f   : > { %284 = vst [vmem:[%s258_s14 + $0x8] sm:$0xf] %v283_v4  ;;  %v287_v6 = vld [vmem:[%s1232_s8 + $0x20] sm:$0xf]  ;;  %v289_v7 = vld [vmem:[%s1232_s8 + $0x28] sm:$0xf] }
  0x30   : > { %286 = vst [vmem:[%s258_s14 + $0xc] sm:$0xf] %v285_v5  ;;  %288 = vst [vmem:[%s258_s14 + $0x10] sm:$0xf] %v287_v6  ;;  %v291_v8 = vld [vmem:[%s1232_s8 + $0x30] sm:$0xf] }
  0x31   : > { %290 = vst [vmem:[%s258_s14 + $0x14] sm:$0xf] %v289_v7  ;;  %v293_v9 = vld [vmem:[%s1232_s8 + $0x38] sm:$0xf]  ;;  %v295_v10 = vld [vmem:[%s1232_s8 + $0x40] sm:$0xf] }
  0x32   : > { %292 = vst [vmem:[%s258_s14 + $0x18] sm:$0xf] %v291_v8  ;;  %294 = vst [vmem:[%s258_s14 + $0x1c] sm:$0xf] %v293_v9  ;;  %v297_v11 = vld [vmem:[%s1232_s8 + $0x48] sm:$0xf] }
  0x33   : > { %296 = vst [vmem:[%s258_s14 + $0x20] sm:$0xf] %v295_v10  ;;  %v299_v12 = vld [vmem:[%s1232_s8 + $0x50] sm:$0xf]  ;;  %v301_v13 = vld [vmem:[%s1232_s8 + $0x58] sm:$0xf] }
  0x34   : > { %298 = vst [vmem:[%s258_s14 + $0x24] sm:$0xf] %v297_v11  ;;  %300 = vst [vmem:[%s258_s14 + $0x28] sm:$0xf] %v299_v12  ;;  %v303_v14 = vld [vmem:[%s1232_s8 + $0x60] sm:$0xf] }
  0x35   : > { %302 = vst [vmem:[%s258_s14 + $0x2c] sm:$0xf] %v301_v13  ;;  %v305_v15 = vld [vmem:[%s1232_s8 + $0x68] sm:$0xf]  ;;  %v307_v16 = vld [vmem:[%s1232_s8 + $0x70] sm:$0xf] }
  0x36   : > { %304 = vst [vmem:[%s258_s14 + $0x30] sm:$0xf] %v303_v14  ;;  %306 = vst [vmem:[%s258_s14 + $0x34] sm:$0xf] %v305_v15  ;;  %v309_v17 = vld [vmem:[%s1232_s8 + $0x78] sm:$0xf] }
  0x37   : > { %308 = vst [vmem:[%s258_s14 + $0x38] sm:$0xf] %v307_v16  ;;  %310 = vst [vmem:[%s258_s14 + $0x3c] sm:$0xf] %v309_v17 }
  0x38 PF: > { %p832_p0 = scmp.ge.s32.totalorder %s1083_s28, 1  ;;  %p382_p1 = scmp.lt.s32.totalorder %s1083_s28, 5 }
  0x3a   : > { %p383_p2 = pnand %p832_p0, %p382_p1 }
  0x3b   : > { %s389_s23 = sand.u32 (!%p383_p2), 1, %s1059_s22   ;;  %s396_s6 = sand.u32 (!%p383_p2), 1, %s1051_s20  }
  0x3c   : > { %386 = sbr.rel (%p383_p2) target bundleno = 398 (0x18e), region = 114  ;;  %s1254_s11 = sshll.u32 (!%p383_p2), %s389_s23, 3 }
  0x3d   : > { %s834_s16 = sshll.u32 (!%p383_p2), %s396_s6, 6  ;;  %s432_s12 = sand.u32 (!%p383_p2), 1, %s1043_s18  }
  0x3e   : > { %p436_p3 = scmp.lt.s32.totalorder (!%p383_p2), %s1071_s25, 1  ;;  %s835_s13 = sshll.u32 (!%p383_p2), %s432_s12, 3 }
  0x3f   : > { %s391_s18 = scalar_lea.vmem (!%p383_p2), [#allocation3], %s1254_s11  ;;  %s1274_s6 = scalar_lea.vmem (!%p383_p2), [#allocation4], %s834_s16 }
  0x40   : > { %s1276_s12 = scalar_lea.vmem (!%p383_p2), [#allocation5], %s835_s13  ;;  %p836_p4 = scmp.ne.s32.totalorder (!%p383_p2), %s1067_s24, 0 }
  0x43   : > { %s1259_s15 = scalar_select %p436_p3, %s1071_s25, 1 }
  0x44   : > { %449 = sbr.rel (%p836_p4) target bundleno = 75 (0x4b), region = 126  ;;  %v1085_v18 = vmov (!%p836_p4), 0.0  }
  0x45   : > { %s438_s7 = scalar_lea.vmem %s1349_s2, %s1259_s15  ;;  %s441_s20 = scalar_lea.vmem %s1350_s3, %s1259_s15  ;;  %450 = vst [vmem:[#allocation2] sm:$0xff] (!%p836_p4), %v1085_v18  ;;  %451 = vst [vmem:[#allocation2 + $0x8] sm:$0xff] (!%p836_p4), %v1085_v18 }
  0x46   : > { %s444_s23 = scalar_lea.vmem %s1351_s4, %s1259_s15 }
  0x4b PF: > { %v984_v19 = vld [vmem:[%s1274_s6] sm:$0xff]   ;;  %v1086_v20 = vmov 0.0   ;;  %v985_v21 = vld [vmem:[%s1274_s6 + $0x8] sm:$0xff]   ;;  %vm1087_vm0 = vmmov 0   ;;  %v986_v22 = vld [vmem:[%s1274_s6 + $0x10] sm:$0xff]   ;;  %p846_p5 = scmp.ne.s32.totalorder %s1067_s24, 1 }
  0x4c   : > { %873 = vmatprep.subr.bf16.mxu0 %v1086_v20  ;;  %889 = vmatprep.mubr.msk.bf16.mxu0 %vm1087_vm0, %v1086_v20  ;;  %v987_v23 = vld [vmem:[%s1274_s6 + $0x18] sm:$0xff]   ;;  %v988_v24 = vld [vmem:[%s1274_s6 + $0x20] sm:$0xff]   ;;  %v989_v25 = vld [vmem:[%s1274_s6 + $0x28] sm:$0xff]  }
  0x4d   : > { %874 = vmatpush3.bf16.msra.mxu0 %v984_v19  ;;  %v990_v26 = vld [vmem:[%s1274_s6 + $0x30] sm:$0xff]   ;;  %v991_v27 = vld [vmem:[%s1274_s6 + $0x38] sm:$0xff]   ;;  %v452_v29 = vld [vmem:[#allocation2] sm:$0xff] }
  0x4e   : > { %875 = vmatprep.subr.bf16.mxu0 %v1086_v20  ;;  %v992_v28 = vld [vmem:[%s391_s18] sm:$0xff]   ;;  %v453_v31 = vld [vmem:[#allocation2 + $0x8] sm:$0xff]  ;;  %v847_v39 = vld [vmem:[%s438_s7] ss:$0 sm:$0xff] (!%p846_p5) }
  0x4f   : > { %v848_v13 = vld [vmem:[%s441_s20] ss:$0 sm:$0xff] (!%p846_p5) }
  0x50   : > { %v849_v16 = vld [vmem:[%s444_s23] ss:$0 sm:$0xff] (!%p846_p5) }
  0x51   : > { %876 = vmatpush3.bf16.msra.mxu0 %v985_v21 }
  0x52   : > { %877 = vmatprep.subr.bf16.mxu0 %v1086_v20 }
  0x55   : > { %878 = vmatpush3.bf16.msra.mxu0 %v986_v22 }
  0x56   : > { %879 = vmatprep.subr.bf16.mxu0 %v1086_v20 }
  0x59   : > { %880 = vmatpush3.bf16.msra.mxu0 %v987_v23 }
  0x5a   : > { %881 = vmatprep.subr.bf16.mxu0 %v1086_v20 }
  0x5d   : > { %882 = vmatpush3.bf16.msra.mxu0 %v988_v24 }
  0x5e   : > { %883 = vmatprep.subr.bf16.mxu0 %v1086_v20 }
  0x61   : > { %884 = vmatpush3.bf16.msra.mxu0 %v989_v25 }
  0x62   : > { %885 = vmatprep.subr.bf16.mxu0 %v1086_v20 }
  0x65   : > { %886 = vmatpush3.bf16.msra.mxu0 %v990_v26 }
  0x66   : > { %887 = vmatprep.subr.bf16.mxu0 %v1086_v20 }
  0x69   : > { %888 = vmatpush3.bf16.msra.mxu0 %v991_v27 }
  0x6c   : > { %890 = vmatmul.mubr.bf16.vlgmr.msra.gmra.mrb[0].mxu0 %v992_v28 }
 0x13e   : > { %574 = sbr.rel (%p846_p5) target bundleno = 390 (0x186), region = 130 }
 0x13f   : > { %v560_v30 = vpop.f32.mrb[0].mxu0 }
 0x140   : > { %v567_v32 = vadd.f32 %v560_v30, %v452_v29  ;;  %v891_v33 = vpop.f32.mrb[1].mxu0 }
 0x141   : > { %v563_v34 = vpop.f32.mrb[2].mxu0 }
 0x142   : > { %569 = vst [vmem:[#allocation2] sm:$0xff] %v567_v32  ;;  %v568_v35 = vadd.f32 %v563_v34, %v453_v31  ;;  %v892_v36 = vpop.f32.mrb[3].mxu0 }
 0x144   : > { %570 = vst [vmem:[#allocation2 + $0x8] sm:$0xff] %v568_v35 }
 0x149   : > { %v575_v37 = vld [vmem:[#allocation2] sm:$0xff] }
 0x14a   : > { %v584_v40 = vadd.f32 %v847_v39, %v575_v37 }
 0x14b   : > { %v576_v38 = vld [vmem:[#allocation2 + $0x8] sm:$0xff] }
 0x14c   : > { %v585_v41 = vadd.f32 %v847_v39, %v576_v38  ;;  %v586_v42 = vrot.slane %v584_v40, 4 }
 0x14e   : > { %v622_v43 = vrot.slane %v585_v41, 4  ;;  %v587_v44 = vadd.f32 %v586_v42, %v584_v40 }
 0x150   : > { %v623_v45 = vadd.f32 %v622_v43, %v585_v41  ;;  %v588_v46 = vrot.slane %v587_v44, 2 }
 0x152   : > { %v624_v47 = vrot.slane %v623_v45, 2  ;;  %v589_v48 = vadd.f32 %v588_v46, %v587_v44 }
 0x154   : > { %v625_v49 = vadd.f32 %v624_v47, %v623_v45  ;;  %v590_v50 = vrot.slane %v589_v48, 1 }
 0x156   : > { %v626_v51 = vrot.slane %v625_v49, 1  ;;  %v591_v52 = vadd.f32 %v590_v50, %v589_v48 }
 0x158   : > { %v627_v53 = vadd.f32 %v626_v51, %v625_v49  ;;  %v593_v54 = vmul.f32 0.125, %v591_v52 }
 0x15a   : > { %v628_v55 = vmul.f32 0.125, %v627_v53  ;;  %v594_v56 = vsub.f32 %v584_v40, %v593_v54 }
 0x15c   : > { %v629_v57 = vsub.f32 %v585_v41, %v628_v55  ;;  %v595_v58 = vmul.f32 %v594_v56, %v594_v56 }
 0x15e   : > { %v630_v59 = vmul.f32 %v629_v57, %v629_v57  ;;  %v596_v60 = vrot.slane %v595_v58, 4 }
 0x160   : > { %v631_v61 = vrot.slane %v630_v59, 4  ;;  %v597_v62 = vadd.f32 %v596_v60, %v595_v58 }
 0x162   : > { %v632_v63 = vadd.f32 %v631_v61, %v630_v59  ;;  %v598_v0 = vrot.slane %v597_v62, 2 }
 0x164   : > { %v633_v1 = vrot.slane %v632_v63, 2  ;;  %v599_v2 = vadd.f32 %v598_v0, %v597_v62 }
 0x166   : > { %v634_v3 = vadd.f32 %v633_v1, %v632_v63  ;;  %v600_v4 = vrot.slane %v599_v2, 1 }
 0x168   : > { %v635_v5 = vrot.slane %v634_v3, 1  ;;  %v601_v6 = vadd.f32 %v600_v4, %v599_v2 }
 0x16a   : > { %v636_v7 = vadd.f32 %v635_v5, %v634_v3  ;;  %v602_v8 = vmul.f32 0.125, %v601_v6 }
 0x16c   : > { %v637_v9 = vmul.f32 0.125, %v636_v7  ;;  %v603_v10 = vadd.f32 1e-05, %v602_v8 }
 0x16e   : > { %v638_v11 = vadd.f32 1e-05, %v637_v9  ;;  %993 = vrsqrt.f32 %v603_v10 }
 0x170   : > { %995 = vrsqrt.f32 %v638_v11 }
 0x178   : > { %v994_v12 = vpop.eup %993 }
 0x179   : > { %v605_v15 = vmul.f32 %v994_v12, %v594_v56 }
 0x17a   : > { %v996_v14 = vpop.eup %995 }
 0x17b   : > { %v640_v17 = vmul.f32 %v996_v14, %v629_v57  ;;  %v613_v18 = vmul.f32 %v848_v13, %v605_v15 }
 0x17d   : > { %v641_v19 = vmul.f32 %v848_v13, %v640_v17  ;;  %v621_v20 = vadd.f32 %v849_v16, %v613_v18 }
 0x17f   : > { %v642_v21 = vadd.f32 %v849_v16, %v641_v19  ;;  %v643_v22 = vmax.f32 %v621_v20, 0.0 }
 0x181   : > { %v644_v23 = vmax.f32 %v642_v21, 0.0 }
 0x183   : > { %v862_v24 = vpack.c.bf16 %v644_v23, %v643_v22 }
 0x185   : > { %863 = vst [vmem:[%s1276_s12] sm:$0xff] %v862_v24  }
 0x186 PF: > { %661 = sbr.rel (!%p1212_p12) target bundleno = 398 (0x18e), region = 134  ;;  %s853_s7 = sshll.u32 (%p1212_p12), %s1071_s25, 2 }
 0x187   : > { %s663_s8 = scalar_lea.vmem (%p1212_p12), %s1352_s5, %s853_s7 }
 0x18c   : > { %v679_v25 = vld [vmem:[%s1276_s12] sm:$0xf] (%p1212_p12)  ;;  %v681_v26 = vld [vmem:[%s1276_s12 + $0x4] sm:$0xf] (%p1212_p12) }
 0x18d   : > { %680 = vst [vmem:[%s663_s8] sm:$0xf] %v679_v25  ;;  %682 = vst [vmem:[%s663_s8 + $0x8] sm:$0xf] %v681_v26 }
 0x18e PF: > { %s15_s28 = sadd.s32 1, %s1083_s28   ;;  %s1364_s30 = sld [smem:[#allocation10_spill]] }
 0x18f   : > { %p12_p6 = scmp.ge.s32.totalorder %s15_s28, 6   ;;  %s1365_s22 = sld [smem:[#allocation6_spill]] }
 0x190   : > { %s1366_s23 = sld [smem:[#allocation9_spill]]  ;;  %s1367_s14 = sld [smem:[#allocation7_spill]] }
 0x191   : > { %s1368_s6 = sld [smem:[#allocation8_spill]]  ;;  %s1369_s18 = smov %s1047_s19 }
 0x192   : > { %s1370_s19 = smov %s1210_s17  ;;  %s1371_s20 = smov %s1055_s21 }
 0x193   : > { %s1373_s24 = smov %s1075_s26  ;;  %s1374_s25 = smov %s1079_s27 }
 0x194   : > { %s1372_s21 = smov %s1364_s30  ;;  %14 = sbr.rel (!%p12_p6) target bundleno = 6 (0x6), region = 223 }
 0x196   : > { %s1375_s26 = smov %s1367_s14 }
 0x197   : > { %s1376_s27 = smov %s1368_s6 }

// kernel: barlow_twins_forward.5
= control target key start
LH: loop header
LB: loop body
LE: loop exit
PB: predicated region body
PF: predicated region fallthrough
CT: control target
= control target key end

     0   :  { %s6260_s6 = smov 0   ;;  %s6262_s7 = smov 0   ;;  %s8310_s0 = inlined_call_operand.vmem [shape: f32[16,256,64], index: 0, kind: input, shape index: {}]   ;;  %s8311_s1 = inlined_call_operand.vmem [shape: bf16[16,256], index: 1, kind: output, shape index: {}]  }
   0x1   :  { %s6264_s8 = smov 0  }
   0x2 LB: > { %s6183_s9 = sadd.s32 4294967295, %s6246_s8   ;;  %s6277_s10 = sadd.s32 1, %s6246_s8   ;;  %s6246_s8 = sphi %s6264_s8, %s8372_s8   ;;  %s6242_s7 = sphi %s6262_s7, %s8371_s7   ;;  %s6238_s6 = sphi %s6260_s6, %s8370_s6  }
   0x3   : > { %s15_s11 = ssub.s32 %s6246_s8, %s6277_s10  ;;  %s18_s12 = sadd.s32 1, %s6242_s7 }
   0x4   : > { %p16_p0 = scmp.eq.s32.totalorder %s15_s11, 0  ;;  %p25_p1 = scmp.ne.s32.totalorder %s6242_s7, %s6238_s6 }
   0x5   : > { %p26_p2 = scmp.eq.s32.totalorder %s6246_s8, 0  ;;  %p55_p3 = scmp.eq.s32.totalorder %s6183_s9, 1 }
   0x6   : > { %s6288_s13 = scalar_select %p16_p0, %s6242_s7, %s18_s12  }
   0x7   : > { %p27_p4 = por %p26_p2, %p25_p1  ;;  %p6290_p5 = por %p55_p3, %p25_p1 }
   0x8   : > { %p6186_p6 = scmp.ge.s32.totalorder %s6246_s8, 2 }
   0xa   : > { %77 = sbr.rel (%p6186_p6) target bundleno = 149 (0x95), region = 16 }
  0x11   : > { %80 = sbr.rel (!%p27_p4) target bundleno = 149 (0x95), region = 20  ;;  %s82_s15 = sand.u32 (%p27_p4), 1, %s6242_s7  }
  0x12   : > { %s6197_s16 = sshll.u32 (%p27_p4), %s6246_s8, 7  ;;  %s6187_s17 = sshll.u32 (%p27_p4), %s82_s15, 11 }
  0x13   : > { %s6300_s20 = scalar_lea.vmem (%p27_p4), %s8310_s0, %s6197_s16  ;;  %s6305_s21 = scalar_lea.vmem (%p27_p4), [#allocation2], %s6187_s17 }
  0x14   : > { %v625_v0 = vld [vmem:[%s6300_s20] sm:$0xff] (%p27_p4)  ;;  %v627_v1 = vld [vmem:[%s6300_s20 + $0x8] sm:$0xff] (%p27_p4)  ;;  %v629_v2 = vld [vmem:[%s6300_s20 + $0x10] sm:$0xff] (%p27_p4) }
  0x15   : > { %626 = vst [vmem:[%s6305_s21] sm:$0xff] (%p27_p4), %v625_v0  ;;  %628 = vst [vmem:[%s6305_s21 + $0x8] sm:$0xff] (%p27_p4), %v627_v1  ;;  %v631_v3 = vld [vmem:[%s6300_s20 + $0x18] sm:$0xff] (%p27_p4)  ;;  %v633_v4 = vld [vmem:[%s6300_s20 + $0x20] sm:$0xff] (%p27_p4) }
  0x16   : > { %630 = vst [vmem:[%s6305_s21 + $0x10] sm:$0xff] (%p27_p4), %v629_v2  ;;  %v635_v5 = vld [vmem:[%s6300_s20 + $0x28] sm:$0xff] (%p27_p4)  ;;  %632 = vst [vmem:[%s6305_s21 + $0x18] sm:$0xff] (%p27_p4), %v631_v3  ;;  %v637_v6 = vld [vmem:[%s6300_s20 + $0x30] sm:$0xff] (%p27_p4) }
  0x17   : > { %634 = vst [vmem:[%s6305_s21 + $0x20] sm:$0xff] (%p27_p4), %v633_v4  ;;  %636 = vst [vmem:[%s6305_s21 + $0x28] sm:$0xff] (%p27_p4), %v635_v5  ;;  %v639_v7 = vld [vmem:[%s6300_s20 + $0x38] sm:$0xff] (%p27_p4)  ;;  %v641_v8 = vld [vmem:[%s6300_s20 + $0x40] sm:$0xff] (%p27_p4) }
  0x18   : > { %638 = vst [vmem:[%s6305_s21 + $0x30] sm:$0xff] %v637_v6  ;;  %640 = vst [vmem:[%s6305_s21 + $0x38] sm:$0xff] %v639_v7  ;;  %v643_v9 = vld [vmem:[%s6300_s20 + $0x48] sm:$0xff]  ;;  %v645_v10 = vld [vmem:[%s6300_s20 + $0x50] sm:$0xff] }
  0x19   : > { %642 = vst [vmem:[%s6305_s21 + $0x40] sm:$0xff] %v641_v8  ;;  %v647_v11 = vld [vmem:[%s6300_s20 + $0x58] sm:$0xff]  ;;  %644 = vst [vmem:[%s6305_s21 + $0x48] sm:$0xff] %v643_v9  ;;  %v649_v12 = vld [vmem:[%s6300_s20 + $0x60] sm:$0xff] }
  0x1a   : > { %646 = vst [vmem:[%s6305_s21 + $0x50] sm:$0xff] %v645_v10  ;;  %648 = vst [vmem:[%s6305_s21 + $0x58] sm:$0xff] %v647_v11  ;;  %v651_v13 = vld [vmem:[%s6300_s20 + $0x68] sm:$0xff]  ;;  %v653_v14 = vld [vmem:[%s6300_s20 + $0x70] sm:$0xff] }
  0x1b   : > { %650 = vst [vmem:[%s6305_s21 + $0x60] sm:$0xff] %v649_v12  ;;  %652 = vst [vmem:[%s6305_s21 + $0x68] sm:$0xff] %v651_v13  ;;  %v655_v15 = vld [vmem:[%s6300_s20 + $0x78] sm:$0xff]  ;;  %v657_v16 = vld [vmem:[%s6300_s20 + $0x100] sm:$0xff] }
  0x1c   : > { %654 = vst [vmem:[%s6305_s21 + $0x70] sm:$0xff] %v653_v14  ;;  %v659_v17 = vld [vmem:[%s6300_s20 + $0x108] sm:$0xff]  ;;  %656 = vst [vmem:[%s6305_s21 + $0x78] sm:$0xff] %v655_v15  ;;  %v661_v18 = vld [vmem:[%s6300_s20 + $0x110] sm:$0xff] }
  0x1d   : > { %658 = vst [vmem:[%s6305_s21 + $0x80] sm:$0xff] %v657_v16  ;;  %660 = vst [vmem:[%s6305_s21 + $0x88] sm:$0xff] %v659_v17  ;;  %v663_v19 = vld [vmem:[%s6300_s20 + $0x118] sm:$0xff]  ;;  %v665_v20 = vld [vmem:[%s6300_s20 + $0x120] sm:$0xff] }
  0x1e   : > { %662 = vst [vmem:[%s6305_s21 + $0x90] sm:$0xff] %v661_v18  ;;  %664 = vst [vmem:[%s6305_s21 + $0x98] sm:$0xff] %v663_v19  ;;  %v667_v21 = vld [vmem:[%s6300_s20 + $0x128] sm:$0xff]  ;;  %v669_v22 = vld [vmem:[%s6300_s20 + $0x130] sm:$0xff] }
  0x1f   : > { %666 = vst [vmem:[%s6305_s21 + $0xa0] sm:$0xff] %v665_v20  ;;  %v671_v23 = vld [vmem:[%s6300_s20 + $0x138] sm:$0xff]  ;;  %668 = vst [vmem:[%s6305_s21 + $0xa8] sm:$0xff] %v667_v21  ;;  %v673_v24 = vld [vmem:[%s6300_s20 + $0x140] sm:$0xff] }
  0x20   : > { %670 = vst [vmem:[%s6305_s21 + $0xb0] sm:$0xff] %v669_v22  ;;  %672 = vst [vmem:[%s6305_s21 + $0xb8] sm:$0xff] %v671_v23  ;;  %v675_v25 = vld [vmem:[%s6300_s20 + $0x148] sm:$0xff]  ;;  %v677_v26 = vld [vmem:[%s6300_s20 + $0x150] sm:$0xff] }
  0x21   : > { %674 = vst [vmem:[%s6305_s21 + $0xc0] sm:$0xff] %v673_v24  ;;  %676 = vst [vmem:[%s6305_s21 + $0xc8] sm:$0xff] %v675_v25  ;;  %v679_v27 = vld [vmem:[%s6300_s20 + $0x158] sm:$0xff]  ;;  %v681_v28 = vld [vmem:[%s6300_s20 + $0x160] sm:$0xff] }
  0x22   : > { %678 = vst [vmem:[%s6305_s21 + $0xd0] sm:$0xff] %v677_v26  ;;  %v683_v29 = vld [vmem:[%s6300_s20 + $0x168] sm:$0xff]  ;;  %680 = vst [vmem:[%s6305_s21 + $0xd8] sm:$0xff] %v679_v27  ;;  %v685_v30 = vld [vmem:[%s6300_s20 + $0x170] sm:$0xff] }
  0x23   : > { %682 = vst [vmem:[%s6305_s21 + $0xe0] sm:$0xff] %v681_v28  ;;  %684 = vst [vmem:[%s6305_s21 + $0xe8] sm:$0xff] %v683_v29  ;;  %v687_v31 = vld [vmem:[%s6300_s20 + $0x178] sm:$0xff]  ;;  %v689_v32 = vld [vmem:[%s6300_s20 + $0x200] sm:$0xff] }
  0x24   : > { %686 = vst [vmem:[%s6305_s21 + $0xf0] sm:$0xff] %v685_v30  ;;  %688 = vst [vmem:[%s6305_s21 + $0xf8] sm:$0xff] %v687_v31  ;;  %v691_v33 = vld [vmem:[%s6300_s20 + $0x208] sm:$0xff]  ;;  %v693_v34 = vld [vmem:[%s6300_s20 + $0x210] sm:$0xff] }
  0x25   : > { %690 = vst [vmem:[%s6305_s21 + $0x100] sm:$0xff] %v689_v32  ;;  %v695_v35 = vld [vmem:[%s6300_s20 + $0x218] sm:$0xff]  ;;  %692 = vst [vmem:[%s6305_s21 + $0x108] sm:$0xff] %v691_v33  ;;  %v697_v36 = vld [vmem:[%s6300_s20 + $0x220] sm:$0xff] }
  0x26   : > { %694 = vst [vmem:[%s6305_s21 + $0x110] sm:$0xff] %v693_v34  ;;  %696 = vst [vmem:[%s6305_s21 + $0x118] sm:$0xff] %v695_v35  ;;  %v699_v37 = vld [vmem:[%s6300_s20 + $0x228] sm:$0xff]  ;;  %v701_v38 = vld [vmem:[%s6300_s20 + $0x230] sm:$0xff] }
  0x27   : > { %698 = vst [vmem:[%s6305_s21 + $0x120] sm:$0xff] %v697_v36  ;;  %700 = vst [vmem:[%s6305_s21 + $0x128] sm:$0xff] %v699_v37  ;;  %v703_v39 = vld [vmem:[%s6300_s20 + $0x238] sm:$0xff]  ;;  %v705_v40 = vld [vmem:[%s6300_s20 + $0x240] sm:$0xff] }
  0x28   : > { %702 = vst [vmem:[%s6305_s21 + $0x130] sm:$0xff] %v701_v38  ;;  %v707_v41 = vld [vmem:[%s6300_s20 + $0x248] sm:$0xff]  ;;  %704 = vst [vmem:[%s6305_s21 + $0x138] sm:$0xff] %v703_v39  ;;  %v709_v42 = vld [vmem:[%s6300_s20 + $0x250] sm:$0xff] }
  0x29   : > { %706 = vst [vmem:[%s6305_s21 + $0x140] sm:$0xff] %v705_v40  ;;  %708 = vst [vmem:[%s6305_s21 + $0x148] sm:$0xff] %v707_v41  ;;  %v711_v43 = vld [vmem:[%s6300_s20 + $0x258] sm:$0xff]  ;;  %v713_v44 = vld [vmem:[%s6300_s20 + $0x260] sm:$0xff] }
  0x2a   : > { %710 = vst [vmem:[%s6305_s21 + $0x150] sm:$0xff] %v709_v42  ;;  %712 = vst [vmem:[%s6305_s21 + $0x158] sm:$0xff] %v711_v43  ;;  %v715_v45 = vld [vmem:[%s6300_s20 + $0x268] sm:$0xff]  ;;  %v717_v46 = vld [vmem:[%s6300_s20 + $0x270] sm:$0xff] }
  0x2b   : > { %714 = vst [vmem:[%s6305_s21 + $0x160] sm:$0xff] %v713_v44  ;;  %v719_v47 = vld [vmem:[%s6300_s20 + $0x278] sm:$0xff]  ;;  %716 = vst [vmem:[%s6305_s21 + $0x168] sm:$0xff] %v715_v45  ;;  %v721_v48 = vld [vmem:[%s6300_s20 + $0x300] sm:$0xff] }
  0x2c   : > { %718 = vst [vmem:[%s6305_s21 + $0x170] sm:$0xff] %v717_v46  ;;  %720 = vst [vmem:[%s6305_s21 + $0x178] sm:$0xff] %v719_v47  ;;  %v723_v49 = vld [vmem:[%s6300_s20 + $0x308] sm:$0xff]  ;;  %v725_v50 = vld [vmem:[%s6300_s20 + $0x310] sm:$0xff] }
  0x2d   : > { %722 = vst [vmem:[%s6305_s21 + $0x180] sm:$0xff] %v721_v48  ;;  %724 = vst [vmem:[%s6305_s21 + $0x188] sm:$0xff] %v723_v49  ;;  %v727_v51 = vld [vmem:[%s6300_s20 + $0x318] sm:$0xff]  ;;  %v729_v52 = vld [vmem:[%s6300_s20 + $0x320] sm:$0xff] }
  0x2e   : > { %726 = vst [vmem:[%s6305_s21 + $0x190] sm:$0xff] %v725_v50  ;;  %v731_v53 = vld [vmem:[%s6300_s20 + $0x328] sm:$0xff]  ;;  %728 = vst [vmem:[%s6305_s21 + $0x198] sm:$0xff] %v727_v51  ;;  %v733_v54 = vld [vmem:[%s6300_s20 + $0x330] sm:$0xff] }
  0x2f   : > { %730 = vst [vmem:[%s6305_s21 + $0x1a0] sm:$0xff] %v729_v52  ;;  %732 = vst [vmem:[%s6305_s21 + $0x1a8] sm:$0xff] %v731_v53  ;;  %v735_v55 = vld [vmem:[%s6300_s20 + $0x338] sm:$0xff]  ;;  %v737_v56 = vld [vmem:[%s6300_s20 + $0x340] sm:$0xff] }
  0x30   : > { %734 = vst [vmem:[%s6305_s21 + $0x1b0] sm:$0xff] %v733_v54  ;;  %736 = vst [vmem:[%s6305_s21 + $0x1b8] sm:$0xff] %v735_v55  ;;  %v739_v57 = vld [vmem:[%s6300_s20 + $0x348] sm:$0xff]  ;;  %v741_v58 = vld [vmem:[%s6300_s20 + $0x350] sm:$0xff] }
  0x31   : > { %738 = vst [vmem:[%s6305_s21 + $0x1c0] sm:$0xff] %v737_v56  ;;  %v743_v59 = vld [vmem:[%s6300_s20 + $0x358] sm:$0xff]  ;;  %740 = vst [vmem:[%s6305_s21 + $0x1c8] sm:$0xff] %v739_v57  ;;  %v745_v60 = vld [vmem:[%s6300_s20 + $0x360] sm:$0xff] }
  0x32   : > { %742 = vst [vmem:[%s6305_s21 + $0x1d0] sm:$0xff] %v741_v58  ;;  %744 = vst [vmem:[%s6305_s21 + $0x1d8] sm:$0xff] %v743_v59  ;;  %v747_v61 = vld [vmem:[%s6300_s20 + $0x368] sm:$0xff]  ;;  %v749_v62 = vld [vmem:[%s6300_s20 + $0x370] sm:$0xff] }
  0x33   : > { %746 = vst [vmem:[%s6305_s21 + $0x1e0] sm:$0xff] %v745_v60  ;;  %748 = vst [vmem:[%s6305_s21 + $0x1e8] sm:$0xff] %v747_v61  ;;  %v751_v63 = vld [vmem:[%s6300_s20 + $0x378] sm:$0xff]  ;;  %v753_v0 = vld [vmem:[%s6300_s20 + $0x400] sm:$0xff] }
  0x34   : > { %750 = vst [vmem:[%s6305_s21 + $0x1f0] sm:$0xff] %v749_v62  ;;  %v755_v1 = vld [vmem:[%s6300_s20 + $0x408] sm:$0xff]  ;;  %752 = vst [vmem:[%s6305_s21 + $0x1f8] sm:$0xff] %v751_v63  ;;  %v757_v2 = vld [vmem:[%s6300_s20 + $0x410] sm:$0xff] }
  0x35   : > { %754 = vst [vmem:[%s6305_s21 + $0x200] sm:$0xff] %v753_v0  ;;  %756 = vst [vmem:[%s6305_s21 + $0x208] sm:$0xff] %v755_v1  ;;  %v759_v3 = vld [vmem:[%s6300_s20 + $0x418] sm:$0xff]  ;;  %v761_v4 = vld [vmem:[%s6300_s20 + $0x420] sm:$0xff] }
  0x36   : > { %758 = vst [vmem:[%s6305_s21 + $0x210] sm:$0xff] %v757_v2  ;;  %760 = vst [vmem:[%s6305_s21 + $0x218] sm:$0xff] %v759_v3  ;;  %v763_v5 = vld [vmem:[%s6300_s20 + $0x428] sm:$0xff]  ;;  %v765_v6 = vld [vmem:[%s6300_s20 + $0x430] sm:$0xff] }
  0x37   : > { %762 = vst [vmem:[%s6305_s21 + $0x220] sm:$0xff] %v761_v4  ;;  %v767_v7 = vld [vmem:[%s6300_s20 + $0x438] sm:$0xff]  ;;  %764 = vst [vmem:[%s6305_s21 + $0x228] sm:$0xff] %v763_v5  ;;  %v769_v8 = vld [vmem:[%s6300_s20 + $0x440] sm:$0xff] }
  0x38   : > { %766 = vst [vmem:[%s6305_s21 + $0x230] sm:$0xff] %v765_v6  ;;  %768 = vst [vmem:[%s6305_s21 + $0x238] sm:$0xff] %v767_v7  ;;  %v771_v9 = vld [vmem:[%s6300_s20 + $0x448] sm:$0xff]  ;;  %v773_v10 = vld [vmem:[%s6300_s20 + $0x450] sm:$0xff] }
  0x39   : > { %770 = vst [vmem:[%s6305_s21 + $0x240] sm:$0xff] %v769_v8  ;;  %772 = vst [vmem:[%s6305_s21 + $0x248] sm:$0xff] %v771_v9  ;;  %v775_v11 = vld [vmem:[%s6300_s20 + $0x458] sm:$0xff]  ;;  %v777_v12 = vld [vmem:[%s6300_s20 + $0x460] sm:$0xff] }
  0x3a   : > { %774 = vst [vmem:[%s6305_s21 + $0x250] sm:$0xff] %v773_v10  ;;  %v779_v13 = vld [vmem:[%s6300_s20 + $0x468] sm:$0xff]  ;;  %776 = vst [vmem:[%s6305_s21 + $0x258] sm:$0xff] %v775_v11  ;;  %v781_v14 = vld [vmem:[%s6300_s20 + $0x470] sm:$0xff] }
  0x3b   : > { %778 = vst [vmem:[%s6305_s21 + $0x260] sm:$0xff] %v777_v12  ;;  %780 = vst [vmem:[%s6305_s21 + $0x268] sm:$0xff] %v779_v13  ;;  %v783_v15 = vld [vmem:[%s6300_s20 + $0x478] sm:$0xff]  ;;  %v785_v16 = vld [vmem:[%s6300_s20 + $0x500] sm:$0xff] }
  0x3c   : > { %782 = vst [vmem:[%s6305_s21 + $0x270] sm:$0xff] %v781_v14  ;;  %784 = vst [vmem:[%s6305_s21 + $0x278] sm:$0xff] %v783_v15  ;;  %v787_v17 = vld [vmem:[%s6300_s20 + $0x508] sm:$0xff]  ;;  %v789_v18 = vld [vmem:[%s6300_s20 + $0x510] sm:$0xff] }
  0x3d   : > { %786 = vst [vmem:[%s6305_s21 + $0x280] sm:$0xff] %v785_v16  ;;  %v791_v19 = vld [vmem:[%s6300_s20 + $0x518] sm:$0xff]  ;;  %788 = vst [vmem:[%s6305_s21 + $0x288] sm:$0xff] %v787_v17  ;;  %v793_v20 = vld [vmem:[%s6300_s20 + $0x520] sm:$0xff] }
  0x3e   : > { %790 = vst [vmem:[%s6305_s21 + $0x290] sm:$0xff] %v789_v18  ;;  %792 = vst [vmem:[%s6305_s21 + $0x298] sm:$0xff] %v791_v19  ;;  %v795_v21 = vld [vmem:[%s6300_s20 + $0x528] sm:$0xff]  ;;  %v797_v22 = vld [vmem:[%s6300_s20 + $0x530] sm:$0xff] }
  0x3f   : > { %794 = vst [vmem:[%s6305_s21 + $0x2a0] sm:$0xff] %v793_v20  ;;  %796 = vst [vmem:[%s6305_s21 + $0x2a8] sm:$0xff] %v795_v21  ;;  %v799_v23 = vld [vmem:[%s6300_s20 + $0x538] sm:$0xff]  ;;  %v801_v24 = vld [vmem:[%s6300_s20 + $0x540] sm:$0xff] }
  0x40   : > { %798 = vst [vmem:[%s6305_s21 + $0x2b0] sm:$0xff] %v797_v22  ;;  %v803_v25 = vld [vmem:[%s6300_s20 + $0x548] sm:$0xff]  ;;  %800 = vst [vmem:[%s6305_s21 + $0x2b8] sm:$0xff] %v799_v23  ;;  %v805_v26 = vld [vmem:[%s6300_s20 + $0x550] sm:$0xff] }
  0x41   : > { %802 = vst [vmem:[%s6305_s21 + $0x2c0] sm:$0xff] %v801_v24  ;;  %804 = vst [vmem:[%s6305_s21 + $0x2c8] sm:$0xff] %v803_v25  ;;  %v807_v27 = vld [vmem:[%s6300_s20 + $0x558] sm:$0xff]  ;;  %v809_v28 = vld [vmem:[%s6300_s20 + $0x560] sm:$0xff] }
  0x42   : > { %806 = vst [vmem:[%s6305_s21 + $0x2d0] sm:$0xff] %v805_v26  ;;  %808 = vst [vmem:[%s6305_s21 + $0x2d8] sm:$0xff] %v807_v27  ;;  %v811_v29 = vld [vmem:[%s6300_s20 + $0x568] sm:$0xff]  ;;  %v813_v30 = vld [vmem:[%s6300_s20 + $0x570] sm:$0xff] }
  0x43   : > { %810 = vst [vmem:[%s6305_s21 + $0x2e0] sm:$0xff] %v809_v28  ;;  %v815_v31 = vld [vmem:[%s6300_s20 + $0x578] sm:$0xff]  ;;  %812 = vst [vmem:[%s6305_s21 + $0x2e8] sm:$0xff] %v811_v29  ;;  %v817_v32 = vld [vmem:[%s6300_s20 + $0x600] sm:$0xff] }
  0x44   : > { %814 = vst [vmem:[%s6305_s21 + $0x2f0] sm:$0xff] %v813_v30  ;;  %816 = vst [vmem:[%s6305_s21 + $0x2f8] sm:$0xff] %v815_v31  ;;  %v819_v33 = vld [vmem:[%s6300_s20 + $0x608] sm:$0xff]  ;;  %v821_v34 = vld [vmem:[%s6300_s20 + $0x610] sm:$0xff] }
  0x45   : > { %818 = vst [vmem:[%s6305_s21 + $0x300] sm:$0xff] %v817_v32  ;;  %820 = vst [vmem:[%s6305_s21 + $0x308] sm:$0xff] %v819_v33  ;;  %v823_v35 = vld [vmem:[%s6300_s20 + $0x618] sm:$0xff]  ;;  %v825_v36 = vld [vmem:[%s6300_s20 + $0x620] sm:$0xff] }
  0x46   : > { %822 = vst [vmem:[%s6305_s21 + $0x310] sm:$0xff] %v821_v34  ;;  %v827_v37 = vld [vmem:[%s6300_s20 + $0x628] sm:$0xff]  ;;  %824 = vst [vmem:[%s6305_s21 + $0x318] sm:$0xff] %v823_v35  ;;  %v829_v38 = vld [vmem:[%s6300_s20 + $0x630] sm:$0xff] }
  0x47   : > { %826 = vst [vmem:[%s6305_s21 + $0x320] sm:$0xff] %v825_v36  ;;  %828 = vst [vmem:[%s6305_s21 + $0x328] sm:$0xff] %v827_v37  ;;  %v831_v39 = vld [vmem:[%s6300_s20 + $0x638] sm:$0xff]  ;;  %v833_v40 = vld [vmem:[%s6300_s20 + $0x640] sm:$0xff] }
  0x48   : > { %830 = vst [vmem:[%s6305_s21 + $0x330] sm:$0xff] %v829_v38  ;;  %832 = vst [vmem:[%s6305_s21 + $0x338] sm:$0xff] %v831_v39  ;;  %v835_v41 = vld [vmem:[%s6300_s20 + $0x648] sm:$0xff]  ;;  %v837_v42 = vld [vmem:[%s6300_s20 + $0x650] sm:$0xff] }
  0x49   : > { %834 = vst [vmem:[%s6305_s21 + $0x340] sm:$0xff] %v833_v40  ;;  %v839_v43 = vld [vmem:[%s6300_s20 + $0x658] sm:$0xff]  ;;  %836 = vst [vmem:[%s6305_s21 + $0x348] sm:$0xff] %v835_v41  ;;  %v841_v44 = vld [vmem:[%s6300_s20 + $0x660] sm:$0xff] }
  0x4a   : > { %838 = vst [vmem:[%s6305_s21 + $0x350] sm:$0xff] %v837_v42  ;;  %840 = vst [vmem:[%s6305_s21 + $0x358] sm:$0xff] %v839_v43  ;;  %v843_v45 = vld [vmem:[%s6300_s20 + $0x668] sm:$0xff]  ;;  %v845_v46 = vld [vmem:[%s6300_s20 + $0x670] sm:$0xff] }
  0x4b   : > { %842 = vst [vmem:[%s6305_s21 + $0x360] sm:$0xff] %v841_v44  ;;  %844 = vst [vmem:[%s6305_s21 + $0x368] sm:$0xff] %v843_v45  ;;  %v847_v47 = vld [vmem:[%s6300_s20 + $0x678] sm:$0xff]  ;;  %v849_v48 = vld [vmem:[%s6300_s20 + $0x700] sm:$0xff] }
  0x4c   : > { %846 = vst [vmem:[%s6305_s21 + $0x370] sm:$0xff] %v845_v46  ;;  %v851_v49 = vld [vmem:[%s6300_s20 + $0x708] sm:$0xff]  ;;  %848 = vst [vmem:[%s6305_s21 + $0x378] sm:$0xff] %v847_v47  ;;  %v853_v50 = vld [vmem:[%s6300_s20 + $0x710] sm:$0xff] }
  0x4d   : > { %850 = vst [vmem:[%s6305_s21 + $0x380] sm:$0xff] %v849_v48  ;;  %852 = vst [vmem:[%s6305_s21 + $0x388] sm:$0xff] %v851_v49  ;;  %v855_v51 = vld [vmem:[%s6300_s20 + $0x718] sm:$0xff]  ;;  %v857_v52 = vld [vmem:[%s6300_s20 + $0x720] sm:$0xff] }
  0x4e   : > { %854 = vst [vmem:[%s6305_s21 + $0x390] sm:$0xff] %v853_v50  ;;  %856 = vst [vmem:[%s6305_s21 + $0x398] sm:$0xff] %v855_v51  ;;  %v859_v53 = vld [vmem:[%s6300_s20 + $0x728] sm:$0xff]  ;;  %v861_v54 = vld [vmem:[%s6300_s20 + $0x730] sm:$0xff] }
  0x4f   : > { %858 = vst [vmem:[%s6305_s21 + $0x3a0] sm:$0xff] %v857_v52  ;;  %v863_v55 = vld [vmem:[%s6300_s20 + $0x738] sm:$0xff]  ;;  %860 = vst [vmem:[%s6305_s21 + $0x3a8] sm:$0xff] %v859_v53  ;;  %v865_v56 = vld [vmem:[%s6300_s20 + $0x740] sm:$0xff] }
  0x50   : > { %862 = vst [vmem:[%s6305_s21 + $0x3b0] sm:$0xff] %v861_v54  ;;  %864 = vst [vmem:[%s6305_s21 + $0x3b8] sm:$0xff] %v863_v55  ;;  %v867_v57 = vld [vmem:[%s6300_s20 + $0x748] sm:$0xff]  ;;  %v869_v58 = vld [vmem:[%s6300_s20 + $0x750] sm:$0xff] }
  0x51   : > { %866 = vst [vmem:[%s6305_s21 + $0x3c0] sm:$0xff] %v865_v56  ;;  %868 = vst [vmem:[%s6305_s21 + $0x3c8] sm:$0xff] %v867_v57  ;;  %v871_v59 = vld [vmem:[%s6300_s20 + $0x758] sm:$0xff]  ;;  %v873_v60 = vld [vmem:[%s6300_s20 + $0x760] sm:$0xff] }
  0x52   : > { %870 = vst [vmem:[%s6305_s21 + $0x3d0] sm:$0xff] %v869_v58  ;;  %v875_v61 = vld [vmem:[%s6300_s20 + $0x768] sm:$0xff]  ;;  %872 = vst [vmem:[%s6305_s21 + $0x3d8] sm:$0xff] %v871_v59  ;;  %v877_v62 = vld [vmem:[%s6300_s20 + $0x770] sm:$0xff] }
  0x53   : > { %874 = vst [vmem:[%s6305_s21 + $0x3e0] sm:$0xff] %v873_v60  ;;  %876 = vst [vmem:[%s6305_s21 + $0x3e8] sm:$0xff] %v875_v61  ;;  %v879_v63 = vld [vmem:[%s6300_s20 + $0x778] sm:$0xff]  ;;  %v881_v0 = vld [vmem:[%s6300_s20 + $0x800] sm:$0xff] }
  0x54   : > { %878 = vst [vmem:[%s6305_s21 + $0x3f0] sm:$0xff] %v877_v62  ;;  %880 = vst [vmem:[%s6305_s21 + $0x3f8] sm:$0xff] %v879_v63  ;;  %v883_v1 = vld [vmem:[%s6300_s20 + $0x808] sm:$0xff]  ;;  %v885_v2 = vld [vmem:[%s6300_s20 + $0x810] sm:$0xff] }
  0x55   : > { %882 = vst [vmem:[%s6305_s21 + $0x400] sm:$0xff] %v881_v0  ;;  %v887_v3 = vld [vmem:[%s6300_s20 + $0x818] sm:$0xff]  ;;  %884 = vst [vmem:[%s6305_s21 + $0x408] sm:$0xff] %v883_v1  ;;  %v889_v4 = vld [vmem:[%s6300_s20 + $0x820] sm:$0xff] }
  0x56   : > { %886 = vst [vmem:[%s6305_s21 + $0x410] sm:$0xff] %v885_v2  ;;  %888 = vst [vmem:[%s6305_s21 + $0x418] sm:$0xff] %v887_v3  ;;  %v891_v5 = vld [vmem:[%s6300_s20 + $0x828] sm:$0xff]  ;;  %v893_v6 = vld [vmem:[%s6300_s20 + $0x830] sm:$0xff] }
  0x57   : > { %890 = vst [vmem:[%s6305_s21 + $0x420] sm:$0xff] %v889_v4  ;;  %892 = vst [vmem:[%s6305_s21 + $0x428] sm:$0xff] %v891_v5  ;;  %v895_v7 = vld [vmem:[%s6300_s20 + $0x838] sm:$0xff]  ;;  %v897_v8 = vld [vmem:[%s6300_s20 + $0x840] sm:$0xff] }
  0x58   : > { %894 = vst [vmem:[%s6305_s21 + $0x430] sm:$0xff] %v893_v6  ;;  %v899_v9 = vld [vmem:[%s6300_s20 + $0x848] sm:$0xff]  ;;  %896 = vst [vmem:[%s6305_s21 + $0x438] sm:$0xff] %v895_v7  ;;  %v901_v10 = vld [vmem:[%s6300_s20 + $0x850] sm:$0xff] }
  0x59   : > { %898 = vst [vmem:[%s6305_s21 + $0x440] sm:$0xff] %v897_v8  ;;  %900 = vst [vmem:[%s6305_s21 + $0x448] sm:$0xff] %v899_v9  ;;  %v903_v11 = vld [vmem:[%s6300_s20 + $0x858] sm:$0xff]  ;;  %v905_v12 = vld [vmem:[%s6300_s20 + $0x860] sm:$0xff] }
  0x5a   : > { %902 = vst [vmem:[%s6305_s21 + $0x450] sm:$0xff] %v901_v10  ;;  %904 = vst [vmem:[%s6305_s21 + $0x458] sm:$0xff] %v903_v11  ;;  %v907_v13 = vld [vmem:[%s6300_s20 + $0x868] sm:$0xff]  ;;  %v909_v14 = vld [vmem:[%s6300_s20 + $0x870] sm:$0xff] }
  0x5b   : > { %906 = vst [vmem:[%s6305_s21 + $0x460] sm:$0xff] %v905_v12  ;;  %v911_v15 = vld [vmem:[%s6300_s20 + $0x878] sm:$0xff]  ;;  %908 = vst [vmem:[%s6305_s21 + $0x468] sm:$0xff] %v907_v13  ;;  %v913_v16 = vld [vmem:[%s6300_s20 + $0x900] sm:$0xff] }
  0x5c   : > { %910 = vst [vmem:[%s6305_s21 + $0x470] sm:$0xff] %v909_v14  ;;  %912 = vst [vmem:[%s6305_s21 + $0x478] sm:$0xff] %v911_v15  ;;  %v915_v17 = vld [vmem:[%s6300_s20 + $0x908] sm:$0xff]  ;;  %v917_v18 = vld [vmem:[%s6300_s20 + $0x910] sm:$0xff] }
  0x5d   : > { %914 = vst [vmem:[%s6305_s21 + $0x480] sm:$0xff] %v913_v16  ;;  %916 = vst [vmem:[%s6305_s21 + $0x488] sm:$0xff] %v915_v17  ;;  %v919_v19 = vld [vmem:[%s6300_s20 + $0x918] sm:$0xff]  ;;  %v921_v20 = vld [vmem:[%s6300_s20 + $0x920] sm:$0xff] }
  0x5e   : > { %918 = vst [vmem:[%s6305_s21 + $0x490] sm:$0xff] %v917_v18  ;;  %v923_v21 = vld [vmem:[%s6300_s20 + $0x928] sm:$0xff]  ;;  %920 = vst [vmem:[%s6305_s21 + $0x498] sm:$0xff] %v919_v19  ;;  %v925_v22 = vld [vmem:[%s6300_s20 + $0x930] sm:$0xff] }
  0x5f   : > { %922 = vst [vmem:[%s6305_s21 + $0x4a0] sm:$0xff] %v921_v20  ;;  %924 = vst [vmem:[%s6305_s21 + $0x4a8] sm:$0xff] %v923_v21  ;;  %v927_v23 = vld [vmem:[%s6300_s20 + $0x938] sm:$0xff]  ;;  %v929_v24 = vld [vmem:[%s6300_s20 + $0x940] sm:$0xff] }
  0x60   : > { %926 = vst [vmem:[%s6305_s21 + $0x4b0] sm:$0xff] %v925_v22  ;;  %928 = vst [vmem:[%s6305_s21 + $0x4b8] sm:$0xff] %v927_v23  ;;  %v931_v25 = vld [vmem:[%s6300_s20 + $0x948] sm:$0xff]  ;;  %v933_v26 = vld [vmem:[%s6300_s20 + $0x950] sm:$0xff] }
  0x61   : > { %930 = vst [vmem:[%s6305_s21 + $0x4c0] sm:$0xff] %v929_v24  ;;  %v935_v27 = vld [vmem:[%s6300_s20 + $0x958] sm:$0xff]  ;;  %932 = vst [vmem:[%s6305_s21 + $0x4c8] sm:$0xff] %v931_v25  ;;  %v937_v28 = vld [vmem:[%s6300_s20 + $0x960] sm:$0xff] }
  0x62   : > { %934 = vst [vmem:[%s6305_s21 + $0x4d0] sm:$0xff] %v933_v26  ;;  %936 = vst [vmem:[%s6305_s21 + $0x4d8] sm:$0xff] %v935_v27  ;;  %v939_v29 = vld [vmem:[%s6300_s20 + $0x968] sm:$0xff]  ;;  %v941_v30 = vld [vmem:[%s6300_s20 + $0x970] sm:$0xff] }
  0x63   : > { %938 = vst [vmem:[%s6305_s21 + $0x4e0] sm:$0xff] %v937_v28  ;;  %940 = vst [vmem:[%s6305_s21 + $0x4e8] sm:$0xff] %v939_v29  ;;  %v943_v31 = vld [vmem:[%s6300_s20 + $0x978] sm:$0xff]  ;;  %v945_v32 = vld [vmem:[%s6300_s20 + $0xa00] sm:$0xff] }
  0x64   : > { %942 = vst [vmem:[%s6305_s21 + $0x4f0] sm:$0xff] %v941_v30  ;;  %v947_v33 = vld [vmem:[%s6300_s20 + $0xa08] sm:$0xff]  ;;  %944 = vst [vmem:[%s6305_s21 + $0x4f8] sm:$0xff] %v943_v31  ;;  %v949_v34 = vld [vmem:[%s6300_s20 + $0xa10] sm:$0xff] }
  0x65   : > { %946 = vst [vmem:[%s6305_s21 + $0x500] sm:$0xff] %v945_v32  ;;  %948 = vst [vmem:[%s6305_s21 + $0x508] sm:$0xff] %v947_v33  ;;  %v951_v35 = vld [vmem:[%s6300_s20 + $0xa18] sm:$0xff]  ;;  %v953_v36 = vld [vmem:[%s6300_s20 + $0xa20] sm:$0xff] }
  0x66   : > { %950 = vst [vmem:[%s6305_s21 + $0x510] sm:$0xff] %v949_v34  ;;  %952 = vst [vmem:[%s6305_s21 + $0x518] sm:$0xff] %v951_v35  ;;  %v955_v37 = vld [vmem:[%s6300_s20 + $0xa28] sm:$0xff]  ;;  %v957_v38 = vld [vmem:[%s6300_s20 + $0xa30] sm:$0xff] }
  0x67   : > { %954 = vst [vmem:[%s6305_s21 + $0x520] sm:$0xff] %v953_v36  ;;  %v959_v39 = vld [vmem:[%s6300_s20 + $0xa38] sm:$0xff]  ;;  %956 = vst [vmem:[%s6305_s21 + $0x528] sm:$0xff] %v955_v37  ;;  %v961_v40 = vld [vmem:[%s6300_s20 + $0xa40] sm:$0xff] }
  0x68   : > { %958 = vst [vmem:[%s6305_s21 + $0x530] sm:$0xff] %v957_v38  ;;  %960 = vst [vmem:[%s6305_s21 + $0x538] sm:$0xff] %v959_v39  ;;  %v963_v41 = vld [vmem:[%s6300_s20 + $0xa48] sm:$0xff]  ;;  %v965_v42 = vld [vmem:[%s6300_s20 + $0xa50] sm:$0xff] }
  0x69   : > { %962 = vst [vmem:[%s6305_s21 + $0x540] sm:$0xff] %v961_v40  ;;  %964 = vst [vmem:[%s6305_s21 + $0x548] sm:$0xff] %v963_v41  ;;  %v967_v43 = vld [vmem:[%s6300_s20 + $0xa58] sm:$0xff]  ;;  %v969_v44 = vld [vmem:[%s6300_s20 + $0xa60] sm:$0xff] }
  0x6a   : > { %966 = vst [vmem:[%s6305_s21 + $0x550] sm:$0xff] %v965_v42  ;;  %v971_v45 = vld [vmem:[%s6300_s20 + $0xa68] sm:$0xff]  ;;  %968 = vst [vmem:[%s6305_s21 + $0x558] sm:$0xff] %v967_v43  ;;  %v973_v46 = vld [vmem:[%s6300_s20 + $0xa70] sm:$0xff] }
  0x6b   : > { %970 = vst [vmem:[%s6305_s21 + $0x560] sm:$0xff] %v969_v44  ;;  %972 = vst [vmem:[%s6305_s21 + $0x568] sm:$0xff] %v971_v45  ;;  %v975_v47 = vld [vmem:[%s6300_s20 + $0xa78] sm:$0xff]  ;;  %v977_v48 = vld [vmem:[%s6300_s20 + $0xb00] sm:$0xff] }
  0x6c   : > { %974 = vst [vmem:[%s6305_s21 + $0x570] sm:$0xff] %v973_v46  ;;  %976 = vst [vmem:[%s6305_s21 + $0x578] sm:$0xff] %v975_v47  ;;  %v979_v49 = vld [vmem:[%s6300_s20 + $0xb08] sm:$0xff]  ;;  %v981_v50 = vld [vmem:[%s6300_s20 + $0xb10] sm:$0xff] }
  0x6d   : > { %978 = vst [vmem:[%s6305_s21 + $0x580] sm:$0xff] %v977_v48  ;;  %v983_v51 = vld [vmem:[%s6300_s20 + $0xb18] sm:$0xff]  ;;  %980 = vst [vmem:[%s6305_s21 + $0x588] sm:$0xff] %v979_v49  ;;  %v985_v52 = vld [vmem:[%s6300_s20 + $0xb20] sm:$0xff] }
  0x6e   : > { %982 = vst [vmem:[%s6305_s21 + $0x590] sm:$0xff] %v981_v50  ;;  %984 = vst [vmem:[%s6305_s21 + $0x598] sm:$0xff] %v983_v51  ;;  %v987_v53 = vld [vmem:[%s6300_s20 + $0xb28] sm:$0xff]  ;;  %v989_v54 = vld [vmem:[%s6300_s20 + $0xb30] sm:$0xff] }
  0x6f   : > { %986 = vst [vmem:[%s6305_s21 + $0x5a0] sm:$0xff] %v985_v52  ;;  %988 = vst [vmem:[%s6305_s21 + $0x5a8] sm:$0xff] %v987_v53  ;;  %v991_v55 = vld [vmem:[%s6300_s20 + $0xb38] sm:$0xff]  ;;  %v993_v56 = vld [vmem:[%s6300_s20 + $0xb40] sm:$0xff] }
  0x70   : > { %990 = vst [vmem:[%s6305_s21 + $0x5b0] sm:$0xff] %v989_v54  ;;  %v995_v57 = vld [vmem:[%s6300_s20 + $0xb48] sm:$0xff]  ;;  %992 = vst [vmem:[%s6305_s21 + $0x5b8] sm:$0xff] %v991_v55  ;;  %v997_v58 = vld [vmem:[%s6300_s20 + $0xb50] sm:$0xff] }
  0x71   : > { %994 = vst [vmem:[%s6305_s21 + $0x5c0] sm:$0xff] %v993_v56  ;;  %996 = vst [vmem:[%s6305_s21 + $0x5c8] sm:$0xff] %v995_v57  ;;  %v999_v59 = vld [vmem:[%s6300_s20 + $0xb58] sm:$0xff]  ;;  %v1001_v60 = vld [vmem:[%s6300_s20 + $0xb60] sm:$0xff] }
  0x72   : > { %998 = vst [vmem:[%s6305_s21 + $0x5d0] sm:$0xff] %v997_v58  ;;  %1000 = vst [vmem:[%s6305_s21 + $0x5d8] sm:$0xff] %v999_v59  ;;  %v1003_v61 = vld [vmem:[%s6300_s20 + $0xb68] sm:$0xff]  ;;  %v1005_v62 = vld [vmem:[%s6300_s20 + $0xb70] sm:$0xff] }
  0x73   : > { %1002 = vst [vmem:[%s6305_s21 + $0x5e0] sm:$0xff] %v1001_v60  ;;  %v1007_v63 = vld [vmem:[%s6300_s20 + $0xb78] sm:$0xff]  ;;  %1004 = vst [vmem:[%s6305_s21 + $0x5e8] sm:$0xff] %v1003_v61  ;;  %v1009_v0 = vld [vmem:[%s6300_s20 + $0xc00] sm:$0xff] }
  0x74   : > { %1006 = vst [vmem:[%s6305_s21 + $0x5f0] sm:$0xff] %v1005_v62  ;;  %1008 = vst [vmem:[%s6305_s21 + $0x5f8] sm:$0xff] %v1007_v63  ;;  %v1011_v1 = vld [vmem:[%s6300_s20 + $0xc08] sm:$0xff]  ;;  %v1013_v2 = vld [vmem:[%s6300_s20 + $0xc10] sm:$0xff] }
  0x75   : > { %1010 = vst [vmem:[%s6305_s21 + $0x600] sm:$0xff] %v1009_v0  ;;  %1012 = vst [vmem:[%s6305_s21 + $0x608] sm:$0xff] %v1011_v1  ;;  %v1015_v3 = vld [vmem:[%s6300_s20 + $0xc18] sm:$0xff]  ;;  %v1017_v4 = vld [vmem:[%s6300_s20 + $0xc20] sm:$0xff] }
  0x76   : > { %1014 = vst [vmem:[%s6305_s21 + $0x610] sm:$0xff] %v1013_v2  ;;  %v1019_v5 = vld [vmem:[%s6300_s20 + $0xc28] sm:$0xff]  ;;  %1016 = vst [vmem:[%s6305_s21 + $0x618] sm:$0xff] %v1015_v3  ;;  %v1021_v6 = vld [vmem:[%s6300_s20 + $0xc30] sm:$0xff] }
  0x77   : > { %1018 = vst [vmem:[%s6305_s21 + $0x620] sm:$0xff] %v1017_v4  ;;  %1020 = vst [vmem:[%s6305_s21 + $0x628] sm:$0xff] %v1019_v5  ;;  %v1023_v7 = vld [vmem:[%s6300_s20 + $0xc38] sm:$0xff]  ;;  %v1025_v8 = vld [vmem:[%s6300_s20 + $0xc40] sm:$0xff] }
  0x78   : > { %1022 = vst [vmem:[%s6305_s21 + $0x630] sm:$0xff] %v1021_v6  ;;  %1024 = vst [vmem:[%s6305_s21 + $0x638] sm:$0xff] %v1023_v7  ;;  %v1027_v9 = vld [vmem:[%s6300_s20 + $0xc48] sm:$0xff]  ;;  %v1029_v10 = vld [vmem:[%s6300_s20 + $0xc50] sm:$0xff] }
  0x79   : > { %1026 = vst [vmem:[%s6305_s21 + $0x640] sm:$0xff] %v1025_v8  ;;  %v1031_v11 = vld [vmem:[%s6300_s20 + $0xc58] sm:$0xff]  ;;  %1028 = vst [vmem:[%s6305_s21 + $0x648] sm:$0xff] %v1027_v9  ;;  %v1033_v12 = vld [vmem:[%s6300_s20 + $0xc60] sm:$0xff] }
  0x7a   : > { %1030 = vst [vmem:[%s6305_s21 + $0x650] sm:$0xff] %v1029_v10  ;;  %1032 = vst [vmem:[%s6305_s21 + $0x658] sm:$0xff] %v1031_v11  ;;  %v1035_v13 = vld [vmem:[%s6300_s20 + $0xc68] sm:$0xff]  ;;  %v1037_v14 = vld [vmem:[%s6300_s20 + $0xc70] sm:$0xff] }
  0x7b   : > { %1034 = vst [vmem:[%s6305_s21 + $0x660] sm:$0xff] %v1033_v12  ;;  %1036 = vst [vmem:[%s6305_s21 + $0x668] sm:$0xff] %v1035_v13  ;;  %v1039_v15 = vld [vmem:[%s6300_s20 + $0xc78] sm:$0xff]  ;;  %v1041_v16 = vld [vmem:[%s6300_s20 + $0xd00] sm:$0xff] }
  0x7c   : > { %1038 = vst [vmem:[%s6305_s21 + $0x670] sm:$0xff] %v1037_v14  ;;  %v1043_v17 = vld [vmem:[%s6300_s20 + $0xd08] sm:$0xff]  ;;  %1040 = vst [vmem:[%s6305_s21 + $0x678] sm:$0xff] %v1039_v15  ;;  %v1045_v18 = vld [vmem:[%s6300_s20 + $0xd10] sm:$0xff] }
  0x7d   : > { %1042 = vst [vmem:[%s6305_s21 + $0x680] sm:$0xff] %v1041_v16  ;;  %1044 = vst [vmem:[%s6305_s21 + $0x688] sm:$0xff] %v1043_v17  ;;  %v1047_v19 = vld [vmem:[%s6300_s20 + $0xd18] sm:$0xff]  ;;  %v1049_v20 = vld [vmem:[%s6300_s20 + $0xd20] sm:$0xff] }
  0x7e   : > { %1046 = vst [vmem:[%s6305_s21 + $0x690] sm:$0xff] %v1045_v18  ;;  %1048 = vst [vmem:[%s6305_s21 + $0x698] sm:$0xff] %v1047_v19  ;;  %v1051_v21 = vld [vmem:[%s6300_s20 + $0xd28] sm:$0xff]  ;;  %v1053_v22 = vld [vmem:[%s6300_s20 + $0xd30] sm:$0xff] }
  0x7f   : > { %1050 = vst [vmem:[%s6305_s21 + $0x6a0] sm:$0xff] %v1049_v20  ;;  %v1055_v23 = vld [vmem:[%s6300_s20 + $0xd38] sm:$0xff]  ;;  %1052 = vst [vmem:[%s6305_s21 + $0x6a8] sm:$0xff] %v1051_v21  ;;  %v1057_v24 = vld [vmem:[%s6300_s20 + $0xd40] sm:$0xff] }
  0x80   : > { %1054 = vst [vmem:[%s6305_s21 + $0x6b0] sm:$0xff] %v1053_v22  ;;  %1056 = vst [vmem:[%s6305_s21 + $0x6b8] sm:$0xff] %v1055_v23  ;;  %v1059_v25 = vld [vmem:[%s6300_s20 + $0xd48] sm:$0xff]  ;;  %v1061_v26 = vld [vmem:[%s6300_s20 + $0xd50] sm:$0xff] }
  0x81   : > { %1058 = vst [vmem:[%s6305_s21 + $0x6c0] sm:$0xff] %v1057_v24  ;;  %1060 = vst [vmem:[%s6305_s21 + $0x6c8] sm:$0xff] %v1059_v25  ;;  %v1063_v27 = vld [vmem:[%s6300_s20 + $0xd58] sm:$0xff]  ;;  %v1065_v28 = vld [vmem:[%s6300_s20 + $0xd60] sm:$0xff] }
  0x82   : > { %1062 = vst [vmem:[%s6305_s21 + $0x6d0] sm:$0xff] %v1061_v26  ;;  %v1067_v29 = vld [vmem:[%s6300_s20 + $0xd68] sm:$0xff]  ;;  %1064 = vst [vmem:[%s6305_s21 + $0x6d8] sm:$0xff] %v1063_v27  ;;  %v1069_v30 = vld [vmem:[%s6300_s20 + $0xd70] sm:$0xff] }
  0x83   : > { %1066 = vst [vmem:[%s6305_s21 + $0x6e0] sm:$0xff] %v1065_v28  ;;  %1068 = vst [vmem:[%s6305_s21 + $0x6e8] sm:$0xff] %v1067_v29  ;;  %v1071_v31 = vld [vmem:[%s6300_s20 + $0xd78] sm:$0xff]  ;;  %v1073_v32 = vld [vmem:[%s6300_s20 + $0xe00] sm:$0xff] }
  0x84   : > { %1070 = vst [vmem:[%s6305_s21 + $0x6f0] sm:$0xff] %v1069_v30  ;;  %1072 = vst [vmem:[%s6305_s21 + $0x6f8] sm:$0xff] %v1071_v31  ;;  %v1075_v33 = vld [vmem:[%s6300_s20 + $0xe08] sm:$0xff]  ;;  %v1077_v34 = vld [vmem:[%s6300_s20 + $0xe10] sm:$0xff] }
  0x85   : > { %1074 = vst [vmem:[%s6305_s21 + $0x700] sm:$0xff] %v1073_v32  ;;  %v1079_v35 = vld [vmem:[%s6300_s20 + $0xe18] sm:$0xff]  ;;  %1076 = vst [vmem:[%s6305_s21 + $0x708] sm:$0xff] %v1075_v33  ;;  %v1081_v36 = vld [vmem:[%s6300_s20 + $0xe20] sm:$0xff] }
  0x86   : > { %1078 = vst [vmem:[%s6305_s21 + $0x710] sm:$0xff] %v1077_v34  ;;  %1080 = vst [vmem:[%s6305_s21 + $0x718] sm:$0xff] %v1079_v35  ;;  %v1083_v37 = vld [vmem:[%s6300_s20 + $0xe28] sm:$0xff]  ;;  %v1085_v38 = vld [vmem:[%s6300_s20 + $0xe30] sm:$0xff] }
  0x87   : > { %1082 = vst [vmem:[%s6305_s21 + $0x720] sm:$0xff] %v1081_v36  ;;  %1084 = vst [vmem:[%s6305_s21 + $0x728] sm:$0xff] %v1083_v37  ;;  %v1087_v39 = vld [vmem:[%s6300_s20 + $0xe38] sm:$0xff]  ;;  %v1089_v40 = vld [vmem:[%s6300_s20 + $0xe40] sm:$0xff] }
  0x88   : > { %1086 = vst [vmem:[%s6305_s21 + $0x730] sm:$0xff] %v1085_v38  ;;  %v1091_v41 = vld [vmem:[%s6300_s20 + $0xe48] sm:$0xff]  ;;  %1088 = vst [vmem:[%s6305_s21 + $0x738] sm:$0xff] %v1087_v39  ;;  %v1093_v42 = vld [vmem:[%s6300_s20 + $0xe50] sm:$0xff] }
  0x89   : > { %1090 = vst [vmem:[%s6305_s21 + $0x740] sm:$0xff] %v1089_v40  ;;  %1092 = vst [vmem:[%s6305_s21 + $0x748] sm:$0xff] %v1091_v41  ;;  %v1095_v43 = vld [vmem:[%s6300_s20 + $0xe58] sm:$0xff]  ;;  %v1097_v44 = vld [vmem:[%s6300_s20 + $0xe60] sm:$0xff] }
  0x8a   : > { %1094 = vst [vmem:[%s6305_s21 + $0x750] sm:$0xff] %v1093_v42  ;;  %1096 = vst [vmem:[%s6305_s21 + $0x758] sm:$0xff] %v1095_v43  ;;  %v1099_v45 = vld [vmem:[%s6300_s20 + $0xe68] sm:$0xff]  ;;  %v1101_v46 = vld [vmem:[%s6300_s20 + $0xe70] sm:$0xff] }
  0x8b   : > { %1098 = vst [vmem:[%s6305_s21 + $0x760] sm:$0xff] %v1097_v44  ;;  %v1103_v47 = vld [vmem:[%s6300_s20 + $0xe78] sm:$0xff]  ;;  %1100 = vst [vmem:[%s6305_s21 + $0x768] sm:$0xff] %v1099_v45  ;;  %v1105_v48 = vld [vmem:[%s6300_s20 + $0xf00] sm:$0xff] }
  0x8c   : > { %1102 = vst [vmem:[%s6305_s21 + $0x770] sm:$0xff] %v1101_v46  ;;  %1104 = vst [vmem:[%s6305_s21 + $0x778] sm:$0xff] %v1103_v47  ;;  %v1107_v49 = vld [vmem:[%s6300_s20 + $0xf08] sm:$0xff]  ;;  %v1109_v50 = vld [vmem:[%s6300_s20 + $0xf10] sm:$0xff] }
  0x8d   : > { %1106 = vst [vmem:[%s6305_s21 + $0x780] sm:$0xff] %v1105_v48  ;;  %1108 = vst [vmem:[%s6305_s21 + $0x788] sm:$0xff] %v1107_v49  ;;  %v1111_v51 = vld [vmem:[%s6300_s20 + $0xf18] sm:$0xff]  ;;  %v1113_v52 = vld [vmem:[%s6300_s20 + $0xf20] sm:$0xff] }
  0x8e   : > { %1110 = vst [vmem:[%s6305_s21 + $0x790] sm:$0xff] %v1109_v50  ;;  %v1115_v53 = vld [vmem:[%s6300_s20 + $0xf28] sm:$0xff]  ;;  %1112 = vst [vmem:[%s6305_s21 + $0x798] sm:$0xff] %v1111_v51  ;;  %v1117_v54 = vld [vmem:[%s6300_s20 + $0xf30] sm:$0xff] }
  0x8f   : > { %1114 = vst [vmem:[%s6305_s21 + $0x7a0] sm:$0xff] %v1113_v52  ;;  %1116 = vst [vmem:[%s6305_s21 + $0x7a8] sm:$0xff] %v1115_v53  ;;  %v1119_v55 = vld [vmem:[%s6300_s20 + $0xf38] sm:$0xff]  ;;  %v1121_v56 = vld [vmem:[%s6300_s20 + $0xf40] sm:$0xff] }
  0x90   : > { %1118 = vst [vmem:[%s6305_s21 + $0x7b0] sm:$0xff] %v1117_v54  ;;  %1120 = vst [vmem:[%s6305_s21 + $0x7b8] sm:$0xff] %v1119_v55  ;;  %v1123_v57 = vld [vmem:[%s6300_s20 + $0xf48] sm:$0xff]  ;;  %v1125_v58 = vld [vmem:[%s6300_s20 + $0xf50] sm:$0xff] }
  0x91   : > { %1122 = vst [vmem:[%s6305_s21 + $0x7c0] sm:$0xff] %v1121_v56  ;;  %v1127_v59 = vld [vmem:[%s6300_s20 + $0xf58] sm:$0xff]  ;;  %1124 = vst [vmem:[%s6305_s21 + $0x7c8] sm:$0xff] %v1123_v57  ;;  %v1129_v60 = vld [vmem:[%s6300_s20 + $0xf60] sm:$0xff] }
  0x92   : > { %1126 = vst [vmem:[%s6305_s21 + $0x7d0] sm:$0xff] %v1125_v58  ;;  %1128 = vst [vmem:[%s6305_s21 + $0x7d8] sm:$0xff] %v1127_v59  ;;  %v1131_v61 = vld [vmem:[%s6300_s20 + $0xf68] sm:$0xff]  ;;  %v1133_v62 = vld [vmem:[%s6300_s20 + $0xf70] sm:$0xff] }
  0x93   : > { %1130 = vst [vmem:[%s6305_s21 + $0x7e0] sm:$0xff] %v1129_v60  ;;  %1132 = vst [vmem:[%s6305_s21 + $0x7e8] sm:$0xff] %v1131_v61  ;;  %v1135_v63 = vld [vmem:[%s6300_s20 + $0xf78] sm:$0xff] }
  0x94   : > { %1134 = vst [vmem:[%s6305_s21 + $0x7f0] sm:$0xff] %v1133_v62  ;;  %1136 = vst [vmem:[%s6305_s21 + $0x7f8] sm:$0xff] %v1135_v63 }
  0x95 PF: > { %p6190_p7 = scmp.ge.s32.totalorder %s6246_s8, 1  ;;  %p1141_p8 = scmp.lt.s32.totalorder %s6246_s8, 3 }
  0x97   : > { %p1142_p9 = pnand %p6190_p7, %p1141_p8 }
  0x98   : > { %s1148_s22 = sand.u32 (!%p1142_p9), 1, %s6238_s6   ;;  %vm1423_vm0 = vcmask (!%p1142_p9), 523264   ;;  %vm4763_vm1 = vcmask (!%p1142_p9), 130112   ;;  %vm4770_vm2 = vcmask (!%p1142_p9), 195712   ;;  %vm4777_vm3 = vcmask (!%p1142_p9), 261312  }
  0x99   : > { %1145 = sbr.rel (%p1142_p9) target bundleno = 832 (0x340), region = 58  ;;  %s6191_s23 = sshll.u32 (!%p1142_p9), %s1148_s22, 11  ;;  %vm4784_vm4 = vcmask (!%p1142_p9), 326912   ;;  %vm4791_vm5 = vcmask (!%p1142_p9), 392512   ;;  %vm4798_vm6 = vcmask (!%p1142_p9), 458112   ;;  %vm4805_vm7 = vcmask (!%p1142_p9), 523712  }
  0x9a   : > { %s6821_s24 = scalar_lea.vmem (!%p1142_p9), [#allocation2], %s6191_s23  ;;  %vm4812_vm8 = vcmask (!%p1142_p9), 589312   ;;  %vm4819_vm9 = vcmask (!%p1142_p9), 654912   ;;  %vm8320_vm10 = vcmask (!%p1142_p9), 720512   ;;  %vm8318_vm11 = vcmask (!%p1142_p9), 786112   ;;  %s7763_s25 = sshll.u32 (!%p1142_p9), %s1148_s22, 3 }
  0x9b   : > { %v1169_v0 = vld [vmem:[%s6821_s24 + $0x10] sm:$0xff] (!%p1142_p9)  ;;  %v1167_v1 = vld [vmem:[%s6821_s24] sm:$0xff] (!%p1142_p9)  ;;  %v1170_v2 = vld [vmem:[%s6821_s24 + $0x18] sm:$0xff] (!%p1142_p9)  ;;  %vm8314_vm12 = vcmask (!%p1142_p9), 851712   ;;  %vm8312_vm13 = vcmask (!%p1142_p9), 917312   ;;  %vm4854_vm14 = vcmask (!%p1142_p9), 982912  }
  0x9c   : > { %v1430_v3 = vsel (!%p1142_p9), %vm1423_vm0, %v1169_v0, 0.0  ;;  %v1424_v4 = vsel (!%p1142_p9), %vm1423_vm0, %v1167_v1, 0.0  ;;  %v1168_v5 = vld [vmem:[%s6821_s24 + $0x8] sm:$0xff] (!%p1142_p9)  ;;  %v1433_v6 = vsel (!%p1142_p9), %vm1423_vm0, %v1170_v2, 0.0  ;;  %v1171_v9 = vld [vmem:[%s6821_s24 + $0x20] sm:$0xff] (!%p1142_p9)  ;;  %v1174_v12 = vld [vmem:[%s6821_s24 + $0x38] sm:$0xff] (!%p1142_p9) }
  0x9d   : > { %1431 = vadd.xlane.f32.xlu1 (!%p1142_p9), %v1430_v3  ;;  %1425 = vadd.xlane.f32.xlu0 (!%p1142_p9), %v1424_v4  ;;  %v1427_v7 = vsel (!%p1142_p9), %vm1423_vm0, %v1168_v5, 0.0  ;;  %v1172_v8 = vld [vmem:[%s6821_s24 + $0x28] sm:$0xff] (!%p1142_p9)  ;;  %v1436_v11 = vsel (!%p1142_p9), %vm1423_vm0, %v1171_v9, 0.0  ;;  %v1173_v13 = vld [vmem:[%s6821_s24 + $0x30] sm:$0xff] (!%p1142_p9)  ;;  %v1445_v14 = vsel (!%p1142_p9), %vm1423_vm0, %v1174_v12, 0.0  ;;  %v1175_v17 = vld [vmem:[%s6821_s24 + $0x40] sm:$0xff] (!%p1142_p9) }
  0x9e   : > { %v1439_v10 = vsel (!%p1142_p9), %vm1423_vm0, %v1172_v8, 0.0  ;;  %v1442_v15 = vsel (!%p1142_p9), %vm1423_vm0, %v1173_v13, 0.0  ;;  %v1176_v16 = vld [vmem:[%s6821_s24 + $0x48] sm:$0xff] (!%p1142_p9)  ;;  %v1448_v19 = vsel (!%p1142_p9), %vm1423_vm0, %v1175_v17, 0.0  ;;  %v1178_v20 = vld [vmem:[%s6821_s24 + $0x58] sm:$0xff] (!%p1142_p9)  ;;  %v1177_v21 = vld [vmem:[%s6821_s24 + $0x50] sm:$0xff] (!%p1142_p9) }
  0x9f   : > { %v1451_v18 = vsel (!%p1142_p9), %vm1423_vm0, %v1176_v16, 0.0  ;;  %v1457_v22 = vsel (!%p1142_p9), %vm1423_vm0, %v1178_v20, 0.0  ;;  %v1454_v23 = vsel (!%p1142_p9), %vm1423_vm0, %v1177_v21, 0.0  ;;  %v1180_v24 = vld [vmem:[%s6821_s24 + $0x68] sm:$0xff] (!%p1142_p9)  ;;  %v1179_v25 = vld [vmem:[%s6821_s24 + $0x60] sm:$0xff] (!%p1142_p9)  ;;  %v1182_v28 = vld [vmem:[%s6821_s24 + $0x78] sm:$0xff] (!%p1142_p9) }
  0xa0   : > { %v1463_v26 = vsel %vm1423_vm0, %v1180_v24, 0.0  ;;  %v1460_v27 = vsel %vm1423_vm0, %v1179_v25, 0.0  ;;  %v1181_v29 = vld [vmem:[%s6821_s24 + $0x70] sm:$0xff]  ;;  %v1469_v30 = vsel %vm1423_vm0, %v1182_v28, 0.0  ;;  %v1184_v32 = vld [vmem:[%s6821_s24 + $0x88] sm:$0xff]  ;;  %v1183_v33 = vld [vmem:[%s6821_s24 + $0x80] sm:$0xff] }
  0xa1   : > { %1434 = vadd.xlane.f32.xlu1 %v1433_v6  ;;  %1428 = vadd.xlane.f32.xlu0 %v1427_v7  ;;  %v1466_v31 = vsel %vm1423_vm0, %v1181_v29, 0.0  ;;  %v1475_v34 = vsel %vm1423_vm0, %v1184_v32, 0.0  ;;  %v1472_v35 = vsel %vm1423_vm0, %v1183_v33, 0.0  ;;  %v1186_v36 = vld [vmem:[%s6821_s24 + $0x98] sm:$0xff]  ;;  %v1185_v37 = vld [vmem:[%s6821_s24 + $0x90] sm:$0xff]  ;;  %v1188_v40 = vld [vmem:[%s6821_s24 + $0xa8] sm:$0xff] }
  0xa2   : > { %v1481_v38 = vsel %vm1423_vm0, %v1186_v36, 0.0  ;;  %v1478_v39 = vsel %vm1423_vm0, %v1185_v37, 0.0  ;;  %v1187_v41 = vld [vmem:[%s6821_s24 + $0xa0] sm:$0xff]  ;;  %v1487_v42 = vsel %vm1423_vm0, %v1188_v40, 0.0  ;;  %v1190_v44 = vld [vmem:[%s6821_s24 + $0xb8] sm:$0xff]  ;;  %v1189_v45 = vld [vmem:[%s6821_s24 + $0xb0] sm:$0xff] }
  0xa3   : > { %v1484_v43 = vsel %vm1423_vm0, %v1187_v41, 0.0  ;;  %v1493_v46 = vsel %vm1423_vm0, %v1190_v44, 0.0  ;;  %v1490_v47 = vsel %vm1423_vm0, %v1189_v45, 0.0  ;;  %v1192_v48 = vld [vmem:[%s6821_s24 + $0xc8] sm:$0xff]  ;;  %v1191_v49 = vld [vmem:[%s6821_s24 + $0xc0] sm:$0xff]  ;;  %v1194_v52 = vld [vmem:[%s6821_s24 + $0xd8] sm:$0xff] }
  0xa4   : > { %v1499_v50 = vsel %vm1423_vm0, %v1192_v48, 0.0  ;;  %v1496_v51 = vsel %vm1423_vm0, %v1191_v49, 0.0  ;;  %v1193_v53 = vld [vmem:[%s6821_s24 + $0xd0] sm:$0xff]  ;;  %v1505_v54 = vsel %vm1423_vm0, %v1194_v52, 0.0  ;;  %v1196_v56 = vld [vmem:[%s6821_s24 + $0xe8] sm:$0xff]  ;;  %v1195_v57 = vld [vmem:[%s6821_s24 + $0xe0] sm:$0xff] }
  0xa5   : > { %1440 = vadd.xlane.f32.xlu1 %v1439_v10  ;;  %1437 = vadd.xlane.f32.xlu0 %v1436_v11  ;;  %v1502_v55 = vsel %vm1423_vm0, %v1193_v53, 0.0  ;;  %v1511_v58 = vsel %vm1423_vm0, %v1196_v56, 0.0  ;;  %v1508_v59 = vsel %vm1423_vm0, %v1195_v57, 0.0  ;;  %v1198_v60 = vld [vmem:[%s6821_s24 + $0xf8] sm:$0xff]  ;;  %v1197_v61 = vld [vmem:[%s6821_s24 + $0xf0] sm:$0xff]  ;;  %v1200_v0 = vld [vmem:[%s6821_s24 + $0x108] sm:$0xff] }
  0xa6   : > { %v1517_v62 = vsel %vm1423_vm0, %v1198_v60, 0.0  ;;  %v1514_v63 = vsel %vm1423_vm0, %v1197_v61, 0.0  ;;  %v1199_v1 = vld [vmem:[%s6821_s24 + $0x100] sm:$0xff]  ;;  %v1523_v2 = vsel %vm1423_vm0, %v1200_v0, 0.0  ;;  %v1202_v4 = vld [vmem:[%s6821_s24 + $0x118] sm:$0xff]  ;;  %v1201_v5 = vld [vmem:[%s6821_s24 + $0x110] sm:$0xff] }
  0xa7   : > { %v1520_v3 = vsel %vm1423_vm0, %v1199_v1, 0.0  ;;  %v1529_v6 = vsel %vm1423_vm0, %v1202_v4, 0.0  ;;  %v1526_v7 = vsel %vm1423_vm0, %v1201_v5, 0.0  ;;  %v1204_v8 = vld [vmem:[%s6821_s24 + $0x128] sm:$0xff]  ;;  %v1203_v9 = vld [vmem:[%s6821_s24 + $0x120] sm:$0xff]  ;;  %v1206_v12 = vld [vmem:[%s6821_s24 + $0x138] sm:$0xff] }
  0xa8   : > { %v1535_v10 = vsel %vm1423_vm0, %v1204_v8, 0.0  ;;  %v1532_v11 = vsel %vm1423_vm0, %v1203_v9, 0.0  ;;  %v1205_v13 = vld [vmem:[%s6821_s24 + $0x130] sm:$0xff]  ;;  %v1208_v16 = vld [vmem:[%s6821_s24 + $0x148] sm:$0xff]  ;;  %v1207_v17 = vld [vmem:[%s6821_s24 + $0x140] sm:$0xff]  ;;  %vm4861_vm15 = vcmask 1048512  }
  0xa9   : > { %1446 = vadd.xlane.f32.xlu1 %v1445_v14  ;;  %1443 = vadd.xlane.f32.xlu0 %v1442_v15  ;;  %v1541_v14 = vsel %vm1423_vm0, %v1206_v12, 0.0  ;;  %v1538_v15 = vsel %vm1423_vm0, %v1205_v13, 0.0  ;;  %v1210_v20 = vld [vmem:[%s6821_s24 + $0x158] sm:$0xff]  ;;  %v1209_v21 = vld [vmem:[%s6821_s24 + $0x150] sm:$0xff]  ;;  %v1212_v24 = vld [vmem:[%s6821_s24 + $0x168] sm:$0xff]  ;;  %s7782_s26 = scalar_lea.vmem [#allocation3], %s7763_s25 }
  0xaa   : > { %v1211_v25 = vld [vmem:[%s6821_s24 + $0x160] sm:$0xff]  ;;  %v1214_v28 = vld [vmem:[%s6821_s24 + $0x178] sm:$0xff]  ;;  %v1213_v29 = vld [vmem:[%s6821_s24 + $0x170] sm:$0xff]  ;;  %s6194_s27 = sshll.u32 (%p6290_p5), %s6183_s9, 2 }
  0xab   : > { %v1216_v32 = vld [vmem:[%s6821_s24 + $0x188] sm:$0xff]  ;;  %v1215_v33 = vld [vmem:[%s6821_s24 + $0x180] sm:$0xff]  ;;  %v1218_v36 = vld [vmem:[%s6821_s24 + $0x198] sm:$0xff]  ;;  %s6083_s30 = scalar_lea.vmem (%p6290_p5), %s8311_s1, %s6194_s27 }
  0xac   : > { %v1217_v37 = vld [vmem:[%s6821_s24 + $0x190] sm:$0xff]  ;;  %v1220_v40 = vld [vmem:[%s6821_s24 + $0x1a8] sm:$0xff]  ;;  %v1219_v41 = vld [vmem:[%s6821_s24 + $0x1a0] sm:$0xff] }
  0xad   : > { %1452 = vadd.xlane.f32.xlu1 %v1451_v18  ;;  %1449 = vadd.xlane.f32.xlu0 %v1448_v19  ;;  %v1547_v18 = vsel %vm1423_vm0, %v1208_v16, 0.0  ;;  %v1544_v19 = vsel %vm1423_vm0, %v1207_v17, 0.0  ;;  %v1222_v44 = vld [vmem:[%s6821_s24 + $0x1b8] sm:$0xff]  ;;  %v1221_v45 = vld [vmem:[%s6821_s24 + $0x1b0] sm:$0xff]  ;;  %v1224_v48 = vld [vmem:[%s6821_s24 + $0x1c8] sm:$0xff] }
  0xae   : > { %v1223_v49 = vld [vmem:[%s6821_s24 + $0x1c0] sm:$0xff]  ;;  %v1226_v52 = vld [vmem:[%s6821_s24 + $0x1d8] sm:$0xff]  ;;  %v1225_v53 = vld [vmem:[%s6821_s24 + $0x1d0] sm:$0xff] }
  0xaf   : > { %v1228_v56 = vld [vmem:[%s6821_s24 + $0x1e8] sm:$0xff]  ;;  %v1227_v57 = vld [vmem:[%s6821_s24 + $0x1e0] sm:$0xff]  ;;  %v1230_v60 = vld [vmem:[%s6821_s24 + $0x1f8] sm:$0xff] }
  0xb0   : > { %v1229_v61 = vld [vmem:[%s6821_s24 + $0x1f0] sm:$0xff]  ;;  %v1232_v0 = vld [vmem:[%s6821_s24 + $0x208] sm:$0xff]  ;;  %v1231_v1 = vld [vmem:[%s6821_s24 + $0x200] sm:$0xff] }
  0xb1   : > { %1458 = vadd.xlane.f32.xlu1 %v1457_v22  ;;  %1455 = vadd.xlane.f32.xlu0 %v1454_v23  ;;  %v1553_v22 = vsel %vm1423_vm0, %v1210_v20, 0.0  ;;  %v1550_v23 = vsel %vm1423_vm0, %v1209_v21, 0.0  ;;  %v1234_v4 = vld [vmem:[%s6821_s24 + $0x218] sm:$0xff]  ;;  %v1233_v5 = vld [vmem:[%s6821_s24 + $0x210] sm:$0xff]  ;;  %v1236_v8 = vld [vmem:[%s6821_s24 + $0x228] sm:$0xff] }
  0xb2   : > { %v1235_v9 = vld [vmem:[%s6821_s24 + $0x220] sm:$0xff]  ;;  %v1238_v12 = vld [vmem:[%s6821_s24 + $0x238] sm:$0xff]  ;;  %v1237_v13 = vld [vmem:[%s6821_s24 + $0x230] sm:$0xff]  ;;  %v6249_v21 = vmov 1985246804  }
  0xb3   : > { %v1637_v17 = vsel %vm1423_vm0, %v1238_v12, 0.0  ;;  %v1239_v20 = vld [vmem:[%s6821_s24 + $0x240] sm:$0xff] }
  0xb5   : > { %1464 = vadd.xlane.f32.xlu1 %v1463_v26  ;;  %1461 = vadd.xlane.f32.xlu0 %v1460_v27  ;;  %v1559_v26 = vsel %vm1423_vm0, %v1212_v24, 0.0  ;;  %v1556_v27 = vsel %vm1423_vm0, %v1211_v25, 0.0  ;;  %v1640_v25 = vsel %vm1423_vm0, %v1239_v20, 0.0 }
  0xb9   : > { %1470 = vadd.xlane.f32.xlu1 %v1469_v30  ;;  %1467 = vadd.xlane.f32.xlu0 %v1466_v31  ;;  %v1565_v30 = vsel %vm1423_vm0, %v1214_v28, 0.0  ;;  %v1562_v31 = vsel %vm1423_vm0, %v1213_v29, 0.0  ;;  %v1242_v28 = vld [vmem:[%s6821_s24 + $0x258] sm:$0xff] }
  0xbd   : > { %1476 = vadd.xlane.f32.xlu1 %v1475_v34  ;;  %1473 = vadd.xlane.f32.xlu0 %v1472_v35  ;;  %v1571_v34 = vsel %vm1423_vm0, %v1216_v32, 0.0  ;;  %v1568_v35 = vsel %vm1423_vm0, %v1215_v33, 0.0 }
  0xc1   : > { %1482 = vadd.xlane.f32.xlu1 %v1481_v38  ;;  %1479 = vadd.xlane.f32.xlu0 %v1478_v39  ;;  %v1577_v38 = vsel %vm1423_vm0, %v1218_v36, 0.0  ;;  %v1574_v39 = vsel %vm1423_vm0, %v1217_v37, 0.0  ;;  %v1244_v36 = vld [vmem:[%s6821_s24 + $0x268] sm:$0xff]  ;;  %v1649_v37 = vsel %vm1423_vm0, %v1242_v28, 0.0 }
  0xc5   : > { %1488 = vadd.xlane.f32.xlu1 %v1487_v42  ;;  %1485 = vadd.xlane.f32.xlu0 %v1484_v43  ;;  %v1583_v42 = vsel %vm1423_vm0, %v1220_v40, 0.0  ;;  %v1580_v43 = vsel %vm1423_vm0, %v1219_v41, 0.0 }
  0xc9   : > { %1494 = vadd.xlane.f32.xlu1 %v1493_v46  ;;  %1491 = vadd.xlane.f32.xlu0 %v1490_v47  ;;  %v1589_v46 = vsel %vm1423_vm0, %v1222_v44, 0.0  ;;  %v1586_v47 = vsel %vm1423_vm0, %v1221_v45, 0.0  ;;  %v1243_v44 = vld [vmem:[%s6821_s24 + $0x260] sm:$0xff] }
  0xcd   : > { %1500 = vadd.xlane.f32.xlu1 %v1499_v50  ;;  %1497 = vadd.xlane.f32.xlu0 %v1496_v51  ;;  %v1595_v50 = vsel %vm1423_vm0, %v1224_v48, 0.0  ;;  %v1592_v51 = vsel %vm1423_vm0, %v1223_v49, 0.0 }
  0xd1   : > { %1506 = vadd.xlane.f32.xlu1 %v1505_v54  ;;  %1503 = vadd.xlane.f32.xlu0 %v1502_v55  ;;  %v1601_v54 = vsel %vm1423_vm0, %v1226_v52, 0.0  ;;  %v1598_v55 = vsel %vm1423_vm0, %v1225_v53, 0.0  ;;  %v1245_v52 = vld [vmem:[%s6821_s24 + $0x270] sm:$0xff] }
  0xd5   : > { %1512 = vadd.xlane.f32.xlu1 %v1511_v58  ;;  %1509 = vadd.xlane.f32.xlu0 %v1508_v59  ;;  %v1607_v58 = vsel %vm1423_vm0, %v1228_v56, 0.0  ;;  %v1604_v59 = vsel %vm1423_vm0, %v1227_v57, 0.0  ;;  %v1248_v57 = vld [vmem:[%s6821_s24 + $0x288] sm:$0xff] }
  0xd9   : > { %1518 = vadd.xlane.f32.xlu1 %v1517_v62  ;;  %1515 = vadd.xlane.f32.xlu0 %v1514_v63  ;;  %v1613_v62 = vsel %vm1423_vm0, %v1230_v60, 0.0  ;;  %v1610_v63 = vsel %vm1423_vm0, %v1229_v61, 0.0  ;;  %v1652_v61 = vsel %vm1423_vm0, %v1243_v44, 0.0 }
  0xdd   : > { %1524 = vadd.xlane.f32.xlu1 %v1523_v2  ;;  %1521 = vadd.xlane.f32.xlu0 %v1520_v3  ;;  %v1619_v2 = vsel %vm1423_vm0, %v1232_v0, 0.0  ;;  %v1616_v3 = vsel %vm1423_vm0, %v1231_v1, 0.0 }
  0xe1   : > { %1530 = vadd.xlane.f32.xlu1 %v1529_v6  ;;  %1527 = vadd.xlane.f32.xlu0 %v1526_v7  ;;  %v1625_v6 = vsel %vm1423_vm0, %v1234_v4, 0.0  ;;  %v1622_v7 = vsel %vm1423_vm0, %v1233_v5, 0.0  ;;  %v1658_v5 = vsel %vm1423_vm0, %v1245_v52, 0.0 }
  0xe5   : > { %1536 = vadd.xlane.f32.xlu1 %v1535_v10  ;;  %1533 = vadd.xlane.f32.xlu0 %v1532_v11  ;;  %v1631_v10 = vsel %vm1423_vm0, %v1236_v8, 0.0  ;;  %v1628_v11 = vsel %vm1423_vm0, %v1235_v9, 0.0 }
  0xe9   : > { %1542 = vadd.xlane.f32.xlu1 %v1541_v14  ;;  %1539 = vadd.xlane.f32.xlu0 %v1538_v15  ;;  %v2707_v14 = vlaneseq  ;;  %v6248_v15 = vmov 839922192  }
  0xea   : > { %v2705_v16 = vunpack.c.l.s4 %v6248_v15 }
  0xed   : > { %1548 = vadd.xlane.f32.xlu1 %v1547_v18  ;;  %1545 = vadd.xlane.f32.xlu0 %v1544_v19  ;;  %v1634_v18 = vsel %vm1423_vm0, %v1237_v13, 0.0  ;;  %v1240_v19 = vld [vmem:[%s6821_s24 + $0x248] sm:$0xff]  ;;  %v1250_v13 = vld [vmem:[%s6821_s24 + $0x298] sm:$0xff] }
  0xee   : > { %v1643_v24 = vsel %vm1423_vm0, %v1240_v19, 0.0 }
  0xf1   : > { %1554 = vadd.xlane.f32.xlu1 %v1553_v22  ;;  %1551 = vadd.xlane.f32.xlu0 %v1550_v23  ;;  %v2712_v22 = vunpack.c.l.s4 %v6249_v21  ;;  %v6969_v23 = vand.u32 127, %v2707_v14 }
  0xf3   : > { %v4765_v32 = vadd.s32 4294967280, %v6969_v23  ;;  %v4772_v33 = vadd.s32 4294967272, %v6969_v23  ;;  %v4800_v1 = vadd.s32 4294967240, %v6969_v23  ;;  %v4821_v44 = vadd.s32 4294967216, %v6969_v23 }
  0xf5   : > { %1560 = vadd.xlane.f32.xlu1 %v1559_v26  ;;  %1557 = vadd.xlane.f32.xlu0 %v1556_v27  ;;  %v2706_v26 = vunpack.c.0.s8 %v2705_v16  ;;  %v6973_v27 = vshrl.u32 %v2707_v14, 7  ;;  %v1249_v14 = vld [vmem:[%s6821_s24 + $0x290] sm:$0xff] }
  0xf7   : > { %v6985_v40 = vsub.s32 %v2706_v26, %v6973_v27  ;;  %v6989_v41 = vsub.s32 %v6969_v23, %v6973_v27  ;;  %v7035_v26 = vsub.s32 %v4800_v1, %v6973_v27 }
  0xf9   : > { %1566 = vadd.xlane.f32.xlu1 %v1565_v30  ;;  %1563 = vadd.xlane.f32.xlu0 %v1562_v31  ;;  %v2713_v31 = vunpack.c.0.s8 %v2712_v22 }
  0xfb   : > { %v6995_v45 = vsub.s32 %v2713_v31, %v6973_v27 }
  0xfd   : > { %1572 = vadd.xlane.f32.xlu1 %v1571_v34  ;;  %1569 = vadd.xlane.f32.xlu0 %v1568_v35  ;;  %v4758_v34 = vadd.s32 4294967288, %v6969_v23  ;;  %v1241_v35 = vld [vmem:[%s6821_s24 + $0x250] sm:$0xff] }
  0xff   : > { %v7004_v49 = vsub.s32 %v4758_v34, %v6973_v27 }
 0x101   : > { %1578 = vadd.xlane.f32.xlu1 %v1577_v38  ;;  %1575 = vadd.xlane.f32.xlu0 %v1574_v39  ;;  %v4779_v38 = vadd.s32 4294967264, %v6969_v23  ;;  %v4786_v39 = vadd.s32 4294967256, %v6969_v23 }
 0x103   : > { %v7014_v60 = vsub.s32 %v4786_v39, %v6973_v27 }
 0x105   : > { %1584 = vadd.xlane.f32.xlu1 %v1583_v42  ;;  %1581 = vadd.xlane.f32.xlu0 %v1580_v43  ;;  %v1646_v42 = vsel %vm1423_vm0, %v1241_v35, 0.0  ;;  %v1655_v43 = vsel %vm1423_vm0, %v1244_v36, 0.0 }
 0x109   : > { %1590 = vadd.xlane.f32.xlu1 %v1589_v46  ;;  %1587 = vadd.xlane.f32.xlu0 %v1586_v47  ;;  %v6998_v46 = vsub.s32 %v4765_v32, %v6973_v27  ;;  %v7001_v47 = vsub.s32 %v4772_v33, %v6973_v27 }
 0x10d   : > { %1596 = vadd.xlane.f32.xlu1 %v1595_v50  ;;  %1593 = vadd.xlane.f32.xlu0 %v1592_v51  ;;  %v1246_v51 = vld [vmem:[%s6821_s24 + $0x278] sm:$0xff] }
 0x111   : > { %1602 = vadd.xlane.f32.xlu1 %v1601_v54  ;;  %1599 = vadd.xlane.f32.xlu0 %v1598_v55 }
 0x115   : > { %1608 = vadd.xlane.f32.xlu1 %v1607_v58  ;;  %1605 = vadd.xlane.f32.xlu0 %v1604_v59  ;;  %v1247_v58 = vld [vmem:[%s6821_s24 + $0x280] sm:$0xff]  ;;  %v7011_v59 = vsub.s32 %v4779_v38, %v6973_v27 }
 0x116   : > { %v1664_v8 = vsel %vm1423_vm0, %v1247_v58, 0.0 }
 0x119   : > { %1614 = vadd.xlane.f32.xlu1 %v1613_v62  ;;  %1611 = vadd.xlane.f32.xlu0 %v1610_v63  ;;  %v4793_v62 = vadd.s32 4294967248, %v6969_v23 }
 0x11d   : > { %1620 = vadd.xlane.f32.xlu1 %v1619_v2  ;;  %1617 = vadd.xlane.f32.xlu0 %v1616_v3  ;;  %v1661_v2 = vsel %vm1423_vm0, %v1246_v51, 0.0 }
 0x121   : > { %1626 = vadd.xlane.f32.xlu1 %v1625_v6  ;;  %1623 = vadd.xlane.f32.xlu0 %v1622_v7  ;;  %v4807_v6 = vadd.s32 4294967232, %v6969_v23  ;;  %v1667_v7 = vsel %vm1423_vm0, %v1248_v57, 0.0 }
 0x123   : > { %v7043_v34 = vsub.s32 %v4807_v6, %v6973_v27 }
 0x125   : > { %1632 = vadd.xlane.f32.xlu1 %v1631_v10  ;;  %1629 = vadd.xlane.f32.xlu0 %v1628_v11 }
 0x129   : > { %1638 = vadd.xlane.f32.xlu1 %v1637_v17  ;;  %1635 = vadd.xlane.f32.xlu0 %v1634_v18  ;;  %v7031_v17 = vsub.s32 %v4793_v62, %v6973_v27  ;;  %v4814_v18 = vadd.s32 4294967224, %v6969_v23  ;;  %v4828_v62 = vadd.s32 4294967208, %v6969_v23 }
 0x12a   : > { %v1432_v29 = vpop.xlane.xlu1 %1431  ;;  %v1426_v30 = vpop.xlane.xlu0 %1425 }
 0x12b   : > { %v2194_v53 = vmul.f32 0.015625, %v1432_v29  ;;  %v2192_v54 = vmul.f32 0.015625, %v1426_v30  ;;  %v1673_v29 = vsel %vm1423_vm0, %v1250_v13, 0.0  ;;  %v1670_v30 = vsel %vm1423_vm0, %v1249_v14, 0.0 }
 0x12d   : > { %1644 = vadd.xlane.f32.xlu1 %v1643_v24  ;;  %1641 = vadd.xlane.f32.xlu0 %v1640_v25 }
 0x12e   : > { %v1435_v48 = vpop.xlane.xlu1 %1434  ;;  %v1429_v50 = vpop.xlane.xlu0 %1428 }
 0x12f   : > { %v2195_v55 = vmul.f32 0.015625, %v1435_v48  ;;  %v2193_v56 = vmul.f32 0.015625, %v1429_v50 }
 0x131   : > { %v2449_v63 = vpack.c.bf16 %v2195_v55, %v2194_v53  ;;  %v2448_v0 = vpack.c.bf16 %v2193_v56, %v2192_v54  ;;  %1650 = vadd.xlane.f32.xlu1 %v1649_v37  ;;  %1647 = vadd.xlane.f32.xlu0 %v1646_v42  ;;  %v1252_v55 = vld [vmem:[%s6821_s24 + $0x2a8] sm:$0xff]  ;;  %v1251_v56 = vld [vmem:[%s6821_s24 + $0x2a0] sm:$0xff] }
 0x132   : > { %v1441_v3 = vpop.xlane.xlu1 %1440  ;;  %v1438_v4 = vpop.xlane.xlu0 %1437 }
 0x133   : > { %v2724_v9 = vrot.slane %v2449_v63, %v6985_v40  ;;  %v2731_v10 = vrot.slane %v2449_v63, %v6995_v45  ;;  %v2710_v11 = vrot.slane %v2448_v0, %v6985_v40  ;;  %v2717_v12 = vrot.slane %v2448_v0, %v6995_v45 }
 0x134   : > { %v2197_v15 = vmul.f32 0.015625, %v1441_v3  ;;  %v2196_v16 = vmul.f32 0.015625, %v1438_v4  ;;  %v1679_v4 = vsel %vm1423_vm0, %v1252_v55, 0.0 }
 0x135   : > { %v4498_v19 = vunpack.c.l.b16 %v2724_v9  ;;  %v4499_v20 = vunpack.c.l.b16 %v2731_v10  ;;  %v4496_v21 = vunpack.c.l.b16 %v2710_v11  ;;  %v4497_v22 = vunpack.c.l.b16 %v2717_v12  ;;  %1656 = vadd.xlane.f32.xlu1 %v1655_v43  ;;  %1653 = vadd.xlane.f32.xlu0 %v1652_v61 }
 0x136   : > { %v2450_v24 = vpack.c.bf16 %v2197_v15, %v2196_v16  ;;  %v1447_v25 = vpop.xlane.xlu1 %1446  ;;  %v1444_v28 = vpop.xlane.xlu0 %1443  ;;  %v7050_v43 = vsub.s32 %v4814_v18, %v6973_v27  ;;  %v7066_v12 = vsub.s32 %v4821_v44, %v6973_v27  ;;  %v1254_v16 = vld [vmem:[%s6821_s24 + $0x2b8] sm:$0xff] }
 0x137   : > { %v4769_v31 = vrot.slane %v4498_v19, %v6998_v46  ;;  %v4757_v32 = vrot.slane %v4496_v21, %v6989_v41  ;;  %v4762_v33 = vrot.slane %v4497_v22, %v7004_v49  ;;  %v2199_v37 = vmul.f32 0.015625, %v1447_v25 }
 0x138   : > { %v2738_v35 = vrot.slane %v2450_v24, %v6985_v40  ;;  %v2745_v36 = vrot.slane %v2450_v24, %v6995_v45  ;;  %v2198_v38 = vmul.f32 0.015625, %v1444_v28  ;;  %v4776_v39 = vrot.slane %v4499_v20, %v7001_v47  ;;  %v1253_v28 = vld [vmem:[%s6821_s24 + $0x2b0] sm:$0xff] }
 0x139   : > { %v4764_v42 = vsel %vm4763_vm1, %v4762_v33, %v4757_v32  ;;  %1662 = vadd.xlane.f32.xlu1 %v1661_v2  ;;  %1659 = vadd.xlane.f32.xlu0 %v1658_v5  ;;  %v1676_v5 = vsel %vm1423_vm0, %v1251_v56, 0.0  ;;  %v7075_v20 = vsub.s32 %v4828_v62, %v6973_v27  ;;  %v4835_v25 = vadd.s32 4294967200, %v6969_v23 }
 0x13a   : > { %v4771_v48 = vsel %vm4770_vm2, %v4769_v31, %v4764_v42  ;;  %v4500_v50 = vunpack.c.l.b16 %v2738_v35  ;;  %v4501_v51 = vunpack.c.l.b16 %v2745_v36  ;;  %v2451_v52 = vpack.c.bf16 %v2199_v37, %v2198_v38  ;;  %v1453_v53 = vpop.xlane.xlu1 %1452  ;;  %v1450_v54 = vpop.xlane.xlu0 %1449 }
 0x13b   : > { %v4778_v57 = vsel %vm4777_vm3, %v4776_v39, %v4771_v48  ;;  %v2201_v58 = vmul.f32 0.015625, %v1453_v53  ;;  %v2200_v61 = vmul.f32 0.015625, %v1450_v54  ;;  %v4842_v35 = vadd.s32 4294967192, %v6969_v23 }
 0x13c   : > { %v4783_v63 = vrot.slane %v4500_v50, %v7011_v59  ;;  %v4790_v0 = vrot.slane %v4501_v51, %v7014_v60  ;;  %v2752_v1 = vrot.slane %v2451_v52, %v6985_v40  ;;  %v2759_v2 = vrot.slane %v2451_v52, %v6995_v45 }
 0x13d   : > { %v2452_v3 = vpack.c.bf16 %v2201_v58, %v2200_v61  ;;  %1668 = vadd.xlane.f32.xlu1 %v1667_v7  ;;  %1665 = vadd.xlane.f32.xlu0 %v1664_v8  ;;  %v1685_v37 = vsel %vm1423_vm0, %v1254_v16, 0.0  ;;  %v1682_v50 = vsel %vm1423_vm0, %v1253_v28, 0.0  ;;  %v7090_v52 = vsub.s32 %v4835_v25, %v6973_v27  ;;  %v1258_v25 = vld [vmem:[%s6821_s24 + $0x2d8] sm:$0xff]  ;;  %v1257_v28 = vld [vmem:[%s6821_s24 + $0x2d0] sm:$0xff] }
 0x13e   : > { %v4785_v6 = vsel %vm4784_vm4, %v4783_v63, %v4778_v57  ;;  %v4502_v9 = vunpack.c.l.b16 %v2752_v1  ;;  %v4503_v10 = vunpack.c.l.b16 %v2759_v2  ;;  %v1459_v11 = vpop.xlane.xlu1 %1458  ;;  %v1456_v13 = vpop.xlane.xlu0 %1455  ;;  %v4849_v53 = vadd.s32 4294967184, %v6969_v23  ;;  %v1256_v63 = vld [vmem:[%s6821_s24 + $0x2c8] sm:$0xff] }
 0x13f   : > { %v4792_v14 = vsel %vm4791_vm5, %v4790_v0, %v4785_v6  ;;  %v2766_v15 = vrot.slane %v2452_v3, %v6985_v40  ;;  %v2773_v7 = vrot.slane %v2452_v3, %v6995_v45  ;;  %v2203_v8 = vmul.f32 0.015625, %v1459_v11  ;;  %v1255_v0 = vld [vmem:[%s6821_s24 + $0x2c0] sm:$0xff] }
 0x140   : > { %v4797_v18 = vrot.slane %v4502_v9, %v7031_v17  ;;  %v4804_v19 = vrot.slane %v4503_v10, %v7035_v26  ;;  %v2202_v21 = vmul.f32 0.015625, %v1456_v13  ;;  %v4856_v54 = vadd.s32 4294967176, %v6969_v23 }
 0x141   : > { %v4504_v22 = vunpack.c.l.b16 %v2766_v15  ;;  %v4505_v24 = vunpack.c.l.b16 %v2773_v7  ;;  %1674 = vadd.xlane.f32.xlu1 %v1673_v29  ;;  %1671 = vadd.xlane.f32.xlu0 %v1670_v30  ;;  %v7098_v1 = vsub.s32 %v4842_v35, %v6973_v27  ;;  %v7105_v9 = vsub.s32 %v4849_v53, %v6973_v27 }
 0x142   : > { %v4799_v31 = vsel %vm4798_vm6, %v4797_v18, %v4792_v14  ;;  %v2453_v32 = vpack.c.bf16 %v2203_v8, %v2202_v21  ;;  %v1465_v33 = vpop.xlane.xlu1 %1464  ;;  %v1462_v36 = vpop.xlane.xlu0 %1461  ;;  %v1691_v11 = vsel %vm1423_vm0, %v1256_v63, 0.0  ;;  %v1688_v13 = vsel %vm1423_vm0, %v1255_v0, 0.0 }
 0x143   : > { %v4806_v38 = vsel %vm4805_vm7, %v4804_v19, %v4799_v31  ;;  %v4811_v39 = vrot.slane %v4504_v22, %v7043_v34  ;;  %v4818_v42 = vrot.slane %v4505_v24, %v7050_v43  ;;  %v2205_v29 = vmul.f32 0.015625, %v1465_v33 }
 0x144   : > { %v2780_v30 = vrot.slane %v2453_v32, %v6985_v40  ;;  %v2787_v44 = vrot.slane %v2453_v32, %v6995_v45  ;;  %v2204_v48 = vmul.f32 0.015625, %v1462_v36  ;;  %v7111_v8 = vsub.s32 %v4856_v54, %v6973_v27 }
 0x145   : > { %v4813_v51 = vsel %vm4812_vm8, %v4811_v39, %v4806_v38  ;;  %1680 = vadd.xlane.f32.xlu1 %v1679_v4  ;;  %1677 = vadd.xlane.f32.xlu0 %v1676_v5 }
 0x146   : > { %v4820_v55 = vsel %vm4819_vm9, %v4818_v42, %v4813_v51  ;;  %v4506_v56 = vunpack.c.l.b16 %v2780_v30  ;;  %v4507_v57 = vunpack.c.l.b16 %v2787_v44  ;;  %v2454_v58 = vpack.c.bf16 %v2205_v29, %v2204_v48  ;;  %v1471_v61 = vpop.xlane.xlu1 %1470  ;;  %v1468_v62 = vpop.xlane.xlu0 %1467  ;;  %v1260_v30 = vld [vmem:[%s6821_s24 + $0x2e8] sm:$0xff]  ;;  %v1259_v44 = vld [vmem:[%s6821_s24 + $0x2e0] sm:$0xff] }
 0x147   : > { %v2207_v2 = vmul.f32 0.015625, %v1471_v61  ;;  %v2206_v3 = vmul.f32 0.015625, %v1468_v62  ;;  %v1697_v42 = vsel %vm1423_vm0, %v1258_v25, 0.0  ;;  %v1694_v29 = vsel %vm1423_vm0, %v1257_v28, 0.0 }
 0x148   : > { %v4825_v4 = vrot.slane %v4506_v56, %v7066_v12  ;;  %v4832_v5 = vrot.slane %v4507_v57, %v7075_v20  ;;  %v2794_v23 = vrot.slane %v2454_v58, %v6985_v40  ;;  %v2801_v6 = vrot.slane %v2454_v58, %v6995_v45 }
 0x149   : > { %v2455_v10 = vpack.c.bf16 %v2207_v2, %v2206_v3  ;;  %1686 = vadd.xlane.f32.xlu1 %v1685_v37  ;;  %1683 = vadd.xlane.f32.xlu0 %v1682_v50  ;;  %v1703_v58 = vsel %vm1423_vm0, %v1260_v30, 0.0  ;;  %v1700_v61 = vsel %vm1423_vm0, %v1259_v44, 0.0 }
 0x14a   : > { %v4827_v14 = vsel %vm8320_vm10, %v4825_v4, %v4820_v55  ;;  %v4508_v15 = vunpack.c.l.b16 %v2794_v23  ;;  %v4509_v7 = vunpack.c.l.b16 %v2801_v6  ;;  %v1477_v16 = vpop.xlane.xlu1 %1476  ;;  %v1474_v18 = vpop.xlane.xlu0 %1473  ;;  %v1262_v6 = vld [vmem:[%s6821_s24 + $0x2f8] sm:$0xff] }
 0x14b   : > { %v4834_v19 = vsel %vm8318_vm11, %v4832_v5, %v4827_v14  ;;  %v2808_v21 = vrot.slane %v2455_v10, %v6985_v40  ;;  %v2815_v22 = vrot.slane %v2455_v10, %v6995_v45  ;;  %v2209_v24 = vmul.f32 0.015625, %v1477_v16  ;;  %v1261_v10 = vld [vmem:[%s6821_s24 + $0x2f0] sm:$0xff] }
 0x14c   : > { %v4839_v31 = vrot.slane %v4508_v15, %v7090_v52  ;;  %v4846_v32 = vrot.slane %v4509_v7, %v7098_v1  ;;  %v2208_v27 = vmul.f32 0.015625, %v1474_v18 }
 0x14d   : > { %v4510_v33 = vunpack.c.l.b16 %v2808_v21  ;;  %v4511_v35 = vunpack.c.l.b16 %v2815_v22  ;;  %1692 = vadd.xlane.f32.xlu1 %v1691_v11  ;;  %1689 = vadd.xlane.f32.xlu0 %v1688_v13  ;;  %v1709_v22 = vsel %vm1423_vm0, %v1262_v6, 0.0 }
 0x14e   : > { %v4841_v36 = vsel %vm8314_vm12, %v4839_v31, %v4834_v19  ;;  %v2456_v37 = vpack.c.bf16 %v2209_v24, %v2208_v27  ;;  %v1483_v38 = vpop.xlane.xlu1 %1482  ;;  %v1480_v39 = vpop.xlane.xlu0 %1479  ;;  %v1706_v24 = vsel %vm1423_vm0, %v1261_v10, 0.0  ;;  %v1264_v27 = vld [vmem:[%s6821_s24 + $0x308] sm:$0xff] }
 0x14f   : > { %v4848_v48 = vsel %vm8312_vm13, %v4846_v32, %v4841_v36  ;;  %v4853_v50 = vrot.slane %v4510_v33, %v7105_v9  ;;  %v4860_v51 = vrot.slane %v4511_v35, %v7111_v8  ;;  %v2211_v53 = vmul.f32 0.015625, %v1483_v38  ;;  %v1263_v33 = vld [vmem:[%s6821_s24 + $0x300] sm:$0xff] }
 0x150   : > { %v2822_v54 = vrot.slane %v2456_v37, %v6985_v40  ;;  %v2829_v55 = vrot.slane %v2456_v37, %v6995_v45  ;;  %v2210_v56 = vmul.f32 0.015625, %v1480_v39 }
 0x151   : > { %v4855_v57 = vsel %vm4854_vm14, %v4853_v50, %v4848_v48  ;;  %1698 = vadd.xlane.f32.xlu1 %v1697_v42  ;;  %1695 = vadd.xlane.f32.xlu0 %v1694_v29  ;;  %v1715_v48 = vsel %vm1423_vm0, %v1264_v27, 0.0  ;;  %v1712_v50 = vsel %vm1423_vm0, %v1263_v33, 0.0 }
 0x152   : > { %v7134_v62 = vsel %vm4861_vm15, %v4860_v51, %v4855_v57  ;;  %v4512_v63 = vunpack.c.l.b16 %v2822_v54  ;;  %v4513_v0 = vunpack.c.l.b16 %v2829_v55  ;;  %v2457_v2 = vpack.c.bf16 %v2211_v53, %v2210_v56  ;;  %v1489_v3 = vpop.xlane.xlu1 %1488  ;;  %v1486_v4 = vpop.xlane.xlu0 %1485  ;;  %v1266_v51 = vld [vmem:[%s6821_s24 + $0x318] sm:$0xff]  ;;  %v1265_v57 = vld [vmem:[%s6821_s24 + $0x310] sm:$0xff] }
 0x153   : > { %v2213_v5 = vmul.f32 0.015625, %v1489_v3  ;;  %v2212_v23 = vmul.f32 0.015625, %v1486_v4  ;;  %v1721_v3 = vsel %vm1423_vm0, %v1266_v51, 0.0 }
 0x154   : > { %v2836_v11 = vrot.slane %v2457_v2, %v6985_v40  ;;  %v2843_v13 = vrot.slane %v2457_v2, %v6995_v45  ;;  %v4866_v14 = vrot.slane %v4512_v63, %v6989_v41  ;;  %v4870_v15 = vrot.slane %v4513_v0, %v7004_v49 }
 0x155   : > { %v2458_v7 = vpack.c.bf16 %v2213_v5, %v2212_v23  ;;  %1704 = vadd.xlane.f32.xlu1 %v1703_v58  ;;  %1701 = vadd.xlane.f32.xlu0 %v1700_v61 }
 0x156   : > { %v4514_v16 = vunpack.c.l.b16 %v2836_v11  ;;  %v4515_v18 = vunpack.c.l.b16 %v2843_v13  ;;  %v1495_v19 = vpop.xlane.xlu1 %1494  ;;  %v1492_v21 = vpop.xlane.xlu0 %1491  ;;  %v4871_v37 = vsel %vm4763_vm1, %v4870_v15, %v4866_v14  ;;  %v1718_v11 = vsel %vm1423_vm0, %v1265_v57, 0.0  ;;  %v1268_v13 = vld [vmem:[%s6821_s24 + $0x328] sm:$0xff] }
 0x157   : > { %v2850_v25 = vrot.slane %v2458_v7, %v6985_v40  ;;  %v2857_v28 = vrot.slane %v2458_v7, %v6995_v45  ;;  %v2215_v31 = vmul.f32 0.015625, %v1495_v19  ;;  %v2214_v32 = vmul.f32 0.015625, %v1492_v21 }
 0x158   : > { %v4875_v35 = vrot.slane %v4514_v16, %v6998_v46  ;;  %v4880_v36 = vrot.slane %v4515_v18, %v7001_v47  ;;  %v1267_v16 = vld [vmem:[%s6821_s24 + $0x320] sm:$0xff] }
 0x159   : > { %v4516_v38 = vunpack.c.l.b16 %v2850_v25  ;;  %v4517_v39 = vunpack.c.l.b16 %v2857_v28  ;;  %v2459_v42 = vpack.c.bf16 %v2215_v31, %v2214_v32  ;;  %1710 = vadd.xlane.f32.xlu1 %v1709_v22  ;;  %1707 = vadd.xlane.f32.xlu0 %v1706_v24  ;;  %v1727_v25 = vsel %vm1423_vm0, %v1268_v13, 0.0 }
 0x15a   : > { %v4876_v29 = vsel %vm4770_vm2, %v4875_v35, %v4871_v37  ;;  %v1501_v30 = vpop.xlane.xlu1 %1500  ;;  %v1498_v44 = vpop.xlane.xlu0 %1497  ;;  %v1724_v35 = vsel %vm1423_vm0, %v1267_v16, 0.0 }
 0x15b   : > { %v4881_v53 = vsel %vm4777_vm3, %v4880_v36, %v4876_v29  ;;  %v4885_v54 = vrot.slane %v4516_v38, %v7011_v59  ;;  %v4890_v55 = vrot.slane %v4517_v39, %v7014_v60  ;;  %v2864_v56 = vrot.slane %v2459_v42, %v6985_v40  ;;  %v1269_v29 = vld [vmem:[%s6821_s24 + $0x330] sm:$0xff] }
 0x15c   : > { %v2871_v58 = vrot.slane %v2459_v42, %v6995_v45  ;;  %v2217_v61 = vmul.f32 0.015625, %v1501_v30  ;;  %v2216_v63 = vmul.f32 0.015625, %v1498_v44  ;;  %v1270_v42 = vld [vmem:[%s6821_s24 + $0x338] sm:$0xff]  ;;  %v1730_v57 = vsel %vm1423_vm0, %v1269_v29, 0.0 }
 0x15d   : > { %v4886_v0 = vsel %vm4784_vm4, %v4885_v54, %v4881_v53  ;;  %v4518_v2 = vunpack.c.l.b16 %v2864_v56  ;;  %1716 = vadd.xlane.f32.xlu1 %v1715_v48  ;;  %1713 = vadd.xlane.f32.xlu0 %v1712_v50  ;;  %v1733_v56 = vsel %vm1423_vm0, %v1270_v42, 0.0 }
 0x15e   : > { %v4891_v4 = vsel %vm4791_vm5, %v4890_v55, %v4886_v0  ;;  %v4519_v5 = vunpack.c.l.b16 %v2871_v58  ;;  %v2460_v23 = vpack.c.bf16 %v2217_v61, %v2216_v63  ;;  %v1507_v6 = vpop.xlane.xlu1 %1506  ;;  %v1504_v10 = vpop.xlane.xlu0 %1503  ;;  %v1272_v58 = vld [vmem:[%s6821_s24 + $0x348] sm:$0xff] }
 0x15f   : > { %v4895_v14 = vrot.slane %v4518_v2, %v7031_v17  ;;  %v2219_v15 = vmul.f32 0.015625, %v1507_v6  ;;  %v2218_v7 = vmul.f32 0.015625, %v1504_v10 }
 0x160   : > { %v4900_v18 = vrot.slane %v4519_v5, %v7035_v26  ;;  %v2878_v19 = vrot.slane %v2460_v23, %v6985_v40  ;;  %v2885_v21 = vrot.slane %v2460_v23, %v6995_v45 }
 0x161   : > { %v4896_v22 = vsel %vm4798_vm6, %v4895_v14, %v4891_v4  ;;  %v2461_v24 = vpack.c.bf16 %v2219_v15, %v2218_v7  ;;  %1722 = vadd.xlane.f32.xlu1 %v1721_v3  ;;  %1719 = vadd.xlane.f32.xlu0 %v1718_v11  ;;  %v1271_v3 = vld [vmem:[%s6821_s24 + $0x340] sm:$0xff]  ;;  %v1739_v11 = vsel %vm1423_vm0, %v1272_v58, 0.0 }
 0x162   : > { %v4901_v28 = vsel %vm4805_vm7, %v4900_v18, %v4896_v22  ;;  %v4520_v31 = vunpack.c.l.b16 %v2878_v19  ;;  %v4521_v32 = vunpack.c.l.b16 %v2885_v21  ;;  %v1513_v27 = vpop.xlane.xlu1 %1512  ;;  %v1510_v33 = vpop.xlane.xlu0 %1509  ;;  %v1736_v18 = vsel %vm1423_vm0, %v1271_v3, 0.0  ;;  %v1274_v19 = vld [vmem:[%s6821_s24 + $0x358] sm:$0xff] }
 0x163   : > { %v2892_v36 = vrot.slane %v2461_v24, %v6985_v40  ;;  %v2899_v37 = vrot.slane %v2461_v24, %v6995_v45  ;;  %v2221_v38 = vmul.f32 0.015625, %v1513_v27  ;;  %v2220_v39 = vmul.f32 0.015625, %v1510_v33 }
 0x164   : > { %v4905_v30 = vrot.slane %v4520_v31, %v7043_v34  ;;  %v4910_v44 = vrot.slane %v4521_v32, %v7050_v43 }
 0x165   : > { %v4522_v48 = vunpack.c.l.b16 %v2892_v36  ;;  %v4523_v50 = vunpack.c.l.b16 %v2899_v37  ;;  %v2462_v51 = vpack.c.bf16 %v2221_v38, %v2220_v39  ;;  %1728 = vadd.xlane.f32.xlu1 %v1727_v25  ;;  %1725 = vadd.xlane.f32.xlu0 %v1724_v35  ;;  %v1273_v25 = vld [vmem:[%s6821_s24 + $0x350] sm:$0xff]  ;;  %v1745_v35 = vsel %vm1423_vm0, %v1274_v19, 0.0 }
 0x166   : > { %v4906_v53 = vsel %vm4812_vm8, %v4905_v30, %v4901_v28  ;;  %v1519_v54 = vpop.xlane.xlu1 %1518  ;;  %v1516_v55 = vpop.xlane.xlu0 %1515  ;;  %v1742_v29 = vsel %vm1423_vm0, %v1273_v25, 0.0 }
 0x167   : > { %v4911_v61 = vsel %vm4819_vm9, %v4910_v44, %v4906_v53  ;;  %v4915_v63 = vrot.slane %v4522_v48, %v7066_v12  ;;  %v4920_v0 = vrot.slane %v4523_v50, %v7075_v20  ;;  %v2906_v2 = vrot.slane %v2462_v51, %v6985_v40  ;;  %v1275_v53 = vld [vmem:[%s6821_s24 + $0x360] sm:$0xff] }
 0x168   : > { %v2913_v4 = vrot.slane %v2462_v51, %v6995_v45  ;;  %v2223_v5 = vmul.f32 0.015625, %v1519_v54  ;;  %v2222_v23 = vmul.f32 0.015625, %v1516_v55  ;;  %v1276_v51 = vld [vmem:[%s6821_s24 + $0x368] sm:$0xff]  ;;  %v1748_v3 = vsel %vm1423_vm0, %v1275_v53, 0.0 }
 0x169   : > { %v4916_v6 = vsel %vm8320_vm10, %v4915_v63, %v4911_v61  ;;  %v4524_v10 = vunpack.c.l.b16 %v2906_v2  ;;  %1734 = vadd.xlane.f32.xlu1 %v1733_v56  ;;  %1731 = vadd.xlane.f32.xlu0 %v1730_v57  ;;  %v1751_v2 = vsel %vm1423_vm0, %v1276_v51, 0.0 }
 0x16a   : > { %v4921_v13 = vsel %vm8318_vm11, %v4920_v0, %v4916_v6  ;;  %v4525_v14 = vunpack.c.l.b16 %v2913_v4  ;;  %v2463_v15 = vpack.c.bf16 %v2223_v5, %v2222_v23  ;;  %v1525_v7 = vpop.xlane.xlu1 %1524  ;;  %v1522_v16 = vpop.xlane.xlu0 %1521 }
 0x16b   : > { %v4925_v21 = vrot.slane %v4524_v10, %v7090_v52  ;;  %v2225_v22 = vmul.f32 0.015625, %v1525_v7  ;;  %v2224_v24 = vmul.f32 0.015625, %v1522_v16  ;;  %v1278_v10 = vld [vmem:[%s6821_s24 + $0x378] sm:$0xff] }
 0x16c   : > { %v4930_v28 = vrot.slane %v4525_v14, %v7098_v1  ;;  %v2920_v31 = vrot.slane %v2463_v15, %v6985_v40  ;;  %v2927_v32 = vrot.slane %v2463_v15, %v6995_v45 }
 0x16d   : > { %v4926_v27 = vsel %vm8314_vm12, %v4925_v21, %v4921_v13  ;;  %v2464_v33 = vpack.c.bf16 %v2225_v22, %v2224_v24  ;;  %1740 = vadd.xlane.f32.xlu1 %v1739_v11  ;;  %1737 = vadd.xlane.f32.xlu0 %v1736_v18  ;;  %v1277_v11 = vld [vmem:[%s6821_s24 + $0x370] sm:$0xff]  ;;  %v1757_v24 = vsel %vm1423_vm0, %v1278_v10, 0.0 }
 0x16e   : > { %v4931_v36 = vsel %vm8312_vm13, %v4930_v28, %v4926_v27  ;;  %v4526_v37 = vunpack.c.l.b16 %v2920_v31  ;;  %v4527_v38 = vunpack.c.l.b16 %v2927_v32  ;;  %v1531_v39 = vpop.xlane.xlu1 %1530  ;;  %v1528_v42 = vpop.xlane.xlu0 %1527  ;;  %vm8313_vm13 = vcmask 1041409   ;;  %v1280_v28 = vld [vmem:[%s6821_s24 + $0x388] sm:$0xff]  ;;  %v1279_v27 = vld [vmem:[%s6821_s24 + $0x380] sm:$0xff] }
 0x16f   : > { %v2934_v30 = vrot.slane %v2464_v33, %v6985_v40  ;;  %v2941_v44 = vrot.slane %v2464_v33, %v6995_v45  ;;  %v2227_v48 = vmul.f32 0.015625, %v1531_v39  ;;  %v2226_v50 = vmul.f32 0.015625, %v1528_v42 }
 0x170   : > { %v4935_v54 = vrot.slane %v4526_v37, %v7105_v9  ;;  %v4940_v55 = vrot.slane %v4527_v38, %v7111_v8  ;;  %v1754_v25 = vsel %vm1423_vm0, %v1277_v11, 0.0  ;;  %v1763_v42 = vsel %vm1423_vm0, %v1280_v28, 0.0  ;;  %v1284_v11 = vld [vmem:[%s6821_s24 + $0x3a8] sm:$0xff] }
 0x171   : > { %v4528_v56 = vunpack.c.l.b16 %v2934_v30  ;;  %v4529_v57 = vunpack.c.l.b16 %v2941_v44  ;;  %v2465_v58 = vpack.c.bf16 %v2227_v48, %v2226_v50  ;;  %1746 = vadd.xlane.f32.xlu1 %v1745_v35  ;;  %1743 = vadd.xlane.f32.xlu0 %v1742_v29  ;;  %v1760_v51 = vsel %vm1423_vm0, %v1279_v27, 0.0 }
 0x172   : > { %v4936_v61 = vsel %vm4854_vm14, %v4935_v54, %v4931_v36  ;;  %v1537_v63 = vpop.xlane.xlu1 %1536  ;;  %v1534_v0 = vpop.xlane.xlu0 %1533  ;;  %v1775_v28 = vsel %vm1423_vm0, %v1284_v11, 0.0 }
 0x173   : > { %v4941_v4 = vsel %vm4861_vm15, %v4940_v55, %v4936_v61  ;;  %v4945_v5 = vrot.slane %v4528_v56, %v6989_v41  ;;  %v4949_v23 = vrot.slane %v4529_v57, %v7004_v49  ;;  %v2948_v6 = vrot.slane %v2465_v58, %v6985_v40  ;;  %v1282_v57 = vld [vmem:[%s6821_s24 + $0x398] sm:$0xff] }
 0x174   : > { %v7222_v13 = vsel %vm8313_vm13, %v4941_v4, %v7134_v62  ;;  %v2955_v14 = vrot.slane %v2465_v58, %v6995_v45  ;;  %v2229_v15 = vmul.f32 0.015625, %v1537_v63  ;;  %v2228_v7 = vmul.f32 0.015625, %v1534_v0  ;;  %v1281_v58 = vld [vmem:[%s6821_s24 + $0x390] sm:$0xff] }
 0x175   : > { %v4530_v16 = vunpack.c.l.b16 %v2948_v6  ;;  %1752 = vadd.xlane.f32.xlu1 %v1751_v2  ;;  %1749 = vadd.xlane.f32.xlu0 %v1748_v3  ;;  %v4950_v33 = vsel %vm4763_vm1, %v4949_v23, %v4945_v5  ;;  %v1769_v6 = vsel %vm1423_vm0, %v1282_v57, 0.0  ;;  %v1766_v10 = vsel %vm1423_vm0, %v1281_v58, 0.0 }
 0x176   : > { %v4531_v18 = vunpack.c.l.b16 %v2955_v14  ;;  %v2466_v19 = vpack.c.bf16 %v2229_v15, %v2228_v7  ;;  %v1543_v21 = vpop.xlane.xlu1 %1542  ;;  %v1540_v22 = vpop.xlane.xlu0 %1539  ;;  %vm8323_vm13 = vcmask 917312  }
 0x177   : > { %v4954_v62 = vrot.slane %v4530_v16, %v6998_v46  ;;  %v2231_v31 = vmul.f32 0.015625, %v1543_v21  ;;  %v2230_v32 = vmul.f32 0.015625, %v1540_v22 }
 0x178   : > { %v4959_v35 = vrot.slane %v4531_v18, %v7001_v47  ;;  %v2962_v36 = vrot.slane %v2466_v19, %v6985_v40  ;;  %v2969_v37 = vrot.slane %v2466_v19, %v6995_v45  ;;  %v1283_v18 = vld [vmem:[%s6821_s24 + $0x3a0] sm:$0xff] }
 0x179   : > { %v4955_v38 = vsel %vm4770_vm2, %v4954_v62, %v4950_v33  ;;  %v2467_v39 = vpack.c.bf16 %v2231_v31, %v2230_v32  ;;  %1758 = vadd.xlane.f32.xlu1 %v1757_v24  ;;  %1755 = vadd.xlane.f32.xlu0 %v1754_v25 }
 0x17a   : > { %v4960_v29 = vsel %vm4777_vm3, %v4959_v35, %v4955_v38  ;;  %v4532_v30 = vunpack.c.l.b16 %v2962_v36  ;;  %v4533_v44 = vunpack.c.l.b16 %v2969_v37  ;;  %v1549_v48 = vpop.xlane.xlu1 %1548  ;;  %v1546_v50 = vpop.xlane.xlu0 %1545  ;;  %v1772_v35 = vsel %vm1423_vm0, %v1283_v18, 0.0  ;;  %v1286_v36 = vld [vmem:[%s6821_s24 + $0x3b8] sm:$0xff] }
 0x17b   : > { %v2976_v53 = vrot.slane %v2467_v39, %v6985_v40  ;;  %v2983_v54 = vrot.slane %v2467_v39, %v6995_v45  ;;  %v2233_v55 = vmul.f32 0.015625, %v1549_v48  ;;  %v2232_v56 = vmul.f32 0.015625, %v1546_v50 }
 0x17c   : > { %v4964_v61 = vrot.slane %v4532_v30, %v7011_v59  ;;  %v4969_v63 = vrot.slane %v4533_v44, %v7014_v60 }
 0x17d   : > { %v4534_v0 = vunpack.c.l.b16 %v2976_v53  ;;  %v4535_v2 = vunpack.c.l.b16 %v2983_v54  ;;  %v2468_v3 = vpack.c.bf16 %v2233_v55, %v2232_v56  ;;  %1764 = vadd.xlane.f32.xlu1 %v1763_v42  ;;  %1761 = vadd.xlane.f32.xlu0 %v1760_v51  ;;  %v1285_v42 = vld [vmem:[%s6821_s24 + $0x3b0] sm:$0xff]  ;;  %v1781_v51 = vsel %vm1423_vm0, %v1286_v36, 0.0 }
 0x17e   : > { %v4965_v4 = vsel %vm4784_vm4, %v4964_v61, %v4960_v29  ;;  %v1555_v5 = vpop.xlane.xlu1 %1554  ;;  %v1552_v23 = vpop.xlane.xlu0 %1551  ;;  %v1778_v58 = vsel %vm1423_vm0, %v1285_v42, 0.0 }
 0x17f   : > { %v4970_v14 = vsel %vm4791_vm5, %v4969_v63, %v4965_v4  ;;  %v4974_v15 = vrot.slane %v4534_v0, %v7031_v17  ;;  %v4979_v7 = vrot.slane %v4535_v2, %v7035_v26  ;;  %v2990_v16 = vrot.slane %v2468_v3, %v6985_v40  ;;  %v1287_v4 = vld [vmem:[%s6821_s24 + $0x3c0] sm:$0xff] }
 0x180   : > { %v2997_v19 = vrot.slane %v2468_v3, %v6995_v45  ;;  %v2235_v21 = vmul.f32 0.015625, %v1555_v5  ;;  %v2234_v22 = vmul.f32 0.015625, %v1552_v23  ;;  %v1288_v3 = vld [vmem:[%s6821_s24 + $0x3c8] sm:$0xff]  ;;  %v1784_v18 = vsel %vm1423_vm0, %v1287_v4, 0.0 }
 0x181   : > { %v4975_v24 = vsel %vm4798_vm6, %v4974_v15, %v4970_v14  ;;  %v4536_v25 = vunpack.c.l.b16 %v2990_v16  ;;  %1770 = vadd.xlane.f32.xlu1 %v1769_v6  ;;  %1767 = vadd.xlane.f32.xlu0 %v1766_v10  ;;  %v1787_v16 = vsel %vm1423_vm0, %v1288_v3, 0.0 }
 0x182   : > { %v4980_v62 = vsel %vm4805_vm7, %v4979_v7, %v4975_v24  ;;  %v4537_v31 = vunpack.c.l.b16 %v2997_v19  ;;  %v2469_v32 = vpack.c.bf16 %v2235_v21, %v2234_v22  ;;  %v1561_v27 = vpop.xlane.xlu1 %1560  ;;  %v1558_v33 = vpop.xlane.xlu0 %1557  ;;  %v1290_v19 = vld [vmem:[%s6821_s24 + $0x3d8] sm:$0xff] }
 0x183   : > { %v4984_v37 = vrot.slane %v4536_v25, %v7043_v34  ;;  %v2237_v38 = vmul.f32 0.015625, %v1561_v27  ;;  %v2236_v39 = vmul.f32 0.015625, %v1558_v33 }
 0x184   : > { %v4989_v29 = vrot.slane %v4537_v31, %v7050_v43  ;;  %v3004_v30 = vrot.slane %v2469_v32, %v6985_v40  ;;  %v3011_v44 = vrot.slane %v2469_v32, %v6995_v45 }
 0x185   : > { %v4985_v48 = vsel %vm4812_vm8, %v4984_v37, %v4980_v62  ;;  %v2470_v50 = vpack.c.bf16 %v2237_v38, %v2236_v39  ;;  %1776 = vadd.xlane.f32.xlu1 %v1775_v28  ;;  %1773 = vadd.xlane.f32.xlu0 %v1772_v35  ;;  %v1289_v28 = vld [vmem:[%s6821_s24 + $0x3d0] sm:$0xff]  ;;  %v1793_v35 = vsel %vm1423_vm0, %v1290_v19, 0.0 }
 0x186   : > { %v4990_v53 = vsel %vm4819_vm9, %v4989_v29, %v4985_v48  ;;  %v4538_v54 = vunpack.c.l.b16 %v3004_v30  ;;  %v4539_v55 = vunpack.c.l.b16 %v3011_v44  ;;  %v1567_v56 = vpop.xlane.xlu1 %1566  ;;  %v1564_v57 = vpop.xlane.xlu0 %1563  ;;  %v1790_v29 = vsel %vm1423_vm0, %v1289_v28, 0.0  ;;  %v1292_v30 = vld [vmem:[%s6821_s24 + $0x3e8] sm:$0xff] }
 0x187   : > { %v3018_v61 = vrot.slane %v2470_v50, %v6985_v40  ;;  %v3025_v63 = vrot.slane %v2470_v50, %v6995_v45  ;;  %v2239_v0 = vmul.f32 0.015625, %v1567_v56  ;;  %v2238_v2 = vmul.f32 0.015625, %v1564_v57  ;;  %v1296_v28 = vld [vmem:[%s6821_s24 + $0x408] sm:$0xff] }
 0x188   : > { %v4994_v5 = vrot.slane %v4538_v54, %v7066_v12  ;;  %v4999_v23 = vrot.slane %v4539_v55, %v7075_v20 }
 0x189   : > { %v4540_v6 = vunpack.c.l.b16 %v3018_v61  ;;  %v4541_v10 = vunpack.c.l.b16 %v3025_v63  ;;  %v2471_v11 = vpack.c.bf16 %v2239_v0, %v2238_v2  ;;  %1782 = vadd.xlane.f32.xlu1 %v1781_v51  ;;  %1779 = vadd.xlane.f32.xlu0 %v1778_v58  ;;  %v1291_v51 = vld [vmem:[%s6821_s24 + $0x3e0] sm:$0xff]  ;;  %v1799_v58 = vsel %vm1423_vm0, %v1292_v30, 0.0 }
 0x18a   : > { %v4995_v14 = vsel %vm8320_vm10, %v4994_v5, %v4990_v53  ;;  %v1573_v15 = vpop.xlane.xlu1 %1572  ;;  %v1570_v7 = vpop.xlane.xlu0 %1569  ;;  %v1796_v4 = vsel %vm1423_vm0, %v1291_v51, 0.0 }
 0x18b   : > { %v5000_v21 = vsel %vm8318_vm11, %v4999_v23, %v4995_v14  ;;  %v5004_v22 = vrot.slane %v4540_v6, %v7090_v52  ;;  %v5009_v24 = vrot.slane %v4541_v10, %v7098_v1  ;;  %v3032_v25 = vrot.slane %v2471_v11, %v6985_v40  ;;  %v1293_v14 = vld [vmem:[%s6821_s24 + $0x3f0] sm:$0xff] }
 0x18c   : > { %v3039_v62 = vrot.slane %v2471_v11, %v6995_v45  ;;  %v2241_v31 = vmul.f32 0.015625, %v1573_v15  ;;  %v2240_v32 = vmul.f32 0.015625, %v1570_v7  ;;  %v1294_v11 = vld [vmem:[%s6821_s24 + $0x3f8] sm:$0xff] }
 0x18d   : > { %v5005_v27 = vsel %vm8314_vm12, %v5004_v22, %v5000_v21  ;;  %v4542_v33 = vunpack.c.l.b16 %v3032_v25  ;;  %1788 = vadd.xlane.f32.xlu1 %v1787_v16  ;;  %1785 = vadd.xlane.f32.xlu0 %v1784_v18  ;;  %vm8315_vm12 = vcmask 1042434   ;;  %v1802_v25 = vsel %vm1423_vm0, %v1293_v14, 0.0  ;;  %v1300_v14 = vld [vmem:[%s6821_s24 + $0x428] sm:$0xff] }
 0x18e   : > { %v5010_v36 = vsel %vm8323_vm13, %v5009_v24, %v5005_v27  ;;  %v4543_v37 = vunpack.c.l.b16 %v3039_v62  ;;  %v2472_v38 = vpack.c.bf16 %v2241_v31, %v2240_v32  ;;  %v1579_v39 = vpop.xlane.xlu1 %1578  ;;  %v1576_v42 = vpop.xlane.xlu0 %1575  ;;  %v1805_v24 = vsel %vm1423_vm0, %v1294_v11, 0.0 }
 0x18f   : > { %v5014_v44 = vrot.slane %v4542_v33, %v7105_v9  ;;  %v2243_v48 = vmul.f32 0.015625, %v1579_v39  ;;  %v2242_v50 = vmul.f32 0.015625, %v1576_v42  ;;  %v1295_v33 = vld [vmem:[%s6821_s24 + $0x400] sm:$0xff]  ;;  %v1811_v42 = vsel %vm1423_vm0, %v1296_v28, 0.0 }
 0x190   : > { %v5019_v53 = vrot.slane %v4543_v37, %v7111_v8  ;;  %v3046_v54 = vrot.slane %v2472_v38, %v6985_v40  ;;  %v3053_v55 = vrot.slane %v2472_v38, %v6995_v45  ;;  %v1808_v51 = vsel %vm1423_vm0, %v1295_v33, 0.0 }
 0x191   : > { %v5015_v56 = vsel %vm4854_vm14, %v5014_v44, %v5010_v36  ;;  %v2473_v57 = vpack.c.bf16 %v2243_v48, %v2242_v50  ;;  %1794 = vadd.xlane.f32.xlu1 %v1793_v35  ;;  %1791 = vadd.xlane.f32.xlu0 %v1790_v29  ;;  %v1823_v28 = vsel %vm1423_vm0, %v1300_v14, 0.0  ;;  %vm8324_vm13 = vcmask 851712  }
 0x192   : > { %v5020_v61 = vsel %vm4861_vm15, %v5019_v53, %v5015_v56  ;;  %v4544_v63 = vunpack.c.l.b16 %v3046_v54  ;;  %v4545_v0 = vunpack.c.l.b16 %v3053_v55  ;;  %v1585_v2 = vpop.xlane.xlu1 %1584  ;;  %v1582_v3 = vpop.xlane.xlu0 %1581 }
 0x193   : > { %v7300_v5 = vsel %vm8315_vm12, %v5020_v61, %v7222_v13  ;;  %v3060_v23 = vrot.slane %v2473_v57, %v6985_v40  ;;  %v3067_v6 = vrot.slane %v2473_v57, %v6995_v45  ;;  %v2245_v10 = vmul.f32 0.015625, %v1585_v2  ;;  %v1298_v57 = vld [vmem:[%s6821_s24 + $0x418] sm:$0xff] }
 0x194   : > { %v5024_v15 = vrot.slane %v4544_v63, %v6989_v41  ;;  %v5028_v7 = vrot.slane %v4545_v0, %v7004_v49  ;;  %v2244_v16 = vmul.f32 0.015625, %v1582_v3  ;;  %vm8325_vm12 = vcmask 917312  }
 0x195   : > { %v4546_v18 = vunpack.c.l.b16 %v3060_v23  ;;  %v4547_v19 = vunpack.c.l.b16 %v3067_v6  ;;  %1800 = vadd.xlane.f32.xlu1 %v1799_v58  ;;  %1797 = vadd.xlane.f32.xlu0 %v1796_v4  ;;  %v1297_v58 = vld [vmem:[%s6821_s24 + $0x410] sm:$0xff] }
 0x196   : > { %v2474_v13 = vpack.c.bf16 %v2245_v10, %v2244_v16  ;;  %v1591_v21 = vpop.xlane.xlu1 %1590  ;;  %v1588_v22 = vpop.xlane.xlu0 %1587  ;;  %v5029_v35 = vsel %vm4763_vm1, %v5028_v7, %v5024_v15  ;;  %v1817_v10 = vsel %vm1423_vm0, %v1298_v57, 0.0  ;;  %v1814_v11 = vsel %vm1423_vm0, %v1297_v58, 0.0 }
 0x197   : > { %v5033_v62 = vrot.slane %v4546_v18, %v6998_v46  ;;  %v5038_v31 = vrot.slane %v4547_v19, %v7001_v47  ;;  %v2247_v32 = vmul.f32 0.015625, %v1591_v21  ;;  %v2246_v27 = vmul.f32 0.015625, %v1588_v22  ;;  %v1299_v19 = vld [vmem:[%s6821_s24 + $0x420] sm:$0xff] }
 0x198   : > { %v3074_v36 = vrot.slane %v2474_v13, %v6985_v40  ;;  %v3081_v37 = vrot.slane %v2474_v13, %v6995_v45 }
 0x199   : > { %v5034_v38 = vsel %vm4770_vm2, %v5033_v62, %v5029_v35  ;;  %v2475_v39 = vpack.c.bf16 %v2247_v32, %v2246_v27  ;;  %1806 = vadd.xlane.f32.xlu1 %v1805_v24  ;;  %1803 = vadd.xlane.f32.xlu0 %v1802_v25  ;;  %v1820_v35 = vsel %vm1423_vm0, %v1299_v19, 0.0 }
 0x19a   : > { %v5039_v29 = vsel %vm4777_vm3, %v5038_v31, %v5034_v38  ;;  %v4548_v30 = vunpack.c.l.b16 %v3074_v36  ;;  %v4549_v44 = vunpack.c.l.b16 %v3081_v37  ;;  %v1597_v48 = vpop.xlane.xlu1 %1596  ;;  %v1594_v50 = vpop.xlane.xlu0 %1593  ;;  %v1302_v36 = vld [vmem:[%s6821_s24 + $0x438] sm:$0xff] }
 0x19b   : > { %v3088_v53 = vrot.slane %v2475_v39, %v6985_v40  ;;  %v3095_v54 = vrot.slane %v2475_v39, %v6995_v45  ;;  %v2249_v55 = vmul.f32 0.015625, %v1597_v48  ;;  %v2248_v56 = vmul.f32 0.015625, %v1594_v50 }
 0x19c   : > { %v5043_v61 = vrot.slane %v4548_v30, %v7011_v59  ;;  %v5048_v63 = vrot.slane %v4549_v44, %v7014_v60 }
 0x19d   : > { %v4550_v0 = vunpack.c.l.b16 %v3088_v53  ;;  %v4551_v2 = vunpack.c.l.b16 %v3095_v54  ;;  %v2476_v3 = vpack.c.bf16 %v2249_v55, %v2248_v56  ;;  %1812 = vadd.xlane.f32.xlu1 %v1811_v42  ;;  %1809 = vadd.xlane.f32.xlu0 %v1808_v51  ;;  %v1301_v42 = vld [vmem:[%s6821_s24 + $0x430] sm:$0xff]  ;;  %v1829_v51 = vsel %vm1423_vm0, %v1302_v36, 0.0 }
 0x19e   : > { %v5044_v4 = vsel %vm4784_vm4, %v5043_v61, %v5039_v29  ;;  %v1603_v23 = vpop.xlane.xlu1 %1602  ;;  %v1600_v6 = vpop.xlane.xlu0 %1599  ;;  %v1826_v58 = vsel %vm1423_vm0, %v1301_v42, 0.0 }
 0x19f   : > { %v5049_v15 = vsel %vm4791_vm5, %v5048_v63, %v5044_v4  ;;  %v5053_v7 = vrot.slane %v4550_v0, %v7031_v17  ;;  %v5058_v16 = vrot.slane %v4551_v2, %v7035_v26  ;;  %v3102_v18 = vrot.slane %v2476_v3, %v6985_v40  ;;  %v1303_v4 = vld [vmem:[%s6821_s24 + $0x440] sm:$0xff] }
 0x1a0   : > { %v3109_v13 = vrot.slane %v2476_v3, %v6995_v45  ;;  %v2251_v21 = vmul.f32 0.015625, %v1603_v23  ;;  %v2250_v22 = vmul.f32 0.015625, %v1600_v6  ;;  %v1304_v3 = vld [vmem:[%s6821_s24 + $0x448] sm:$0xff]  ;;  %v1832_v19 = vsel %vm1423_vm0, %v1303_v4, 0.0 }
 0x1a1   : > { %v5054_v24 = vsel %vm4798_vm6, %v5053_v7, %v5049_v15  ;;  %v4552_v25 = vunpack.c.l.b16 %v3102_v18  ;;  %1818 = vadd.xlane.f32.xlu1 %v1817_v10  ;;  %1815 = vadd.xlane.f32.xlu0 %v1814_v11  ;;  %v1835_v18 = vsel %vm1423_vm0, %v1304_v3, 0.0 }
 0x1a2   : > { %v5059_v62 = vsel %vm4805_vm7, %v5058_v16, %v5054_v24  ;;  %v4553_v31 = vunpack.c.l.b16 %v3109_v13  ;;  %v2477_v32 = vpack.c.bf16 %v2251_v21, %v2250_v22  ;;  %v1609_v27 = vpop.xlane.xlu1 %1608  ;;  %v1606_v33 = vpop.xlane.xlu0 %1605  ;;  %v1306_v13 = vld [vmem:[%s6821_s24 + $0x458] sm:$0xff] }
 0x1a3   : > { %v5063_v37 = vrot.slane %v4552_v25, %v7043_v34  ;;  %v2253_v38 = vmul.f32 0.015625, %v1609_v27  ;;  %v2252_v39 = vmul.f32 0.015625, %v1606_v33 }
 0x1a4   : > { %v5068_v29 = vrot.slane %v4553_v31, %v7050_v43  ;;  %v3116_v30 = vrot.slane %v2477_v32, %v6985_v40  ;;  %v3123_v44 = vrot.slane %v2477_v32, %v6995_v45 }
 0x1a5   : > { %v5064_v48 = vsel %vm4812_vm8, %v5063_v37, %v5059_v62  ;;  %v2478_v50 = vpack.c.bf16 %v2253_v38, %v2252_v39  ;;  %1824 = vadd.xlane.f32.xlu1 %v1823_v28  ;;  %1821 = vadd.xlane.f32.xlu0 %v1820_v35  ;;  %v1305_v28 = vld [vmem:[%s6821_s24 + $0x450] sm:$0xff]  ;;  %v1841_v35 = vsel %vm1423_vm0, %v1306_v13, 0.0 }
 0x1a6   : > { %v5069_v53 = vsel %vm4819_vm9, %v5068_v29, %v5064_v48  ;;  %v4554_v54 = vunpack.c.l.b16 %v3116_v30  ;;  %v4555_v55 = vunpack.c.l.b16 %v3123_v44  ;;  %v1615_v56 = vpop.xlane.xlu1 %1614  ;;  %v1612_v57 = vpop.xlane.xlu0 %1611  ;;  %v1838_v29 = vsel %vm1423_vm0, %v1305_v28, 0.0  ;;  %v1308_v30 = vld [vmem:[%s6821_s24 + $0x468] sm:$0xff] }
 0x1a7   : > { %v3130_v61 = vrot.slane %v2478_v50, %v6985_v40  ;;  %v3137_v63 = vrot.slane %v2478_v50, %v6995_v45  ;;  %v2255_v0 = vmul.f32 0.015625, %v1615_v56  ;;  %v2254_v2 = vmul.f32 0.015625, %v1612_v57  ;;  %v1312_v28 = vld [vmem:[%s6821_s24 + $0x488] sm:$0xff] }
 0x1a8   : > { %v5073_v23 = vrot.slane %v4554_v54, %v7066_v12  ;;  %v5078_v6 = vrot.slane %v4555_v55, %v7075_v20 }
 0x1a9   : > { %v4556_v10 = vunpack.c.l.b16 %v3130_v61  ;;  %v4557_v11 = vunpack.c.l.b16 %v3137_v63  ;;  %v2479_v14 = vpack.c.bf16 %v2255_v0, %v2254_v2  ;;  %1830 = vadd.xlane.f32.xlu1 %v1829_v51  ;;  %1827 = vadd.xlane.f32.xlu0 %v1826_v58  ;;  %v1307_v51 = vld [vmem:[%s6821_s24 + $0x460] sm:$0xff]  ;;  %v1847_v58 = vsel %vm1423_vm0, %v1308_v30, 0.0 }
 0x1aa   : > { %v5074_v15 = vsel %vm8320_vm10, %v5073_v23, %v5069_v53  ;;  %v1621_v7 = vpop.xlane.xlu1 %1620  ;;  %v1618_v16 = vpop.xlane.xlu0 %1617  ;;  %v1844_v4 = vsel %vm1423_vm0, %v1307_v51, 0.0 }
 0x1ab   : > { %v5079_v21 = vsel %vm8318_vm11, %v5078_v6, %v5074_v15  ;;  %v5083_v22 = vrot.slane %v4556_v10, %v7090_v52  ;;  %v5088_v24 = vrot.slane %v4557_v11, %v7098_v1  ;;  %v3144_v25 = vrot.slane %v2479_v14, %v6985_v40  ;;  %v1309_v15 = vld [vmem:[%s6821_s24 + $0x470] sm:$0xff] }
 0x1ac   : > { %v3151_v62 = vrot.slane %v2479_v14, %v6995_v45  ;;  %v2257_v31 = vmul.f32 0.015625, %v1621_v7  ;;  %v2256_v32 = vmul.f32 0.015625, %v1618_v16  ;;  %v1310_v14 = vld [vmem:[%s6821_s24 + $0x478] sm:$0xff] }
 0x1ad   : > { %v5084_v27 = vsel %vm8324_vm13, %v5083_v22, %v5079_v21  ;;  %v4558_v33 = vunpack.c.l.b16 %v3144_v25  ;;  %1836 = vadd.xlane.f32.xlu1 %v1835_v18  ;;  %1833 = vadd.xlane.f32.xlu0 %v1832_v19  ;;  %vm8316_vm13 = vcmask 1043459   ;;  %v1850_v25 = vsel %vm1423_vm0, %v1309_v15, 0.0  ;;  %v1316_v15 = vld [vmem:[%s6821_s24 + $0x4a8] sm:$0xff] }
 0x1ae   : > { %v5089_v36 = vsel %vm8325_vm12, %v5088_v24, %v5084_v27  ;;  %v4559_v37 = vunpack.c.l.b16 %v3151_v62  ;;  %v2480_v38 = vpack.c.bf16 %v2257_v31, %v2256_v32  ;;  %v1627_v39 = vpop.xlane.xlu1 %1626  ;;  %v1624_v42 = vpop.xlane.xlu0 %1623  ;;  %v1853_v24 = vsel %vm1423_vm0, %v1310_v14, 0.0 }
 0x1af   : > { %v5093_v44 = vrot.slane %v4558_v33, %v7105_v9  ;;  %v2259_v48 = vmul.f32 0.015625, %v1627_v39  ;;  %v2258_v50 = vmul.f32 0.015625, %v1624_v42  ;;  %v1311_v33 = vld [vmem:[%s6821_s24 + $0x480] sm:$0xff]  ;;  %v1859_v42 = vsel %vm1423_vm0, %v1312_v28, 0.0 }
 0x1b0   : > { %v5098_v53 = vrot.slane %v4559_v37, %v7111_v8  ;;  %v3158_v54 = vrot.slane %v2480_v38, %v6985_v40  ;;  %v3165_v55 = vrot.slane %v2480_v38, %v6995_v45  ;;  %v1856_v51 = vsel %vm1423_vm0, %v1311_v33, 0.0 }
 0x1b1   : > { %v5094_v56 = vsel %vm4854_vm14, %v5093_v44, %v5089_v36  ;;  %v2481_v57 = vpack.c.bf16 %v2259_v48, %v2258_v50  ;;  %1842 = vadd.xlane.f32.xlu1 %v1841_v35  ;;  %1839 = vadd.xlane.f32.xlu0 %v1838_v29  ;;  %v1871_v28 = vsel %vm1423_vm0, %v1316_v15, 0.0  ;;  %vm8326_vm12 = vcmask 851712  }
 0x1b2   : > { %v5099_v61 = vsel %vm4861_vm15, %v5098_v53, %v5094_v56  ;;  %v4560_v63 = vunpack.c.l.b16 %v3158_v54  ;;  %v4561_v0 = vunpack.c.l.b16 %v3165_v55  ;;  %v1633_v2 = vpop.xlane.xlu1 %1632  ;;  %v1630_v3 = vpop.xlane.xlu0 %1629 }
 0x1b3   : > { %v7383_v23 = vsel %vm8316_vm13, %v5099_v61, %v7300_v5  ;;  %v3172_v6 = vrot.slane %v2481_v57, %v6985_v40  ;;  %v3179_v10 = vrot.slane %v2481_v57, %v6995_v45  ;;  %v2261_v11 = vmul.f32 0.015625, %v1633_v2  ;;  %v1314_v57 = vld [vmem:[%s6821_s24 + $0x498] sm:$0xff] }
 0x1b4   : > { %v5103_v7 = vrot.slane %v4560_v63, %v6989_v41  ;;  %v5107_v16 = vrot.slane %v4561_v0, %v7004_v49  ;;  %v2260_v18 = vmul.f32 0.015625, %v1630_v3  ;;  %vm8327_vm13 = vcmask 917312  }
 0x1b5   : > { %v4562_v19 = vunpack.c.l.b16 %v3172_v6  ;;  %v4563_v13 = vunpack.c.l.b16 %v3179_v10  ;;  %1848 = vadd.xlane.f32.xlu1 %v1847_v58  ;;  %1845 = vadd.xlane.f32.xlu0 %v1844_v4  ;;  %v1313_v58 = vld [vmem:[%s6821_s24 + $0x490] sm:$0xff] }
 0x1b6   : > { %v2482_v5 = vpack.c.bf16 %v2261_v11, %v2260_v18  ;;  %v1639_v21 = vpop.xlane.xlu1 %1638  ;;  %v1636_v22 = vpop.xlane.xlu0 %1635  ;;  %v5108_v35 = vsel %vm4763_vm1, %v5107_v16, %v5103_v7  ;;  %v1865_v11 = vsel %vm1423_vm0, %v1314_v57, 0.0  ;;  %v1862_v14 = vsel %vm1423_vm0, %v1313_v58, 0.0 }
 0x1b7   : > { %v5112_v62 = vrot.slane %v4562_v19, %v6998_v46  ;;  %v5117_v31 = vrot.slane %v4563_v13, %v7001_v47  ;;  %v2263_v32 = vmul.f32 0.015625, %v1639_v21  ;;  %v2262_v27 = vmul.f32 0.015625, %v1636_v22  ;;  %v1315_v13 = vld [vmem:[%s6821_s24 + $0x4a0] sm:$0xff] }
 0x1b8   : > { %v3186_v36 = vrot.slane %v2482_v5, %v6985_v40  ;;  %v3193_v37 = vrot.slane %v2482_v5, %v6995_v45 }
 0x1b9   : > { %v5113_v38 = vsel %vm4770_vm2, %v5112_v62, %v5108_v35  ;;  %v2483_v39 = vpack.c.bf16 %v2263_v32, %v2262_v27  ;;  %1854 = vadd.xlane.f32.xlu1 %v1853_v24  ;;  %1851 = vadd.xlane.f32.xlu0 %v1850_v25  ;;  %v1868_v35 = vsel %vm1423_vm0, %v1315_v13, 0.0 }
 0x1ba   : > { %v5118_v29 = vsel %vm4777_vm3, %v5117_v31, %v5113_v38  ;;  %v4564_v30 = vunpack.c.l.b16 %v3186_v36  ;;  %v4565_v44 = vunpack.c.l.b16 %v3193_v37  ;;  %v1645_v48 = vpop.xlane.xlu1 %1644  ;;  %v1642_v50 = vpop.xlane.xlu0 %1641  ;;  %v1318_v36 = vld [vmem:[%s6821_s24 + $0x4b8] sm:$0xff] }
 0x1bb   : > { %v3200_v53 = vrot.slane %v2483_v39, %v6985_v40  ;;  %v3207_v54 = vrot.slane %v2483_v39, %v6995_v45  ;;  %v2265_v55 = vmul.f32 0.015625, %v1645_v48  ;;  %v2264_v56 = vmul.f32 0.015625, %v1642_v50 }
 0x1bc   : > { %v5122_v61 = vrot.slane %v4564_v30, %v7011_v59  ;;  %v5127_v63 = vrot.slane %v4565_v44, %v7014_v60 }
 0x1bd   : > { %v4566_v0 = vunpack.c.l.b16 %v3200_v53  ;;  %v4567_v2 = vunpack.c.l.b16 %v3207_v54  ;;  %v2484_v3 = vpack.c.bf16 %v2265_v55, %v2264_v56  ;;  %1860 = vadd.xlane.f32.xlu1 %v1859_v42  ;;  %1857 = vadd.xlane.f32.xlu0 %v1856_v51  ;;  %v1317_v42 = vld [vmem:[%s6821_s24 + $0x4b0] sm:$0xff]  ;;  %v1877_v51 = vsel %vm1423_vm0, %v1318_v36, 0.0 }
 0x1be   : > { %v5123_v4 = vsel %vm4784_vm4, %v5122_v61, %v5118_v29  ;;  %v1651_v6 = vpop.xlane.xlu1 %1650  ;;  %v1648_v10 = vpop.xlane.xlu0 %1647  ;;  %v1874_v58 = vsel %vm1423_vm0, %v1317_v42, 0.0 }
 0x1bf   : > { %v5128_v7 = vsel %vm4791_vm5, %v5127_v63, %v5123_v4  ;;  %v5132_v16 = vrot.slane %v4566_v0, %v7031_v17  ;;  %v5137_v18 = vrot.slane %v4567_v2, %v7035_v26  ;;  %v3214_v19 = vrot.slane %v2484_v3, %v6985_v40  ;;  %v1319_v4 = vld [vmem:[%s6821_s24 + $0x4c0] sm:$0xff] }
 0x1c0   : > { %v3221_v5 = vrot.slane %v2484_v3, %v6995_v45  ;;  %v2267_v21 = vmul.f32 0.015625, %v1651_v6  ;;  %v2266_v22 = vmul.f32 0.015625, %v1648_v10  ;;  %v1320_v3 = vld [vmem:[%s6821_s24 + $0x4c8] sm:$0xff]  ;;  %v1880_v13 = vsel %vm1423_vm0, %v1319_v4, 0.0 }
 0x1c1   : > { %v5133_v24 = vsel %vm4798_vm6, %v5132_v16, %v5128_v7  ;;  %v4568_v25 = vunpack.c.l.b16 %v3214_v19  ;;  %1866 = vadd.xlane.f32.xlu1 %v1865_v11  ;;  %1863 = vadd.xlane.f32.xlu0 %v1862_v14  ;;  %v1883_v19 = vsel %vm1423_vm0, %v1320_v3, 0.0 }
 0x1c2   : > { %v5138_v62 = vsel %vm4805_vm7, %v5137_v18, %v5133_v24  ;;  %v4569_v31 = vunpack.c.l.b16 %v3221_v5  ;;  %v2485_v32 = vpack.c.bf16 %v2267_v21, %v2266_v22  ;;  %v1657_v27 = vpop.xlane.xlu1 %1656  ;;  %v1654_v33 = vpop.xlane.xlu0 %1653  ;;  %v1322_v5 = vld [vmem:[%s6821_s24 + $0x4d8] sm:$0xff] }
 0x1c3   : > { %v5142_v37 = vrot.slane %v4568_v25, %v7043_v34  ;;  %v2269_v38 = vmul.f32 0.015625, %v1657_v27  ;;  %v2268_v39 = vmul.f32 0.015625, %v1654_v33 }
 0x1c4   : > { %v5147_v29 = vrot.slane %v4569_v31, %v7050_v43  ;;  %v3228_v30 = vrot.slane %v2485_v32, %v6985_v40  ;;  %v3235_v44 = vrot.slane %v2485_v32, %v6995_v45 }
 0x1c5   : > { %v5143_v48 = vsel %vm4812_vm8, %v5142_v37, %v5138_v62  ;;  %v2486_v50 = vpack.c.bf16 %v2269_v38, %v2268_v39  ;;  %1872 = vadd.xlane.f32.xlu1 %v1871_v28  ;;  %1869 = vadd.xlane.f32.xlu0 %v1868_v35  ;;  %v1321_v28 = vld [vmem:[%s6821_s24 + $0x4d0] sm:$0xff]  ;;  %v1889_v35 = vsel %vm1423_vm0, %v1322_v5, 0.0 }
 0x1c6   : > { %v5148_v53 = vsel %vm4819_vm9, %v5147_v29, %v5143_v48  ;;  %v4570_v54 = vunpack.c.l.b16 %v3228_v30  ;;  %v4571_v55 = vunpack.c.l.b16 %v3235_v44  ;;  %v1663_v56 = vpop.xlane.xlu1 %1662  ;;  %v1660_v57 = vpop.xlane.xlu0 %1659  ;;  %v1886_v29 = vsel %vm1423_vm0, %v1321_v28, 0.0  ;;  %v1324_v30 = vld [vmem:[%s6821_s24 + $0x4e8] sm:$0xff] }
 0x1c7   : > { %v3242_v61 = vrot.slane %v2486_v50, %v6985_v40  ;;  %v3249_v63 = vrot.slane %v2486_v50, %v6995_v45  ;;  %v2271_v0 = vmul.f32 0.015625, %v1663_v56  ;;  %v2270_v2 = vmul.f32 0.015625, %v1660_v57  ;;  %v1328_v28 = vld [vmem:[%s6821_s24 + $0x508] sm:$0xff] }
 0x1c8   : > { %v5152_v6 = vrot.slane %v4570_v54, %v7066_v12  ;;  %v5157_v10 = vrot.slane %v4571_v55, %v7075_v20 }
 0x1c9   : > { %v4572_v11 = vunpack.c.l.b16 %v3242_v61  ;;  %v4573_v14 = vunpack.c.l.b16 %v3249_v63  ;;  %v2487_v15 = vpack.c.bf16 %v2271_v0, %v2270_v2  ;;  %1878 = vadd.xlane.f32.xlu1 %v1877_v51  ;;  %1875 = vadd.xlane.f32.xlu0 %v1874_v58  ;;  %v1323_v51 = vld [vmem:[%s6821_s24 + $0x4e0] sm:$0xff]  ;;  %v1895_v58 = vsel %vm1423_vm0, %v1324_v30, 0.0 }
 0x1ca   : > { %v5153_v7 = vsel %vm8320_vm10, %v5152_v6, %v5148_v53  ;;  %v1669_v16 = vpop.xlane.xlu1 %1668  ;;  %v1666_v18 = vpop.xlane.xlu0 %1665  ;;  %v1892_v4 = vsel %vm1423_vm0, %v1323_v51, 0.0 }
 0x1cb   : > { %v5158_v21 = vsel %vm8318_vm11, %v5157_v10, %v5153_v7  ;;  %v5162_v22 = vrot.slane %v4572_v11, %v7090_v52  ;;  %v5167_v24 = vrot.slane %v4573_v14, %v7098_v1  ;;  %v3256_v25 = vrot.slane %v2487_v15, %v6985_v40  ;;  %v1325_v7 = vld [vmem:[%s6821_s24 + $0x4f0] sm:$0xff] }
 0x1cc   : > { %v3263_v62 = vrot.slane %v2487_v15, %v6995_v45  ;;  %v2273_v31 = vmul.f32 0.015625, %v1669_v16  ;;  %v2272_v32 = vmul.f32 0.015625, %v1666_v18  ;;  %v1326_v15 = vld [vmem:[%s6821_s24 + $0x4f8] sm:$0xff] }
 0x1cd   : > { %v5163_v27 = vsel %vm8326_vm12, %v5162_v22, %v5158_v21  ;;  %v4574_v33 = vunpack.c.l.b16 %v3256_v25  ;;  %1884 = vadd.xlane.f32.xlu1 %v1883_v19  ;;  %1881 = vadd.xlane.f32.xlu0 %v1880_v13  ;;  %vm8317_vm12 = vcmask 1044484   ;;  %v1898_v25 = vsel %vm1423_vm0, %v1325_v7, 0.0  ;;  %v1332_v7 = vld [vmem:[%s6821_s24 + $0x528] sm:$0xff] }
 0x1ce   : > { %v5168_v36 = vsel %vm8327_vm13, %v5167_v24, %v5163_v27  ;;  %v4575_v37 = vunpack.c.l.b16 %v3263_v62  ;;  %v2488_v38 = vpack.c.bf16 %v2273_v31, %v2272_v32  ;;  %v1675_v39 = vpop.xlane.xlu1 %1674  ;;  %v1672_v42 = vpop.xlane.xlu0 %1671  ;;  %v1901_v24 = vsel %vm1423_vm0, %v1326_v15, 0.0 }
 0x1cf   : > { %v5172_v44 = vrot.slane %v4574_v33, %v7105_v9  ;;  %v2275_v48 = vmul.f32 0.015625, %v1675_v39  ;;  %v2274_v50 = vmul.f32 0.015625, %v1672_v42  ;;  %v1327_v33 = vld [vmem:[%s6821_s24 + $0x500] sm:$0xff]  ;;  %v1907_v42 = vsel %vm1423_vm0, %v1328_v28, 0.0 }
 0x1d0   : > { %v5177_v53 = vrot.slane %v4575_v37, %v7111_v8  ;;  %v3270_v54 = vrot.slane %v2488_v38, %v6985_v40  ;;  %v3277_v55 = vrot.slane %v2488_v38, %v6995_v45  ;;  %v1904_v51 = vsel %vm1423_vm0, %v1327_v33, 0.0 }
 0x1d1   : > { %v5173_v56 = vsel %vm4854_vm14, %v5172_v44, %v5168_v36  ;;  %v2489_v57 = vpack.c.bf16 %v2275_v48, %v2274_v50  ;;  %1890 = vadd.xlane.f32.xlu1 %v1889_v35  ;;  %1887 = vadd.xlane.f32.xlu0 %v1886_v29  ;;  %v1919_v28 = vsel %vm1423_vm0, %v1332_v7, 0.0  ;;  %vm8328_vm13 = vcmask 851712  }
 0x1d2   : > { %v5178_v61 = vsel %vm4861_vm15, %v5177_v53, %v5173_v56  ;;  %v4576_v63 = vunpack.c.l.b16 %v3270_v54  ;;  %v4577_v0 = vunpack.c.l.b16 %v3277_v55  ;;  %v1681_v2 = vpop.xlane.xlu1 %1680  ;;  %v1678_v3 = vpop.xlane.xlu0 %1677 }
 0x1d3   : > { %v7466_v6 = vsel %vm8317_vm12, %v5178_v61, %v7383_v23  ;;  %v3284_v10 = vrot.slane %v2489_v57, %v6985_v40  ;;  %v3291_v11 = vrot.slane %v2489_v57, %v6995_v45  ;;  %v2277_v14 = vmul.f32 0.015625, %v1681_v2  ;;  %v1330_v57 = vld [vmem:[%s6821_s24 + $0x518] sm:$0xff] }
 0x1d4   : > { %v5182_v16 = vrot.slane %v4576_v63, %v6989_v41  ;;  %v5186_v18 = vrot.slane %v4577_v0, %v7004_v49  ;;  %v2276_v19 = vmul.f32 0.015625, %v1678_v3  ;;  %vm8329_vm12 = vcmask 917312  }
 0x1d5   : > { %v4578_v13 = vunpack.c.l.b16 %v3284_v10  ;;  %v4579_v5 = vunpack.c.l.b16 %v3291_v11  ;;  %1896 = vadd.xlane.f32.xlu1 %v1895_v58  ;;  %1893 = vadd.xlane.f32.xlu0 %v1892_v4  ;;  %v1329_v58 = vld [vmem:[%s6821_s24 + $0x510] sm:$0xff] }
 0x1d6   : > { %v2490_v23 = vpack.c.bf16 %v2277_v14, %v2276_v19  ;;  %v1687_v21 = vpop.xlane.xlu1 %1686  ;;  %v1684_v22 = vpop.xlane.xlu0 %1683  ;;  %v5187_v35 = vsel %vm4763_vm1, %v5186_v18, %v5182_v16  ;;  %v1913_v14 = vsel %vm1423_vm0, %v1330_v57, 0.0  ;;  %v1910_v15 = vsel %vm1423_vm0, %v1329_v58, 0.0 }
 0x1d7   : > { %v5191_v62 = vrot.slane %v4578_v13, %v6998_v46  ;;  %v5196_v31 = vrot.slane %v4579_v5, %v7001_v47  ;;  %v2279_v32 = vmul.f32 0.015625, %v1687_v21  ;;  %v2278_v27 = vmul.f32 0.015625, %v1684_v22  ;;  %v1331_v5 = vld [vmem:[%s6821_s24 + $0x520] sm:$0xff] }
 0x1d8   : > { %v3298_v36 = vrot.slane %v2490_v23, %v6985_v40  ;;  %v3305_v37 = vrot.slane %v2490_v23, %v6995_v45 }
 0x1d9   : > { %v5192_v38 = vsel %vm4770_vm2, %v5191_v62, %v5187_v35  ;;  %v2491_v39 = vpack.c.bf16 %v2279_v32, %v2278_v27  ;;  %1902 = vadd.xlane.f32.xlu1 %v1901_v24  ;;  %1899 = vadd.xlane.f32.xlu0 %v1898_v25  ;;  %v1916_v35 = vsel %vm1423_vm0, %v1331_v5, 0.0 }
 0x1da   : > { %v5197_v29 = vsel %vm4777_vm3, %v5196_v31, %v5192_v38  ;;  %v4580_v30 = vunpack.c.l.b16 %v3298_v36  ;;  %v4581_v44 = vunpack.c.l.b16 %v3305_v37  ;;  %v1693_v48 = vpop.xlane.xlu1 %1692  ;;  %v1690_v50 = vpop.xlane.xlu0 %1689  ;;  %v1334_v36 = vld [vmem:[%s6821_s24 + $0x538] sm:$0xff] }
 0x1db   : > { %v3312_v53 = vrot.slane %v2491_v39, %v6985_v40  ;;  %v3319_v54 = vrot.slane %v2491_v39, %v6995_v45  ;;  %v2281_v55 = vmul.f32 0.015625, %v1693_v48  ;;  %v2280_v56 = vmul.f32 0.015625, %v1690_v50 }
 0x1dc   : > { %v5201_v61 = vrot.slane %v4580_v30, %v7011_v59  ;;  %v5206_v63 = vrot.slane %v4581_v44, %v7014_v60 }
 0x1dd   : > { %v4582_v0 = vunpack.c.l.b16 %v3312_v53  ;;  %v4583_v2 = vunpack.c.l.b16 %v3319_v54  ;;  %v2492_v3 = vpack.c.bf16 %v2281_v55, %v2280_v56  ;;  %1908 = vadd.xlane.f32.xlu1 %v1907_v42  ;;  %1905 = vadd.xlane.f32.xlu0 %v1904_v51  ;;  %v1333_v42 = vld [vmem:[%s6821_s24 + $0x530] sm:$0xff]  ;;  %v1925_v51 = vsel %vm1423_vm0, %v1334_v36, 0.0 }
 0x1de   : > { %v5202_v4 = vsel %vm4784_vm4, %v5201_v61, %v5197_v29  ;;  %v1699_v10 = vpop.xlane.xlu1 %1698  ;;  %v1696_v11 = vpop.xlane.xlu0 %1695  ;;  %v1922_v58 = vsel %vm1423_vm0, %v1333_v42, 0.0 }
 0x1df   : > { %v5207_v16 = vsel %vm4791_vm5, %v5206_v63, %v5202_v4  ;;  %v5211_v18 = vrot.slane %v4582_v0, %v7031_v17  ;;  %v5216_v19 = vrot.slane %v4583_v2, %v7035_v26  ;;  %v3326_v13 = vrot.slane %v2492_v3, %v6985_v40  ;;  %v1335_v4 = vld [vmem:[%s6821_s24 + $0x540] sm:$0xff] }
 0x1e0   : > { %v3333_v23 = vrot.slane %v2492_v3, %v6995_v45  ;;  %v2283_v21 = vmul.f32 0.015625, %v1699_v10  ;;  %v2282_v22 = vmul.f32 0.015625, %v1696_v11  ;;  %v1336_v3 = vld [vmem:[%s6821_s24 + $0x548] sm:$0xff]  ;;  %v1928_v5 = vsel %vm1423_vm0, %v1335_v4, 0.0 }
 0x1e1   : > { %v5212_v24 = vsel %vm4798_vm6, %v5211_v18, %v5207_v16  ;;  %v4584_v25 = vunpack.c.l.b16 %v3326_v13  ;;  %1914 = vadd.xlane.f32.xlu1 %v1913_v14  ;;  %1911 = vadd.xlane.f32.xlu0 %v1910_v15  ;;  %v1931_v13 = vsel %vm1423_vm0, %v1336_v3, 0.0 }
 0x1e2   : > { %v5217_v62 = vsel %vm4805_vm7, %v5216_v19, %v5212_v24  ;;  %v4585_v31 = vunpack.c.l.b16 %v3333_v23  ;;  %v2493_v32 = vpack.c.bf16 %v2283_v21, %v2282_v22  ;;  %v1705_v27 = vpop.xlane.xlu1 %1704  ;;  %v1702_v33 = vpop.xlane.xlu0 %1701 }
 0x1e3   : > { %v5221_v37 = vrot.slane %v4584_v25, %v7043_v34  ;;  %v2285_v38 = vmul.f32 0.015625, %v1705_v27  ;;  %v2284_v39 = vmul.f32 0.015625, %v1702_v33  ;;  %v1338_v25 = vld [vmem:[%s6821_s24 + $0x558] sm:$0xff] }
 0x1e4   : > { %v5226_v29 = vrot.slane %v4585_v31, %v7050_v43  ;;  %v3340_v30 = vrot.slane %v2493_v32, %v6985_v40  ;;  %v3347_v44 = vrot.slane %v2493_v32, %v6995_v45 }
 0x1e5   : > { %v5222_v48 = vsel %vm4812_vm8, %v5221_v37, %v5217_v62  ;;  %v2494_v50 = vpack.c.bf16 %v2285_v38, %v2284_v39  ;;  %1920 = vadd.xlane.f32.xlu1 %v1919_v28  ;;  %1917 = vadd.xlane.f32.xlu0 %v1916_v35  ;;  %v1337_v28 = vld [vmem:[%s6821_s24 + $0x550] sm:$0xff]  ;;  %v1937_v37 = vsel %vm1423_vm0, %v1338_v25, 0.0  ;;  %v1340_v39 = vld [vmem:[%s6821_s24 + $0x568] sm:$0xff] }
 0x1e6   : > { %v5227_v53 = vsel %vm4819_vm9, %v5226_v29, %v5222_v48  ;;  %v4586_v54 = vunpack.c.l.b16 %v3340_v30  ;;  %v4587_v55 = vunpack.c.l.b16 %v3347_v44  ;;  %v1711_v56 = vpop.xlane.xlu1 %1710  ;;  %v1708_v57 = vpop.xlane.xlu0 %1707  ;;  %v1934_v38 = vsel %vm1423_vm0, %v1337_v28, 0.0  ;;  %v1339_v29 = vld [vmem:[%s6821_s24 + $0x560] sm:$0xff] }
 0x1e7   : > { %v3354_v61 = vrot.slane %v2494_v50, %v6985_v40  ;;  %v3361_v63 = vrot.slane %v2494_v50, %v6995_v45  ;;  %v2287_v0 = vmul.f32 0.015625, %v1711_v56  ;;  %v2286_v2 = vmul.f32 0.015625, %v1708_v57 }
 0x1e8   : > { %v5231_v10 = vrot.slane %v4586_v54, %v7066_v12  ;;  %v5236_v11 = vrot.slane %v4587_v55, %v7075_v20 }
 0x1e9   : > { %v4588_v14 = vunpack.c.l.b16 %v3354_v61  ;;  %v4589_v15 = vunpack.c.l.b16 %v3361_v63  ;;  %v2495_v7 = vpack.c.bf16 %v2287_v0, %v2286_v2  ;;  %1926 = vadd.xlane.f32.xlu1 %v1925_v51  ;;  %1923 = vadd.xlane.f32.xlu0 %v1922_v58  ;;  %v1943_v51 = vsel %vm1423_vm0, %v1340_v39, 0.0  ;;  %v1342_v61 = vld [vmem:[%s6821_s24 + $0x578] sm:$0xff]  ;;  %v1341_v0 = vld [vmem:[%s6821_s24 + $0x570] sm:$0xff] }
 0x1ea   : > { %v5232_v16 = vsel %vm8320_vm10, %v5231_v10, %v5227_v53  ;;  %v1717_v18 = vpop.xlane.xlu1 %1716  ;;  %v1714_v19 = vpop.xlane.xlu0 %1713  ;;  %v1940_v58 = vsel %vm1423_vm0, %v1339_v29, 0.0  ;;  %v1949_v3 = vsel %vm1423_vm0, %v1342_v61, 0.0 }
 0x1eb   : > { %v5237_v23 = vsel %vm8318_vm11, %v5236_v11, %v5232_v16  ;;  %v5241_v21 = vrot.slane %v4588_v14, %v7090_v52  ;;  %v5246_v22 = vrot.slane %v4589_v15, %v7098_v1  ;;  %v3368_v24 = vrot.slane %v2495_v7, %v6985_v40  ;;  %v1344_v16 = vld [vmem:[%s6821_s24 + $0x588] sm:$0xff] }
 0x1ec   : > { %v3375_v62 = vrot.slane %v2495_v7, %v6995_v45  ;;  %vm8319_vm11 = vcmask 1045509   ;;  %v2289_v44 = vmul.f32 0.015625, %v1717_v18  ;;  %v2288_v48 = vmul.f32 0.015625, %v1714_v19  ;;  %v1343_v18 = vld [vmem:[%s6821_s24 + $0x580] sm:$0xff] }
 0x1ed   : > { %v5242_v31 = vsel %vm8328_vm13, %v5241_v21, %v5237_v23  ;;  %v4590_v32 = vunpack.c.l.b16 %v3368_v24  ;;  %1932 = vadd.xlane.f32.xlu1 %v1931_v13  ;;  %1929 = vadd.xlane.f32.xlu0 %v1928_v5  ;;  %v1946_v7 = vsel %vm1423_vm0, %v1341_v0, 0.0  ;;  %v1955_v13 = vsel %vm1423_vm0, %v1344_v16, 0.0 }
 0x1ee   : > { %v5247_v27 = vsel %vm8329_vm12, %v5246_v22, %v5242_v31  ;;  %v4591_v33 = vunpack.c.l.b16 %v3375_v62  ;;  %v1723_v35 = vpop.xlane.xlu1 %1722  ;;  %v1720_v36 = vpop.xlane.xlu0 %1719  ;;  %v2496_v2 = vpack.c.bf16 %v2289_v44, %v2288_v48  ;;  %v1952_v5 = vsel %vm1423_vm0, %v1343_v18, 0.0  ;;  %v1346_v62 = vld [vmem:[%s6821_s24 + $0x598] sm:$0xff]  ;;  %v1345_v31 = vld [vmem:[%s6821_s24 + $0x590] sm:$0xff]  ;;  %v1347_v44 = vld [vmem:[%s6821_s24 + $0x5a0] sm:$0xff] }
 0x1ef   : > { %v5251_v42 = vrot.slane %v4590_v32, %v7105_v9  ;;  %v2291_v54 = vmul.f32 0.015625, %v1723_v35  ;;  %v2290_v55 = vmul.f32 0.015625, %v1720_v36  ;;  %v1961_v35 = vsel %vm1423_vm0, %v1346_v62, 0.0  ;;  %v1348_v36 = vld [vmem:[%s6821_s24 + $0x5a8] sm:$0xff] }
 0x1f0   : > { %v5256_v30 = vrot.slane %v4591_v33, %v7111_v8  ;;  %v3389_v19 = vrot.slane %v2496_v2, %v6995_v45  ;;  %vm8330_vm12 = vcmask 786112  }
 0x1f1   : > { %v5252_v50 = vsel %vm4854_vm14, %v5251_v42, %v5247_v27  ;;  %1938 = vadd.xlane.f32.xlu1 %v1937_v37  ;;  %1935 = vadd.xlane.f32.xlu0 %v1934_v38  ;;  %v2497_v4 = vpack.c.bf16 %v2291_v54, %v2290_v55 }
 0x1f2   : > { %v5257_v53 = vsel %vm4861_vm15, %v5256_v30, %v5252_v50  ;;  %v1729_v56 = vpop.xlane.xlu1 %1728  ;;  %v1726_v57 = vpop.xlane.xlu0 %1725  ;;  %v4593_v27 = vunpack.c.l.b16 %v3389_v19  ;;  %v1958_v30 = vsel %vm1423_vm0, %v1345_v31, 0.0 }
 0x1f3   : > { %v7548_v63 = vsel %vm8319_vm11, %v5257_v53, %v7466_v6  ;;  %v2293_v10 = vmul.f32 0.015625, %v1729_v56  ;;  %v2292_v11 = vmul.f32 0.015625, %v1726_v57  ;;  %v3382_v6 = vrot.slane %v2496_v2, %v6985_v40  ;;  %v1350_v57 = vld [vmem:[%s6821_s24 + $0x5b8] sm:$0xff] }
 0x1f4   : > { %v3396_v23 = vrot.slane %v2497_v4, %v6985_v40  ;;  %v3403_v33 = vrot.slane %v2497_v4, %v6995_v45  ;;  %v5265_v50 = vrot.slane %v4593_v27, %v7004_v49  ;;  %v1964_v4 = vsel %vm1423_vm0, %v1347_v44, 0.0  ;;  %v1355_v27 = vld [vmem:[%s6821_s24 + $0x5e0] sm:$0xff] }
 0x1f5   : > { %1944 = vadd.xlane.f32.xlu1 %v1943_v51  ;;  %1941 = vadd.xlane.f32.xlu0 %v1940_v58  ;;  %v2498_v21 = vpack.c.bf16 %v2293_v10, %v2292_v11  ;;  %v4592_v32 = vunpack.c.l.b16 %v3382_v6  ;;  %v1967_v51 = vsel %vm1423_vm0, %v1348_v36, 0.0  ;;  %v1349_v10 = vld [vmem:[%s6821_s24 + $0x5b0] sm:$0xff]  ;;  %vm8333_vm11 = vcmask 851712  }
 0x1f6   : > { %v1735_v14 = vpop.xlane.xlu1 %1734  ;;  %v1732_v15 = vpop.xlane.xlu0 %1731  ;;  %v4594_v37 = vunpack.c.l.b16 %v3396_v23  ;;  %v4595_v53 = vunpack.c.l.b16 %v3403_v33  ;;  %v1356_v23 = vld [vmem:[%s6821_s24 + $0x5e8] sm:$0xff]  ;;  %v1970_v62 = vsel %vm1423_vm0, %v1349_v10, 0.0 }
 0x1f7   : > { %v2295_v22 = vmul.f32 0.015625, %v1735_v14  ;;  %v2294_v24 = vmul.f32 0.015625, %v1732_v15  ;;  %v3410_v38 = vrot.slane %v2498_v21, %v6985_v40  ;;  %v5261_v48 = vrot.slane %v4592_v32, %v6989_v41  ;;  %v1352_v15 = vld [vmem:[%s6821_s24 + $0x5c8] sm:$0xff] }
 0x1f8   : > { %v3417_v54 = vrot.slane %v2498_v21, %v6995_v45  ;;  %v5270_v58 = vrot.slane %v4594_v37, %v6998_v46  ;;  %v1973_v14 = vsel %vm1423_vm0, %v1350_v57, 0.0  ;;  %v5275_v16 = vrot.slane %v4595_v53, %v7001_v47  ;;  %v1358_v37 = vld [vmem:[%s6821_s24 + $0x5f8] sm:$0xff] }
 0x1f9   : > { %1950 = vadd.xlane.f32.xlu1 %v1949_v3  ;;  %1947 = vadd.xlane.f32.xlu0 %v1946_v7  ;;  %v2499_v39 = vpack.c.bf16 %v2295_v22, %v2294_v24  ;;  %v4596_v61 = vunpack.c.l.b16 %v3410_v38  ;;  %v5266_v11 = vsel %vm4763_vm1, %v5265_v50, %v5261_v48  ;;  %v1351_v7 = vld [vmem:[%s6821_s24 + $0x5c0] sm:$0xff]  ;;  %v1979_v31 = vsel %vm1423_vm0, %v1352_v15, 0.0  ;;  %v1357_v38 = vld [vmem:[%s6821_s24 + $0x5f0] sm:$0xff] }
 0x1fa   : > { %v1741_v25 = vpop.xlane.xlu1 %1740  ;;  %v1738_v28 = vpop.xlane.xlu0 %1737  ;;  %v4597_v18 = vunpack.c.l.b16 %v3417_v54  ;;  %v5271_v21 = vsel %vm4770_vm2, %v5270_v58, %v5266_v11  ;;  %v1976_v32 = vsel %vm1423_vm0, %v1351_v7, 0.0  ;;  %v7605_v36 = vsel %vm1423_vm0, %v1356_v23, 0.0 }
 0x1fb   : > { %v2297_v55 = vmul.f32 0.015625, %v1741_v25  ;;  %v2296_v56 = vmul.f32 0.015625, %v1738_v28  ;;  %v3424_v0 = vrot.slane %v2499_v39, %v6985_v40  ;;  %v3431_v6 = vrot.slane %v2499_v39, %v6995_v45  ;;  %v1360_v39 = vld [vmem:[%s6821_s24 + $0x608] sm:$0xff] }
 0x1fc   : > { %v5280_v22 = vrot.slane %v4596_v61, %v7011_v59  ;;  %v5285_v44 = vrot.slane %v4597_v18, %v7014_v60  ;;  %v1362_v61 = vld [vmem:[%s6821_s24 + $0x618] sm:$0xff]  ;;  %v7621_v10 = vsel %vm1423_vm0, %v1358_v37, 0.0  ;;  %v7624_v11 = vsel %vm1423_vm0, %v1357_v38, 0.0 }
 0x1fd   : > { %1956 = vadd.xlane.f32.xlu1 %v1955_v13  ;;  %1953 = vadd.xlane.f32.xlu0 %v1952_v5  ;;  %v7587_v19 = vpack.c.bf16 %v2297_v55, %v2296_v56  ;;  %v1354_v13 = vld [vmem:[%s6821_s24 + $0x5d8] sm:$0xff]  ;;  %v1353_v5 = vld [vmem:[%s6821_s24 + $0x5d0] sm:$0xff]  ;;  %v4598_v24 = vunpack.c.l.b16 %v3424_v0  ;;  %v4599_v48 = vunpack.c.l.b16 %v3431_v6  ;;  %v7636_v6 = vsel %vm1423_vm0, %v1362_v61, 0.0 }
 0x1fe   : > { %v1747_v42 = vpop.xlane.xlu1 %1746  ;;  %v1744_v29 = vpop.xlane.xlu0 %1743  ;;  %v1985_v33 = vsel %vm1423_vm0, %v1354_v13, 0.0  ;;  %v1361_v0 = vld [vmem:[%s6821_s24 + $0x610] sm:$0xff]  ;;  %v1366_v37 = vld [vmem:[%s6821_s24 + $0x638] sm:$0xff] }
 0x1ff   : > { %v3438_v50 = vrot.slane %v7587_v19, %v6985_v40  ;;  %v5290_v54 = vrot.slane %v4598_v24, %v7031_v17  ;;  %v2299_v55 = vmul.f32 0.015625, %v1747_v42  ;;  %v2298_v56 = vmul.f32 0.015625, %v1744_v29 }
 0x200   : > { %v3445_v42 = vrot.slane %v7587_v19, %v6995_v45  ;;  %v7639_v13 = vsel %vm1423_vm0, %v1361_v0, 0.0  ;;  %v5295_v23 = vrot.slane %v4599_v48, %v7035_v26 }
 0x201   : > { %1962 = vadd.xlane.f32.xlu1 %v1961_v35  ;;  %1959 = vadd.xlane.f32.xlu0 %v1958_v30  ;;  %v1982_v35 = vsel %vm1423_vm0, %v1353_v5, 0.0  ;;  %v5276_v30 = vsel %vm4777_vm3, %v5275_v16, %v5271_v21  ;;  %v4600_v18 = vunpack.c.l.b16 %v3438_v50  ;;  %v1364_v5 = vld [vmem:[%s6821_s24 + $0x628] sm:$0xff]  ;;  %v2501_v21 = vpack.c.bf16 %v2299_v55, %v2298_v56 }
 0x202   : > { %v7575_v2 = vpop.xlane.xlu1 %1752  ;;  %v7577_v3 = vpop.xlane.xlu0 %1749  ;;  %v5281_v53 = vsel %vm4784_vm4, %v5280_v22, %v5276_v30  ;;  %v7648_v30 = vunpack.c.l.b16 %v3445_v42  ;;  %v7653_v48 = vsel %vm1423_vm0, %v1364_v5, 0.0 }
 0x203   : > { %v5286_v16 = vsel %vm4791_vm5, %v5285_v44, %v5281_v53  ;;  %v3452_v55 = vrot.slane %v2501_v21, %v6985_v40 }
 0x204   : > { %v5291_v19 = vsel %vm4798_vm6, %v5290_v54, %v5286_v16 }
 0x205   : > { %1968 = vadd.xlane.f32.xlu1 %v1967_v51  ;;  %1965 = vadd.xlane.f32.xlu0 %v1964_v4  ;;  %v1359_v51 = vld [vmem:[%s6821_s24 + $0x600] sm:$0xff]  ;;  %v1988_v4 = vsel %vm1423_vm0, %v1355_v27, 0.0  ;;  %v5296_v54 = vsel %vm4805_vm7, %v5295_v23, %v5291_v19  ;;  %v3459_v19 = vrot.slane %v2501_v21, %v6995_v45 }
 0x206   : > { %v7594_v25 = vpop.xlane.xlu1 %1758  ;;  %v7596_v28 = vpop.xlane.xlu0 %1755  ;;  %v7632_v7 = vsel %vm1423_vm0, %v1359_v51, 0.0  ;;  %v1363_v27 = vld [vmem:[%s6821_s24 + $0x620] sm:$0xff]  ;;  %v5300_v51 = vrot.slane %v4600_v18, %v7043_v34 }
 0x208   : > { %v5301_v5 = vsel %vm4812_vm8, %v5300_v51, %v5296_v54  ;;  %v1365_v54 = vld [vmem:[%s6821_s24 + $0x630] sm:$0xff] }
 0x209   : > { %1974 = vadd.xlane.f32.xlu1 %v1973_v14  ;;  %1971 = vadd.xlane.f32.xlu0 %v1970_v62  ;;  %v7627_v14 = vsel %vm1423_vm0, %v1360_v39, 0.0 }
 0x20a   : > { %v1765_v57 = vpop.xlane.xlu1 %1764  ;;  %v1762_v58 = vpop.xlane.xlu0 %1761 }
 0x20b   : > { %v2305_v29 = vmul.f32 0.015625, %v1765_v57  ;;  %v2304_v15 = vmul.f32 0.015625, %v1762_v58 }
 0x20d   : > { %1980 = vadd.xlane.f32.xlu1 %v1979_v31  ;;  %1977 = vadd.xlane.f32.xlu0 %v1976_v32  ;;  %v2504_v22 = vpack.c.bf16 %v2305_v29, %v2304_v15  ;;  %v2301_v31 = vmul.f32 0.015625, %v7575_v2  ;;  %v2300_v32 = vmul.f32 0.015625, %v7577_v3  ;;  %v7657_v2 = vsel %vm1423_vm0, %v1363_v27, 0.0 }
 0x20e   : > { %v1771_v24 = vpop.xlane.xlu1 %1770  ;;  %v1768_v62 = vpop.xlane.xlu0 %1767  ;;  %v7660_v3 = vsel %vm1423_vm0, %v1366_v37, 0.0  ;;  %v5305_v29 = vrot.slane %v7648_v30, %v7050_v43  ;;  %v2302_v27 = vmul.f32 0.015625, %v7596_v28  ;;  %v4603_v28 = vunpack.c.l.b16 %v3459_v19 }
 0x20f   : > { %v2307_v38 = vmul.f32 0.015625, %v1771_v24  ;;  %v2306_v39 = vmul.f32 0.015625, %v1768_v62  ;;  %v3494_v44 = vrot.slane %v2504_v22, %v6985_v40  ;;  %v3501_v50 = vrot.slane %v2504_v22, %v6995_v45 }
 0x210   : > { %v7664_v0 = vpack.c.bf16 %v2301_v31, %v2300_v32  ;;  %v4602_v24 = vunpack.c.l.b16 %v3452_v55  ;;  %v2303_v62 = vmul.f32 0.015625, %v7594_v25 }
 0x211   : > { %v2505_v53 = vpack.c.bf16 %v2307_v38, %v2306_v39  ;;  %1986 = vadd.xlane.f32.xlu1 %v1985_v33  ;;  %1983 = vadd.xlane.f32.xlu0 %v1982_v35  ;;  %v4608_v56 = vunpack.c.l.b16 %v3494_v44  ;;  %v4609_v57 = vunpack.c.l.b16 %v3501_v50 }
 0x212   : > { %v1777_v58 = vpop.xlane.xlu1 %1776  ;;  %v1774_v61 = vpop.xlane.xlu0 %1773  ;;  %v3466_v38 = vrot.slane %v7664_v0, %v6985_v40  ;;  %v3473_v50 = vrot.slane %v7664_v0, %v6995_v45  ;;  %v5310_v55 = vrot.slane %v4602_v24, %v7066_v12 }
 0x213   : > { %v3508_v42 = vrot.slane %v2505_v53, %v6985_v40  ;;  %v3515_v33 = vrot.slane %v2505_v53, %v6995_v45  ;;  %v2309_v35 = vmul.f32 0.015625, %v1777_v58  ;;  %v5340_v15 = vrot.slane %v4608_v56, %v6989_v41 }
 0x214   : > { %v5344_v16 = vrot.slane %v4609_v57, %v7004_v49  ;;  %v2308_v18 = vmul.f32 0.015625, %v1774_v61  ;;  %v2503_v56 = vpack.c.bf16 %v2303_v62, %v2302_v27  ;;  %v5306_v62 = vsel %vm4819_vm9, %v5305_v29, %v5301_v5 }
 0x215   : > { %v4610_v23 = vunpack.c.l.b16 %v3508_v42  ;;  %v4611_v22 = vunpack.c.l.b16 %v3515_v33  ;;  %1992 = vadd.xlane.f32.xlu1 %v7605_v36  ;;  %1989 = vadd.xlane.f32.xlu0 %v1988_v4  ;;  %v5315_v27 = vrot.slane %v4603_v28, %v7075_v20 }
 0x216   : > { %v2506_v37 = vpack.c.bf16 %v2309_v35, %v2308_v18  ;;  %v1783_v31 = vpop.xlane.xlu1 %1782  ;;  %v1780_v32 = vpop.xlane.xlu0 %1779  ;;  %v5345_v44 = vsel %vm4763_vm1, %v5344_v16, %v5340_v15  ;;  %v4604_v16 = vunpack.c.l.b16 %v3466_v38 }
 0x217   : > { %v5349_v39 = vrot.slane %v4610_v23, %v6998_v46  ;;  %v2311_v21 = vmul.f32 0.015625, %v1783_v31  ;;  %v2310_v30 = vmul.f32 0.015625, %v1780_v32  ;;  %v5354_v36 = vrot.slane %v4611_v22, %v7001_v47 }
 0x218   : > { %v3522_v4 = vrot.slane %v2506_v37, %v6985_v40  ;;  %v3529_v25 = vrot.slane %v2506_v37, %v6995_v45  ;;  %v3480_v37 = vrot.slane %v2503_v56, %v6985_v40 }
 0x219   : > { %v5350_v51 = vsel %vm4770_vm2, %v5349_v39, %v5345_v44  ;;  %v2507_v53 = vpack.c.bf16 %v2311_v21, %v2310_v30  ;;  %1998 = vadd.xlane.f32.xlu1 %v7621_v10  ;;  %1995 = vadd.xlane.f32.xlu0 %v7624_v11  ;;  %v7696_v11 = vsel %vm1423_vm0, %v1365_v54, 0.0  ;;  %v5311_v39 = vsel %vm8320_vm10, %v5310_v55, %v5306_v62 }
 0x21a   : > { %v4612_v57 = vunpack.c.l.b16 %v3522_v4  ;;  %v4613_v58 = vunpack.c.l.b16 %v3529_v25  ;;  %v1789_v61 = vpop.xlane.xlu1 %1788  ;;  %v1786_v42 = vpop.xlane.xlu0 %1785  ;;  %v5355_v18 = vsel %vm4777_vm3, %v5354_v36, %v5350_v51  ;;  %v4605_v21 = vunpack.c.l.b16 %v3473_v50 }
 0x21b   : > { %v3536_v33 = vrot.slane %v2507_v53, %v6985_v40  ;;  %v3543_v35 = vrot.slane %v2507_v53, %v6995_v45  ;;  %v2313_v0 = vmul.f32 0.015625, %v1789_v61  ;;  %v2312_v15 = vmul.f32 0.015625, %v1786_v42 }
 0x21c   : > { %v5359_v10 = vrot.slane %v4612_v57, %v7011_v59  ;;  %v5364_v19 = vrot.slane %v4613_v58, %v7014_v60  ;;  %v3487_v36 = vrot.slane %v2503_v56, %v6995_v45  ;;  %v4606_v50 = vunpack.c.l.b16 %v3480_v37 }
 0x21d   : > { %v4614_v23 = vunpack.c.l.b16 %v3536_v33  ;;  %v4615_v22 = vunpack.c.l.b16 %v3543_v35  ;;  %v2508_v24 = vpack.c.bf16 %v2313_v0, %v2312_v15  ;;  %2004 = vadd.xlane.f32.xlu1 %v7627_v14  ;;  %2001 = vadd.xlane.f32.xlu0 %v7632_v7  ;;  %v5320_v14 = vrot.slane %v4604_v16, %v7090_v52 }
 0x21e   : > { %v5360_v31 = vsel %vm4784_vm4, %v5359_v10, %v5355_v18  ;;  %v1795_v32 = vpop.xlane.xlu1 %1794  ;;  %v1792_v38 = vpop.xlane.xlu0 %1791  ;;  %v5316_v58 = vsel %vm8330_vm12, %v5315_v27, %v5311_v39  ;;  %v4607_v0 = vunpack.c.l.b16 %v3487_v36  ;;  %v1368_v10 = vld [vmem:[%s6821_s24 + $0x648] sm:$0xff]  ;;  %v1367_v39 = vld [vmem:[%s6821_s24 + $0x640] sm:$0xff]  ;;  %vm8331_vm12 = vcmask 917312  }
 0x21f   : > { %v5369_v30 = vrot.slane %v4614_v23, %v7031_v17  ;;  %v3550_v44 = vrot.slane %v2508_v24, %v6985_v40  ;;  %v3557_v7 = vrot.slane %v2508_v24, %v6995_v45  ;;  %v2315_v29 = vmul.f32 0.015625, %v1795_v32 }
 0x220   : > { %v2314_v5 = vmul.f32 0.015625, %v1792_v38  ;;  %v5365_v4 = vsel %vm4791_vm5, %v5364_v19, %v5360_v31  ;;  %v5374_v25 = vrot.slane %v4615_v22, %v7035_v26  ;;  %v5321_v33 = vsel %vm8328_vm13, %v5320_v14, %v5316_v58 }
 0x221   : > { %v4616_v28 = vunpack.c.l.b16 %v3550_v44  ;;  %2010 = vadd.xlane.f32.xlu1 %v7636_v6  ;;  %2007 = vadd.xlane.f32.xlu0 %v7639_v13  ;;  %v5370_v51 = vsel %vm4798_vm6, %v5369_v30, %v5365_v4  ;;  %v4617_v53 = vunpack.c.l.b16 %v3557_v7  ;;  %v5325_v6 = vrot.slane %v4605_v21, %v7098_v1 }
 0x222   : > { %v2509_v54 = vpack.c.bf16 %v2315_v29, %v2314_v5  ;;  %v1801_v55 = vpop.xlane.xlu1 %1800  ;;  %v1798_v57 = vpop.xlane.xlu0 %1797  ;;  %v5375_v15 = vsel %vm4805_vm7, %v5374_v25, %v5370_v51  ;;  %v5330_v19 = vrot.slane %v4606_v50, %v7105_v9  ;;  %v2027_v21 = vsel %vm1423_vm0, %v1368_v10, 0.0 }
 0x223   : > { %v5379_v56 = vrot.slane %v4616_v28, %v7043_v34  ;;  %v2317_v61 = vmul.f32 0.015625, %v1801_v55  ;;  %v2316_v42 = vmul.f32 0.015625, %v1798_v57  ;;  %v5384_v16 = vrot.slane %v4617_v53, %v7050_v43 }
 0x224   : > { %v3564_v13 = vrot.slane %v2509_v54, %v6985_v40  ;;  %v3571_v35 = vrot.slane %v2509_v54, %v6995_v45  ;;  %v5326_v29 = vsel %vm8331_vm12, %v5325_v6, %v5321_v33  ;;  %v5335_v5 = vrot.slane %v4607_v0, %v7111_v8  ;;  %v1370_v54 = vld [vmem:[%s6821_s24 + $0x658] sm:$0xff] }
 0x225   : > { %v2510_v18 = vpack.c.bf16 %v2317_v61, %v2316_v42  ;;  %2016 = vadd.xlane.f32.xlu1 %v7653_v48  ;;  %2013 = vadd.xlane.f32.xlu0 %v7657_v2  ;;  %v5380_v23 = vsel %vm4812_vm8, %v5379_v56, %v5375_v15  ;;  %v2024_v28 = vsel %vm1423_vm0, %v1367_v39, 0.0  ;;  %v5331_v50 = vsel %vm4854_vm14, %v5330_v19, %v5326_v29 }
 0x226   : > { %v4618_v22 = vunpack.c.l.b16 %v3564_v13  ;;  %v4619_v24 = vunpack.c.l.b16 %v3571_v35  ;;  %v1807_v62 = vpop.xlane.xlu1 %1806  ;;  %v1804_v27 = vpop.xlane.xlu0 %1803  ;;  %v5385_v30 = vsel %vm4819_vm9, %v5384_v16, %v5380_v23  ;;  %vm8332_vm13 = vcmask 786112   ;;  %v1375_v16 = vld [vmem:[%s6821_s24 + $0x680] sm:$0xff] }
 0x227   : > { %v3578_v37 = vrot.slane %v2510_v18, %v6985_v40  ;;  %v3585_v31 = vrot.slane %v2510_v18, %v6995_v45  ;;  %v2319_v32 = vmul.f32 0.015625, %v1807_v62  ;;  %v2318_v38 = vmul.f32 0.015625, %v1804_v27  ;;  %v1371_v18 = vld [vmem:[%s6821_s24 + $0x660] sm:$0xff] }
 0x228   : > { %v5389_v48 = vrot.slane %v4618_v22, %v7066_v12  ;;  %v5394_v2 = vrot.slane %v4619_v24, %v7075_v20  ;;  %vm6058_vm12 = vcmask 1046534   ;;  %v2033_v0 = vsel %vm1423_vm0, %v1370_v54, 0.0 }
 0x229   : > { %v4620_v44 = vunpack.c.l.b16 %v3578_v37  ;;  %v4621_v14 = vunpack.c.l.b16 %v3585_v31  ;;  %v2511_v7 = vpack.c.bf16 %v2319_v32, %v2318_v38  ;;  %2022 = vadd.xlane.f32.xlu1 %v7660_v3  ;;  %2019 = vadd.xlane.f32.xlu0 %v7696_v11  ;;  %v1369_v11 = vld [vmem:[%s6821_s24 + $0x650] sm:$0xff]  ;;  %v5336_v10 = vsel %vm4861_vm15, %v5335_v5, %v5331_v50 }
 0x22a   : > { %v5390_v36 = vsel %vm8320_vm10, %v5389_v48, %v5385_v30  ;;  %v1813_v4 = vpop.xlane.xlu1 %1812  ;;  %v1810_v25 = vpop.xlane.xlu0 %1809  ;;  %vm8321_vm10 = vcmask 1047559   ;;  %v2030_v15 = vsel %vm1423_vm0, %v1369_v11, 0.0  ;;  %v2048_v38 = vsel %vm1423_vm0, %v1375_v16, 0.0 }
 0x22b   : > { %v5395_v51 = vsel %vm8332_vm13, %v5394_v2, %v5390_v36  ;;  %v5399_v53 = vrot.slane %v4620_v44, %v7090_v52  ;;  %v3592_v3 = vrot.slane %v2511_v7, %v6985_v40  ;;  %v5404_v55 = vrot.slane %v4621_v14, %v7098_v1 }
 0x22c   : > { %v3599_v57 = vrot.slane %v2511_v7, %v6995_v45  ;;  %v2321_v58 = vmul.f32 0.015625, %v1813_v4  ;;  %v2320_v56 = vmul.f32 0.015625, %v1810_v25  ;;  %v2036_v39 = vsel %vm1423_vm0, %v1371_v18, 0.0  ;;  %v1377_v4 = vld [vmem:[%s6821_s24 + $0x690] sm:$0xff]  ;;  %v1376_v25 = vld [vmem:[%s6821_s24 + $0x688] sm:$0xff] }
 0x22d   : > { %v5400_v61 = vsel %vm8333_vm11, %v5399_v53, %v5395_v51  ;;  %v4622_v42 = vunpack.c.l.b16 %v3592_v3  ;;  %2028 = vadd.xlane.f32.xlu1 %v2027_v21  ;;  %2025 = vadd.xlane.f32.xlu0 %v2024_v28  ;;  %vm8334_vm11 = vcmask 917312   ;;  %v6059_v48 = vsel %vm6058_vm12, %v5336_v10, %v7548_v63 }
 0x22e   : > { %v4623_v33 = vunpack.c.l.b16 %v3599_v57  ;;  %v2512_v6 = vpack.c.bf16 %v2321_v58, %v2320_v56  ;;  %v1819_v13 = vpop.xlane.xlu1 %1818  ;;  %v1816_v35 = vpop.xlane.xlu0 %1815  ;;  %v5405_v24 = vsel %vm8334_vm11, %v5404_v55, %v5400_v61  ;;  %v2054_v57 = vsel %vm1423_vm0, %v1377_v4, 0.0  ;;  %v1391_v56 = vld [vmem:[%s6821_s24 + $0x700] sm:$0xff] }
 0x22f   : > { %v5409_v19 = vrot.slane %v4622_v42, %v7105_v9  ;;  %v2323_v23 = vmul.f32 0.015625, %v1819_v13  ;;  %v2322_v22 = vmul.f32 0.015625, %v1816_v35  ;;  %v2051_v58 = vsel %vm1423_vm0, %v1376_v25, 0.0  ;;  %v1378_v13 = vld [vmem:[%s6821_s24 + $0x698] sm:$0xff]  ;;  %v1407_v25 = vld [vmem:[%s6821_s24 + $0x780] sm:$0xff] }
 0x230   : > { %v5414_v62 = vrot.slane %v4623_v33, %v7111_v8  ;;  %v3606_v27 = vrot.slane %v2512_v6, %v6985_v40  ;;  %v3613_v37 = vrot.slane %v2512_v6, %v6995_v45  ;;  %v2096_v10 = vsel %vm1423_vm0, %v1391_v56, 0.0 }
 0x231   : > { %v5410_v31 = vsel %vm4854_vm14, %v5409_v19, %v5405_v24  ;;  %v2513_v32 = vpack.c.bf16 %v2323_v23, %v2322_v22  ;;  %2034 = vadd.xlane.f32.xlu1 %v2033_v0  ;;  %2031 = vadd.xlane.f32.xlu0 %v2030_v15  ;;  %vm8335_vm13 = vcmask 720512   ;;  %vm8336_vm11 = vcmask 786112  }
 0x232   : > { %v5415_v2 = vsel %vm4861_vm15, %v5414_v62, %v5410_v31  ;;  %v4624_v21 = vunpack.c.l.b16 %v3606_v27  ;;  %v4625_v30 = vunpack.c.l.b16 %v3613_v37  ;;  %v1825_v44 = vpop.xlane.xlu1 %1824  ;;  %v1822_v14 = vpop.xlane.xlu0 %1821  ;;  %v2057_v27 = vsel %vm1423_vm0, %v1378_v13, 0.0 }
 0x233   : > { %v6061_v7 = vsel %vm8321_vm10, %v5415_v2, %v6059_v48  ;;  %v3620_v29 = vrot.slane %v2513_v32, %v6985_v40  ;;  %v3627_v5 = vrot.slane %v2513_v32, %v6995_v45  ;;  %v2325_v36 = vmul.f32 0.015625, %v1825_v44  ;;  %v1392_v48 = vld [vmem:[%s6821_s24 + $0x708] sm:$0xff] }
 0x234   : > { %v6069_v28 = vpack.c.b16 %v6061_v7, %v6061_v7  ;;  %v5419_v63 = vrot.slane %v4624_v21, %v6989_v41  ;;  %v5423_v50 = vrot.slane %v4625_v30, %v7004_v49  ;;  %v2324_v51 = vmul.f32 0.015625, %v1822_v14 }
 0x235   : > { %v4626_v53 = vunpack.c.l.b16 %v3620_v29  ;;  %v4627_v3 = vunpack.c.l.b16 %v3627_v5  ;;  %2049 = vadd.xlane.f32.xlu1 %v2048_v38  ;;  %2037 = vadd.xlane.f32.xlu0 %v2036_v39  ;;  %v1393_v39 = vld [vmem:[%s6821_s24 + $0x710] sm:$0xff]  ;;  %v2099_v4 = vsel %vm1423_vm0, %v1392_v48, 0.0  ;;  %vm8352_vm10 = vcmask 917312  }
 0x236   : > { %v2514_v54 = vpack.c.bf16 %v2325_v36, %v2324_v51  ;;  %v1831_v11 = vpop.xlane.xlu1 %1830  ;;  %v1828_v55 = vpop.xlane.xlu0 %1827  ;;  %6073 = vst [vmem:[%s7782_s26] sm:$0xf] %v6069_v28  ;;  %v5424_v35 = vsel %vm4763_vm1, %v5423_v50, %v5419_v63  ;;  %v2102_v36 = vsel %vm1423_vm0, %v1393_v39, 0.0 }
 0x237   : > { %v5428_v61 = vrot.slane %v4626_v53, %v6998_v46  ;;  %v5433_v42 = vrot.slane %v4627_v3, %v7001_v47  ;;  %v2327_v33 = vmul.f32 0.015625, %v1831_v11  ;;  %v2326_v6 = vmul.f32 0.015625, %v1828_v55  ;;  %v1394_v53 = vld [vmem:[%s6821_s24 + $0x718] sm:$0xff] }
 0x238   : > { %v3634_v0 = vrot.slane %v2514_v54, %v6985_v40  ;;  %v3641_v15 = vrot.slane %v2514_v54, %v6995_v45  ;;  %v2105_v13 = vsel %vm1423_vm0, %v1394_v53, 0.0  ;;  %v1395_v53 = vld [vmem:[%s6821_s24 + $0x720] sm:$0xff] }
 0x239   : > { %v5429_v16 = vsel %vm4770_vm2, %v5428_v61, %v5424_v35  ;;  %v2515_v18 = vpack.c.bf16 %v2327_v33, %v2326_v6  ;;  %2055 = vadd.xlane.f32.xlu1 %v2054_v57  ;;  %2052 = vadd.xlane.f32.xlu0 %v2051_v58  ;;  %v2144_v58 = vsel %vm1423_vm0, %v1407_v25, 0.0  ;;  %v1379_v35 = vld [vmem:[%s6821_s24 + $0x6a0] sm:$0xff] }
 0x23a   : > { %v5434_v19 = vsel %vm4777_vm3, %v5433_v42, %v5429_v16  ;;  %v4628_v23 = vunpack.c.l.b16 %v3634_v0  ;;  %v4629_v22 = vunpack.c.l.b16 %v3641_v15  ;;  %v1837_v24 = vpop.xlane.xlu1 %1836  ;;  %v1834_v62 = vpop.xlane.xlu0 %1833 }
 0x23b   : > { %v3648_v37 = vrot.slane %v2515_v18, %v6985_v40  ;;  %v3655_v31 = vrot.slane %v2515_v18, %v6995_v45  ;;  %v2329_v32 = vmul.f32 0.015625, %v1837_v24  ;;  %v2328_v38 = vmul.f32 0.015625, %v1834_v62  ;;  %v1408_v18 = vld [vmem:[%s6821_s24 + $0x788] sm:$0xff] }
 0x23c   : > { %v5438_v2 = vrot.slane %v4628_v23, %v7011_v59  ;;  %v5443_v21 = vrot.slane %v4629_v22, %v7014_v60  ;;  %v2060_v62 = vsel %vm1423_vm0, %v1379_v35, 0.0  ;;  %v2147_v39 = vsel %vm1423_vm0, %v1408_v18, 0.0 }
 0x23d   : > { %v4630_v30 = vunpack.c.l.b16 %v3648_v37  ;;  %v4631_v44 = vunpack.c.l.b16 %v3655_v31  ;;  %v2516_v14 = vpack.c.bf16 %v2329_v32, %v2328_v38  ;;  %2097 = vadd.xlane.f32.xlu1 %v2096_v10  ;;  %2058 = vadd.xlane.f32.xlu0 %v2057_v27 }
 0x23e   : > { %v5439_v7 = vsel %vm4784_vm4, %v5438_v2, %v5434_v19  ;;  %v1843_v29 = vpop.xlane.xlu1 %1842  ;;  %v1840_v5 = vpop.xlane.xlu0 %1839 }
 0x23f   : > { %v5444_v28 = vsel %vm4791_vm5, %v5443_v21, %v5439_v7  ;;  %v5448_v63 = vrot.slane %v4630_v30, %v7031_v17  ;;  %v5453_v50 = vrot.slane %v4631_v44, %v7035_v26  ;;  %v3662_v51 = vrot.slane %v2516_v14, %v6985_v40  ;;  %v1409_v44 = vld [vmem:[%s6821_s24 + $0x790] sm:$0xff] }
 0x240   : > { %v3669_v3 = vrot.slane %v2516_v14, %v6995_v45  ;;  %v2331_v54 = vmul.f32 0.015625, %v1843_v29  ;;  %v2330_v11 = vmul.f32 0.015625, %v1840_v5  ;;  %v1380_v14 = vld [vmem:[%s6821_s24 + $0x6a8] sm:$0xff] }
 0x241   : > { %v5449_v55 = vsel %vm4798_vm6, %v5448_v63, %v5444_v28  ;;  %v4632_v57 = vunpack.c.l.b16 %v3662_v51  ;;  %2103 = vadd.xlane.f32.xlu1 %v2102_v36  ;;  %2100 = vadd.xlane.f32.xlu0 %v2099_v4  ;;  %v2063_v51 = vsel %vm1423_vm0, %v1380_v14, 0.0 }
 0x242   : > { %v5454_v56 = vsel %vm4805_vm7, %v5453_v50, %v5449_v55  ;;  %v4633_v61 = vunpack.c.l.b16 %v3669_v3  ;;  %v2517_v42 = vpack.c.bf16 %v2331_v54, %v2330_v11  ;;  %v1849_v33 = vpop.xlane.xlu1 %1848  ;;  %v1846_v6 = vpop.xlane.xlu0 %1845  ;;  %v2150_v50 = vsel %vm1423_vm0, %v1409_v44, 0.0 }
 0x243   : > { %v5458_v0 = vrot.slane %v4632_v57, %v7043_v34  ;;  %v2333_v15 = vmul.f32 0.015625, %v1849_v33  ;;  %v2332_v16 = vmul.f32 0.015625, %v1846_v6  ;;  %v1410_v57 = vld [vmem:[%s6821_s24 + $0x798] sm:$0xff]  ;;  %v2108_v6 = vsel %vm1423_vm0, %v1395_v53, 0.0 }
 0x244   : > { %v5463_v10 = vrot.slane %v4633_v61, %v7050_v43  ;;  %v3676_v19 = vrot.slane %v2517_v42, %v6985_v40  ;;  %v3683_v23 = vrot.slane %v2517_v42, %v6995_v45  ;;  %v2153_v18 = vsel %vm1423_vm0, %v1410_v57, 0.0 }
 0x245   : > { %v5459_v22 = vsel %vm4812_vm8, %v5458_v0, %v5454_v56  ;;  %v2518_v24 = vpack.c.bf16 %v2333_v15, %v2332_v16  ;;  %2145 = vadd.xlane.f32.xlu1 %v2144_v58  ;;  %2106 = vadd.xlane.f32.xlu0 %v2105_v13 }
 0x246   : > { %v5464_v27 = vsel %vm4819_vm9, %v5463_v10, %v5459_v22  ;;  %v4634_v37 = vunpack.c.l.b16 %v3676_v19  ;;  %v4635_v31 = vunpack.c.l.b16 %v3683_v23  ;;  %v1855_v32 = vpop.xlane.xlu1 %1854  ;;  %v1852_v38 = vpop.xlane.xlu0 %1851  ;;  %v1381_v10 = vld [vmem:[%s6821_s24 + $0x6b0] sm:$0xff] }
 0x247   : > { %v3690_v48 = vrot.slane %v2518_v24, %v6985_v40  ;;  %v3697_v2 = vrot.slane %v2518_v24, %v6995_v45  ;;  %v2335_v21 = vmul.f32 0.015625, %v1855_v32  ;;  %v2334_v30 = vmul.f32 0.015625, %v1852_v38  ;;  %v1396_v24 = vld [vmem:[%s6821_s24 + $0x728] sm:$0xff] }
 0x248   : > { %v5468_v7 = vrot.slane %v4634_v37, %v7066_v12  ;;  %v5473_v29 = vrot.slane %v4635_v31, %v7075_v20  ;;  %v2066_v38 = vsel %vm1423_vm0, %v1381_v10, 0.0  ;;  %v2111_v44 = vsel %vm1423_vm0, %v1396_v24, 0.0  ;;  %v1383_v24 = vld [vmem:[%s6821_s24 + $0x6c0] sm:$0xff] }
 0x249   : > { %v4636_v5 = vunpack.c.l.b16 %v3690_v48  ;;  %v4637_v36 = vunpack.c.l.b16 %v3697_v2  ;;  %v2519_v4 = vpack.c.bf16 %v2335_v21, %v2334_v30  ;;  %2061 = vadd.xlane.f32.xlu1 %v2060_v62  ;;  %2148 = vadd.xlane.f32.xlu0 %v2147_v39 }
 0x24a   : > { %v5469_v25 = vsel %vm8335_vm13, %v5468_v7, %v5464_v27  ;;  %v1861_v28 = vpop.xlane.xlu1 %1860  ;;  %v1858_v63 = vpop.xlane.xlu0 %1857  ;;  %vm8337_vm13 = vcmask 851712  }
 0x24b   : > { %v5474_v3 = vsel %vm8336_vm11, %v5473_v29, %v5469_v25  ;;  %v5478_v54 = vrot.slane %v4636_v5, %v7090_v52  ;;  %v5483_v11 = vrot.slane %v4637_v36, %v7098_v1  ;;  %v3704_v55 = vrot.slane %v2519_v4, %v6985_v40  ;;  %v1411_v36 = vld [vmem:[%s6821_s24 + $0x7a0] sm:$0xff] }
 0x24c   : > { %v3711_v58 = vrot.slane %v2519_v4, %v6995_v45  ;;  %v2337_v56 = vmul.f32 0.015625, %v1861_v28  ;;  %v2336_v61 = vmul.f32 0.015625, %v1858_v63  ;;  %vm8338_vm11 = vcmask 917312   ;;  %v1382_v4 = vld [vmem:[%s6821_s24 + $0x6b8] sm:$0xff] }
 0x24d   : > { %v5479_v42 = vsel %vm8337_vm13, %v5478_v54, %v5474_v3  ;;  %v4638_v33 = vunpack.c.l.b16 %v3704_v55  ;;  %2151 = vadd.xlane.f32.xlu1 %v2150_v50  ;;  %2064 = vadd.xlane.f32.xlu0 %v2063_v51  ;;  %v2156_v54 = vsel %vm1423_vm0, %v1411_v36, 0.0  ;;  %vm8339_vm13 = vcmask 720512  }
 0x24e   : > { %v5484_v13 = vsel %vm8338_vm11, %v5483_v11, %v5479_v42  ;;  %v4639_v35 = vunpack.c.l.b16 %v3711_v58  ;;  %v2520_v0 = vpack.c.bf16 %v2337_v56, %v2336_v61  ;;  %v1867_v15 = vpop.xlane.xlu1 %1866  ;;  %v1864_v16 = vpop.xlane.xlu0 %1863  ;;  %v2069_v11 = vsel %vm1423_vm0, %v1382_v4, 0.0  ;;  %v1397_v61 = vld [vmem:[%s6821_s24 + $0x730] sm:$0xff]  ;;  %v1412_v42 = vld [vmem:[%s6821_s24 + $0x7a8] sm:$0xff] }
 0x24f   : > { %v5488_v19 = vrot.slane %v4638_v33, %v7105_v9  ;;  %v2339_v23 = vmul.f32 0.015625, %v1867_v15  ;;  %v2338_v22 = vmul.f32 0.015625, %v1864_v16  ;;  %vm8340_vm11 = vcmask 786112  }
 0x250   : > { %v5493_v62 = vrot.slane %v4639_v35, %v7111_v8  ;;  %v3718_v27 = vrot.slane %v2520_v0, %v6985_v40  ;;  %v3725_v37 = vrot.slane %v2520_v0, %v6995_v45 }
 0x251   : > { %v5489_v31 = vsel %vm4854_vm14, %v5488_v19, %v5484_v13  ;;  %v2521_v32 = vpack.c.bf16 %v2339_v23, %v2338_v22  ;;  %2109 = vadd.xlane.f32.xlu1 %v2108_v6  ;;  %2154 = vadd.xlane.f32.xlu0 %v2153_v18  ;;  %v2114_v23 = vsel %vm1423_vm0, %v1397_v61, 0.0  ;;  %v2159_v22 = vsel %vm1423_vm0, %v1412_v42, 0.0 }
 0x252   : > { %v7854_v39 = vsel %vm4861_vm15, %v5493_v62, %v5489_v31  ;;  %v4640_v48 = vunpack.c.l.b16 %v3718_v27  ;;  %v4641_v2 = vunpack.c.l.b16 %v3725_v37  ;;  %v1873_v21 = vpop.xlane.xlu1 %1872  ;;  %v1870_v30 = vpop.xlane.xlu0 %1869 }
 0x253   : > { %v3732_v14 = vrot.slane %v2521_v32, %v6985_v40  ;;  %v3739_v7 = vrot.slane %v2521_v32, %v6995_v45  ;;  %v2341_v29 = vmul.f32 0.015625, %v1873_v21  ;;  %v2340_v5 = vmul.f32 0.015625, %v1870_v30  ;;  %v1398_v32 = vld [vmem:[%s6821_s24 + $0x738] sm:$0xff] }
 0x254   : > { %v5498_v25 = vrot.slane %v4640_v48, %v6989_v41  ;;  %v5502_v28 = vrot.slane %v4641_v2, %v7004_v49  ;;  %v2072_v30 = vsel %vm1423_vm0, %v1383_v24, 0.0  ;;  %v2117_v36 = vsel %vm1423_vm0, %v1398_v32, 0.0 }
 0x255   : > { %v4642_v63 = vunpack.c.l.b16 %v3732_v14  ;;  %v4643_v50 = vunpack.c.l.b16 %v3739_v7  ;;  %v2522_v51 = vpack.c.bf16 %v2341_v29, %v2340_v5  ;;  %2067 = vadd.xlane.f32.xlu1 %v2066_v38  ;;  %2112 = vadd.xlane.f32.xlu0 %v2111_v44 }
 0x256   : > { %v1879_v53 = vpop.xlane.xlu1 %1878  ;;  %v1876_v3 = vpop.xlane.xlu0 %1875  ;;  %v5503_v33 = vsel %vm4763_vm1, %v5502_v28, %v5498_v25 }
 0x257   : > { %v5507_v55 = vrot.slane %v4642_v63, %v6998_v46  ;;  %v5512_v57 = vrot.slane %v4643_v50, %v7001_v47  ;;  %v3746_v58 = vrot.slane %v2522_v51, %v6985_v40  ;;  %v3753_v56 = vrot.slane %v2522_v51, %v6995_v45  ;;  %v1413_v50 = vld [vmem:[%s6821_s24 + $0x7b0] sm:$0xff]  ;;  %v1384_v51 = vld [vmem:[%s6821_s24 + $0x6c8] sm:$0xff] }
 0x258   : > { %v2343_v6 = vmul.f32 0.015625, %v1879_v53  ;;  %v2342_v13 = vmul.f32 0.015625, %v1876_v3  ;;  %v2162_v61 = vsel %vm1423_vm0, %v1413_v50, 0.0  ;;  %v2075_v42 = vsel %vm1423_vm0, %v1384_v51, 0.0 }
 0x259   : > { %v5508_v35 = vsel %vm4770_vm2, %v5507_v55, %v5503_v33  ;;  %v4644_v0 = vunpack.c.l.b16 %v3746_v58  ;;  %v4645_v15 = vunpack.c.l.b16 %v3753_v56  ;;  %2157 = vadd.xlane.f32.xlu1 %v2156_v54  ;;  %2070 = vadd.xlane.f32.xlu0 %v2069_v11  ;;  %v1399_v33 = vld [vmem:[%s6821_s24 + $0x740] sm:$0xff] }
 0x25a   : > { %v5513_v16 = vsel %vm4777_vm3, %v5512_v57, %v5508_v35  ;;  %v2523_v18 = vpack.c.bf16 %v2343_v6, %v2342_v13  ;;  %v1885_v10 = vpop.xlane.xlu1 %1884  ;;  %v1882_v19 = vpop.xlane.xlu0 %1881 }
 0x25b   : > { %v5517_v62 = vrot.slane %v4644_v0, %v7011_v59  ;;  %v5522_v27 = vrot.slane %v4645_v15, %v7014_v60  ;;  %v2345_v37 = vmul.f32 0.015625, %v1885_v10  ;;  %v2344_v31 = vmul.f32 0.015625, %v1882_v19  ;;  %v1414_v15 = vld [vmem:[%s6821_s24 + $0x7b8] sm:$0xff] }
 0x25c   : > { %v3760_v38 = vrot.slane %v2523_v18, %v6985_v40  ;;  %v3767_v48 = vrot.slane %v2523_v18, %v6995_v45  ;;  %v2165_v32 = vsel %vm1423_vm0, %v1414_v15, 0.0 }
 0x25d   : > { %v5518_v2 = vsel %vm4784_vm4, %v5517_v62, %v5513_v16  ;;  %v2524_v21 = vpack.c.bf16 %v2345_v37, %v2344_v31  ;;  %2115 = vadd.xlane.f32.xlu1 %v2114_v23  ;;  %2160 = vadd.xlane.f32.xlu0 %v2159_v22  ;;  %v2120_v22 = vsel %vm1423_vm0, %v1399_v33, 0.0 }
 0x25e   : > { %v5523_v44 = vsel %vm4791_vm5, %v5522_v27, %v5518_v2  ;;  %v4646_v14 = vunpack.c.l.b16 %v3760_v38  ;;  %v4647_v7 = vunpack.c.l.b16 %v3767_v48  ;;  %v1891_v29 = vpop.xlane.xlu1 %1890  ;;  %v1888_v5 = vpop.xlane.xlu0 %1887  ;;  %v1385_v38 = vld [vmem:[%s6821_s24 + $0x6d0] sm:$0xff] }
 0x25f   : > { %v3774_v4 = vrot.slane %v2524_v21, %v6985_v40  ;;  %v3781_v25 = vrot.slane %v2524_v21, %v6995_v45  ;;  %v2347_v28 = vmul.f32 0.015625, %v1891_v29  ;;  %v2346_v63 = vmul.f32 0.015625, %v1888_v5 }
 0x260   : > { %v5527_v53 = vrot.slane %v4646_v14, %v7031_v17  ;;  %v5532_v3 = vrot.slane %v4647_v7, %v7035_v26 }
 0x261   : > { %v4648_v54 = vunpack.c.l.b16 %v3774_v4  ;;  %v4649_v11 = vunpack.c.l.b16 %v3781_v25  ;;  %v2525_v55 = vpack.c.bf16 %v2347_v28, %v2346_v63  ;;  %2073 = vadd.xlane.f32.xlu1 %v2072_v30  ;;  %2118 = vadd.xlane.f32.xlu0 %v2117_v36  ;;  %v1400_v30 = vld [vmem:[%s6821_s24 + $0x748] sm:$0xff]  ;;  %v2078_v36 = vsel %vm1423_vm0, %v1385_v38, 0.0 }
 0x262   : > { %v5528_v57 = vsel %vm4798_vm6, %v5527_v53, %v5523_v44  ;;  %v1897_v58 = vpop.xlane.xlu1 %1896  ;;  %v1894_v56 = vpop.xlane.xlu0 %1893  ;;  %v2123_v51 = vsel %vm1423_vm0, %v1400_v30, 0.0 }
 0x263   : > { %v5533_v6 = vsel %vm4805_vm7, %v5532_v3, %v5528_v57  ;;  %v5537_v13 = vrot.slane %v4648_v54, %v7043_v34  ;;  %v5542_v35 = vrot.slane %v4649_v11, %v7050_v43  ;;  %v3788_v0 = vrot.slane %v2525_v55, %v6985_v40  ;;  %v1386_v57 = vld [vmem:[%s6821_s24 + $0x6d8] sm:$0xff] }
 0x264   : > { %v3795_v16 = vrot.slane %v2525_v55, %v6995_v45  ;;  %v2349_v18 = vmul.f32 0.015625, %v1897_v58  ;;  %v2348_v10 = vmul.f32 0.015625, %v1894_v56  ;;  %v1415_v55 = vld [vmem:[%s6821_s24 + $0x7c0] sm:$0xff]  ;;  %v2081_v15 = vsel %vm1423_vm0, %v1386_v57, 0.0 }
 0x265   : > { %v5538_v19 = vsel %vm4812_vm8, %v5537_v13, %v5533_v6  ;;  %v4650_v23 = vunpack.c.l.b16 %v3788_v0  ;;  %2163 = vadd.xlane.f32.xlu1 %v2162_v61  ;;  %2076 = vadd.xlane.f32.xlu0 %v2075_v42  ;;  %v2168_v0 = vsel %vm1423_vm0, %v1415_v55, 0.0 }
 0x266   : > { %v5543_v24 = vsel %vm4819_vm9, %v5542_v35, %v5538_v19  ;;  %v4651_v62 = vunpack.c.l.b16 %v3795_v16  ;;  %v2526_v27 = vpack.c.bf16 %v2349_v18, %v2348_v10  ;;  %v1903_v37 = vpop.xlane.xlu1 %1902  ;;  %v1900_v31 = vpop.xlane.xlu0 %1899  ;;  %v1372_v16 = vld [vmem:[%s6821_s24 + $0x668] sm:$0xff] }
 0x267   : > { %v5547_v48 = vrot.slane %v4650_v23, %v7066_v12  ;;  %v2351_v2 = vmul.f32 0.015625, %v1903_v37  ;;  %v2350_v21 = vmul.f32 0.015625, %v1900_v31 }
 0x268   : > { %v5552_v44 = vrot.slane %v4651_v62, %v7075_v20  ;;  %v3802_v14 = vrot.slane %v2526_v27, %v6985_v40  ;;  %v3809_v7 = vrot.slane %v2526_v27, %v6995_v45 }
 0x269   : > { %v5548_v29 = vsel %vm8339_vm13, %v5547_v48, %v5543_v24  ;;  %v2527_v5 = vpack.c.bf16 %v2351_v2, %v2350_v21  ;;  %2121 = vadd.xlane.f32.xlu1 %v2120_v22  ;;  %2166 = vadd.xlane.f32.xlu0 %v2165_v32  ;;  %vm8341_vm13 = vcmask 851712   ;;  %v1416_v22 = vld [vmem:[%s6821_s24 + $0x7c8] sm:$0xff]  ;;  %v2039_v32 = vsel %vm1423_vm0, %v1372_v16, 0.0 }
 0x26a   : > { %v5553_v4 = vsel %vm8340_vm11, %v5552_v44, %v5548_v29  ;;  %v4652_v25 = vunpack.c.l.b16 %v3802_v14  ;;  %v4653_v28 = vunpack.c.l.b16 %v3809_v7  ;;  %v1909_v63 = vpop.xlane.xlu1 %1908  ;;  %v1906_v50 = vpop.xlane.xlu0 %1905  ;;  %vm8342_vm11 = vcmask 917312  }
 0x26b   : > { %v3816_v53 = vrot.slane %v2527_v5, %v6985_v40  ;;  %v3823_v3 = vrot.slane %v2527_v5, %v6995_v45  ;;  %v2353_v54 = vmul.f32 0.015625, %v1909_v63  ;;  %v2352_v11 = vmul.f32 0.015625, %v1906_v50  ;;  %v1402_v5 = vld [vmem:[%s6821_s24 + $0x758] sm:$0xff] }
 0x26c   : > { %v5557_v58 = vrot.slane %v4652_v25, %v7090_v52  ;;  %v5562_v56 = vrot.slane %v4653_v28, %v7098_v1  ;;  %v2171_v44 = vsel %vm1423_vm0, %v1416_v22, 0.0  ;;  %v1418_v22 = vld [vmem:[%s6821_s24 + $0x7d8] sm:$0xff] }
 0x26d   : > { %v4654_v61 = vunpack.c.l.b16 %v3816_v53  ;;  %v4655_v42 = vunpack.c.l.b16 %v3823_v3  ;;  %v2528_v33 = vpack.c.bf16 %v2353_v54, %v2352_v11  ;;  %2079 = vadd.xlane.f32.xlu1 %v2078_v36  ;;  %2124 = vadd.xlane.f32.xlu0 %v2123_v51  ;;  %v1401_v36 = vld [vmem:[%s6821_s24 + $0x750] sm:$0xff]  ;;  %v2129_v54 = vsel %vm1423_vm0, %v1402_v5, 0.0 }
 0x26e   : > { %v5558_v6 = vsel %vm8341_vm13, %v5557_v58, %v5553_v4  ;;  %v1915_v13 = vpop.xlane.xlu1 %1914  ;;  %v1912_v35 = vpop.xlane.xlu0 %1911  ;;  %vm8343_vm13 = vcmask 1041409   ;;  %v2126_v11 = vsel %vm1423_vm0, %v1401_v36, 0.0 }
 0x26f   : > { %v5563_v18 = vsel %vm8342_vm11, %v5562_v56, %v5558_v6  ;;  %v5567_v10 = vrot.slane %v4654_v61, %v7105_v9  ;;  %v5572_v19 = vrot.slane %v4655_v42, %v7111_v8  ;;  %v3830_v23 = vrot.slane %v2528_v33, %v6985_v40  ;;  %v1388_v61 = vld [vmem:[%s6821_s24 + $0x6e8] sm:$0xff]  ;;  %v1387_v42 = vld [vmem:[%s6821_s24 + $0x6e0] sm:$0xff] }
 0x270   : > { %v3837_v24 = vrot.slane %v2528_v33, %v6995_v45  ;;  %v2355_v62 = vmul.f32 0.015625, %v1915_v13  ;;  %v2354_v27 = vmul.f32 0.015625, %v1912_v35  ;;  %vm8344_vm11 = vcmask 720512  }
 0x271   : > { %v5568_v37 = vsel %vm4854_vm14, %v5567_v10, %v5563_v18  ;;  %v4656_v31 = vunpack.c.l.b16 %v3830_v23  ;;  %2169 = vadd.xlane.f32.xlu1 %v2168_v0  ;;  %2082 = vadd.xlane.f32.xlu0 %v2081_v15  ;;  %v2084_v23 = vsel %vm1423_vm0, %v1387_v42, 0.0 }
 0x272   : > { %v5573_v38 = vsel %vm4861_vm15, %v5572_v19, %v5568_v37  ;;  %v4657_v48 = vunpack.c.l.b16 %v3837_v24  ;;  %v2529_v2 = vpack.c.bf16 %v2355_v62, %v2354_v27  ;;  %v1921_v21 = vpop.xlane.xlu1 %1920  ;;  %v1918_v30 = vpop.xlane.xlu0 %1917  ;;  %v2087_v19 = vsel %vm1423_vm0, %v1388_v61, 0.0 }
 0x273   : > { %v7938_v14 = vsel %vm8343_vm13, %v5573_v38, %v7854_v39  ;;  %v2357_v7 = vmul.f32 0.015625, %v1921_v21  ;;  %v2356_v29 = vmul.f32 0.015625, %v1918_v30  ;;  %v5577_v28 = vrot.slane %v4656_v31, %v6989_v41  ;;  %v1417_v31 = vld [vmem:[%s6821_s24 + $0x7d0] sm:$0xff] }
 0x274   : > { %v3844_v4 = vrot.slane %v2529_v2, %v6985_v40  ;;  %v3851_v25 = vrot.slane %v2529_v2, %v6995_v45  ;;  %v5581_v63 = vrot.slane %v4657_v48, %v7004_v49  ;;  %v2177_v30 = vsel %vm1423_vm0, %v1418_v22, 0.0 }
 0x275   : > { %v2530_v50 = vpack.c.bf16 %v2357_v7, %v2356_v29  ;;  %2040 = vadd.xlane.f32.xlu1 %v2039_v32  ;;  %2172 = vadd.xlane.f32.xlu0 %v2171_v44  ;;  %vm8345_vm13 = vcmask 786112  }
 0x276   : > { %v4658_v51 = vunpack.c.l.b16 %v3844_v4  ;;  %v4659_v39 = vunpack.c.l.b16 %v3851_v25  ;;  %v1927_v53 = vpop.xlane.xlu1 %1926  ;;  %v1924_v3 = vpop.xlane.xlu0 %1923  ;;  %v5582_v13 = vsel %vm4763_vm1, %v5581_v63, %v5577_v28  ;;  %v2174_v4 = vsel %vm1423_vm0, %v1417_v31, 0.0  ;;  %v1374_v25 = vld [vmem:[%s6821_s24 + $0x678] sm:$0xff] }
 0x277   : > { %v3858_v55 = vrot.slane %v2530_v50, %v6985_v40  ;;  %v3865_v57 = vrot.slane %v2530_v50, %v6995_v45  ;;  %v2359_v58 = vmul.f32 0.015625, %v1927_v53  ;;  %v2358_v56 = vmul.f32 0.015625, %v1924_v3 }
 0x278   : > { %v5586_v33 = vrot.slane %v4658_v51, %v6998_v46  ;;  %v5591_v6 = vrot.slane %v4659_v39, %v7001_v47  ;;  %v1373_v51 = vld [vmem:[%s6821_s24 + $0x670] sm:$0xff] }
 0x279   : > { %v4660_v35 = vunpack.c.l.b16 %v3858_v55  ;;  %v4661_v0 = vunpack.c.l.b16 %v3865_v57  ;;  %v2531_v15 = vpack.c.bf16 %v2359_v58, %v2358_v56  ;;  %2130 = vadd.xlane.f32.xlu1 %v2129_v54  ;;  %2127 = vadd.xlane.f32.xlu0 %v2126_v11  ;;  %v2045_v55 = vsel %vm1423_vm0, %v1374_v25, 0.0 }
 0x27a   : > { %v5587_v16 = vsel %vm4770_vm2, %v5586_v33, %v5582_v13  ;;  %v1933_v18 = vpop.xlane.xlu1 %1932  ;;  %v1930_v10 = vpop.xlane.xlu0 %1929  ;;  %v2042_v33 = vsel %vm1423_vm0, %v1373_v51, 0.0 }
 0x27b   : > { %v5592_v24 = vsel %vm4777_vm3, %v5591_v6, %v5587_v16  ;;  %v5596_v62 = vrot.slane %v4660_v35, %v7011_v59  ;;  %v5601_v27 = vrot.slane %v4661_v0, %v7014_v60  ;;  %v3872_v37 = vrot.slane %v2531_v15, %v6985_v40  ;;  %v1403_v16 = vld [vmem:[%s6821_s24 + $0x760] sm:$0xff] }
 0x27c   : > { %v3879_v32 = vrot.slane %v2531_v15, %v6995_v45  ;;  %v2361_v38 = vmul.f32 0.015625, %v1933_v18  ;;  %v2360_v48 = vmul.f32 0.015625, %v1930_v10  ;;  %v1404_v15 = vld [vmem:[%s6821_s24 + $0x768] sm:$0xff]  ;;  %v2132_v31 = vsel %vm1423_vm0, %v1403_v16, 0.0 }
 0x27d   : > { %v5597_v2 = vsel %vm4784_vm4, %v5596_v62, %v5592_v24  ;;  %v4662_v21 = vunpack.c.l.b16 %v3872_v37  ;;  %2088 = vadd.xlane.f32.xlu1 %v2087_v19  ;;  %2085 = vadd.xlane.f32.xlu0 %v2084_v23  ;;  %v2135_v37 = vsel %vm1423_vm0, %v1404_v15, 0.0 }
 0x27e   : > { %v5602_v44 = vsel %vm4791_vm5, %v5601_v27, %v5597_v2  ;;  %v4663_v7 = vunpack.c.l.b16 %v3879_v32  ;;  %v2532_v29 = vpack.c.bf16 %v2361_v38, %v2360_v48  ;;  %v1939_v5 = vpop.xlane.xlu1 %1938  ;;  %v1936_v36 = vpop.xlane.xlu0 %1935  ;;  %v1390_v32 = vld [vmem:[%s6821_s24 + $0x6f8] sm:$0xff] }
 0x27f   : > { %v5606_v28 = vrot.slane %v4662_v21, %v7031_v17  ;;  %v2363_v63 = vmul.f32 0.015625, %v1939_v5  ;;  %v2362_v50 = vmul.f32 0.015625, %v1936_v36 }
 0x280   : > { %v5611_v39 = vrot.slane %v4663_v7, %v7035_v26  ;;  %v3886_v53 = vrot.slane %v2532_v29, %v6985_v40  ;;  %v3893_v3 = vrot.slane %v2532_v29, %v6995_v45 }
 0x281   : > { %v5607_v54 = vsel %vm4798_vm6, %v5606_v28, %v5602_v44  ;;  %v2533_v11 = vpack.c.bf16 %v2363_v63, %v2362_v50  ;;  %2178 = vadd.xlane.f32.xlu1 %v2177_v30  ;;  %2175 = vadd.xlane.f32.xlu0 %v2174_v4  ;;  %v1389_v30 = vld [vmem:[%s6821_s24 + $0x6f0] sm:$0xff]  ;;  %v2093_v4 = vsel %vm1423_vm0, %v1390_v32, 0.0 }
 0x282   : > { %v5612_v57 = vsel %vm4805_vm7, %v5611_v39, %v5607_v54  ;;  %v4664_v58 = vunpack.c.l.b16 %v3886_v53  ;;  %v4665_v56 = vunpack.c.l.b16 %v3893_v3  ;;  %v1945_v61 = vpop.xlane.xlu1 %1944  ;;  %v1942_v42 = vpop.xlane.xlu0 %1941  ;;  %v2090_v39 = vsel %vm1423_vm0, %v1389_v30, 0.0  ;;  %v1420_v53 = vld [vmem:[%s6821_s24 + $0x7e8] sm:$0xff] }
 0x283   : > { %v3900_v6 = vrot.slane %v2533_v11, %v6985_v40  ;;  %v3907_v13 = vrot.slane %v2533_v11, %v6995_v45  ;;  %v2365_v35 = vmul.f32 0.015625, %v1945_v61  ;;  %v2364_v0 = vmul.f32 0.015625, %v1942_v42 }
 0x284   : > { %v5616_v18 = vrot.slane %v4664_v58, %v7043_v34  ;;  %v5621_v10 = vrot.slane %v4665_v56, %v7050_v43 }
 0x285   : > { %v4666_v19 = vunpack.c.l.b16 %v3900_v6  ;;  %v4667_v23 = vunpack.c.l.b16 %v3907_v13  ;;  %v2534_v22 = vpack.c.bf16 %v2365_v35, %v2364_v0  ;;  %2046 = vadd.xlane.f32.xlu1 %v2045_v55  ;;  %2043 = vadd.xlane.f32.xlu0 %v2042_v33  ;;  %v1419_v55 = vld [vmem:[%s6821_s24 + $0x7e0] sm:$0xff]  ;;  %v2183_v33 = vsel %vm1423_vm0, %v1420_v53, 0.0 }
 0x286   : > { %v5617_v24 = vsel %vm4812_vm8, %v5616_v18, %v5612_v57  ;;  %v1951_v62 = vpop.xlane.xlu1 %1950  ;;  %v1948_v27 = vpop.xlane.xlu0 %1947  ;;  %v2180_v16 = vsel %vm1423_vm0, %v1419_v55, 0.0 }
 0x287   : > { %v5622_v38 = vsel %vm4819_vm9, %v5621_v10, %v5617_v24  ;;  %v5626_v48 = vrot.slane %v4666_v19, %v7066_v12  ;;  %v5631_v2 = vrot.slane %v4667_v23, %v7075_v20  ;;  %v3914_v21 = vrot.slane %v2534_v22, %v6985_v40  ;;  %v1405_v24 = vld [vmem:[%s6821_s24 + $0x770] sm:$0xff] }
 0x288   : > { %v3921_v44 = vrot.slane %v2534_v22, %v6995_v45  ;;  %v2367_v7 = vmul.f32 0.015625, %v1951_v62  ;;  %v2366_v29 = vmul.f32 0.015625, %v1948_v27  ;;  %v1406_v22 = vld [vmem:[%s6821_s24 + $0x778] sm:$0xff]  ;;  %v2138_v30 = vsel %vm1423_vm0, %v1405_v24, 0.0 }
 0x289   : > { %v5627_v5 = vsel %vm8344_vm11, %v5626_v48, %v5622_v38  ;;  %v4668_v36 = vunpack.c.l.b16 %v3914_v21  ;;  %2136 = vadd.xlane.f32.xlu1 %v2135_v37  ;;  %2133 = vadd.xlane.f32.xlu0 %v2132_v31  ;;  %vm8346_vm11 = vcmask 851712   ;;  %v2141_v21 = vsel %vm1423_vm0, %v1406_v22, 0.0 }
 0x28a   : > { %v5632_v25 = vsel %vm8345_vm13, %v5631_v2, %v5627_v5  ;;  %v4669_v28 = vunpack.c.l.b16 %v3921_v44  ;;  %v2535_v63 = vpack.c.bf16 %v2367_v7, %v2366_v29  ;;  %v1957_v50 = vpop.xlane.xlu1 %1956  ;;  %v1954_v51 = vpop.xlane.xlu0 %1953  ;;  %vm8347_vm13 = vcmask 917312  }
 0x28b   : > { %v5636_v3 = vrot.slane %v4668_v36, %v7090_v52  ;;  %v2369_v54 = vmul.f32 0.015625, %v1957_v50  ;;  %v2368_v11 = vmul.f32 0.015625, %v1954_v51  ;;  %v1422_v36 = vld [vmem:[%s6821_s24 + $0x7f8] sm:$0xff] }
 0x28c   : > { %v5641_v57 = vrot.slane %v4669_v28, %v7098_v1  ;;  %v3928_v58 = vrot.slane %v2535_v63, %v6985_v40  ;;  %v3935_v56 = vrot.slane %v2535_v63, %v6995_v45 }
 0x28d   : > { %v5637_v61 = vsel %vm8346_vm11, %v5636_v3, %v5632_v25  ;;  %v2536_v42 = vpack.c.bf16 %v2369_v54, %v2368_v11  ;;  %2094 = vadd.xlane.f32.xlu1 %v2093_v4  ;;  %2091 = vadd.xlane.f32.xlu0 %v2090_v39  ;;  %v1421_v4 = vld [vmem:[%s6821_s24 + $0x7f0] sm:$0xff]  ;;  %vm8348_vm11 = vcmask 1042434   ;;  %v2189_v11 = vsel %vm1423_vm0, %v1422_v36, 0.0 }
 0x28e   : > { %v5642_v6 = vsel %vm8347_vm13, %v5641_v57, %v5637_v61  ;;  %v4670_v13 = vunpack.c.l.b16 %v3928_v58  ;;  %v4671_v35 = vunpack.c.l.b16 %v3935_v56  ;;  %v1963_v0 = vpop.xlane.xlu1 %1962  ;;  %v1960_v15 = vpop.xlane.xlu0 %1959  ;;  %v2186_v55 = vsel %vm1423_vm0, %v1421_v4, 0.0 }
 0x28f   : > { %v3942_v18 = vrot.slane %v2536_v42, %v6985_v40  ;;  %v3949_v10 = vrot.slane %v2536_v42, %v6995_v45  ;;  %v2371_v19 = vmul.f32 0.015625, %v1963_v0  ;;  %v2370_v23 = vmul.f32 0.015625, %v1960_v15 }
 0x290   : > { %v5646_v62 = vrot.slane %v4670_v13, %v7105_v9  ;;  %v5651_v27 = vrot.slane %v4671_v35, %v7111_v8  ;;  %vm8349_vm0 = vcmask 720512   ;;  %vm8350_vm13 = vcmask 786112  }
 0x291   : > { %v4672_v37 = vunpack.c.l.b16 %v3942_v18  ;;  %v4673_v31 = vunpack.c.l.b16 %v3949_v10  ;;  %v2537_v32 = vpack.c.bf16 %v2371_v19, %v2370_v23  ;;  %2184 = vadd.xlane.f32.xlu1 %v2183_v33  ;;  %2181 = vadd.xlane.f32.xlu0 %v2180_v16 }
 0x292   : > { %v5647_v38 = vsel %vm4854_vm14, %v5646_v62, %v5642_v6  ;;  %v1969_v48 = vpop.xlane.xlu1 %1968  ;;  %v1966_v2 = vpop.xlane.xlu0 %1965 }
 0x293   : > { %v5652_v44 = vsel %vm4861_vm15, %v5651_v27, %v5647_v38  ;;  %v5656_v7 = vrot.slane %v4672_v37, %v6989_v41  ;;  %v5660_v29 = vrot.slane %v4673_v31, %v7004_v49  ;;  %v3956_v5 = vrot.slane %v2537_v32, %v6985_v40 }
 0x294   : > { %v8026_v25 = vsel %vm8348_vm11, %v5652_v44, %v7938_v14  ;;  %v3963_v28 = vrot.slane %v2537_v32, %v6995_v45  ;;  %v2373_v63 = vmul.f32 0.015625, %v1969_v48  ;;  %v2372_v50 = vmul.f32 0.015625, %v1966_v2 }
 0x295   : > { %v4674_v51 = vunpack.c.l.b16 %v3956_v5  ;;  %2142 = vadd.xlane.f32.xlu1 %v2141_v21  ;;  %2139 = vadd.xlane.f32.xlu0 %v2138_v30  ;;  %v5661_v56 = vsel %vm4763_vm1, %v5660_v29, %v5656_v7  ;;  %vm8351_vm11 = vcmask 851712  }
 0x296   : > { %v4675_v39 = vunpack.c.l.b16 %v3963_v28  ;;  %v2538_v53 = vpack.c.bf16 %v2373_v63, %v2372_v50  ;;  %v1975_v3 = vpop.xlane.xlu1 %1974  ;;  %v1972_v54 = vpop.xlane.xlu0 %1971 }
 0x297   : > { %v5665_v57 = vrot.slane %v4674_v51, %v6998_v46  ;;  %v2375_v58 = vmul.f32 0.015625, %v1975_v3  ;;  %v2374_v14 = vmul.f32 0.015625, %v1972_v54 }
 0x298   : > { %v5670_v61 = vrot.slane %v4675_v39, %v7001_v47  ;;  %v3970_v42 = vrot.slane %v2538_v53, %v6985_v40  ;;  %v3977_v33 = vrot.slane %v2538_v53, %v6995_v45 }
 0x299   : > { %v5666_v6 = vsel %vm4770_vm2, %v5665_v57, %v5661_v56  ;;  %v2539_v13 = vpack.c.bf16 %v2375_v58, %v2374_v14  ;;  %2190 = vadd.xlane.f32.xlu1 %v2189_v11  ;;  %2187 = vadd.xlane.f32.xlu0 %v2186_v55 }
 0x29a   : > { %v5671_v35 = vsel %vm4777_vm3, %v5670_v61, %v5666_v6  ;;  %v4676_v0 = vunpack.c.l.b16 %v3970_v42  ;;  %v4677_v15 = vunpack.c.l.b16 %v3977_v33  ;;  %v1981_v16 = vpop.xlane.xlu1 %1980  ;;  %v1978_v18 = vpop.xlane.xlu0 %1977 }
 0x29b   : > { %v3984_v10 = vrot.slane %v2539_v13, %v6985_v40  ;;  %v3991_v19 = vrot.slane %v2539_v13, %v6995_v45  ;;  %v2377_v23 = vmul.f32 0.015625, %v1981_v16  ;;  %v2376_v22 = vmul.f32 0.015625, %v1978_v18 }
 0x29c   : > { %v5675_v24 = vrot.slane %v4676_v0, %v7011_v59  ;;  %v5680_v62 = vrot.slane %v4677_v15, %v7014_v60 }
 0x29d   : > { %v4678_v27 = vunpack.c.l.b16 %v3984_v10  ;;  %v4679_v37 = vunpack.c.l.b16 %v3991_v19  ;;  %v2540_v31 = vpack.c.bf16 %v2377_v23, %v2376_v22 }
 0x29e   : > { %v5676_v32 = vsel %vm4784_vm4, %v5675_v24, %v5671_v35  ;;  %v1987_v38 = vpop.xlane.xlu1 %1986  ;;  %v1984_v48 = vpop.xlane.xlu0 %1983 }
 0x29f   : > { %v5681_v2 = vsel %vm4791_vm5, %v5680_v62, %v5676_v32  ;;  %v5685_v21 = vrot.slane %v4678_v27, %v7031_v17  ;;  %v5690_v30 = vrot.slane %v4679_v37, %v7035_v26  ;;  %v3998_v44 = vrot.slane %v2540_v31, %v6985_v40 }
 0x2a0   : > { %v4005_v7 = vrot.slane %v2540_v31, %v6995_v45  ;;  %v2379_v29 = vmul.f32 0.015625, %v1987_v38  ;;  %v2378_v5 = vmul.f32 0.015625, %v1984_v48 }
 0x2a1   : > { %v5686_v36 = vsel %vm4798_vm6, %v5685_v21, %v5681_v2  ;;  %v4680_v4 = vunpack.c.l.b16 %v3998_v44 }
 0x2a2   : > { %v5691_v28 = vsel %vm4805_vm7, %v5690_v30, %v5686_v36  ;;  %v4681_v63 = vunpack.c.l.b16 %v4005_v7  ;;  %v2541_v50 = vpack.c.bf16 %v2379_v29, %v2378_v5  ;;  %v1993_v51 = vpop.xlane.xlu1 %1992  ;;  %v1990_v39 = vpop.xlane.xlu0 %1989 }
 0x2a3   : > { %v5695_v53 = vrot.slane %v4680_v4, %v7043_v34  ;;  %v2381_v3 = vmul.f32 0.015625, %v1993_v51  ;;  %v2380_v54 = vmul.f32 0.015625, %v1990_v39 }
 0x2a4   : > { %v5700_v11 = vrot.slane %v4681_v63, %v7050_v43  ;;  %v4012_v55 = vrot.slane %v2541_v50, %v6985_v40  ;;  %v4019_v57 = vrot.slane %v2541_v50, %v6995_v45 }
 0x2a5   : > { %v5696_v58 = vsel %vm4812_vm8, %v5695_v53, %v5691_v28  ;;  %v2542_v14 = vpack.c.bf16 %v2381_v3, %v2380_v54 }
 0x2a6   : > { %v5701_v56 = vsel %vm4819_vm9, %v5700_v11, %v5696_v58  ;;  %v4682_v61 = vunpack.c.l.b16 %v4012_v55  ;;  %v4683_v42 = vunpack.c.l.b16 %v4019_v57  ;;  %v1999_v33 = vpop.xlane.xlu1 %1998  ;;  %v1996_v6 = vpop.xlane.xlu0 %1995 }
 0x2a7   : > { %v4026_v13 = vrot.slane %v2542_v14, %v6985_v40  ;;  %v4033_v35 = vrot.slane %v2542_v14, %v6995_v45  ;;  %v2383_v0 = vmul.f32 0.015625, %v1999_v33  ;;  %v2382_v15 = vmul.f32 0.015625, %v1996_v6 }
 0x2a8   : > { %v5705_v16 = vrot.slane %v4682_v61, %v7066_v12  ;;  %v5710_v18 = vrot.slane %v4683_v42, %v7075_v20 }
 0x2a9   : > { %v4684_v10 = vunpack.c.l.b16 %v4026_v13  ;;  %v4685_v19 = vunpack.c.l.b16 %v4033_v35  ;;  %v2543_v23 = vpack.c.bf16 %v2383_v0, %v2382_v15 }
 0x2aa   : > { %v5706_v22 = vsel %vm8349_vm0, %v5705_v16, %v5701_v56  ;;  %v2005_v24 = vpop.xlane.xlu1 %2004  ;;  %v2002_v62 = vpop.xlane.xlu0 %2001 }
 0x2ab   : > { %v5711_v27 = vsel %vm8350_vm13, %v5710_v18, %v5706_v22  ;;  %v5715_v37 = vrot.slane %v4684_v10, %v7090_v52  ;;  %v5720_v31 = vrot.slane %v4685_v19, %v7098_v1  ;;  %v4040_v32 = vrot.slane %v2543_v23, %v6985_v40 }
 0x2ac   : > { %v4047_v38 = vrot.slane %v2543_v23, %v6995_v45  ;;  %v2385_v48 = vmul.f32 0.015625, %v2005_v24  ;;  %v2384_v2 = vmul.f32 0.015625, %v2002_v62 }
 0x2ad   : > { %v5716_v21 = vsel %vm8351_vm11, %v5715_v37, %v5711_v27  ;;  %v4686_v30 = vunpack.c.l.b16 %v4040_v32 }
 0x2ae   : > { %v5721_v44 = vsel %vm8352_vm10, %v5720_v31, %v5716_v21  ;;  %v4687_v7 = vunpack.c.l.b16 %v4047_v38  ;;  %v2544_v29 = vpack.c.bf16 %v2385_v48, %v2384_v2  ;;  %v2011_v5 = vpop.xlane.xlu1 %2010  ;;  %v2008_v36 = vpop.xlane.xlu0 %2007  ;;  %vm8353_vm10 = vcmask 1043459  }
 0x2af   : > { %v5725_v4 = vrot.slane %v4686_v30, %v7105_v9  ;;  %v2387_v28 = vmul.f32 0.015625, %v2011_v5  ;;  %v2386_v63 = vmul.f32 0.015625, %v2008_v36 }
 0x2b0   : > { %v5730_v50 = vrot.slane %v4687_v7, %v7111_v8  ;;  %v4054_v51 = vrot.slane %v2544_v29, %v6985_v40  ;;  %v4061_v39 = vrot.slane %v2544_v29, %v6995_v45 }
 0x2b1   : > { %v5726_v53 = vsel %vm4854_vm14, %v5725_v4, %v5721_v44  ;;  %v2545_v3 = vpack.c.bf16 %v2387_v28, %v2386_v63 }
 0x2b2   : > { %v5731_v54 = vsel %vm4861_vm15, %v5730_v50, %v5726_v53  ;;  %v4688_v11 = vunpack.c.l.b16 %v4054_v51  ;;  %v4689_v55 = vunpack.c.l.b16 %v4061_v39  ;;  %v2017_v57 = vpop.xlane.xlu1 %2016  ;;  %v2014_v58 = vpop.xlane.xlu0 %2013 }
 0x2b3   : > { %v8076_v14 = vsel %vm8353_vm10, %v5731_v54, %v8026_v25  ;;  %v4068_v56 = vrot.slane %v2545_v3, %v6985_v40  ;;  %v4075_v61 = vrot.slane %v2545_v3, %v6995_v45  ;;  %v2389_v42 = vmul.f32 0.015625, %v2017_v57 }
 0x2b4   : > { %v5735_v33 = vrot.slane %v4688_v11, %v6989_v41  ;;  %v5739_v6 = vrot.slane %v4689_v55, %v7004_v49  ;;  %v2388_v13 = vmul.f32 0.015625, %v2014_v58  ;;  %vm8363_vm10 = vcmask 1045509  }
 0x2b5   : > { %v4690_v35 = vunpack.c.l.b16 %v4068_v56  ;;  %v4691_v0 = vunpack.c.l.b16 %v4075_v61 }
 0x2b6   : > { %v2546_v15 = vpack.c.bf16 %v2389_v42, %v2388_v13  ;;  %v2023_v16 = vpop.xlane.xlu1 %2022  ;;  %v2020_v18 = vpop.xlane.xlu0 %2019  ;;  %v5740_v22 = vsel %vm4763_vm1, %v5739_v6, %v5735_v33 }
 0x2b7   : > { %v5744_v10 = vrot.slane %v4690_v35, %v6998_v46  ;;  %v5749_v25 = vrot.slane %v4691_v0, %v7001_v47  ;;  %v2391_v19 = vmul.f32 0.015625, %v2023_v16  ;;  %v2390_v23 = vmul.f32 0.015625, %v2020_v18 }
 0x2b8   : > { %v4082_v24 = vrot.slane %v2546_v15, %v6985_v40  ;;  %v4089_v62 = vrot.slane %v2546_v15, %v6995_v45 }
 0x2b9   : > { %v5745_v27 = vsel %vm4770_vm2, %v5744_v10, %v5740_v22  ;;  %v2547_v37 = vpack.c.bf16 %v2391_v19, %v2390_v23 }
 0x2ba   : > { %v5750_v31 = vsel %vm4777_vm3, %v5749_v25, %v5745_v27  ;;  %v4692_v32 = vunpack.c.l.b16 %v4082_v24  ;;  %v4693_v38 = vunpack.c.l.b16 %v4089_v62  ;;  %v2029_v48 = vpop.xlane.xlu1 %2028  ;;  %v2026_v2 = vpop.xlane.xlu0 %2025 }
 0x2bb   : > { %v4096_v21 = vrot.slane %v2547_v37, %v6985_v40  ;;  %v4103_v30 = vrot.slane %v2547_v37, %v6995_v45  ;;  %v2393_v44 = vmul.f32 0.015625, %v2029_v48  ;;  %v2392_v7 = vmul.f32 0.015625, %v2026_v2 }
 0x2bc   : > { %v5754_v29 = vrot.slane %v4692_v32, %v7011_v59  ;;  %v5759_v5 = vrot.slane %v4693_v38, %v7014_v60 }
 0x2bd   : > { %v4694_v36 = vunpack.c.l.b16 %v4096_v21  ;;  %v4695_v4 = vunpack.c.l.b16 %v4103_v30  ;;  %v2548_v28 = vpack.c.bf16 %v2393_v44, %v2392_v7 }
 0x2be   : > { %v5755_v63 = vsel %vm4784_vm4, %v5754_v29, %v5750_v31  ;;  %v2035_v50 = vpop.xlane.xlu1 %2034  ;;  %v2032_v51 = vpop.xlane.xlu0 %2031 }
 0x2bf   : > { %v5760_v39 = vsel %vm4791_vm5, %v5759_v5, %v5755_v63  ;;  %v5764_v53 = vrot.slane %v4694_v36, %v7031_v17  ;;  %v5769_v3 = vrot.slane %v4695_v4, %v7035_v26  ;;  %v4110_v54 = vrot.slane %v2548_v28, %v6985_v40 }
 0x2c0   : > { %v4117_v11 = vrot.slane %v2548_v28, %v6995_v45  ;;  %v2395_v55 = vmul.f32 0.015625, %v2035_v50  ;;  %v2394_v57 = vmul.f32 0.015625, %v2032_v51 }
 0x2c1   : > { %v5765_v58 = vsel %vm4798_vm6, %v5764_v53, %v5760_v39  ;;  %v4696_v56 = vunpack.c.l.b16 %v4110_v54 }
 0x2c2   : > { %v5770_v61 = vsel %vm4805_vm7, %v5769_v3, %v5765_v58  ;;  %v4697_v42 = vunpack.c.l.b16 %v4117_v11  ;;  %v2549_v33 = vpack.c.bf16 %v2395_v55, %v2394_v57  ;;  %v2050_v6 = vpop.xlane.xlu1 %2049  ;;  %v8101_v13 = vpop.xlane.xlu0 %2037 }
 0x2c3   : > { %v5774_v35 = vrot.slane %v4696_v56, %v7043_v34  ;;  %v2400_v24 = vmul.f32 0.015625, %v2050_v6 }
 0x2c4   : > { %v5779_v0 = vrot.slane %v4697_v42, %v7050_v43  ;;  %v4124_v15 = vrot.slane %v2549_v33, %v6985_v40  ;;  %v4131_v16 = vrot.slane %v2549_v33, %v6995_v45 }
 0x2c5   : > { %v5775_v18 = vsel %vm4812_vm8, %v5774_v35, %v5770_v61 }
 0x2c6   : > { %v5780_v10 = vsel %vm4819_vm9, %v5779_v0, %v5775_v18  ;;  %v4698_v25 = vunpack.c.l.b16 %v4124_v15  ;;  %v4699_v19 = vunpack.c.l.b16 %v4131_v16  ;;  %v2056_v23 = vpop.xlane.xlu1 %2055  ;;  %v2053_v22 = vpop.xlane.xlu0 %2052 }
 0x2c7   : > { %v2401_v62 = vmul.f32 0.015625, %v2053_v22  ;;  %v2402_v44 = vmul.f32 0.015625, %v2056_v23 }
 0x2c8   : > { %v5784_v27 = vrot.slane %v4698_v25, %v7066_v12  ;;  %v5789_v37 = vrot.slane %v4699_v19, %v7075_v20 }
 0x2c9   : > { %v2552_v31 = vpack.c.bf16 %v2401_v62, %v2400_v24 }
 0x2ca   : > { %v5785_v32 = vsel %vm8349_vm0, %v5784_v27, %v5780_v10  ;;  %v2098_v38 = vpop.xlane.xlu1 %2097  ;;  %v2059_v48 = vpop.xlane.xlu0 %2058 }
 0x2cb   : > { %v8113_v2 = vsel %vm8350_vm13, %v5789_v37, %v5785_v32  ;;  %v4166_v21 = vrot.slane %v2552_v31, %v6985_v40  ;;  %v4173_v30 = vrot.slane %v2552_v31, %v6995_v45  ;;  %v2403_v7 = vmul.f32 0.015625, %v2059_v48 }
 0x2cc   : > { %v2416_v63 = vmul.f32 0.015625, %v2098_v38 }
 0x2cd   : > { %v4704_v29 = vunpack.c.l.b16 %v4166_v21  ;;  %v4705_v5 = vunpack.c.l.b16 %v4173_v30  ;;  %v2553_v36 = vpack.c.bf16 %v2403_v7, %v2402_v44 }
 0x2ce   : > { %v2104_v4 = vpop.xlane.xlu1 %2103  ;;  %v2101_v28 = vpop.xlane.xlu0 %2100 }
 0x2cf   : > { %v2417_v50 = vmul.f32 0.015625, %v2101_v28  ;;  %v4180_v51 = vrot.slane %v2553_v36, %v6985_v40  ;;  %v4187_v39 = vrot.slane %v2553_v36, %v6995_v45  ;;  %v5814_v53 = vrot.slane %v4704_v29, %v6989_v41 }
 0x2d0   : > { %v5818_v3 = vrot.slane %v4705_v5, %v7004_v49  ;;  %v2418_v56 = vmul.f32 0.015625, %v2104_v4 }
 0x2d1   : > { %v2560_v54 = vpack.c.bf16 %v2417_v50, %v2416_v63  ;;  %v4706_v11 = vunpack.c.l.b16 %v4180_v51  ;;  %v4707_v55 = vunpack.c.l.b16 %v4187_v39 }
 0x2d2   : > { %v2146_v57 = vpop.xlane.xlu1 %2145  ;;  %v2107_v58 = vpop.xlane.xlu0 %2106  ;;  %v5819_v0 = vsel %vm4763_vm1, %v5818_v3, %v5814_v53 }
 0x2d3   : > { %v4278_v61 = vrot.slane %v2560_v54, %v6985_v40  ;;  %v4285_v42 = vrot.slane %v2560_v54, %v6995_v45  ;;  %v2419_v33 = vmul.f32 0.015625, %v2107_v58  ;;  %v5823_v6 = vrot.slane %v4706_v11, %v6998_v46 }
 0x2d4   : > { %v5828_v35 = vrot.slane %v4707_v55, %v7001_v47  ;;  %v2432_v22 = vmul.f32 0.015625, %v2146_v57 }
 0x2d5   : > { %v4720_v15 = vunpack.c.l.b16 %v4278_v61  ;;  %v4721_v16 = vunpack.c.l.b16 %v4285_v42  ;;  %v2561_v18 = vpack.c.bf16 %v2419_v33, %v2418_v56  ;;  %v5824_v10 = vsel %vm4770_vm2, %v5823_v6, %v5819_v0 }
 0x2d6   : > { %v2062_v25 = vpop.xlane.xlu1 %2061  ;;  %v2149_v19 = vpop.xlane.xlu0 %2148  ;;  %v5829_v23 = vsel %vm4777_vm3, %v5828_v35, %v5824_v10 }
 0x2d7   : > { %v4292_v24 = vrot.slane %v2561_v18, %v6985_v40  ;;  %v5893_v62 = vrot.slane %v4720_v15, %v6989_v41  ;;  %v5897_v27 = vrot.slane %v4721_v16, %v7004_v49  ;;  %v4299_v37 = vrot.slane %v2561_v18, %v6995_v45 }
 0x2d8   : > { %v2433_v31 = vmul.f32 0.015625, %v2149_v19  ;;  %v2404_v7 = vmul.f32 0.015625, %v2062_v25 }
 0x2d9   : > { %v4722_v32 = vunpack.c.l.b16 %v4292_v24  ;;  %v4723_v38 = vunpack.c.l.b16 %v4299_v37  ;;  %v5898_v5 = vsel %vm4763_vm1, %v5897_v27, %v5893_v62 }
 0x2da   : > { %v2568_v48 = vpack.c.bf16 %v2433_v31, %v2432_v22  ;;  %v2152_v21 = vpop.xlane.xlu1 %2151  ;;  %v2065_v30 = vpop.xlane.xlu0 %2064 }
 0x2db   : > { %v5902_v44 = vrot.slane %v4722_v32, %v6998_v46  ;;  %v2405_v29 = vmul.f32 0.015625, %v2065_v30  ;;  %v5907_v36 = vrot.slane %v4723_v38, %v7001_v47  ;;  %v2434_v3 = vmul.f32 0.015625, %v2152_v21 }
 0x2dc   : > { %v4390_v4 = vrot.slane %v2568_v48, %v6985_v40  ;;  %v4397_v28 = vrot.slane %v2568_v48, %v6995_v45 }
 0x2dd   : > { %v5903_v63 = vsel %vm4770_vm2, %v5902_v44, %v5898_v5  ;;  %v2554_v50 = vpack.c.bf16 %v2405_v29, %v2404_v7 }
 0x2de   : > { %v8139_v51 = vsel %vm4777_vm3, %v5907_v36, %v5903_v63  ;;  %v2110_v39 = vpop.xlane.xlu1 %2109  ;;  %v2155_v53 = vpop.xlane.xlu0 %2154  ;;  %v4736_v57 = vunpack.c.l.b16 %v4390_v4  ;;  %v4737_v58 = vunpack.c.l.b16 %v4397_v28 }
 0x2df   : > { %v4194_v54 = vrot.slane %v2554_v50, %v6985_v40  ;;  %v4201_v11 = vrot.slane %v2554_v50, %v6995_v45  ;;  %v2435_v55 = vmul.f32 0.015625, %v2155_v53  ;;  %v2420_v44 = vmul.f32 0.015625, %v2110_v39 }
 0x2e0   : > { %v5972_v18 = vrot.slane %v4736_v57, %v6989_v41  ;;  %v5976_v10 = vrot.slane %v4737_v58, %v7004_v49 }
 0x2e1   : > { %v4708_v56 = vunpack.c.l.b16 %v4194_v54  ;;  %v4709_v61 = vunpack.c.l.b16 %v4201_v11  ;;  %v2569_v42 = vpack.c.bf16 %v2435_v55, %v2434_v3 }
 0x2e2   : > { %v2068_v33 = vpop.xlane.xlu1 %2067  ;;  %v2113_v6 = vpop.xlane.xlu0 %2112  ;;  %v5977_v32 = vsel %vm4763_vm1, %v5976_v10, %v5972_v18  ;;  %vm8354_vm1 = vmmov %vm8351_vm11 }
 0x2e3   : > { %v5833_v35 = vrot.slane %v4708_v56, %v7011_v59  ;;  %v5838_v0 = vrot.slane %v4709_v61, %v7014_v60  ;;  %v4404_v15 = vrot.slane %v2569_v42, %v6985_v40  ;;  %v4411_v16 = vrot.slane %v2569_v42, %v6995_v45 }
 0x2e4   : > { %v2421_v48 = vmul.f32 0.015625, %v2113_v6  ;;  %v2406_v29 = vmul.f32 0.015625, %v2068_v33 }
 0x2e5   : > { %v5834_v25 = vsel %vm4784_vm4, %v5833_v35, %v5829_v23  ;;  %v4738_v19 = vunpack.c.l.b16 %v4404_v15  ;;  %v4739_v22 = vunpack.c.l.b16 %v4411_v16 }
 0x2e6   : > { %v8151_v24 = vsel %vm4791_vm5, %v5838_v0, %v5834_v25  ;;  %v2158_v62 = vpop.xlane.xlu1 %2157  ;;  %v2071_v27 = vpop.xlane.xlu0 %2070  ;;  %v2562_v5 = vpack.c.bf16 %v2421_v48, %v2420_v44 }
 0x2e7   : > { %v5981_v37 = vrot.slane %v4738_v19, %v6998_v46  ;;  %v5986_v31 = vrot.slane %v4739_v22, %v7001_v47  ;;  %v2407_v7 = vmul.f32 0.015625, %v2071_v27  ;;  %v2436_v53 = vmul.f32 0.015625, %v2158_v62 }
 0x2e8   : > { %v4306_v28 = vrot.slane %v2562_v5, %v6985_v40  ;;  %v4313_v11 = vrot.slane %v2562_v5, %v6995_v45 }
 0x2e9   : > { %v5982_v38 = vsel %vm4770_vm2, %v5981_v37, %v5977_v32  ;;  %v2555_v4 = vpack.c.bf16 %v2407_v7, %v2406_v29  ;;  %v2396_v37 = vmul.f32 0.015625, %v8101_v13  ;;  %vm8355_vm2 = vcmask 917312  }
 0x2ea   : > { %v8158_v41 = vsel %vm4777_vm3, %v5986_v31, %v5982_v38  ;;  %v2116_v49 = vpop.xlane.xlu1 %2115  ;;  %v2161_v23 = vpop.xlane.xlu0 %2160  ;;  %v4724_v55 = vunpack.c.l.b16 %v4306_v28  ;;  %v4725_v0 = vunpack.c.l.b16 %v4313_v11  ;;  %vm8356_vm3 = vmmov %vm8349_vm0 }
 0x2eb   : > { %v2437_v47 = vmul.f32 0.015625, %v2161_v23  ;;  %v4208_v3 = vrot.slane %v2555_v4, %v6985_v40  ;;  %v4215_v39 = vrot.slane %v2555_v4, %v6995_v45  ;;  %v2422_v33 = vmul.f32 0.015625, %v2116_v49 }
 0x2ec   : > { %v5912_v15 = vrot.slane %v4724_v55, %v7011_v59  ;;  %v5917_v23 = vrot.slane %v4725_v0, %v7014_v60 }
 0x2ed   : > { %v2570_v54 = vpack.c.bf16 %v2437_v47, %v2436_v53  ;;  %v4710_v42 = vunpack.c.l.b16 %v4208_v3  ;;  %v4711_v16 = vunpack.c.l.b16 %v4215_v39 }
 0x2ee   : > { %v2074_v21 = vpop.xlane.xlu1 %2073  ;;  %v2119_v30 = vpop.xlane.xlu0 %2118  ;;  %v5913_v49 = vsel %vm4784_vm4, %v5912_v15, %v8139_v51 }
 0x2ef   : > { %v2423_v57 = vmul.f32 0.015625, %v2119_v30  ;;  %v4418_v6 = vrot.slane %v2570_v54, %v6985_v40  ;;  %v2408_v35 = vmul.f32 0.015625, %v2074_v21  ;;  %v5843_v62 = vrot.slane %v4710_v42, %v7031_v17 }
 0x2f0   : > { %v4425_v27 = vrot.slane %v2570_v54, %v6995_v45  ;;  %v5848_v48 = vrot.slane %v4711_v16, %v7035_v26  ;;  %v5918_v53 = vsel %vm4791_vm5, %v5917_v23, %v5913_v49 }
 0x2f1   : > { %v2563_v18 = vpack.c.bf16 %v2423_v57, %v2422_v33  ;;  %v4740_v31 = vunpack.c.l.b16 %v4418_v6  ;;  %v5844_v13 = vsel %vm4798_vm6, %v5843_v62, %v8151_v24 }
 0x2f2   : > { %v2164_v36 = vpop.xlane.xlu1 %2163  ;;  %v2077_v46 = vpop.xlane.xlu0 %2076  ;;  %v5849_v39 = vsel %vm4805_vm7, %v5848_v48, %v5844_v13 }
 0x2f3   : > { %v2409_v61 = vmul.f32 0.015625, %v2077_v46  ;;  %v2438_v32 = vmul.f32 0.015625, %v2164_v36  ;;  %v4320_v21 = vrot.slane %v2563_v18, %v6985_v40  ;;  %v4741_v36 = vunpack.c.l.b16 %v4425_v27 }
 0x2f4   : > { %v5991_v51 = vrot.slane %v4740_v31, %v7011_v59  ;;  %v4327_v47 = vrot.slane %v2563_v18, %v6995_v45 }
 0x2f5   : > { %v2556_v19 = vpack.c.bf16 %v2409_v61, %v2408_v35  ;;  %v4726_v3 = vunpack.c.l.b16 %v4320_v21  ;;  %v5996_v59 = vrot.slane %v4741_v36, %v7014_v60 }
 0x2f6   : > { %v2122_v63 = vpop.xlane.xlu1 %2121  ;;  %v2167_v50 = vpop.xlane.xlu0 %2166  ;;  %v5992_v6 = vsel %vm4784_vm4, %v5991_v51, %v8158_v41  ;;  %v4727_v35 = vunpack.c.l.b16 %v4327_v47  ;;  %vm8357_vm4 = vmmov %vm8350_vm13 }
 0x2f7   : > { %v2439_v22 = vmul.f32 0.015625, %v2167_v50  ;;  %v4222_v7 = vrot.slane %v2556_v19, %v6985_v40  ;;  %v2424_v29 = vmul.f32 0.015625, %v2122_v63  ;;  %v4229_v54 = vrot.slane %v2556_v19, %v6995_v45  ;;  %vm8362_vm11 = vmmov %vm8357_vm4 }
 0x2f8   : > { %v5922_v15 = vrot.slane %v4726_v3, %v7031_v17  ;;  %vm8365_vm13 = vmmov %vm8355_vm2 }
 0x2f9   : > { %v2571_v5 = vpack.c.bf16 %v2439_v22, %v2438_v32  ;;  %v4712_v57 = vunpack.c.l.b16 %v4222_v7  ;;  %v4713_v16 = vunpack.c.l.b16 %v4229_v54  ;;  %v5997_v54 = vsel %vm4791_vm5, %v5996_v59, %v5992_v6 }
 0x2fa   : > { %v2080_v58 = vpop.xlane.xlu1 %2079  ;;  %v2125_v56 = vpop.xlane.xlu0 %2124  ;;  %v5923_v21 = vsel %vm4798_vm6, %v5922_v15, %v5918_v53  ;;  %vm8358_vm5 = vcmask 1044484  }
 0x2fb   : > { %v2425_v38 = vmul.f32 0.015625, %v2125_v56  ;;  %v2410_v11 = vmul.f32 0.015625, %v2080_v58  ;;  %v4432_v24 = vrot.slane %v2571_v5, %v6985_v40  ;;  %v5853_v60 = vrot.slane %v4712_v57, %v7043_v34 }
 0x2fc   : > { %v4439_v62 = vrot.slane %v2571_v5, %v6995_v45  ;;  %v5858_v13 = vrot.slane %v4713_v16, %v7050_v43 }
 0x2fd   : > { %v2564_v28 = vpack.c.bf16 %v2425_v38, %v2424_v29  ;;  %v4742_v27 = vunpack.c.l.b16 %v4432_v24 }
 0x2fe   : > { %v2170_v10 = vpop.xlane.xlu1 %2169  ;;  %v2083_v25 = vpop.xlane.xlu0 %2082  ;;  %v4743_v36 = vunpack.c.l.b16 %v4439_v62 }
 0x2ff   : > { %v2411_v4 = vmul.f32 0.015625, %v2083_v25  ;;  %v4334_v58 = vrot.slane %v2564_v28, %v6985_v40  ;;  %v2440_v18 = vmul.f32 0.015625, %v2170_v10  ;;  %v4341_v41 = vrot.slane %v2564_v28, %v6995_v45 }
 0x301   : > { %v2557_v61 = vpack.c.bf16 %v2411_v4, %v2410_v11  ;;  %v4728_v49 = vunpack.c.l.b16 %v4334_v58 }
 0x302   : > { %v2041_v30 = vpop.xlane.xlu1 %2040  ;;  %v2173_v44 = vpop.xlane.xlu0 %2172 }
 0x303   : > { %v2397_v46 = vmul.f32 0.015625, %v2041_v30  ;;  %v2441_v33 = vmul.f32 0.015625, %v2173_v44  ;;  %v4236_v31 = vrot.slane %v2557_v61, %v6985_v40  ;;  %v5927_v30 = vrot.slane %v4727_v35, %v7035_v26 }
 0x304   : > { %v4243_v44 = vrot.slane %v2557_v61, %v6995_v45  ;;  %v5932_v53 = vrot.slane %v4728_v49, %v7043_v34  ;;  %v6006_v61 = vrot.slane %v4743_v36, %v7035_v26 }
 0x305   : > { %v2550_v50 = vpack.c.bf16 %v2397_v46, %v2396_v37  ;;  %v2572_v38 = vpack.c.bf16 %v2441_v33, %v2440_v18  ;;  %v5854_v46 = vsel %vm4812_vm8, %v5853_v60, %v5849_v39  ;;  %v4714_v4 = vunpack.c.l.b16 %v4236_v31 }
 0x306   : > { %v2131_v63 = vpop.xlane.xlu1 %2130  ;;  %v2128_v55 = vpop.xlane.xlu0 %2127  ;;  %v5928_v11 = vsel %vm4805_vm7, %v5927_v30, %v5923_v21  ;;  %v4715_v57 = vunpack.c.l.b16 %v4243_v44 }
 0x307   : > { %v4138_v56 = vrot.slane %v2550_v50, %v6985_v40  ;;  %v4145_v42 = vrot.slane %v2550_v50, %v6995_v45  ;;  %v4446_v51 = vrot.slane %v2572_v38, %v6985_v40  ;;  %v2427_v47 = vmul.f32 0.015625, %v2131_v63 }
 0x308   : > { %v2426_v28 = vmul.f32 0.015625, %v2128_v55  ;;  %v4729_v50 = vunpack.c.l.b16 %v4341_v41  ;;  %v4453_v39 = vrot.slane %v2572_v38, %v6995_v45  ;;  %v5863_v33 = vrot.slane %v4714_v4, %v7066_v12 }
 0x309   : > { %v4700_v0 = vunpack.c.l.b16 %v4138_v56  ;;  %v4701_v25 = vunpack.c.l.b16 %v4145_v42  ;;  %v4744_v35 = vunpack.c.l.b16 %v4446_v51  ;;  %v5933_v59 = vsel %vm4812_vm8, %v5932_v53, %v5928_v11 }
 0x30a   : > { %v2089_v19 = vpop.xlane.xlu1 %2088  ;;  %v2086_v22 = vpop.xlane.xlu0 %2085  ;;  %v2565_v58 = vpack.c.bf16 %v2427_v47, %v2426_v28  ;;  %v5937_v6 = vrot.slane %v4729_v50, %v7050_v43  ;;  %v5868_v16 = vrot.slane %v4715_v57, %v7075_v20  ;;  %v8220_v18 = vunpack.c.l.b16 %v4453_v39 }
 0x30b   : > { %v5794_v37 = vrot.slane %v4700_v0, %v7090_v52  ;;  %v5799_v32 = vrot.slane %v4701_v25, %v7098_v1  ;;  %v2413_v23 = vmul.f32 0.015625, %v2089_v19  ;;  %v2412_v48 = vmul.f32 0.015625, %v2086_v22 }
 0x30c   : > { %v6011_v31 = vrot.slane %v4744_v35, %v7043_v34  ;;  %v5938_v30 = vsel %vm4819_vm9, %v5937_v6, %v5933_v59  ;;  %v4355_v44 = vrot.slane %v2565_v58, %v6995_v45  ;;  %v6016_v34 = vrot.slane %v8220_v18, %v7050_v43 }
 0x30d   : > { %v5795_v10 = vsel %vm8354_vm1, %v5794_v37, %v8113_v2  ;;  %v6001_v2 = vrot.slane %v4742_v27, %v7031_v17  ;;  %v2558_v3 = vpack.c.bf16 %v2413_v23, %v2412_v48  ;;  %v5859_v17 = vsel %vm4819_vm9, %v5858_v13, %v5854_v46 }
 0x30e   : > { %v8202_v7 = vsel %vm8355_vm2, %v5799_v32, %v5795_v10  ;;  %v2179_v29 = vpop.xlane.xlu1 %2178  ;;  %v2176_v5 = vpop.xlane.xlu0 %2175  ;;  %v5864_v41 = vsel %vm8356_vm3, %v5863_v33, %v5859_v17  ;;  %v4348_v32 = vrot.slane %v2565_v58, %v6985_v40  ;;  %v4731_v11 = vunpack.c.l.b16 %v4355_v44 }
 0x30f   : > { %v6002_v55 = vsel %vm4798_vm6, %v6001_v2, %v5997_v54  ;;  %v4250_v0 = vrot.slane %v2558_v3, %v6985_v40  ;;  %v2443_v26 = vmul.f32 0.015625, %v2179_v29  ;;  %v2442_v25 = vmul.f32 0.015625, %v2176_v5  ;;  %vm8359_vm6 = vmmov %vm8354_vm1 }
 0x310   : > { %v4257_v38 = vrot.slane %v2558_v3, %v6995_v45  ;;  %v6007_v21 = vsel %vm4805_vm7, %v6006_v61, %v6002_v55  ;;  %v5869_v13 = vsel %vm8357_vm4, %v5868_v16, %v5864_v41  ;;  %v4730_v4 = vunpack.c.l.b16 %v4348_v32  ;;  %vm8360_vm7 = vmmov %vm8349_vm0 }
 0x311   : > { %v4716_v49 = vunpack.c.l.b16 %v4250_v0  ;;  %v2573_v29 = vpack.c.bf16 %v2443_v26, %v2442_v25  ;;  %v6012_v50 = vsel %vm4812_vm8, %v6011_v31, %v6007_v21  ;;  %vm8361_vm8 = vmmov %vm8355_vm2 }
 0x312   : > { %v2047_v24 = vpop.xlane.xlu1 %2046  ;;  %v2044_v56 = vpop.xlane.xlu0 %2043  ;;  %v4717_v51 = vunpack.c.l.b16 %v4257_v38  ;;  %v5942_v55 = vrot.slane %v4730_v4, %v7066_v12  ;;  %vm8367_vm2 = vmmov %vm8359_vm6 }
 0x313   : > { %v2399_v42 = vmul.f32 0.015625, %v2047_v24  ;;  %v2398_v63 = vmul.f32 0.015625, %v2044_v56  ;;  %v5873_v53 = vrot.slane %v4716_v49, %v7090_v52  ;;  %v4460_v43 = vrot.slane %v2573_v29, %v6985_v40  ;;  %vm8368_vm3 = vmmov %vm8361_vm8 }
 0x314   : > { %v4467_v59 = vrot.slane %v2573_v29, %v6995_v45 }
 0x315   : > { %v2551_v15 = vpack.c.bf16 %v2399_v42, %v2398_v63  ;;  %v5874_v58 = vsel %vm8359_vm6, %v5873_v53, %v5869_v13 }
 0x316   : > { %v2137_v19 = vpop.xlane.xlu1 %2136  ;;  %v2134_v22 = vpop.xlane.xlu0 %2133  ;;  %v4747_v32 = vunpack.c.l.b16 %v4467_v59 }
 0x317   : > { %v4152_v60 = vrot.slane %v2551_v15, %v6985_v40  ;;  %v4159_v62 = vrot.slane %v2551_v15, %v6995_v45  ;;  %v2429_v27 = vmul.f32 0.015625, %v2137_v19  ;;  %v2428_v37 = vmul.f32 0.015625, %v2134_v22 }
 0x318   : > { %v4746_v15 = vunpack.c.l.b16 %v4460_v43 }
 0x319   : > { %v4702_v10 = vunpack.c.l.b16 %v4152_v60  ;;  %v4703_v23 = vunpack.c.l.b16 %v4159_v62  ;;  %v2566_v48 = vpack.c.bf16 %v2429_v27, %v2428_v37  ;;  %v5943_v27 = vsel %vm8360_vm7, %v5942_v55, %v5938_v30 }
 0x31a   : > { %v2095_v5 = vpop.xlane.xlu1 %2094  ;;  %v2092_v46 = vpop.xlane.xlu0 %2091 }
 0x31b   : > { %v5804_v36 = vrot.slane %v4702_v10, %v7105_v9  ;;  %v5809_v2 = vrot.slane %v4703_v23, %v7111_v8  ;;  %v2415_v47 = vmul.f32 0.015625, %v2095_v5  ;;  %v2414_v28 = vmul.f32 0.015625, %v2092_v46 }
 0x31c   : > { %v4362_v54 = vrot.slane %v2566_v48, %v6985_v40  ;;  %v4369_v61 = vrot.slane %v2566_v48, %v6995_v45  ;;  %v6017_v23 = vsel %vm4819_vm9, %v6016_v34, %v6012_v50  ;;  %v6021_v48 = vrot.slane %v4746_v15, %v7066_v12  ;;  %vm8364_vm9 = vmmov %vm8354_vm1 }
 0x31d   : > { %v5805_v3 = vsel %vm4854_vm14, %v5804_v36, %v8202_v7  ;;  %v2559_v39 = vpack.c.bf16 %v2415_v47, %v2414_v28  ;;  %v5878_v7 = vrot.slane %v4717_v51, %v7098_v1  ;;  %v6026_v12 = vrot.slane %v4747_v32, %v7075_v20  ;;  %vm8366_vm1 = vmmov %vm8357_vm4 }
 0x31e   : > { %v5810_v57 = vsel %vm4861_vm15, %v5809_v2, %v5805_v3  ;;  %v2185_v24 = vpop.xlane.xlu1 %2184  ;;  %v2182_v56 = vpop.xlane.xlu0 %2181  ;;  %v4732_v6 = vunpack.c.l.b16 %v4362_v54  ;;  %v4733_v19 = vunpack.c.l.b16 %v4369_v61  ;;  %v6022_v53 = vsel %vm8349_vm0, %v6021_v48, %v6017_v23 }
 0x31f   : > { %v6065_v17 = vsel %vm8358_vm5, %v5810_v57, %v8076_v14  ;;  %v2445_v42 = vmul.f32 0.015625, %v2185_v24  ;;  %v2444_v63 = vmul.f32 0.015625, %v2182_v56  ;;  %v4264_v33 = vrot.slane %v2559_v39, %v6985_v40 }
 0x320   : > { %v4271_v35 = vrot.slane %v2559_v39, %v6995_v45  ;;  %v5947_v14 = vrot.slane %v4731_v11, %v7075_v20  ;;  %v5879_v37 = vsel %vm8361_vm8, %v5878_v7, %v5874_v58  ;;  %v5952_v38 = vrot.slane %v4732_v6, %v7090_v52 }
 0x321   : > { %v2574_v0 = vpack.c.bf16 %v2445_v42, %v2444_v63  ;;  %v4718_v16 = vunpack.c.l.b16 %v4264_v33  ;;  %v5957_v46 = vrot.slane %v4733_v19, %v7098_v1  ;;  %v6027_v56 = vsel %vm8366_vm1, %v6026_v12, %v6022_v53 }
 0x322   : > { %v4719_v18 = vunpack.c.l.b16 %v4271_v35  ;;  %v2143_v26 = vpop.xlane.xlu1 %2142  ;;  %v2140_v25 = vpop.xlane.xlu0 %2139  ;;  %v5948_v5 = vsel %vm8362_vm11, %v5947_v14, %v5943_v27  ;;  %vm8369_vm4 = vcmask 1047559  }
 0x323   : > { %v4474_v22 = vrot.slane %v2574_v0, %v6985_v40  ;;  %v2431_v60 = vmul.f32 0.015625, %v2143_v26  ;;  %v2430_v62 = vmul.f32 0.015625, %v2140_v25  ;;  %v5883_v41 = vrot.slane %v4718_v16, %v7105_v9 }
 0x324   : > { %v5888_v31 = vrot.slane %v4719_v18, %v7111_v8  ;;  %v4481_v49 = vrot.slane %v2574_v0, %v6995_v45  ;;  %v5953_v47 = vsel %vm8364_vm9, %v5952_v38, %v5948_v5 }
 0x325   : > { %v2567_v10 = vpack.c.bf16 %v2431_v60, %v2430_v62  ;;  %v5884_v21 = vsel %vm4854_vm14, %v5883_v41, %v5879_v37  ;;  %v4748_v44 = vunpack.c.l.b16 %v4474_v22  ;;  %v5958_v57 = vsel %vm8365_vm13, %v5957_v46, %v5953_v47 }
 0x326   : > { %v2191_v30 = vpop.xlane.xlu1 %2190  ;;  %v2188_v29 = vpop.xlane.xlu0 %2187  ;;  %v5889_v13 = vsel %vm4861_vm15, %v5888_v31, %v5884_v21  ;;  %v4749_v28 = vunpack.c.l.b16 %v4481_v49 }
 0x327   : > { %v4376_v36 = vrot.slane %v2567_v10, %v6985_v40  ;;  %v6066_v2 = vsel %vm8363_vm10, %v5889_v13, %v6065_v17  ;;  %v4383_v4 = vrot.slane %v2567_v10, %v6995_v45  ;;  %v2447_v34 = vmul.f32 0.015625, %v2191_v30 }
 0x328   : > { %v2446_v51 = vmul.f32 0.015625, %v2188_v29  ;;  %v6031_v3 = vrot.slane %v4748_v44, %v7090_v52  ;;  %v6036_v17 = vrot.slane %v4749_v28, %v7098_v1 }
 0x329   : > { %v4734_v50 = vunpack.c.l.b16 %v4376_v36  ;;  %v4735_v54 = vunpack.c.l.b16 %v4383_v4 }
 0x32a   : > { %v2575_v11 = vpack.c.bf16 %v2447_v34, %v2446_v51  ;;  %v6032_v52 = vsel %vm8367_vm2, %v6031_v3, %v6027_v56 }
 0x32b   : > { %v5962_v43 = vrot.slane %v4734_v50, %v7105_v9  ;;  %v5967_v39 = vrot.slane %v4735_v54, %v7111_v8 }
 0x32c   : > { %v4488_v24 = vrot.slane %v2575_v11, %v6985_v40  ;;  %v4495_v20 = vrot.slane %v2575_v11, %v6995_v45  ;;  %v6037_v45 = vsel %vm8368_vm3, %v6036_v17, %v6032_v52 }
 0x32d   : > { %v5963_v61 = vsel %vm4854_vm14, %v5962_v43, %v5958_v57 }
 0x32e   : > { %v5968_v42 = vsel %vm4861_vm15, %v5967_v39, %v5963_v61  ;;  %v4750_v63 = vunpack.c.l.b16 %v4488_v24  ;;  %v4751_v55 = vunpack.c.l.b16 %v4495_v20 }
 0x32f   : > { %v6067_v7 = vsel %vm6058_vm12, %v5968_v42, %v6066_v2 }
 0x330   : > { %v6041_v33 = vrot.slane %v4750_v63, %v7105_v9  ;;  %v6046_v40 = vrot.slane %v4751_v55, %v7111_v8  ;;  %v6099_v9 = vld [vmem:[%s7782_s26] sm:$0xf] (%p6290_p5) }
 0x331   : > { %6081 = sbr.rel (!%p6290_p5) target bundleno = 832 (0x340), region = 66  ;;  %6100 = vst [vmem:[%s6083_s30] sm:$0xf] (%p6290_p5), %v6099_v9 }
 0x332   : > { %v6042_v35 = vsel %vm4854_vm14, %v6041_v33, %v6037_v45 }
 0x333   : > { %v6047_v1 = vsel %vm4861_vm15, %v6046_v40, %v6042_v35 }
 0x334   : > { %v6068_v58 = vsel %vm8369_vm4, %v6047_v1, %v6067_v7 }
 0x335   : > { %v6070_v59 = vpack.c.b16 %v6068_v58, %v6068_v58 }
 0x337   : > { %6074 = vst [vmem:[%s7782_s26 + $0x4] sm:$0xf] %v6070_v59 }
 0x33e   : > { %v6101_v8 = vld [vmem:[%s7782_s26 + $0x4] sm:$0xf] }
 0x33f   : > { %6102 = vst [vmem:[%s6083_s30 + $0x8] sm:$0xf] %v6101_v8 }
 0x340 PF: > { %p8_p10 = scmp.ge.s32.totalorder %s6277_s10, 4   ;;  %s8370_s6 = smov %s6242_s7 }
 0x341   : > { %s8371_s7 = smov %s6288_s13  ;;  %s8372_s8 = smov %s6277_s10 }
 0x342   :  { %10 = sbr.rel (!%p8_p10) target bundleno = 2 (0x2), region = 138 }

// kernel: barlow_twins_forward.9
= control target key start
LH: loop header
LB: loop body
LE: loop exit
PB: predicated region body
PF: predicated region fallthrough
CT: control target
= control target key end

     0   :  { %s962_s12 = smov 0   ;;  %s964_s13 = smov 0   ;;  %s1174_s0 = inlined_call_operand.vmem [shape: bf16[16,256], index: 0, kind: input, shape index: {}]   ;;  %s1175_s1 = inlined_call_operand.vmem [shape: bf16[256,256], index: 1, kind: input, shape index: {}]   ;;  %s1176_s2 = inlined_call_operand.vmem [shape: f32[1,256], index: 2, kind: input, shape index: {}]   ;;  %s1177_s3 = inlined_call_operand.vmem [shape: f32[16,256], index: 3, kind: output, shape index: {}]  }
   0x1   :  { %s966_s14 = smov 0   ;;  %s968_s15 = smov 0  }
   0x2   :  { %s970_s16 = smov 0   ;;  %s972_s17 = smov 0  }
   0x3   :  { %s974_s18 = smov 0   ;;  %s976_s19 = smov 0  }
   0x4   :  { %s978_s20 = smov 0   ;;  %s980_s21 = smov 0  }
   0x5   :  { %s982_s22 = smov 0  }
   0x6 LB: > { %s687_s23 = sadd.s32 4294967295, %s937_s22   ;;  %s22_s24 = sadd.s32 1, %s929_s20  ;;  %s937_s22 = sphi %s982_s22, %s13_s22   ;;  %s933_s21 = sphi %s980_s21, %s1198_s21   ;;  %s929_s20 = sphi %s978_s20, %s1197_s20   ;;  %s925_s19 = sphi %s976_s19, %s1196_s19   ;;  %s921_s18 = sphi %s974_s18, %s1195_s18   ;;  %s917_s17 = sphi %s972_s17, %s1194_s17   ;;  %s913_s16 = sphi %s970_s16, %s1193_s16   ;;  %s909_s15 = sphi %s968_s15, %s1192_s15   ;;  %s905_s14 = sphi %s966_s14, %s1191_s14   ;;  %s901_s13 = sphi %s964_s13, %s1190_s13   ;;  %s897_s12 = sphi %s962_s12, %s1189_s12  }
   0x7   : > { %p23_p0 = scmp.ge.s32.totalorder %s22_s24, 2  ;;  %s25_s25 = sadd.s32 1, %s933_s21 }
   0x8   : > { %s32_s26 = sadd.s32 1, %s917_s17  ;;  %p39_p1 = scmp.ne.s32.totalorder %s917_s17, %s913_s16 }
   0x9   : > { %s1200_s24 = smov (%p23_p0, %s22_s24), 0  ;;  %s1202_s25 = smov (!%p23_p0, %s25_s25), %s933_s21 }
   0xa   : > { %1180 = sst [smem:[#allocation6_spill]] %s1200_s24  ;;  %s29_s27 = ssub.s32 %s929_s20, %s1200_s24 }
   0xb   : > { %p40_p2 = scmp.eq.s32.totalorder %s937_s22, 0  ;;  %p27_p3 = scmp.ge.s32.totalorder %s1202_s25, 2 }
   0xc   : > { %p30_p4 = scmp.eq.s32.totalorder %s29_s27, 0  ;;  %s60_s29 = sadd.s32 1, %s909_s15 }
   0xd   : > { %p1029_p5 = por %p40_p2, %p39_p1  ;;  %s1204_s25 = smov (%p27_p3, %s1202_s25), 0 }
   0xe   : > { %1182 = sst [smem:[#allocation7_spill]] %s1204_s25  ;;  %s56_s4 = ssub.s32 %s933_s21, %s1204_s25 }
   0xf   : > { %s1037_s30 = scalar_select %p30_p4, %s917_s17, %s32_s26  }
  0x10   : > { %p67_p6 = scmp.ne.s32.totalorder %s909_s15, %s905_s14  ;;  %s57_s5 = sor.u32 %s56_s4, %s29_s27 }
  0x11   : > { %1183 = sst [smem:[#allocation8_spill]] %s1037_s30  ;;  %p110_p7 = scmp.eq.s32.totalorder %s56_s4, 0 }
  0x12   : > { %p58_p8 = scmp.eq.s32.totalorder %s57_s5, 0  ;;  %p1043_p9 = por %p67_p6, %p40_p2 }
  0x13   : > { %s112_s7 = sadd.s32 1, %s901_s13  ;;  %p122_p10 = scmp.ne.s32.totalorder %s901_s13, %s897_s12 }
  0x14   : > { %s1051_s8 = scalar_select %p58_p8, %s909_s15, %s60_s29  }
  0x15   : > { %s1054_s9 = scalar_select %p110_p7, %s901_s13, %s112_s7  }
  0x16   : > { %p123_p11 = scmp.eq.s32.totalorder %s687_s23, 3  ;;  %p690_p13 = scmp.ge.s32.totalorder %s937_s22, 4 }
  0x18   : > { %p1056_p12 = por %p123_p11, %p122_p10  ;;  %145 = sbr.rel (%p690_p13) target bundleno = 54 (0x36), region = 16 }
  0x1f   : > { %148 = sbr.rel (!%p1029_p5) target bundleno = 38 (0x26), region = 20  ;;  %s150_s11 = sand.u32 (%p1029_p5), 1, %s917_s17  }
  0x20   : > { %s692_s26 = sshll.u32 (%p1029_p5), %s929_s20, 2  ;;  %s691_s27 = sshll.u32 (%p1029_p5), %s150_s11, 3 }
  0x21   : > { %s154_s5 = scalar_lea.vmem (%p1029_p5), %s1174_s0, %s692_s26  ;;  %s152_s23 = scalar_lea.vmem (%p1029_p5), [#allocation3], %s691_s27 }
  0x22   : > { %v170_v0 = vld [vmem:[%s154_s5] sm:$0xf] (%p1029_p5)  ;;  %v172_v1 = vld [vmem:[%s154_s5 + $0x8] sm:$0xf] (%p1029_p5) }
  0x23   : > { %171 = vst [vmem:[%s152_s23] sm:$0xf] (%p1029_p5), %v170_v0  ;;  %173 = vst [vmem:[%s152_s23 + $0x4] sm:$0xf] (%p1029_p5), %v172_v1 }
  0x26 PF: > { %200 = sbr.rel (!%p1043_p9) target bundleno = 54 (0x36), region = 61  ;;  %s202_s28 = sand.u32 (%p1043_p9), 1, %s909_s15  }
  0x27   : > { %s717_s7 = sshll.u32 (%p1043_p9), %s929_s20, 5  ;;  %s693_s25 = sshll.u32 (%p1043_p9), %s202_s28, 6 }
  0x28   : > { %s207_s11 = sadd.s32 (%p1043_p9), %s933_s21, %s717_s7  ;;  %s204_s6 = scalar_lea.vmem (%p1043_p9), [#allocation4], %s693_s25 }
  0x29   : > { %s696_s24 = sshll.u32 (%p1043_p9), %s207_s11, 2 }
  0x2a   : > { %s1076_s26 = scalar_lea.vmem (%p1043_p9), %s1175_s1, %s696_s24 }
  0x2b   : > { %v225_v2 = vld [vmem:[%s1076_s26] sm:$0xf] (%p1043_p9)  ;;  %v227_v3 = vld [vmem:[%s1076_s26 + $0x8] sm:$0xf] (%p1043_p9)  ;;  %v229_v4 = vld [vmem:[%s1076_s26 + $0x10] sm:$0xf] (%p1043_p9) }
  0x2c   : > { %226 = vst [vmem:[%s204_s6] sm:$0xf] (%p1043_p9), %v225_v2  ;;  %228 = vst [vmem:[%s204_s6 + $0x4] sm:$0xf] (%p1043_p9), %v227_v3  ;;  %v231_v5 = vld [vmem:[%s1076_s26 + $0x18] sm:$0xf] (%p1043_p9) }
  0x2d   : > { %230 = vst [vmem:[%s204_s6 + $0x8] sm:$0xf] %v229_v4  ;;  %v233_v6 = vld [vmem:[%s1076_s26 + $0x20] sm:$0xf]  ;;  %v235_v7 = vld [vmem:[%s1076_s26 + $0x28] sm:$0xf] }
  0x2e   : > { %232 = vst [vmem:[%s204_s6 + $0xc] sm:$0xf] %v231_v5  ;;  %234 = vst [vmem:[%s204_s6 + $0x10] sm:$0xf] %v233_v6  ;;  %v237_v8 = vld [vmem:[%s1076_s26 + $0x30] sm:$0xf] }
  0x2f   : > { %236 = vst [vmem:[%s204_s6 + $0x14] sm:$0xf] %v235_v7  ;;  %v239_v9 = vld [vmem:[%s1076_s26 + $0x38] sm:$0xf]  ;;  %v241_v10 = vld [vmem:[%s1076_s26 + $0x40] sm:$0xf] }
  0x30   : > { %238 = vst [vmem:[%s204_s6 + $0x18] sm:$0xf] %v237_v8  ;;  %240 = vst [vmem:[%s204_s6 + $0x1c] sm:$0xf] %v239_v9  ;;  %v243_v11 = vld [vmem:[%s1076_s26 + $0x48] sm:$0xf] }
  0x31   : > { %242 = vst [vmem:[%s204_s6 + $0x20] sm:$0xf] %v241_v10  ;;  %v245_v12 = vld [vmem:[%s1076_s26 + $0x50] sm:$0xf]  ;;  %v247_v13 = vld [vmem:[%s1076_s26 + $0x58] sm:$0xf] }
  0x32   : > { %244 = vst [vmem:[%s204_s6 + $0x24] sm:$0xf] %v243_v11  ;;  %246 = vst [vmem:[%s204_s6 + $0x28] sm:$0xf] %v245_v12  ;;  %v249_v14 = vld [vmem:[%s1076_s26 + $0x60] sm:$0xf] }
  0x33   : > { %248 = vst [vmem:[%s204_s6 + $0x2c] sm:$0xf] %v247_v13  ;;  %v251_v15 = vld [vmem:[%s1076_s26 + $0x68] sm:$0xf]  ;;  %v253_v16 = vld [vmem:[%s1076_s26 + $0x70] sm:$0xf] }
  0x34   : > { %250 = vst [vmem:[%s204_s6 + $0x30] sm:$0xf] %v249_v14  ;;  %252 = vst [vmem:[%s204_s6 + $0x34] sm:$0xf] %v251_v15  ;;  %v255_v17 = vld [vmem:[%s1076_s26 + $0x78] sm:$0xf] }
  0x35   : > { %254 = vst [vmem:[%s204_s6 + $0x38] sm:$0xf] %v253_v16  ;;  %256 = vst [vmem:[%s204_s6 + $0x3c] sm:$0xf] %v255_v17 }
  0x36 PF: > { %p697_p0 = scmp.ge.s32.totalorder %s937_s22, 1  ;;  %p316_p1 = scmp.lt.s32.totalorder %s937_s22, 5 }
  0x38   : > { %p317_p2 = pnand %p697_p0, %p316_p1 }
  0x39   : > { %s323_s24 = sand.u32 (!%p317_p2), 1, %s913_s16   ;;  %s330_s25 = sand.u32 (!%p317_p2), 1, %s905_s14  }
  0x3a   : > { %320 = sbr.rel (%p317_p2) target bundleno = 388 (0x184), region = 106  ;;  %s1098_s30 = sshll.u32 (!%p317_p2), %s323_s24, 3 }
  0x3b   : > { %s699_s27 = sshll.u32 (!%p317_p2), %s330_s25, 6  ;;  %s356_s4 = sand.u32 (!%p317_p2), 1, %s897_s12  }
  0x3c   : > { %p360_p3 = scmp.lt.s32.totalorder (!%p317_p2), %s925_s19, 1  ;;  %s700_s5 = sshll.u32 (!%p317_p2), %s356_s4, 4 }
  0x3d   : > { %s325_s29 = scalar_lea.vmem (!%p317_p2), [#allocation3], %s1098_s30  ;;  %s1110_s26 = scalar_lea.vmem (!%p317_p2), [#allocation4], %s699_s27 }
  0x3e   : > { %s1112_s6 = scalar_lea.vmem (!%p317_p2), [#allocation5], %s700_s5  ;;  %p701_p4 = scmp.ne.s32.totalorder (!%p317_p2), %s921_s18, 0 }
  0x41   : > { %s1103_s23 = scalar_select %p360_p3, %s925_s19, 1 }
  0x42   : > { %367 = sbr.rel (%p701_p4) target bundleno = 73 (0x49), region = 118  ;;  %v939_v18 = vmov (!%p701_p4), 0.0  }
  0x43   : > { %s362_s11 = scalar_lea.vmem %s1176_s2, %s1103_s23  ;;  %368 = vst [vmem:[#allocation2] sm:$0xff] (!%p701_p4), %v939_v18  ;;  %369 = vst [vmem:[#allocation2 + $0x8] sm:$0xff] (!%p701_p4), %v939_v18 }
  0x49 PF: > { %v838_v19 = vld [vmem:[%s1110_s26] sm:$0xff]   ;;  %v940_v20 = vmov 0.0   ;;  %v839_v21 = vld [vmem:[%s1110_s26 + $0x8] sm:$0xff]   ;;  %vm941_vm0 = vmmov 0   ;;  %v840_v22 = vld [vmem:[%s1110_s26 + $0x10] sm:$0xff]   ;;  %p711_p5 = scmp.ne.s32.totalorder %s921_s18, 1 }
  0x4a   : > { %727 = vmatprep.subr.bf16.mxu0 %v940_v20  ;;  %743 = vmatprep.mubr.msk.bf16.mxu0 %vm941_vm0, %v940_v20  ;;  %v841_v23 = vld [vmem:[%s1110_s26 + $0x18] sm:$0xff]   ;;  %v842_v24 = vld [vmem:[%s1110_s26 + $0x20] sm:$0xff]   ;;  %v843_v25 = vld [vmem:[%s1110_s26 + $0x28] sm:$0xff]  }
  0x4b   : > { %728 = vmatpush3.bf16.msra.mxu0 %v838_v19  ;;  %v844_v26 = vld [vmem:[%s1110_s26 + $0x30] sm:$0xff]   ;;  %v845_v27 = vld [vmem:[%s1110_s26 + $0x38] sm:$0xff]   ;;  %v370_v29 = vld [vmem:[#allocation2] sm:$0xff] }
  0x4c   : > { %729 = vmatprep.subr.bf16.mxu0 %v940_v20  ;;  %v846_v28 = vld [vmem:[%s325_s29] sm:$0xff]   ;;  %v371_v31 = vld [vmem:[#allocation2 + $0x8] sm:$0xff]  ;;  %v712_v38 = vld [vmem:[%s362_s11] ss:$0 sm:$0xff] (!%p711_p5) }
  0x4f   : > { %730 = vmatpush3.bf16.msra.mxu0 %v839_v21 }
  0x50   : > { %731 = vmatprep.subr.bf16.mxu0 %v940_v20 }
  0x53   : > { %732 = vmatpush3.bf16.msra.mxu0 %v840_v22 }
  0x54   : > { %733 = vmatprep.subr.bf16.mxu0 %v940_v20 }
  0x57   : > { %734 = vmatpush3.bf16.msra.mxu0 %v841_v23 }
  0x58   : > { %735 = vmatprep.subr.bf16.mxu0 %v940_v20 }
  0x5b   : > { %736 = vmatpush3.bf16.msra.mxu0 %v842_v24 }
  0x5c   : > { %737 = vmatprep.subr.bf16.mxu0 %v940_v20 }
  0x5f   : > { %738 = vmatpush3.bf16.msra.mxu0 %v843_v25 }
  0x60   : > { %739 = vmatprep.subr.bf16.mxu0 %v940_v20 }
  0x63   : > { %740 = vmatpush3.bf16.msra.mxu0 %v844_v26 }
  0x64   : > { %741 = vmatprep.subr.bf16.mxu0 %v940_v20 }
  0x67   : > { %742 = vmatpush3.bf16.msra.mxu0 %v845_v27 }
  0x6a   : > { %744 = vmatmul.mubr.bf16.vlgmr.msra.gmra.mrb[0].mxu0 %v846_v28 }
 0x13c   : > { %492 = sbr.rel (%p711_p5) target bundleno = 380 (0x17c), region = 122 }
 0x13d   : > { %v478_v30 = vpop.f32.mrb[0].mxu0 }
 0x13e   : > { %v485_v32 = vadd.f32 %v478_v30, %v370_v29  ;;  %v745_v33 = vpop.f32.mrb[1].mxu0 }
 0x13f   : > { %v481_v34 = vpop.f32.mrb[2].mxu0 }
 0x140   : > { %487 = vst [vmem:[#allocation2] sm:$0xff] %v485_v32  ;;  %v486_v35 = vadd.f32 %v481_v34, %v371_v31  ;;  %v746_v36 = vpop.f32.mrb[3].mxu0 }
 0x142   : > { %488 = vst [vmem:[#allocation2 + $0x8] sm:$0xff] %v486_v35 }
 0x147   : > { %v493_v37 = vld [vmem:[#allocation2] sm:$0xff] }
 0x148   : > { %v502_v40 = vadd.f32 %v712_v38, %v493_v37 }
 0x149   : > { %v494_v39 = vld [vmem:[#allocation2 + $0x8] sm:$0xff] }
 0x14a   : > { %v503_v41 = vadd.f32 %v712_v38, %v494_v39  ;;  %v504_v42 = vrot.slane %v502_v40, 4 }
 0x14c   : > { %v524_v43 = vrot.slane %v503_v41, 4  ;;  %v505_v44 = vadd.f32 %v504_v42, %v502_v40 }
 0x14e   : > { %v525_v45 = vadd.f32 %v524_v43, %v503_v41  ;;  %v506_v46 = vrot.slane %v505_v44, 2 }
 0x150   : > { %v526_v47 = vrot.slane %v525_v45, 2  ;;  %v507_v48 = vadd.f32 %v506_v46, %v505_v44 }
 0x152   : > { %v527_v49 = vadd.f32 %v526_v47, %v525_v45  ;;  %v508_v50 = vrot.slane %v507_v48, 1 }
 0x154   : > { %v528_v51 = vrot.slane %v527_v49, 1  ;;  %v509_v52 = vadd.f32 %v508_v50, %v507_v48 }
 0x156   : > { %v529_v53 = vadd.f32 %v528_v51, %v527_v49  ;;  %v511_v54 = vmul.f32 0.125, %v509_v52 }
 0x158   : > { %v530_v55 = vmul.f32 0.125, %v529_v53  ;;  %v512_v56 = vsub.f32 %v502_v40, %v511_v54 }
 0x15a   : > { %v531_v57 = vsub.f32 %v503_v41, %v530_v55  ;;  %v513_v58 = vmul.f32 %v512_v56, %v512_v56 }
 0x15c   : > { %v532_v59 = vmul.f32 %v531_v57, %v531_v57  ;;  %v514_v60 = vrot.slane %v513_v58, 4 }
 0x15e   : > { %v533_v61 = vrot.slane %v532_v59, 4  ;;  %v515_v62 = vadd.f32 %v514_v60, %v513_v58 }
 0x160   : > { %v534_v63 = vadd.f32 %v533_v61, %v532_v59  ;;  %v516_v0 = vrot.slane %v515_v62, 2 }
 0x162   : > { %v535_v1 = vrot.slane %v534_v63, 2  ;;  %v517_v2 = vadd.f32 %v516_v0, %v515_v62 }
 0x164   : > { %v536_v3 = vadd.f32 %v535_v1, %v534_v63  ;;  %v518_v4 = vrot.slane %v517_v2, 1 }
 0x166   : > { %v537_v5 = vrot.slane %v536_v3, 1  ;;  %v519_v6 = vadd.f32 %v518_v4, %v517_v2 }
 0x168   : > { %v538_v7 = vadd.f32 %v537_v5, %v536_v3  ;;  %v520_v8 = vmul.f32 0.125, %v519_v6 }
 0x16a   : > { %v539_v9 = vmul.f32 0.125, %v538_v7  ;;  %v521_v10 = vadd.f32 1e-05, %v520_v8 }
 0x16c   : > { %v540_v11 = vadd.f32 1e-05, %v539_v9  ;;  %847 = vrsqrt.f32 %v521_v10 }
 0x16e   : > { %849 = vrsqrt.f32 %v540_v11 }
 0x176   : > { %v848_v12 = vpop.eup %847 }
 0x177   : > { %v523_v14 = vmul.f32 %v848_v12, %v512_v56 }
 0x178   : > { %v850_v13 = vpop.eup %849 }
 0x179   : > { %v542_v15 = vmul.f32 %v850_v13, %v531_v57  ;;  %543 = vst [vmem:[%s1112_s6] sm:$0xff] %v523_v14 }
 0x17b   : > { %544 = vst [vmem:[%s1112_s6 + $0x8] sm:$0xff] %v542_v15 }
 0x17c PF: > { %551 = sbr.rel (!%p1056_p12) target bundleno = 388 (0x184), region = 126  ;;  %s714_s16 = sshll.u32 (%p1056_p12), %s925_s19, 3 }
 0x17d   : > { %s553_s25 = scalar_lea.vmem (%p1056_p12), %s1177_s3, %s714_s16 }
 0x180   : > { %v583_v16 = vld [vmem:[%s1112_s6] sm:$0xff] (%p1056_p12) }
 0x181   : > { %584 = vst [vmem:[%s553_s25] sm:$0xff] (%p1056_p12), %v583_v16 }
 0x182   : > { %v585_v17 = vld [vmem:[%s1112_s6 + $0x8] sm:$0xff] (%p1056_p12) }
 0x183   : > { %586 = vst [vmem:[%s553_s25 + $0x10] sm:$0xff] %v585_v17 }
 0x184 PF: > { %s13_s22 = sadd.s32 1, %s937_s22   ;;  %s1186_s10 = sld [smem:[#allocation8_spill]] }
 0x185   : > { %p10_p6 = scmp.ge.s32.totalorder %s13_s22, 6   ;;  %s1187_s30 = sld [smem:[#allocation6_spill]] }
 0x186   : > { %s1188_s27 = sld [smem:[#allocation7_spill]]  ;;  %s1189_s12 = smov %s901_s13 }
 0x187   : > { %s1190_s13 = smov %s1054_s9  ;;  %s1191_s14 = smov %s909_s15 }
 0x188   : > { %s1192_s15 = smov %s1051_s8  ;;  %s1193_s16 = smov %s917_s17 }
 0x189   : > { %s1195_s18 = smov %s929_s20  ;;  %s1196_s19 = smov %s933_s21 }
 0x18a   : > { %s1194_s17 = smov %s1186_s10  ;;  %12 = sbr.rel (!%p10_p6) target bundleno = 6 (0x6), region = 206 }
 0x18b   : > { %s1197_s20 = smov %s1187_s30 }
 0x18c   : > { %s1198_s21 = smov %s1188_s27 }

</bundles_post_ra>
